<compile_context>
chip_gen: v5e
topology: v5e:2x2
jax: 0.10.0
libtpu: 0.0.40
codegen_flags: <defaults>
</compile_context>

<pallas_src>
import functools

import jax
import jax.numpy as jnp
from jax import lax
from jax.experimental import pallas as pl
from jax.experimental.pallas import tpu as pltpu

# ---- synthetic SHINEConfig ------------------------------------------------
MAX_LEVEL = 3                   # config.tree_level_world
FEATURED_LEVEL_NUM = 2          # config.tree_level_feat
FREE_LEVEL_NUM = MAX_LEVEL - FEATURED_LEVEL_NUM + 1
FEATURE_DIM = 8                 # config.feature_dim
FEATURE_STD = 0.01              # config.feature_std
POLY_INT_ON = True              # config.poly_int_on

TN = 512                        # points per grid step (lane axis tile)
SUB = 128                       # points per inner sub-block (one lane width)
TC = 128                        # table-row chunk (MXU-native contraction K)


# ---- Pallas kernel ---------------------------------------------------------
def _query_feature_kernel(ranges_ref, coord_ref, idx_ref, table_ref, out_ref,
                          *, level_values, poly):
    # ranges_ref : (grid * L * 2,) i32 in SMEM (scalar prefetch)
    #              flat [block i, level l] -> chunk-id range [start, end)
    # coord_ref  : (3, TN)    f32  (points along lanes)
    # idx_ref    : (L, 8, TN) i32  (global rows of the concatenated table;
    #                               -1 == unobserved node -> zero contribution)
    # table_ref  : (C, F, TC) f32  (table split into 128-row chunks)
    # out_ref    : (F, TN)    f32
    tn = coord_ref.shape[1]
    feat_dim = out_ref.shape[0]
    num_levels = idx_ref.shape[0]
    i = pl.program_id(0)

    # chunk-local row iota along sublanes (hoisted; 16 vregs, reused everywhere)
    col = lax.broadcasted_iota(jnp.int32, (TC, SUB), 0)

    # corner bit patterns (z fastest; matches p0..p7 ordering in interpolate())
    kbits = lax.broadcasted_iota(jnp.int32, (8, tn), 0)
    bx = (kbits >> 2) & 1
    by = (kbits >> 1) & 1
    bz = kbits & 1

    # interpolation weights for the whole (8, TN) block, once per level
    scaled = coord_ref[...] * 0.5 + 0.5                       # (3, TN)
    p_levels = []
    for l in range(num_levels):
        c = scaled * (2.0 ** level_values[l])
        d = c - jnp.floor(c)                                  # torch.frac
        if poly:
            t = 3.0 * d * d - 2.0 * d * d * d                 # smoothstep
        else:
            t = d
        tx = t[0:1, :]
        ty = t[1:2, :]
        tz = t[2:3, :]                                        # (1, TN)
        p_l = (jnp.where(bx == 1, tx, 1.0 - tx)
               * jnp.where(by == 1, ty, 1.0 - ty)
               * jnp.where(bz == 1, tz, 1.0 - tz))            # (8, TN)
        p_levels.append(p_l)

    for sb in range(tn // SUB):
        s0 = sb * SUB
        acc = jnp.zeros((feat_dim, SUB), jnp.float32)         # one vreg (F=8)

        for l in range(num_levels):
            idx_l = idx_ref[l, :, s0:s0 + SUB]                # (8, SUB) i32
            p_l = p_levels[l][:, s0:s0 + SUB]                 # (8, SUB) f32
            roff = i * (num_levels * 2) + l * 2
            c_start = ranges_ref[roff]
            c_end = ranges_ref[roff + 1]

            def chunk_body(ci, acc, idx_l=idx_l, p_l=p_l):
                tab = table_ref[ci]                           # (F, TC)
                ish = idx_l - ci * TC                         # chunk-local rows
                # Unweighted 0/1 one-hot per corner, accumulating MXU dots;
                # weight applied as a post-matmul (1, SUB) scale.  Index -1 /
                # out-of-chunk rows match nothing -> zero (same as the zeroed
                # last row selected by -1 in the PyTorch module).
                for k in range(8):
                    oh = jnp.where(ish[k:k + 1, :] == col, 1.0, 0.0)  # (TC,SUB)
                    part = jnp.dot(tab, oh,
                                   preferred_element_type=jnp.float32)
                    acc = acc + p_l[k:k + 1, :] * part
                return acc

            acc = lax.fori_loop(c_start, c_end, chunk_body, acc)

        out_ref[:, s0:s0 + SUB] = acc.astype(out_ref.dtype)   # lane-dense store


def query_feature_pallas(coord, indices_t, table, level_values):
    """coord (N,3) f32, indices_t (L,8,N) i32, table (T_total, F) f32."""
    n = coord.shape[0]
    L = indices_t.shape[0]
    t_total, feat = table.shape
    assert n % TN == 0 and TN % SUB == 0 and t_total % TC == 0
    num_chunks = t_total // TC

    # --- sort points by finest-level corner-0 row id (Morton-chunk order) so
    #     every grid block touches a narrow contiguous range of table chunks.
    key0 = indices_t[0, 0, :]
    key = jnp.where(key0 >= 0, key0, jnp.iinfo(jnp.int32).max)
    perm = jnp.argsort(key)
    inv_perm = jnp.argsort(perm)
    coord_s = jnp.take(coord, perm, axis=0)                   # (N, 3)
    idx_s = jnp.take(indices_t, perm, axis=2)                 # (L, 8, N)

    # --- per-block, per-level chunk ranges (scalar-prefetched into SMEM)
    g = n // TN
    idx_r = idx_s.reshape(L, 8, g, TN)
    valid = idx_r >= 0
    lo = jnp.min(jnp.where(valid, idx_r, jnp.int32(2 ** 30)), axis=(1, 3))
    hi = jnp.max(jnp.where(valid, idx_r, jnp.int32(-1)), axis=(1, 3))
    any_valid = hi >= 0
    start = jnp.where(any_valid, lo // TC, 0)                 # (L, g)
    end = jnp.where(any_valid, hi // TC + 1, 0)               # (L, g)
    ranges = jnp.stack([start, end], axis=-1)                 # (L, g, 2)
    ranges = jnp.transpose(ranges, (1, 0, 2)).reshape(-1).astype(jnp.int32)

    # table as (num_chunks, F, TC): dynamic leading-dim chunk select in-kernel
    table_c = jnp.transpose(table.reshape(num_chunks, TC, feat), (0, 2, 1))

    kernel = functools.partial(_query_feature_kernel,
                               level_values=tuple(level_values),
                               poly=POLY_INT_ON)

    out_t = pl.pallas_call(
        kernel,
        out_shape=jax.ShapeDtypeStruct((feat, n), jnp.float32),
        grid_spec=pltpu.PrefetchScalarGridSpec(
            num_scalar_prefetch=1,
            grid=(g,),
            in_specs=[
                pl.BlockSpec((3, TN), lambda i, r: (0, i)),
                pl.BlockSpec((L, 8, TN), lambda i, r: (0, 0, i)),
                pl.BlockSpec((num_chunks, feat, TC), lambda i, r: (0, 0, 0)),
            ],
            out_specs=pl.BlockSpec((feat, TN), lambda i, r: (0, i)),
        ),
        compiler_params=pltpu.CompilerParams(
            dimension_semantics=("parallel",)),
    )(ranges, coord_s.T, idx_s, table_c)

    out_s = out_t.T                                           # (N, F) sorted
    return jnp.take(out_s, inv_perm, axis=0)                  # original order


# ---- host-side glue: synthetic octree structure ----------------------------
def build_tables(key):
    """hierarchical_items: one table per featured level, feature_std * randn,
    last row zeroed (set_zero); each level padded to a multiple of TC and
    concatenated row-wise (so no 128-row chunk straddles two levels)."""
    tables = []
    offsets = []
    off = 0
    for l in range(FEATURED_LEVEL_NUM):
        level = MAX_LEVEL - l
        sz = (2 ** level + 1) ** 3 + 1
        padded = ((sz + TC - 1) // TC) * TC
        key, sub = jax.random.split(key)
        t = FEATURE_STD * jax.random.normal(sub, (sz, FEATURE_DIM), jnp.float32)
        t = t.at[-1].set(0.0)                                 # set_zero()
        t = jnp.pad(t, ((0, padded - sz), (0, 0)))
        tables.append(t)
        offsets.append(off)
        off += padded
    return jnp.concatenate(tables, axis=0), offsets           # (T_total, F)


# TODO(synk): Morton-code quantization + Python-dict node/corner lookup tables
# (kaolin spc ops) have no Pallas equivalent; replicated here for a fully
# populated octree with dense corner enumeration (this is `get_indices`).
def build_indices(coord, offsets):
    idx_levels = []
    for l in range(FEATURED_LEVEL_NUM):
        level = MAX_LEVEL - l
        res = 2 ** level
        q = jnp.clip(jnp.floor(res * (coord * 0.5 + 0.5)), 0, res - 1)
        q = q.astype(jnp.int32)                               # quantize_points
        stride = res + 1
        corners = []
        for k in range(8):
            ox, oy, oz = (k >> 2) & 1, (k >> 1) & 1, k & 1
            idx = ((q[:, 0] + ox) * stride * stride
                   + (q[:, 1] + oy) * stride
                   + (q[:, 2] + oz))
            # -1 (unobserved node) would be kept as-is -> matches no chunk row.
            idx = jnp.where(idx >= 0, idx + offsets[l], -1)
            corners.append(idx)
        idx_levels.append(jnp.stack(corners, axis=0))         # (8, N)
    return jnp.stack(idx_levels, axis=0).astype(jnp.int32)    # (L, 8, N)


# ---- pure-JAX reference (query_feature_with_indices) ------------------------
def ref_query(coord, indices_t, table):
    n = coord.shape[0]
    acc = jnp.zeros((n, FEATURE_DIM), jnp.float32)
    for l in range(FEATURED_LEVEL_NUM):
        level = MAX_LEVEL - l
        c = (2.0 ** level) * (coord * 0.5 + 0.5)
        d = c - jnp.floor(c)
        t = 3.0 * d * d - 2.0 * d * d * d if POLY_INT_ON else d
        tx, ty, tz = t[:, 0], t[:, 1], t[:, 2]
        ps = []
        for k in range(8):
            ox, oy, oz = (k >> 2) & 1, (k >> 1) & 1, k & 1
            ps.append((tx if ox else 1 - tx)
                      * (ty if oy else 1 - ty)
                      * (tz if oz else 1 - tz))
        p = jnp.stack(ps, axis=1)                             # (N, 8)
        idx = indices_t[l].T                                  # (N, 8)
        feats = jnp.where(idx[..., None] >= 0, table[idx], 0.0)  # (N, 8, F)
        acc = acc + jnp.sum(feats * p[:, :, None], axis=1)
    return acc


if __name__ == "__main__":
    key = jax.random.PRNGKey(0)
    kc, kt = jax.random.split(key)

    N = 1024                                                  # grid = 2 (megacore)
    coord = jax.random.uniform(kc, (N, 3), jnp.float32,
                               minval=-0.99, maxval=0.99)
    table, offsets = build_tables(kt)                         # (896, 8)
    indices_t = build_indices(coord, offsets)                 # (2, 8, 1024)
    level_values = [MAX_LEVEL - l for l in range(FEATURED_LEVEL_NUM)]

    out = query_feature_pallas(coord, indices_t, table, level_values)
    out = jax.block_until_ready(out)

    ref = ref_query(coord, indices_t, table)
    assert out.shape == (N, FEATURE_DIM)
    err = float(jnp.max(jnp.abs(out - ref)))
    assert jnp.allclose(out, ref, atol=1e-4), err

    print("KERNEL_OK")
</pallas_src>

<mosaic_0001>
module attributes {stable_mosaic.version = 11 : i64} {
  func.func @_query_feature_kernel(%arg0: i32, %arg1: memref<8xi32, #tpu.memory_space<smem>>, %arg2: memref<3x512xf32, #tpu.memory_space<vmem>>, %arg3: memref<2x8x512xi32, #tpu.memory_space<vmem>>, %arg4: memref<7x8x128xf32, #tpu.memory_space<vmem>>, %arg5: memref<8x512xf32, #tpu.memory_space<vmem>>) attributes {dimension_semantics = [#tpu.dimension_semantics<parallel>], iteration_bounds = array<i64: 2>, scalar_prefetch = 1 : i64, scratch_operands = 0 : i64, tpu.core_type = #tpu.core_type<tc>, window_params = [{transform_indices = @transform_0, window_bounds = array<i64: 3, 512>}, {transform_indices = @transform_1, window_bounds = array<i64: 2, 8, 512>}, {pipeline_mode = #tpu.pipeline_mode<synchronous>, transform_indices = @transform_2, window_bounds = array<i64: 7, 8, 128>}, {transform_indices = @transform_3, window_bounds = array<i64: 8, 512>}]} {
    %0 = tpu.iota {dimensions = array<i32: 0>} : vector<128x128xi32>
    %1 = tpu.iota {dimensions = array<i32: 0>} : vector<8x512xi32>
    %c2_i32 = arith.constant 2 : i32
    %2 = vector.broadcast %c2_i32 : i32 to vector<8x512xi32>
    %3 = arith.shrsi %1, %2 : vector<8x512xi32>
    %c1_i32 = arith.constant 1 : i32
    %4 = vector.broadcast %c1_i32 : i32 to vector<8x512xi32>
    %5 = arith.andi %3, %4 : vector<8x512xi32>
    %c1_i32_0 = arith.constant 1 : i32
    %6 = vector.broadcast %c1_i32_0 : i32 to vector<8x512xi32>
    %7 = arith.shrsi %1, %6 : vector<8x512xi32>
    %c1_i32_1 = arith.constant 1 : i32
    %8 = vector.broadcast %c1_i32_1 : i32 to vector<8x512xi32>
    %9 = arith.andi %7, %8 : vector<8x512xi32>
    %c1_i32_2 = arith.constant 1 : i32
    %10 = vector.broadcast %c1_i32_2 : i32 to vector<8x512xi32>
    %11 = arith.andi %1, %10 : vector<8x512xi32>
    %c0 = arith.constant 0 : index
    %c0_3 = arith.constant 0 : index
    %12 = vector.load %arg2[%c0, %c0_3] : memref<3x512xf32, #tpu.memory_space<vmem>>, vector<3x512xf32>
    %cst = arith.constant 5.000000e-01 : f32
    %13 = vector.broadcast %cst : f32 to vector<3x512xf32>
    %14 = arith.mulf %12, %13 : vector<3x512xf32>
    %cst_4 = arith.constant 5.000000e-01 : f32
    %15 = vector.broadcast %cst_4 : f32 to vector<3x512xf32>
    %16 = arith.addf %14, %15 : vector<3x512xf32>
    %cst_5 = arith.constant 8.000000e+00 : f32
    %17 = vector.broadcast %cst_5 : f32 to vector<3x512xf32>
    %18 = arith.mulf %16, %17 : vector<3x512xf32>
    %19 = math.floor %18 : vector<3x512xf32>
    %20 = arith.subf %18, %19 : vector<3x512xf32>
    %cst_6 = arith.constant 3.000000e+00 : f32
    %21 = vector.broadcast %cst_6 : f32 to vector<3x512xf32>
    %22 = arith.mulf %21, %20 : vector<3x512xf32>
    %23 = arith.mulf %22, %20 : vector<3x512xf32>
    %cst_7 = arith.constant 2.000000e+00 : f32
    %24 = vector.broadcast %cst_7 : f32 to vector<3x512xf32>
    %25 = arith.mulf %24, %20 : vector<3x512xf32>
    %26 = arith.mulf %25, %20 : vector<3x512xf32>
    %27 = arith.mulf %26, %20 : vector<3x512xf32>
    %28 = arith.subf %23, %27 : vector<3x512xf32>
    %29 = vector.extract_strided_slice %28 {offsets = [0, 0], sizes = [1, 512], strides = [1, 1]} : vector<3x512xf32> to vector<1x512xf32>
    %30 = vector.extract_strided_slice %28 {offsets = [1, 0], sizes = [1, 512], strides = [1, 1]} : vector<3x512xf32> to vector<1x512xf32>
    %31 = vector.extract_strided_slice %28 {offsets = [2, 0], sizes = [1, 512], strides = [1, 1]} : vector<3x512xf32> to vector<1x512xf32>
    %c1_i32_8 = arith.constant 1 : i32
    %32 = vector.broadcast %c1_i32_8 : i32 to vector<8x512xi32>
    %33 = arith.cmpi eq, %5, %32 : vector<8x512xi32>
    %cst_9 = arith.constant 1.000000e+00 : f32
    %34 = vector.broadcast %cst_9 : f32 to vector<1x512xf32>
    %35 = arith.subf %34, %29 : vector<1x512xf32>
    %36 = vector.shape_cast %29 : vector<1x512xf32> to vector<1x512xf32>
    %37 = vector.broadcast %36 : vector<1x512xf32> to vector<8x512xf32>
    %38 = vector.shape_cast %35 : vector<1x512xf32> to vector<1x512xf32>
    %39 = vector.broadcast %38 : vector<1x512xf32> to vector<8x512xf32>
    %40 = arith.select %33, %37, %39 : vector<8x512xi1>, vector<8x512xf32>
    %c1_i32_10 = arith.constant 1 : i32
    %41 = vector.broadcast %c1_i32_10 : i32 to vector<8x512xi32>
    %42 = arith.cmpi eq, %9, %41 : vector<8x512xi32>
    %cst_11 = arith.constant 1.000000e+00 : f32
    %43 = vector.broadcast %cst_11 : f32 to vector<1x512xf32>
    %44 = arith.subf %43, %30 : vector<1x512xf32>
    %45 = vector.shape_cast %30 : vector<1x512xf32> to vector<1x512xf32>
    %46 = vector.broadcast %45 : vector<1x512xf32> to vector<8x512xf32>
    %47 = vector.shape_cast %44 : vector<1x512xf32> to vector<1x512xf32>
    %48 = vector.broadcast %47 : vector<1x512xf32> to vector<8x512xf32>
    %49 = arith.select %42, %46, %48 : vector<8x512xi1>, vector<8x512xf32>
    %50 = arith.mulf %40, %49 : vector<8x512xf32>
    %c1_i32_12 = arith.constant 1 : i32
    %51 = vector.broadcast %c1_i32_12 : i32 to vector<8x512xi32>
    %52 = arith.cmpi eq, %11, %51 : vector<8x512xi32>
    %cst_13 = arith.constant 1.000000e+00 : f32
    %53 = vector.broadcast %cst_13 : f32 to vector<1x512xf32>
    %54 = arith.subf %53, %31 : vector<1x512xf32>
    %55 = vector.shape_cast %31 : vector<1x512xf32> to vector<1x512xf32>
    %56 = vector.broadcast %55 : vector<1x512xf32> to vector<8x512xf32>
    %57 = vector.shape_cast %54 : vector<1x512xf32> to vector<1x512xf32>
    %58 = vector.broadcast %57 : vector<1x512xf32> to vector<8x512xf32>
    %59 = arith.select %52, %56, %58 : vector<8x512xi1>, vector<8x512xf32>
    %60 = arith.mulf %50, %59 : vector<8x512xf32>
    %cst_14 = arith.constant 4.000000e+00 : f32
    %61 = vector.broadcast %cst_14 : f32 to vector<3x512xf32>
    %62 = arith.mulf %16, %61 : vector<3x512xf32>
    %63 = math.floor %62 : vector<3x512xf32>
    %64 = arith.subf %62, %63 : vector<3x512xf32>
    %cst_15 = arith.constant 3.000000e+00 : f32
    %65 = vector.broadcast %cst_15 : f32 to vector<3x512xf32>
    %66 = arith.mulf %65, %64 : vector<3x512xf32>
    %67 = arith.mulf %66, %64 : vector<3x512xf32>
    %cst_16 = arith.constant 2.000000e+00 : f32
    %68 = vector.broadcast %cst_16 : f32 to vector<3x512xf32>
    %69 = arith.mulf %68, %64 : vector<3x512xf32>
    %70 = arith.mulf %69, %64 : vector<3x512xf32>
    %71 = arith.mulf %70, %64 : vector<3x512xf32>
    %72 = arith.subf %67, %71 : vector<3x512xf32>
    %73 = vector.extract_strided_slice %72 {offsets = [0, 0], sizes = [1, 512], strides = [1, 1]} : vector<3x512xf32> to vector<1x512xf32>
    %74 = vector.extract_strided_slice %72 {offsets = [1, 0], sizes = [1, 512], strides = [1, 1]} : vector<3x512xf32> to vector<1x512xf32>
    %75 = vector.extract_strided_slice %72 {offsets = [2, 0], sizes = [1, 512], strides = [1, 1]} : vector<3x512xf32> to vector<1x512xf32>
    %c1_i32_17 = arith.constant 1 : i32
    %76 = vector.broadcast %c1_i32_17 : i32 to vector<8x512xi32>
    %77 = arith.cmpi eq, %5, %76 : vector<8x512xi32>
    %cst_18 = arith.constant 1.000000e+00 : f32
    %78 = vector.broadcast %cst_18 : f32 to vector<1x512xf32>
    %79 = arith.subf %78, %73 : vector<1x512xf32>
    %80 = vector.shape_cast %73 : vector<1x512xf32> to vector<1x512xf32>
    %81 = vector.broadcast %80 : vector<1x512xf32> to vector<8x512xf32>
    %82 = vector.shape_cast %79 : vector<1x512xf32> to vector<1x512xf32>
    %83 = vector.broadcast %82 : vector<1x512xf32> to vector<8x512xf32>
    %84 = arith.select %77, %81, %83 : vector<8x512xi1>, vector<8x512xf32>
    %c1_i32_19 = arith.constant 1 : i32
    %85 = vector.broadcast %c1_i32_19 : i32 to vector<8x512xi32>
    %86 = arith.cmpi eq, %9, %85 : vector<8x512xi32>
    %cst_20 = arith.constant 1.000000e+00 : f32
    %87 = vector.broadcast %cst_20 : f32 to vector<1x512xf32>
    %88 = arith.subf %87, %74 : vector<1x512xf32>
    %89 = vector.shape_cast %74 : vector<1x512xf32> to vector<1x512xf32>
    %90 = vector.broadcast %89 : vector<1x512xf32> to vector<8x512xf32>
    %91 = vector.shape_cast %88 : vector<1x512xf32> to vector<1x512xf32>
    %92 = vector.broadcast %91 : vector<1x512xf32> to vector<8x512xf32>
    %93 = arith.select %86, %90, %92 : vector<8x512xi1>, vector<8x512xf32>
    %94 = arith.mulf %84, %93 : vector<8x512xf32>
    %c1_i32_21 = arith.constant 1 : i32
    %95 = vector.broadcast %c1_i32_21 : i32 to vector<8x512xi32>
    %96 = arith.cmpi eq, %11, %95 : vector<8x512xi32>
    %cst_22 = arith.constant 1.000000e+00 : f32
    %97 = vector.broadcast %cst_22 : f32 to vector<1x512xf32>
    %98 = arith.subf %97, %75 : vector<1x512xf32>
    %99 = vector.shape_cast %75 : vector<1x512xf32> to vector<1x512xf32>
    %100 = vector.broadcast %99 : vector<1x512xf32> to vector<8x512xf32>
    %101 = vector.shape_cast %98 : vector<1x512xf32> to vector<1x512xf32>
    %102 = vector.broadcast %101 : vector<1x512xf32> to vector<8x512xf32>
    %103 = arith.select %96, %100, %102 : vector<8x512xi1>, vector<8x512xf32>
    %104 = arith.mulf %94, %103 : vector<8x512xf32>
    %cst_23 = arith.constant 0.000000e+00 : f32
    %105 = vector.broadcast %cst_23 : f32 to vector<8x128xf32>
    %c0_24 = arith.constant 0 : index
    %c0_25 = arith.constant 0 : index
    %c0_26 = arith.constant 0 : index
    %106 = vector.load %arg3[%c0_24, %c0_25, %c0_26] : memref<2x8x512xi32, #tpu.memory_space<vmem>>, vector<1x8x128xi32>
    %107 = vector.shape_cast %106 : vector<1x8x128xi32> to vector<8x128xi32>
    %108 = vector.extract_strided_slice %60 {offsets = [0, 0], sizes = [8, 128], strides = [1, 1]} : vector<8x512xf32> to vector<8x128xf32>
    %c4_i32 = arith.constant 4 : i32
    %109 = arith.muli %arg0, %c4_i32 : i32
    %c0_i32 = arith.constant 0 : i32
    %110 = arith.addi %109, %c0_i32 : i32
    %111 = arith.index_cast %110 : i32 to index
    %112 = memref.load %arg1[%111] : memref<8xi32, #tpu.memory_space<smem>>
    %c1_i32_27 = arith.constant 1 : i32
    %113 = arith.addi %110, %c1_i32_27 : i32
    %114 = arith.index_cast %113 : i32 to index
    %115 = memref.load %arg1[%114] : memref<8xi32, #tpu.memory_space<smem>>
    %116 = arith.subi %115, %112 : i32
    %117 = arith.addi %112, %116 : i32
    %c1_i32_28 = arith.constant 1 : i32
    %118 = scf.for %arg6 = %112 to %117 step %c1_i32_28 iter_args(%arg7 = %105) -> (vector<8x128xf32>)  : i32 {
      %217 = arith.index_cast %arg6 : i32 to index
      %c0_85 = arith.constant 0 : index
      %c0_86 = arith.constant 0 : index
      %218 = vector.load %arg4[%217, %c0_85, %c0_86] : memref<7x8x128xf32, #tpu.memory_space<vmem>>, vector<1x8x128xf32>
      %219 = vector.shape_cast %218 : vector<1x8x128xf32> to vector<8x128xf32>
      %c128_i32 = arith.constant 128 : i32
      %220 = arith.muli %arg6, %c128_i32 : i32
      %221 = vector.broadcast %220 : i32 to vector<8x128xi32>
      %222 = arith.subi %107, %221 : vector<8x128xi32>
      %223 = vector.extract_strided_slice %222 {offsets = [0, 0], sizes = [1, 128], strides = [1, 1]} : vector<8x128xi32> to vector<1x128xi32>
      %224 = vector.broadcast %223 : vector<1x128xi32> to vector<128x128xi32>
      %225 = arith.cmpi eq, %224, %0 : vector<128x128xi32>
      %cst_87 = arith.constant 1.000000e+00 : f32
      %cst_88 = arith.constant 0.000000e+00 : f32
      %226 = vector.broadcast %cst_87 : f32 to vector<128x128xf32>
      %227 = vector.broadcast %cst_88 : f32 to vector<128x128xf32>
      %228 = arith.select %225, %226, %227 : vector<128x128xi1>, vector<128x128xf32>
      %cst_89 = arith.constant dense<0.000000e+00> : vector<8x128xf32>
      %229 = tpu.matmul %219, %228, %cst_89 {dimension_numbers = #tpu.dot_dimension_numbers<[1], [0], [0], [1], [0, 0, 1, 1], [], []>} : vector<8x128xf32>, vector<128x128xf32>, vector<8x128xf32> -> vector<8x128xf32>
      %230 = vector.extract_strided_slice %108 {offsets = [0, 0], sizes = [1, 128], strides = [1, 1]} : vector<8x128xf32> to vector<1x128xf32>
      %231 = vector.broadcast %230 : vector<1x128xf32> to vector<8x128xf32>
      %232 = arith.mulf %231, %229 : vector<8x128xf32>
      %233 = arith.addf %arg7, %232 : vector<8x128xf32>
      %234 = vector.extract_strided_slice %222 {offsets = [1, 0], sizes = [1, 128], strides = [1, 1]} : vector<8x128xi32> to vector<1x128xi32>
      %235 = vector.broadcast %234 : vector<1x128xi32> to vector<128x128xi32>
      %236 = arith.cmpi eq, %235, %0 : vector<128x128xi32>
      %cst_90 = arith.constant 1.000000e+00 : f32
      %cst_91 = arith.constant 0.000000e+00 : f32
      %237 = vector.broadcast %cst_90 : f32 to vector<128x128xf32>
      %238 = vector.broadcast %cst_91 : f32 to vector<128x128xf32>
      %239 = arith.select %236, %237, %238 : vector<128x128xi1>, vector<128x128xf32>
      %cst_92 = arith.constant dense<0.000000e+00> : vector<8x128xf32>
      %240 = tpu.matmul %219, %239, %cst_92 {dimension_numbers = #tpu.dot_dimension_numbers<[1], [0], [0], [1], [0, 0, 1, 1], [], []>} : vector<8x128xf32>, vector<128x128xf32>, vector<8x128xf32> -> vector<8x128xf32>
      %241 = vector.extract_strided_slice %108 {offsets = [1, 0], sizes = [1, 128], strides = [1, 1]} : vector<8x128xf32> to vector<1x128xf32>
      %242 = vector.broadcast %241 : vector<1x128xf32> to vector<8x128xf32>
      %243 = arith.mulf %242, %240 : vector<8x128xf32>
      %244 = arith.addf %233, %243 : vector<8x128xf32>
      %245 = vector.extract_strided_slice %222 {offsets = [2, 0], sizes = [1, 128], strides = [1, 1]} : vector<8x128xi32> to vector<1x128xi32>
      %246 = vector.broadcast %245 : vector<1x128xi32> to vector<128x128xi32>
      %247 = arith.cmpi eq, %246, %0 : vector<128x128xi32>
      %cst_93 = arith.constant 1.000000e+00 : f32
      %cst_94 = arith.constant 0.000000e+00 : f32
      %248 = vector.broadcast %cst_93 : f32 to vector<128x128xf32>
      %249 = vector.broadcast %cst_94 : f32 to vector<128x128xf32>
      %250 = arith.select %247, %248, %249 : vector<128x128xi1>, vector<128x128xf32>
      %cst_95 = arith.constant dense<0.000000e+00> : vector<8x128xf32>
      %251 = tpu.matmul %219, %250, %cst_95 {dimension_numbers = #tpu.dot_dimension_numbers<[1], [0], [0], [1], [0, 0, 1, 1], [], []>} : vector<8x128xf32>, vector<128x128xf32>, vector<8x128xf32> -> vector<8x128xf32>
      %252 = vector.extract_strided_slice %108 {offsets = [2, 0], sizes = [1, 128], strides = [1, 1]} : vector<8x128xf32> to vector<1x128xf32>
      %253 = vector.broadcast %252 : vector<1x128xf32> to vector<8x128xf32>
      %254 = arith.mulf %253, %251 : vector<8x128xf32>
      %255 = arith.addf %244, %254 : vector<8x128xf32>
      %256 = vector.extract_strided_slice %222 {offsets = [3, 0], sizes = [1, 128], strides = [1, 1]} : vector<8x128xi32> to vector<1x128xi32>
      %257 = vector.broadcast %256 : vector<1x128xi32> to vector<128x128xi32>
      %258 = arith.cmpi eq, %257, %0 : vector<128x128xi32>
      %cst_96 = arith.constant 1.000000e+00 : f32
      %cst_97 = arith.constant 0.000000e+00 : f32
      %259 = vector.broadcast %cst_96 : f32 to vector<128x128xf32>
      %260 = vector.broadcast %cst_97 : f32 to vector<128x128xf32>
      %261 = arith.select %258, %259, %260 : vector<128x128xi1>, vector<128x128xf32>
      %cst_98 = arith.constant dense<0.000000e+00> : vector<8x128xf32>
      %262 = tpu.matmul %219, %261, %cst_98 {dimension_numbers = #tpu.dot_dimension_numbers<[1], [0], [0], [1], [0, 0, 1, 1], [], []>} : vector<8x128xf32>, vector<128x128xf32>, vector<8x128xf32> -> vector<8x128xf32>
      %263 = vector.extract_strided_slice %108 {offsets = [3, 0], sizes = [1, 128], strides = [1, 1]} : vector<8x128xf32> to vector<1x128xf32>
      %264 = vector.broadcast %263 : vector<1x128xf32> to vector<8x128xf32>
      %265 = arith.mulf %264, %262 : vector<8x128xf32>
      %266 = arith.addf %255, %265 : vector<8x128xf32>
      %267 = vector.extract_strided_slice %222 {offsets = [4, 0], sizes = [1, 128], strides = [1, 1]} : vector<8x128xi32> to vector<1x128xi32>
      %268 = vector.broadcast %267 : vector<1x128xi32> to vector<128x128xi32>
      %269 = arith.cmpi eq, %268, %0 : vector<128x128xi32>
      %cst_99 = arith.constant 1.000000e+00 : f32
      %cst_100 = arith.constant 0.000000e+00 : f32
      %270 = vector.broadcast %cst_99 : f32 to vector<128x128xf32>
      %271 = vector.broadcast %cst_100 : f32 to vector<128x128xf32>
      %272 = arith.select %269, %270, %271 : vector<128x128xi1>, vector<128x128xf32>
      %cst_101 = arith.constant dense<0.000000e+00> : vector<8x128xf32>
      %273 = tpu.matmul %219, %272, %cst_101 {dimension_numbers = #tpu.dot_dimension_numbers<[1], [0], [0], [1], [0, 0, 1, 1], [], []>} : vector<8x128xf32>, vector<128x128xf32>, vector<8x128xf32> -> vector<8x128xf32>
      %274 = vector.extract_strided_slice %108 {offsets = [4, 0], sizes = [1, 128], strides = [1, 1]} : vector<8x128xf32> to vector<1x128xf32>
      %275 = vector.broadcast %274 : vector<1x128xf32> to vector<8x128xf32>
      %276 = arith.mulf %275, %273 : vector<8x128xf32>
      %277 = arith.addf %266, %276 : vector<8x128xf32>
      %278 = vector.extract_strided_slice %222 {offsets = [5, 0], sizes = [1, 128], strides = [1, 1]} : vector<8x128xi32> to vector<1x128xi32>
      %279 = vector.broadcast %278 : vector<1x128xi32> to vector<128x128xi32>
      %280 = arith.cmpi eq, %279, %0 : vector<128x128xi32>
      %cst_102 = arith.constant 1.000000e+00 : f32
      %cst_103 = arith.constant 0.000000e+00 : f32
      %281 = vector.broadcast %cst_102 : f32 to vector<128x128xf32>
      %282 = vector.broadcast %cst_103 : f32 to vector<128x128xf32>
      %283 = arith.select %280, %281, %282 : vector<128x128xi1>, vector<128x128xf32>
      %cst_104 = arith.constant dense<0.000000e+00> : vector<8x128xf32>
      %284 = tpu.matmul %219, %283, %cst_104 {dimension_numbers = #tpu.dot_dimension_numbers<[1], [0], [0], [1], [0, 0, 1, 1], [], []>} : vector<8x128xf32>, vector<128x128xf32>, vector<8x128xf32> -> vector<8x128xf32>
      %285 = vector.extract_strided_slice %108 {offsets = [5, 0], sizes = [1, 128], strides = [1, 1]} : vector<8x128xf32> to vector<1x128xf32>
      %286 = vector.broadcast %285 : vector<1x128xf32> to vector<8x128xf32>
      %287 = arith.mulf %286, %284 : vector<8x128xf32>
      %288 = arith.addf %277, %287 : vector<8x128xf32>
      %289 = vector.extract_strided_slice %222 {offsets = [6, 0], sizes = [1, 128], strides = [1, 1]} : vector<8x128xi32> to vector<1x128xi32>
      %290 = vector.broadcast %289 : vector<1x128xi32> to vector<128x128xi32>
      %291 = arith.cmpi eq, %290, %0 : vector<128x128xi32>
      %cst_105 = arith.constant 1.000000e+00 : f32
      %cst_106 = arith.constant 0.000000e+00 : f32
      %292 = vector.broadcast %cst_105 : f32 to vector<128x128xf32>
      %293 = vector.broadcast %cst_106 : f32 to vector<128x128xf32>
      %294 = arith.select %291, %292, %293 : vector<128x128xi1>, vector<128x128xf32>
      %cst_107 = arith.constant dense<0.000000e+00> : vector<8x128xf32>
      %295 = tpu.matmul %219, %294, %cst_107 {dimension_numbers = #tpu.dot_dimension_numbers<[1], [0], [0], [1], [0, 0, 1, 1], [], []>} : vector<8x128xf32>, vector<128x128xf32>, vector<8x128xf32> -> vector<8x128xf32>
      %296 = vector.extract_strided_slice %108 {offsets = [6, 0], sizes = [1, 128], strides = [1, 1]} : vector<8x128xf32> to vector<1x128xf32>
      %297 = vector.broadcast %296 : vector<1x128xf32> to vector<8x128xf32>
      %298 = arith.mulf %297, %295 : vector<8x128xf32>
      %299 = arith.addf %288, %298 : vector<8x128xf32>
      %300 = vector.extract_strided_slice %222 {offsets = [7, 0], sizes = [1, 128], strides = [1, 1]} : vector<8x128xi32> to vector<1x128xi32>
      %301 = vector.broadcast %300 : vector<1x128xi32> to vector<128x128xi32>
      %302 = arith.cmpi eq, %301, %0 : vector<128x128xi32>
      %cst_108 = arith.constant 1.000000e+00 : f32
      %cst_109 = arith.constant 0.000000e+00 : f32
      %303 = vector.broadcast %cst_108 : f32 to vector<128x128xf32>
      %304 = vector.broadcast %cst_109 : f32 to vector<128x128xf32>
      %305 = arith.select %302, %303, %304 : vector<128x128xi1>, vector<128x128xf32>
      %cst_110 = arith.constant dense<0.000000e+00> : vector<8x128xf32>
      %306 = tpu.matmul %219, %305, %cst_110 {dimension_numbers = #tpu.dot_dimension_numbers<[1], [0], [0], [1], [0, 0, 1, 1], [], []>} : vector<8x128xf32>, vector<128x128xf32>, vector<8x128xf32> -> vector<8x128xf32>
      %307 = vector.extract_strided_slice %108 {offsets = [7, 0], sizes = [1, 128], strides = [1, 1]} : vector<8x128xf32> to vector<1x128xf32>
      %308 = vector.broadcast %307 : vector<1x128xf32> to vector<8x128xf32>
      %309 = arith.mulf %308, %306 : vector<8x128xf32>
      %310 = arith.addf %299, %309 : vector<8x128xf32>
      scf.yield %310 : vector<8x128xf32>
    }
    %c1 = arith.constant 1 : index
    %c0_29 = arith.constant 0 : index
    %c0_30 = arith.constant 0 : index
    %119 = vector.load %arg3[%c1, %c0_29, %c0_30] : memref<2x8x512xi32, #tpu.memory_space<vmem>>, vector<1x8x128xi32>
    %120 = vector.shape_cast %119 : vector<1x8x128xi32> to vector<8x128xi32>
    %121 = vector.extract_strided_slice %104 {offsets = [0, 0], sizes = [8, 128], strides = [1, 1]} : vector<8x512xf32> to vector<8x128xf32>
    %c4_i32_31 = arith.constant 4 : i32
    %122 = arith.muli %arg0, %c4_i32_31 : i32
    %c2_i32_32 = arith.constant 2 : i32
    %123 = arith.addi %122, %c2_i32_32 : i32
    %124 = arith.index_cast %123 : i32 to index
    %125 = memref.load %arg1[%124] : memref<8xi32, #tpu.memory_space<smem>>
    %c1_i32_33 = arith.constant 1 : i32
    %126 = arith.addi %123, %c1_i32_33 : i32
    %127 = arith.index_cast %126 : i32 to index
    %128 = memref.load %arg1[%127] : memref<8xi32, #tpu.memory_space<smem>>
    %129 = arith.subi %128, %125 : i32
    %130 = arith.addi %125, %129 : i32
    %c1_i32_34 = arith.constant 1 : i32
    %131 = scf.for %arg6 = %125 to %130 step %c1_i32_34 iter_args(%arg7 = %118) -> (vector<8x128xf32>)  : i32 {
      %217 = arith.index_cast %arg6 : i32 to index
      %c0_85 = arith.constant 0 : index
      %c0_86 = arith.constant 0 : index
      %218 = vector.load %arg4[%217, %c0_85, %c0_86] : memref<7x8x128xf32, #tpu.memory_space<vmem>>, vector<1x8x128xf32>
      %219 = vector.shape_cast %218 : vector<1x8x128xf32> to vector<8x128xf32>
      %c128_i32 = arith.constant 128 : i32
      %220 = arith.muli %arg6, %c128_i32 : i32
      %221 = vector.broadcast %220 : i32 to vector<8x128xi32>
      %222 = arith.subi %120, %221 : vector<8x128xi32>
      %223 = vector.extract_strided_slice %222 {offsets = [0, 0], sizes = [1, 128], strides = [1, 1]} : vector<8x128xi32> to vector<1x128xi32>
      %224 = vector.broadcast %223 : vector<1x128xi32> to vector<128x128xi32>
      %225 = arith.cmpi eq, %224, %0 : vector<128x128xi32>
      %cst_87 = arith.constant 1.000000e+00 : f32
      %cst_88 = arith.constant 0.000000e+00 : f32
      %226 = vector.broadcast %cst_87 : f32 to vector<128x128xf32>
      %227 = vector.broadcast %cst_88 : f32 to vector<128x128xf32>
      %228 = arith.select %225, %226, %227 : vector<128x128xi1>, vector<128x128xf32>
      %cst_89 = arith.constant dense<0.000000e+00> : vector<8x128xf32>
      %229 = tpu.matmul %219, %228, %cst_89 {dimension_numbers = #tpu.dot_dimension_numbers<[1], [0], [0], [1], [0, 0, 1, 1], [], []>} : vector<8x128xf32>, vector<128x128xf32>, vector<8x128xf32> -> vector<8x128xf32>
      %230 = vector.extract_strided_slice %121 {offsets = [0, 0], sizes = [1, 128], strides = [1, 1]} : vector<8x128xf32> to vector<1x128xf32>
      %231 = vector.broadcast %230 : vector<1x128xf32> to vector<8x128xf32>
      %232 = arith.mulf %231, %229 : vector<8x128xf32>
      %233 = arith.addf %arg7, %232 : vector<8x128xf32>
      %234 = vector.extract_strided_slice %222 {offsets = [1, 0], sizes = [1, 128], strides = [1, 1]} : vector<8x128xi32> to vector<1x128xi32>
      %235 = vector.broadcast %234 : vector<1x128xi32> to vector<128x128xi32>
      %236 = arith.cmpi eq, %235, %0 : vector<128x128xi32>
      %cst_90 = arith.constant 1.000000e+00 : f32
      %cst_91 = arith.constant 0.000000e+00 : f32
      %237 = vector.broadcast %cst_90 : f32 to vector<128x128xf32>
      %238 = vector.broadcast %cst_91 : f32 to vector<128x128xf32>
      %239 = arith.select %236, %237, %238 : vector<128x128xi1>, vector<128x128xf32>
      %cst_92 = arith.constant dense<0.000000e+00> : vector<8x128xf32>
      %240 = tpu.matmul %219, %239, %cst_92 {dimension_numbers = #tpu.dot_dimension_numbers<[1], [0], [0], [1], [0, 0, 1, 1], [], []>} : vector<8x128xf32>, vector<128x128xf32>, vector<8x128xf32> -> vector<8x128xf32>
      %241 = vector.extract_strided_slice %121 {offsets = [1, 0], sizes = [1, 128], strides = [1, 1]} : vector<8x128xf32> to vector<1x128xf32>
      %242 = vector.broadcast %241 : vector<1x128xf32> to vector<8x128xf32>
      %243 = arith.mulf %242, %240 : vector<8x128xf32>
      %244 = arith.addf %233, %243 : vector<8x128xf32>
      %245 = vector.extract_strided_slice %222 {offsets = [2, 0], sizes = [1, 128], strides = [1, 1]} : vector<8x128xi32> to vector<1x128xi32>
      %246 = vector.broadcast %245 : vector<1x128xi32> to vector<128x128xi32>
      %247 = arith.cmpi eq, %246, %0 : vector<128x128xi32>
      %cst_93 = arith.constant 1.000000e+00 : f32
      %cst_94 = arith.constant 0.000000e+00 : f32
      %248 = vector.broadcast %cst_93 : f32 to vector<128x128xf32>
      %249 = vector.broadcast %cst_94 : f32 to vector<128x128xf32>
      %250 = arith.select %247, %248, %249 : vector<128x128xi1>, vector<128x128xf32>
      %cst_95 = arith.constant dense<0.000000e+00> : vector<8x128xf32>
      %251 = tpu.matmul %219, %250, %cst_95 {dimension_numbers = #tpu.dot_dimension_numbers<[1], [0], [0], [1], [0, 0, 1, 1], [], []>} : vector<8x128xf32>, vector<128x128xf32>, vector<8x128xf32> -> vector<8x128xf32>
      %252 = vector.extract_strided_slice %121 {offsets = [2, 0], sizes = [1, 128], strides = [1, 1]} : vector<8x128xf32> to vector<1x128xf32>
      %253 = vector.broadcast %252 : vector<1x128xf32> to vector<8x128xf32>
      %254 = arith.mulf %253, %251 : vector<8x128xf32>
      %255 = arith.addf %244, %254 : vector<8x128xf32>
      %256 = vector.extract_strided_slice %222 {offsets = [3, 0], sizes = [1, 128], strides = [1, 1]} : vector<8x128xi32> to vector<1x128xi32>
      %257 = vector.broadcast %256 : vector<1x128xi32> to vector<128x128xi32>
      %258 = arith.cmpi eq, %257, %0 : vector<128x128xi32>
      %cst_96 = arith.constant 1.000000e+00 : f32
      %cst_97 = arith.constant 0.000000e+00 : f32
      %259 = vector.broadcast %cst_96 : f32 to vector<128x128xf32>
      %260 = vector.broadcast %cst_97 : f32 to vector<128x128xf32>
      %261 = arith.select %258, %259, %260 : vector<128x128xi1>, vector<128x128xf32>
      %cst_98 = arith.constant dense<0.000000e+00> : vector<8x128xf32>
      %262 = tpu.matmul %219, %261, %cst_98 {dimension_numbers = #tpu.dot_dimension_numbers<[1], [0], [0], [1], [0, 0, 1, 1], [], []>} : vector<8x128xf32>, vector<128x128xf32>, vector<8x128xf32> -> vector<8x128xf32>
      %263 = vector.extract_strided_slice %121 {offsets = [3, 0], sizes = [1, 128], strides = [1, 1]} : vector<8x128xf32> to vector<1x128xf32>
      %264 = vector.broadcast %263 : vector<1x128xf32> to vector<8x128xf32>
      %265 = arith.mulf %264, %262 : vector<8x128xf32>
      %266 = arith.addf %255, %265 : vector<8x128xf32>
      %267 = vector.extract_strided_slice %222 {offsets = [4, 0], sizes = [1, 128], strides = [1, 1]} : vector<8x128xi32> to vector<1x128xi32>
      %268 = vector.broadcast %267 : vector<1x128xi32> to vector<128x128xi32>
      %269 = arith.cmpi eq, %268, %0 : vector<128x128xi32>
      %cst_99 = arith.constant 1.000000e+00 : f32
      %cst_100 = arith.constant 0.000000e+00 : f32
      %270 = vector.broadcast %cst_99 : f32 to vector<128x128xf32>
      %271 = vector.broadcast %cst_100 : f32 to vector<128x128xf32>
      %272 = arith.select %269, %270, %271 : vector<128x128xi1>, vector<128x128xf32>
      %cst_101 = arith.constant dense<0.000000e+00> : vector<8x128xf32>
      %273 = tpu.matmul %219, %272, %cst_101 {dimension_numbers = #tpu.dot_dimension_numbers<[1], [0], [0], [1], [0, 0, 1, 1], [], []>} : vector<8x128xf32>, vector<128x128xf32>, vector<8x128xf32> -> vector<8x128xf32>
      %274 = vector.extract_strided_slice %121 {offsets = [4, 0], sizes = [1, 128], strides = [1, 1]} : vector<8x128xf32> to vector<1x128xf32>
      %275 = vector.broadcast %274 : vector<1x128xf32> to vector<8x128xf32>
      %276 = arith.mulf %275, %273 : vector<8x128xf32>
      %277 = arith.addf %266, %276 : vector<8x128xf32>
      %278 = vector.extract_strided_slice %222 {offsets = [5, 0], sizes = [1, 128], strides = [1, 1]} : vector<8x128xi32> to vector<1x128xi32>
      %279 = vector.broadcast %278 : vector<1x128xi32> to vector<128x128xi32>
      %280 = arith.cmpi eq, %279, %0 : vector<128x128xi32>
      %cst_102 = arith.constant 1.000000e+00 : f32
      %cst_103 = arith.constant 0.000000e+00 : f32
      %281 = vector.broadcast %cst_102 : f32 to vector<128x128xf32>
      %282 = vector.broadcast %cst_103 : f32 to vector<128x128xf32>
      %283 = arith.select %280, %281, %282 : vector<128x128xi1>, vector<128x128xf32>
      %cst_104 = arith.constant dense<0.000000e+00> : vector<8x128xf32>
      %284 = tpu.matmul %219, %283, %cst_104 {dimension_numbers = #tpu.dot_dimension_numbers<[1], [0], [0], [1], [0, 0, 1, 1], [], []>} : vector<8x128xf32>, vector<128x128xf32>, vector<8x128xf32> -> vector<8x128xf32>
      %285 = vector.extract_strided_slice %121 {offsets = [5, 0], sizes = [1, 128], strides = [1, 1]} : vector<8x128xf32> to vector<1x128xf32>
      %286 = vector.broadcast %285 : vector<1x128xf32> to vector<8x128xf32>
      %287 = arith.mulf %286, %284 : vector<8x128xf32>
      %288 = arith.addf %277, %287 : vector<8x128xf32>
      %289 = vector.extract_strided_slice %222 {offsets = [6, 0], sizes = [1, 128], strides = [1, 1]} : vector<8x128xi32> to vector<1x128xi32>
      %290 = vector.broadcast %289 : vector<1x128xi32> to vector<128x128xi32>
      %291 = arith.cmpi eq, %290, %0 : vector<128x128xi32>
      %cst_105 = arith.constant 1.000000e+00 : f32
      %cst_106 = arith.constant 0.000000e+00 : f32
      %292 = vector.broadcast %cst_105 : f32 to vector<128x128xf32>
      %293 = vector.broadcast %cst_106 : f32 to vector<128x128xf32>
      %294 = arith.select %291, %292, %293 : vector<128x128xi1>, vector<128x128xf32>
      %cst_107 = arith.constant dense<0.000000e+00> : vector<8x128xf32>
      %295 = tpu.matmul %219, %294, %cst_107 {dimension_numbers = #tpu.dot_dimension_numbers<[1], [0], [0], [1], [0, 0, 1, 1], [], []>} : vector<8x128xf32>, vector<128x128xf32>, vector<8x128xf32> -> vector<8x128xf32>
      %296 = vector.extract_strided_slice %121 {offsets = [6, 0], sizes = [1, 128], strides = [1, 1]} : vector<8x128xf32> to vector<1x128xf32>
      %297 = vector.broadcast %296 : vector<1x128xf32> to vector<8x128xf32>
      %298 = arith.mulf %297, %295 : vector<8x128xf32>
      %299 = arith.addf %288, %298 : vector<8x128xf32>
      %300 = vector.extract_strided_slice %222 {offsets = [7, 0], sizes = [1, 128], strides = [1, 1]} : vector<8x128xi32> to vector<1x128xi32>
      %301 = vector.broadcast %300 : vector<1x128xi32> to vector<128x128xi32>
      %302 = arith.cmpi eq, %301, %0 : vector<128x128xi32>
      %cst_108 = arith.constant 1.000000e+00 : f32
      %cst_109 = arith.constant 0.000000e+00 : f32
      %303 = vector.broadcast %cst_108 : f32 to vector<128x128xf32>
      %304 = vector.broadcast %cst_109 : f32 to vector<128x128xf32>
      %305 = arith.select %302, %303, %304 : vector<128x128xi1>, vector<128x128xf32>
      %cst_110 = arith.constant dense<0.000000e+00> : vector<8x128xf32>
      %306 = tpu.matmul %219, %305, %cst_110 {dimension_numbers = #tpu.dot_dimension_numbers<[1], [0], [0], [1], [0, 0, 1, 1], [], []>} : vector<8x128xf32>, vector<128x128xf32>, vector<8x128xf32> -> vector<8x128xf32>
      %307 = vector.extract_strided_slice %121 {offsets = [7, 0], sizes = [1, 128], strides = [1, 1]} : vector<8x128xf32> to vector<1x128xf32>
      %308 = vector.broadcast %307 : vector<1x128xf32> to vector<8x128xf32>
      %309 = arith.mulf %308, %306 : vector<8x128xf32>
      %310 = arith.addf %299, %309 : vector<8x128xf32>
      scf.yield %310 : vector<8x128xf32>
    }
    %c0_35 = arith.constant 0 : index
    %c0_36 = arith.constant 0 : index
    %132 = vector.load %arg5[%c0_35, %c0_36] : memref<8x512xf32, #tpu.memory_space<vmem>>, vector<8x128xf32>
    tpu.vector_store %arg5[%c0_35, %c0_36], %131 {strides = array<i32>} : memref<8x512xf32, #tpu.memory_space<vmem>>, vector<8x128xf32>,
    %cst_37 = arith.constant 0.000000e+00 : f32
    %133 = vector.broadcast %cst_37 : f32 to vector<8x128xf32>
    %c0_38 = arith.constant 0 : index
    %c0_39 = arith.constant 0 : index
    %c128 = arith.constant 128 : index
    %134 = vector.load %arg3[%c0_38, %c0_39, %c128] : memref<2x8x512xi32, #tpu.memory_space<vmem>>, vector<1x8x128xi32>
    %135 = vector.shape_cast %134 : vector<1x8x128xi32> to vector<8x128xi32>
    %136 = vector.extract_strided_slice %60 {offsets = [0, 128], sizes = [8, 128], strides = [1, 1]} : vector<8x512xf32> to vector<8x128xf32>
    %c4_i32_40 = arith.constant 4 : i32
    %137 = arith.muli %arg0, %c4_i32_40 : i32
    %c0_i32_41 = arith.constant 0 : i32
    %138 = arith.addi %137, %c0_i32_41 : i32
    %139 = arith.index_cast %138 : i32 to index
    %140 = memref.load %arg1[%139] : memref<8xi32, #tpu.memory_space<smem>>
    %c1_i32_42 = arith.constant 1 : i32
    %141 = arith.addi %138, %c1_i32_42 : i32
    %142 = arith.index_cast %141 : i32 to index
    %143 = memref.load %arg1[%142] : memref<8xi32, #tpu.memory_space<smem>>
    %144 = arith.subi %143, %140 : i32
    %145 = arith.addi %140, %144 : i32
    %c1_i32_43 = arith.constant 1 : i32
    %146 = scf.for %arg6 = %140 to %145 step %c1_i32_43 iter_args(%arg7 = %133) -> (vector<8x128xf32>)  : i32 {
      %217 = arith.index_cast %arg6 : i32 to index
      %c0_85 = arith.constant 0 : index
      %c0_86 = arith.constant 0 : index
      %218 = vector.load %arg4[%217, %c0_85, %c0_86] : memref<7x8x128xf32, #tpu.memory_space<vmem>>, vector<1x8x128xf32>
      %219 = vector.shape_cast %218 : vector<1x8x128xf32> to vector<8x128xf32>
      %c128_i32 = arith.constant 128 : i32
      %220 = arith.muli %arg6, %c128_i32 : i32
      %221 = vector.broadcast %220 : i32 to vector<8x128xi32>
      %222 = arith.subi %135, %221 : vector<8x128xi32>
      %223 = vector.extract_strided_slice %222 {offsets = [0, 0], sizes = [1, 128], strides = [1, 1]} : vector<8x128xi32> to vector<1x128xi32>
      %224 = vector.broadcast %223 : vector<1x128xi32> to vector<128x128xi32>
      %225 = arith.cmpi eq, %224, %0 : vector<128x128xi32>
      %cst_87 = arith.constant 1.000000e+00 : f32
      %cst_88 = arith.constant 0.000000e+00 : f32
      %226 = vector.broadcast %cst_87 : f32 to vector<128x128xf32>
      %227 = vector.broadcast %cst_88 : f32 to vector<128x128xf32>
      %228 = arith.select %225, %226, %227 : vector<128x128xi1>, vector<128x128xf32>
      %cst_89 = arith.constant dense<0.000000e+00> : vector<8x128xf32>
      %229 = tpu.matmul %219, %228, %cst_89 {dimension_numbers = #tpu.dot_dimension_numbers<[1], [0], [0], [1], [0, 0, 1, 1], [], []>} : vector<8x128xf32>, vector<128x128xf32>, vector<8x128xf32> -> vector<8x128xf32>
      %230 = vector.extract_strided_slice %136 {offsets = [0, 0], sizes = [1, 128], strides = [1, 1]} : vector<8x128xf32> to vector<1x128xf32>
      %231 = vector.broadcast %230 : vector<1x128xf32> to vector<8x128xf32>
      %232 = arith.mulf %231, %229 : vector<8x128xf32>
      %233 = arith.addf %arg7, %232 : vector<8x128xf32>
      %234 = vector.extract_strided_slice %222 {offsets = [1, 0], sizes = [1, 128], strides = [1, 1]} : vector<8x128xi32> to vector<1x128xi32>
      %235 = vector.broadcast %234 : vector<1x128xi32> to vector<128x128xi32>
      %236 = arith.cmpi eq, %235, %0 : vector<128x128xi32>
      %cst_90 = arith.constant 1.000000e+00 : f32
      %cst_91 = arith.constant 0.000000e+00 : f32
      %237 = vector.broadcast %cst_90 : f32 to vector<128x128xf32>
      %238 = vector.broadcast %cst_91 : f32 to vector<128x128xf32>
      %239 = arith.select %236, %237, %238 : vector<128x128xi1>, vector<128x128xf32>
      %cst_92 = arith.constant dense<0.000000e+00> : vector<8x128xf32>
      %240 = tpu.matmul %219, %239, %cst_92 {dimension_numbers = #tpu.dot_dimension_numbers<[1], [0], [0], [1], [0, 0, 1, 1], [], []>} : vector<8x128xf32>, vector<128x128xf32>, vector<8x128xf32> -> vector<8x128xf32>
      %241 = vector.extract_strided_slice %136 {offsets = [1, 0], sizes = [1, 128], strides = [1, 1]} : vector<8x128xf32> to vector<1x128xf32>
      %242 = vector.broadcast %241 : vector<1x128xf32> to vector<8x128xf32>
      %243 = arith.mulf %242, %240 : vector<8x128xf32>
      %244 = arith.addf %233, %243 : vector<8x128xf32>
      %245 = vector.extract_strided_slice %222 {offsets = [2, 0], sizes = [1, 128], strides = [1, 1]} : vector<8x128xi32> to vector<1x128xi32>
      %246 = vector.broadcast %245 : vector<1x128xi32> to vector<128x128xi32>
      %247 = arith.cmpi eq, %246, %0 : vector<128x128xi32>
      %cst_93 = arith.constant 1.000000e+00 : f32
      %cst_94 = arith.constant 0.000000e+00 : f32
      %248 = vector.broadcast %cst_93 : f32 to vector<128x128xf32>
      %249 = vector.broadcast %cst_94 : f32 to vector<128x128xf32>
      %250 = arith.select %247, %248, %249 : vector<128x128xi1>, vector<128x128xf32>
      %cst_95 = arith.constant dense<0.000000e+00> : vector<8x128xf32>
      %251 = tpu.matmul %219, %250, %cst_95 {dimension_numbers = #tpu.dot_dimension_numbers<[1], [0], [0], [1], [0, 0, 1, 1], [], []>} : vector<8x128xf32>, vector<128x128xf32>, vector<8x128xf32> -> vector<8x128xf32>
      %252 = vector.extract_strided_slice %136 {offsets = [2, 0], sizes = [1, 128], strides = [1, 1]} : vector<8x128xf32> to vector<1x128xf32>
      %253 = vector.broadcast %252 : vector<1x128xf32> to vector<8x128xf32>
      %254 = arith.mulf %253, %251 : vector<8x128xf32>
      %255 = arith.addf %244, %254 : vector<8x128xf32>
      %256 = vector.extract_strided_slice %222 {offsets = [3, 0], sizes = [1, 128], strides = [1, 1]} : vector<8x128xi32> to vector<1x128xi32>
      %257 = vector.broadcast %256 : vector<1x128xi32> to vector<128x128xi32>
      %258 = arith.cmpi eq, %257, %0 : vector<128x128xi32>
      %cst_96 = arith.constant 1.000000e+00 : f32
      %cst_97 = arith.constant 0.000000e+00 : f32
      %259 = vector.broadcast %cst_96 : f32 to vector<128x128xf32>
      %260 = vector.broadcast %cst_97 : f32 to vector<128x128xf32>
      %261 = arith.select %258, %259, %260 : vector<128x128xi1>, vector<128x128xf32>
      %cst_98 = arith.constant dense<0.000000e+00> : vector<8x128xf32>
      %262 = tpu.matmul %219, %261, %cst_98 {dimension_numbers = #tpu.dot_dimension_numbers<[1], [0], [0], [1], [0, 0, 1, 1], [], []>} : vector<8x128xf32>, vector<128x128xf32>, vector<8x128xf32> -> vector<8x128xf32>
      %263 = vector.extract_strided_slice %136 {offsets = [3, 0], sizes = [1, 128], strides = [1, 1]} : vector<8x128xf32> to vector<1x128xf32>
      %264 = vector.broadcast %263 : vector<1x128xf32> to vector<8x128xf32>
      %265 = arith.mulf %264, %262 : vector<8x128xf32>
      %266 = arith.addf %255, %265 : vector<8x128xf32>
      %267 = vector.extract_strided_slice %222 {offsets = [4, 0], sizes = [1, 128], strides = [1, 1]} : vector<8x128xi32> to vector<1x128xi32>
      %268 = vector.broadcast %267 : vector<1x128xi32> to vector<128x128xi32>
      %269 = arith.cmpi eq, %268, %0 : vector<128x128xi32>
      %cst_99 = arith.constant 1.000000e+00 : f32
      %cst_100 = arith.constant 0.000000e+00 : f32
      %270 = vector.broadcast %cst_99 : f32 to vector<128x128xf32>
      %271 = vector.broadcast %cst_100 : f32 to vector<128x128xf32>
      %272 = arith.select %269, %270, %271 : vector<128x128xi1>, vector<128x128xf32>
      %cst_101 = arith.constant dense<0.000000e+00> : vector<8x128xf32>
      %273 = tpu.matmul %219, %272, %cst_101 {dimension_numbers = #tpu.dot_dimension_numbers<[1], [0], [0], [1], [0, 0, 1, 1], [], []>} : vector<8x128xf32>, vector<128x128xf32>, vector<8x128xf32> -> vector<8x128xf32>
      %274 = vector.extract_strided_slice %136 {offsets = [4, 0], sizes = [1, 128], strides = [1, 1]} : vector<8x128xf32> to vector<1x128xf32>
      %275 = vector.broadcast %274 : vector<1x128xf32> to vector<8x128xf32>
      %276 = arith.mulf %275, %273 : vector<8x128xf32>
      %277 = arith.addf %266, %276 : vector<8x128xf32>
      %278 = vector.extract_strided_slice %222 {offsets = [5, 0], sizes = [1, 128], strides = [1, 1]} : vector<8x128xi32> to vector<1x128xi32>
      %279 = vector.broadcast %278 : vector<1x128xi32> to vector<128x128xi32>
      %280 = arith.cmpi eq, %279, %0 : vector<128x128xi32>
      %cst_102 = arith.constant 1.000000e+00 : f32
      %cst_103 = arith.constant 0.000000e+00 : f32
      %281 = vector.broadcast %cst_102 : f32 to vector<128x128xf32>
      %282 = vector.broadcast %cst_103 : f32 to vector<128x128xf32>
      %283 = arith.select %280, %281, %282 : vector<128x128xi1>, vector<128x128xf32>
      %cst_104 = arith.constant dense<0.000000e+00> : vector<8x128xf32>
      %284 = tpu.matmul %219, %283, %cst_104 {dimension_numbers = #tpu.dot_dimension_numbers<[1], [0], [0], [1], [0, 0, 1, 1], [], []>} : vector<8x128xf32>, vector<128x128xf32>, vector<8x128xf32> -> vector<8x128xf32>
      %285 = vector.extract_strided_slice %136 {offsets = [5, 0], sizes = [1, 128], strides = [1, 1]} : vector<8x128xf32> to vector<1x128xf32>
      %286 = vector.broadcast %285 : vector<1x128xf32> to vector<8x128xf32>
      %287 = arith.mulf %286, %284 : vector<8x128xf32>
      %288 = arith.addf %277, %287 : vector<8x128xf32>
      %289 = vector.extract_strided_slice %222 {offsets = [6, 0], sizes = [1, 128], strides = [1, 1]} : vector<8x128xi32> to vector<1x128xi32>
      %290 = vector.broadcast %289 : vector<1x128xi32> to vector<128x128xi32>
      %291 = arith.cmpi eq, %290, %0 : vector<128x128xi32>
      %cst_105 = arith.constant 1.000000e+00 : f32
      %cst_106 = arith.constant 0.000000e+00 : f32
      %292 = vector.broadcast %cst_105 : f32 to vector<128x128xf32>
      %293 = vector.broadcast %cst_106 : f32 to vector<128x128xf32>
      %294 = arith.select %291, %292, %293 : vector<128x128xi1>, vector<128x128xf32>
      %cst_107 = arith.constant dense<0.000000e+00> : vector<8x128xf32>
      %295 = tpu.matmul %219, %294, %cst_107 {dimension_numbers = #tpu.dot_dimension_numbers<[1], [0], [0], [1], [0, 0, 1, 1], [], []>} : vector<8x128xf32>, vector<128x128xf32>, vector<8x128xf32> -> vector<8x128xf32>
      %296 = vector.extract_strided_slice %136 {offsets = [6, 0], sizes = [1, 128], strides = [1, 1]} : vector<8x128xf32> to vector<1x128xf32>
      %297 = vector.broadcast %296 : vector<1x128xf32> to vector<8x128xf32>
      %298 = arith.mulf %297, %295 : vector<8x128xf32>
      %299 = arith.addf %288, %298 : vector<8x128xf32>
      %300 = vector.extract_strided_slice %222 {offsets = [7, 0], sizes = [1, 128], strides = [1, 1]} : vector<8x128xi32> to vector<1x128xi32>
      %301 = vector.broadcast %300 : vector<1x128xi32> to vector<128x128xi32>
      %302 = arith.cmpi eq, %301, %0 : vector<128x128xi32>
      %cst_108 = arith.constant 1.000000e+00 : f32
      %cst_109 = arith.constant 0.000000e+00 : f32
      %303 = vector.broadcast %cst_108 : f32 to vector<128x128xf32>
      %304 = vector.broadcast %cst_109 : f32 to vector<128x128xf32>
      %305 = arith.select %302, %303, %304 : vector<128x128xi1>, vector<128x128xf32>
      %cst_110 = arith.constant dense<0.000000e+00> : vector<8x128xf32>
      %306 = tpu.matmul %219, %305, %cst_110 {dimension_numbers = #tpu.dot_dimension_numbers<[1], [0], [0], [1], [0, 0, 1, 1], [], []>} : vector<8x128xf32>, vector<128x128xf32>, vector<8x128xf32> -> vector<8x128xf32>
      %307 = vector.extract_strided_slice %136 {offsets = [7, 0], sizes = [1, 128], strides = [1, 1]} : vector<8x128xf32> to vector<1x128xf32>
      %308 = vector.broadcast %307 : vector<1x128xf32> to vector<8x128xf32>
      %309 = arith.mulf %308, %306 : vector<8x128xf32>
      %310 = arith.addf %299, %309 : vector<8x128xf32>
      scf.yield %310 : vector<8x128xf32>
    }
    %c1_44 = arith.constant 1 : index
    %c0_45 = arith.constant 0 : index
    %c128_46 = arith.constant 128 : index
    %147 = vector.load %arg3[%c1_44, %c0_45, %c128_46] : memref<2x8x512xi32, #tpu.memory_space<vmem>>, vector<1x8x128xi32>
    %148 = vector.shape_cast %147 : vector<1x8x128xi32> to vector<8x128xi32>
    %149 = vector.extract_strided_slice %104 {offsets = [0, 128], sizes = [8, 128], strides = [1, 1]} : vector<8x512xf32> to vector<8x128xf32>
    %c4_i32_47 = arith.constant 4 : i32
    %150 = arith.muli %arg0, %c4_i32_47 : i32
    %c2_i32_48 = arith.constant 2 : i32
    %151 = arith.addi %150, %c2_i32_48 : i32
    %152 = arith.index_cast %151 : i32 to index
    %153 = memref.load %arg1[%152] : memref<8xi32, #tpu.memory_space<smem>>
    %c1_i32_49 = arith.constant 1 : i32
    %154 = arith.addi %151, %c1_i32_49 : i32
    %155 = arith.index_cast %154 : i32 to index
    %156 = memref.load %arg1[%155] : memref<8xi32, #tpu.memory_space<smem>>
    %157 = arith.subi %156, %153 : i32
    %158 = arith.addi %153, %157 : i32
    %c1_i32_50 = arith.constant 1 : i32
    %159 = scf.for %arg6 = %153 to %158 step %c1_i32_50 iter_args(%arg7 = %146) -> (vector<8x128xf32>)  : i32 {
      %217 = arith.index_cast %arg6 : i32 to index
      %c0_85 = arith.constant 0 : index
      %c0_86 = arith.constant 0 : index
      %218 = vector.load %arg4[%217, %c0_85, %c0_86] : memref<7x8x128xf32, #tpu.memory_space<vmem>>, vector<1x8x128xf32>
      %219 = vector.shape_cast %218 : vector<1x8x128xf32> to vector<8x128xf32>
      %c128_i32 = arith.constant 128 : i32
      %220 = arith.muli %arg6, %c128_i32 : i32
      %221 = vector.broadcast %220 : i32 to vector<8x128xi32>
      %222 = arith.subi %148, %221 : vector<8x128xi32>
      %223 = vector.extract_strided_slice %222 {offsets = [0, 0], sizes = [1, 128], strides = [1, 1]} : vector<8x128xi32> to vector<1x128xi32>
      %224 = vector.broadcast %223 : vector<1x128xi32> to vector<128x128xi32>
      %225 = arith.cmpi eq, %224, %0 : vector<128x128xi32>
      %cst_87 = arith.constant 1.000000e+00 : f32
      %cst_88 = arith.constant 0.000000e+00 : f32
      %226 = vector.broadcast %cst_87 : f32 to vector<128x128xf32>
      %227 = vector.broadcast %cst_88 : f32 to vector<128x128xf32>
      %228 = arith.select %225, %226, %227 : vector<128x128xi1>, vector<128x128xf32>
      %cst_89 = arith.constant dense<0.000000e+00> : vector<8x128xf32>
      %229 = tpu.matmul %219, %228, %cst_89 {dimension_numbers = #tpu.dot_dimension_numbers<[1], [0], [0], [1], [0, 0, 1, 1], [], []>} : vector<8x128xf32>, vector<128x128xf32>, vector<8x128xf32> -> vector<8x128xf32>
      %230 = vector.extract_strided_slice %149 {offsets = [0, 0], sizes = [1, 128], strides = [1, 1]} : vector<8x128xf32> to vector<1x128xf32>
      %231 = vector.broadcast %230 : vector<1x128xf32> to vector<8x128xf32>
      %232 = arith.mulf %231, %229 : vector<8x128xf32>
      %233 = arith.addf %arg7, %232 : vector<8x128xf32>
      %234 = vector.extract_strided_slice %222 {offsets = [1, 0], sizes = [1, 128], strides = [1, 1]} : vector<8x128xi32> to vector<1x128xi32>
      %235 = vector.broadcast %234 : vector<1x128xi32> to vector<128x128xi32>
      %236 = arith.cmpi eq, %235, %0 : vector<128x128xi32>
      %cst_90 = arith.constant 1.000000e+00 : f32
      %cst_91 = arith.constant 0.000000e+00 : f32
      %237 = vector.broadcast %cst_90 : f32 to vector<128x128xf32>
      %238 = vector.broadcast %cst_91 : f32 to vector<128x128xf32>
      %239 = arith.select %236, %237, %238 : vector<128x128xi1>, vector<128x128xf32>
      %cst_92 = arith.constant dense<0.000000e+00> : vector<8x128xf32>
      %240 = tpu.matmul %219, %239, %cst_92 {dimension_numbers = #tpu.dot_dimension_numbers<[1], [0], [0], [1], [0, 0, 1, 1], [], []>} : vector<8x128xf32>, vector<128x128xf32>, vector<8x128xf32> -> vector<8x128xf32>
      %241 = vector.extract_strided_slice %149 {offsets = [1, 0], sizes = [1, 128], strides = [1, 1]} : vector<8x128xf32> to vector<1x128xf32>
      %242 = vector.broadcast %241 : vector<1x128xf32> to vector<8x128xf32>
      %243 = arith.mulf %242, %240 : vector<8x128xf32>
      %244 = arith.addf %233, %243 : vector<8x128xf32>
      %245 = vector.extract_strided_slice %222 {offsets = [2, 0], sizes = [1, 128], strides = [1, 1]} : vector<8x128xi32> to vector<1x128xi32>
      %246 = vector.broadcast %245 : vector<1x128xi32> to vector<128x128xi32>
      %247 = arith.cmpi eq, %246, %0 : vector<128x128xi32>
      %cst_93 = arith.constant 1.000000e+00 : f32
      %cst_94 = arith.constant 0.000000e+00 : f32
      %248 = vector.broadcast %cst_93 : f32 to vector<128x128xf32>
      %249 = vector.broadcast %cst_94 : f32 to vector<128x128xf32>
      %250 = arith.select %247, %248, %249 : vector<128x128xi1>, vector<128x128xf32>
      %cst_95 = arith.constant dense<0.000000e+00> : vector<8x128xf32>
      %251 = tpu.matmul %219, %250, %cst_95 {dimension_numbers = #tpu.dot_dimension_numbers<[1], [0], [0], [1], [0, 0, 1, 1], [], []>} : vector<8x128xf32>, vector<128x128xf32>, vector<8x128xf32> -> vector<8x128xf32>
      %252 = vector.extract_strided_slice %149 {offsets = [2, 0], sizes = [1, 128], strides = [1, 1]} : vector<8x128xf32> to vector<1x128xf32>
      %253 = vector.broadcast %252 : vector<1x128xf32> to vector<8x128xf32>
      %254 = arith.mulf %253, %251 : vector<8x128xf32>
      %255 = arith.addf %244, %254 : vector<8x128xf32>
      %256 = vector.extract_strided_slice %222 {offsets = [3, 0], sizes = [1, 128], strides = [1, 1]} : vector<8x128xi32> to vector<1x128xi32>
      %257 = vector.broadcast %256 : vector<1x128xi32> to vector<128x128xi32>
      %258 = arith.cmpi eq, %257, %0 : vector<128x128xi32>
      %cst_96 = arith.constant 1.000000e+00 : f32
      %cst_97 = arith.constant 0.000000e+00 : f32
      %259 = vector.broadcast %cst_96 : f32 to vector<128x128xf32>
      %260 = vector.broadcast %cst_97 : f32 to vector<128x128xf32>
      %261 = arith.select %258, %259, %260 : vector<128x128xi1>, vector<128x128xf32>
      %cst_98 = arith.constant dense<0.000000e+00> : vector<8x128xf32>
      %262 = tpu.matmul %219, %261, %cst_98 {dimension_numbers = #tpu.dot_dimension_numbers<[1], [0], [0], [1], [0, 0, 1, 1], [], []>} : vector<8x128xf32>, vector<128x128xf32>, vector<8x128xf32> -> vector<8x128xf32>
      %263 = vector.extract_strided_slice %149 {offsets = [3, 0], sizes = [1, 128], strides = [1, 1]} : vector<8x128xf32> to vector<1x128xf32>
      %264 = vector.broadcast %263 : vector<1x128xf32> to vector<8x128xf32>
      %265 = arith.mulf %264, %262 : vector<8x128xf32>
      %266 = arith.addf %255, %265 : vector<8x128xf32>
      %267 = vector.extract_strided_slice %222 {offsets = [4, 0], sizes = [1, 128], strides = [1, 1]} : vector<8x128xi32> to vector<1x128xi32>
      %268 = vector.broadcast %267 : vector<1x128xi32> to vector<128x128xi32>
      %269 = arith.cmpi eq, %268, %0 : vector<128x128xi32>
      %cst_99 = arith.constant 1.000000e+00 : f32
      %cst_100 = arith.constant 0.000000e+00 : f32
      %270 = vector.broadcast %cst_99 : f32 to vector<128x128xf32>
      %271 = vector.broadcast %cst_100 : f32 to vector<128x128xf32>
      %272 = arith.select %269, %270, %271 : vector<128x128xi1>, vector<128x128xf32>
      %cst_101 = arith.constant dense<0.000000e+00> : vector<8x128xf32>
      %273 = tpu.matmul %219, %272, %cst_101 {dimension_numbers = #tpu.dot_dimension_numbers<[1], [0], [0], [1], [0, 0, 1, 1], [], []>} : vector<8x128xf32>, vector<128x128xf32>, vector<8x128xf32> -> vector<8x128xf32>
      %274 = vector.extract_strided_slice %149 {offsets = [4, 0], sizes = [1, 128], strides = [1, 1]} : vector<8x128xf32> to vector<1x128xf32>
      %275 = vector.broadcast %274 : vector<1x128xf32> to vector<8x128xf32>
      %276 = arith.mulf %275, %273 : vector<8x128xf32>
      %277 = arith.addf %266, %276 : vector<8x128xf32>
      %278 = vector.extract_strided_slice %222 {offsets = [5, 0], sizes = [1, 128], strides = [1, 1]} : vector<8x128xi32> to vector<1x128xi32>
      %279 = vector.broadcast %278 : vector<1x128xi32> to vector<128x128xi32>
      %280 = arith.cmpi eq, %279, %0 : vector<128x128xi32>
      %cst_102 = arith.constant 1.000000e+00 : f32
      %cst_103 = arith.constant 0.000000e+00 : f32
      %281 = vector.broadcast %cst_102 : f32 to vector<128x128xf32>
      %282 = vector.broadcast %cst_103 : f32 to vector<128x128xf32>
      %283 = arith.select %280, %281, %282 : vector<128x128xi1>, vector<128x128xf32>
      %cst_104 = arith.constant dense<0.000000e+00> : vector<8x128xf32>
      %284 = tpu.matmul %219, %283, %cst_104 {dimension_numbers = #tpu.dot_dimension_numbers<[1], [0], [0], [1], [0, 0, 1, 1], [], []>} : vector<8x128xf32>, vector<128x128xf32>, vector<8x128xf32> -> vector<8x128xf32>
      %285 = vector.extract_strided_slice %149 {offsets = [5, 0], sizes = [1, 128], strides = [1, 1]} : vector<8x128xf32> to vector<1x128xf32>
      %286 = vector.broadcast %285 : vector<1x128xf32> to vector<8x128xf32>
      %287 = arith.mulf %286, %284 : vector<8x128xf32>
      %288 = arith.addf %277, %287 : vector<8x128xf32>
      %289 = vector.extract_strided_slice %222 {offsets = [6, 0], sizes = [1, 128], strides = [1, 1]} : vector<8x128xi32> to vector<1x128xi32>
      %290 = vector.broadcast %289 : vector<1x128xi32> to vector<128x128xi32>
      %291 = arith.cmpi eq, %290, %0 : vector<128x128xi32>
      %cst_105 = arith.constant 1.000000e+00 : f32
      %cst_106 = arith.constant 0.000000e+00 : f32
      %292 = vector.broadcast %cst_105 : f32 to vector<128x128xf32>
      %293 = vector.broadcast %cst_106 : f32 to vector<128x128xf32>
      %294 = arith.select %291, %292, %293 : vector<128x128xi1>, vector<128x128xf32>
      %cst_107 = arith.constant dense<0.000000e+00> : vector<8x128xf32>
      %295 = tpu.matmul %219, %294, %cst_107 {dimension_numbers = #tpu.dot_dimension_numbers<[1], [0], [0], [1], [0, 0, 1, 1], [], []>} : vector<8x128xf32>, vector<128x128xf32>, vector<8x128xf32> -> vector<8x128xf32>
      %296 = vector.extract_strided_slice %149 {offsets = [6, 0], sizes = [1, 128], strides = [1, 1]} : vector<8x128xf32> to vector<1x128xf32>
      %297 = vector.broadcast %296 : vector<1x128xf32> to vector<8x128xf32>
      %298 = arith.mulf %297, %295 : vector<8x128xf32>
      %299 = arith.addf %288, %298 : vector<8x128xf32>
      %300 = vector.extract_strided_slice %222 {offsets = [7, 0], sizes = [1, 128], strides = [1, 1]} : vector<8x128xi32> to vector<1x128xi32>
      %301 = vector.broadcast %300 : vector<1x128xi32> to vector<128x128xi32>
      %302 = arith.cmpi eq, %301, %0 : vector<128x128xi32>
      %cst_108 = arith.constant 1.000000e+00 : f32
      %cst_109 = arith.constant 0.000000e+00 : f32
      %303 = vector.broadcast %cst_108 : f32 to vector<128x128xf32>
      %304 = vector.broadcast %cst_109 : f32 to vector<128x128xf32>
      %305 = arith.select %302, %303, %304 : vector<128x128xi1>, vector<128x128xf32>
      %cst_110 = arith.constant dense<0.000000e+00> : vector<8x128xf32>
      %306 = tpu.matmul %219, %305, %cst_110 {dimension_numbers = #tpu.dot_dimension_numbers<[1], [0], [0], [1], [0, 0, 1, 1], [], []>} : vector<8x128xf32>, vector<128x128xf32>, vector<8x128xf32> -> vector<8x128xf32>
      %307 = vector.extract_strided_slice %149 {offsets = [7, 0], sizes = [1, 128], strides = [1, 1]} : vector<8x128xf32> to vector<1x128xf32>
      %308 = vector.broadcast %307 : vector<1x128xf32> to vector<8x128xf32>
      %309 = arith.mulf %308, %306 : vector<8x128xf32>
      %310 = arith.addf %299, %309 : vector<8x128xf32>
      scf.yield %310 : vector<8x128xf32>
    }
    %c0_51 = arith.constant 0 : index
    %c128_52 = arith.constant 128 : index
    %160 = vector.load %arg5[%c0_51, %c128_52] : memref<8x512xf32, #tpu.memory_space<vmem>>, vector<8x128xf32>
    tpu.vector_store %arg5[%c0_51, %c128_52], %159 {strides = array<i32>} : memref<8x512xf32, #tpu.memory_space<vmem>>, vector<8x128xf32>,
    %cst_53 = arith.constant 0.000000e+00 : f32
    %161 = vector.broadcast %cst_53 : f32 to vector<8x128xf32>
    %c0_54 = arith.constant 0 : index
    %c0_55 = arith.constant 0 : index
    %c256 = arith.constant 256 : index
    %162 = vector.load %arg3[%c0_54, %c0_55, %c256] : memref<2x8x512xi32, #tpu.memory_space<vmem>>, vector<1x8x128xi32>
    %163 = vector.shape_cast %162 : vector<1x8x128xi32> to vector<8x128xi32>
    %164 = vector.extract_strided_slice %60 {offsets = [0, 256], sizes = [8, 128], strides = [1, 1]} : vector<8x512xf32> to vector<8x128xf32>
    %c4_i32_56 = arith.constant 4 : i32
    %165 = arith.muli %arg0, %c4_i32_56 : i32
    %c0_i32_57 = arith.constant 0 : i32
    %166 = arith.addi %165, %c0_i32_57 : i32
    %167 = arith.index_cast %166 : i32 to index
    %168 = memref.load %arg1[%167] : memref<8xi32, #tpu.memory_space<smem>>
    %c1_i32_58 = arith.constant 1 : i32
    %169 = arith.addi %166, %c1_i32_58 : i32
    %170 = arith.index_cast %169 : i32 to index
    %171 = memref.load %arg1[%170] : memref<8xi32, #tpu.memory_space<smem>>
    %172 = arith.subi %171, %168 : i32
    %173 = arith.addi %168, %172 : i32
    %c1_i32_59 = arith.constant 1 : i32
    %174 = scf.for %arg6 = %168 to %173 step %c1_i32_59 iter_args(%arg7 = %161) -> (vector<8x128xf32>)  : i32 {
      %217 = arith.index_cast %arg6 : i32 to index
      %c0_85 = arith.constant 0 : index
      %c0_86 = arith.constant 0 : index
      %218 = vector.load %arg4[%217, %c0_85, %c0_86] : memref<7x8x128xf32, #tpu.memory_space<vmem>>, vector<1x8x128xf32>
      %219 = vector.shape_cast %218 : vector<1x8x128xf32> to vector<8x128xf32>
      %c128_i32 = arith.constant 128 : i32
      %220 = arith.muli %arg6, %c128_i32 : i32
      %221 = vector.broadcast %220 : i32 to vector<8x128xi32>
      %222 = arith.subi %163, %221 : vector<8x128xi32>
      %223 = vector.extract_strided_slice %222 {offsets = [0, 0], sizes = [1, 128], strides = [1, 1]} : vector<8x128xi32> to vector<1x128xi32>
      %224 = vector.broadcast %223 : vector<1x128xi32> to vector<128x128xi32>
      %225 = arith.cmpi eq, %224, %0 : vector<128x128xi32>
      %cst_87 = arith.constant 1.000000e+00 : f32
      %cst_88 = arith.constant 0.000000e+00 : f32
      %226 = vector.broadcast %cst_87 : f32 to vector<128x128xf32>
      %227 = vector.broadcast %cst_88 : f32 to vector<128x128xf32>
      %228 = arith.select %225, %226, %227 : vector<128x128xi1>, vector<128x128xf32>
      %cst_89 = arith.constant dense<0.000000e+00> : vector<8x128xf32>
      %229 = tpu.matmul %219, %228, %cst_89 {dimension_numbers = #tpu.dot_dimension_numbers<[1], [0], [0], [1], [0, 0, 1, 1], [], []>} : vector<8x128xf32>, vector<128x128xf32>, vector<8x128xf32> -> vector<8x128xf32>
      %230 = vector.extract_strided_slice %164 {offsets = [0, 0], sizes = [1, 128], strides = [1, 1]} : vector<8x128xf32> to vector<1x128xf32>
      %231 = vector.broadcast %230 : vector<1x128xf32> to vector<8x128xf32>
      %232 = arith.mulf %231, %229 : vector<8x128xf32>
      %233 = arith.addf %arg7, %232 : vector<8x128xf32>
      %234 = vector.extract_strided_slice %222 {offsets = [1, 0], sizes = [1, 128], strides = [1, 1]} : vector<8x128xi32> to vector<1x128xi32>
      %235 = vector.broadcast %234 : vector<1x128xi32> to vector<128x128xi32>
      %236 = arith.cmpi eq, %235, %0 : vector<128x128xi32>
      %cst_90 = arith.constant 1.000000e+00 : f32
      %cst_91 = arith.constant 0.000000e+00 : f32
      %237 = vector.broadcast %cst_90 : f32 to vector<128x128xf32>
      %238 = vector.broadcast %cst_91 : f32 to vector<128x128xf32>
      %239 = arith.select %236, %237, %238 : vector<128x128xi1>, vector<128x128xf32>
      %cst_92 = arith.constant dense<0.000000e+00> : vector<8x128xf32>
      %240 = tpu.matmul %219, %239, %cst_92 {dimension_numbers = #tpu.dot_dimension_numbers<[1], [0], [0], [1], [0, 0, 1, 1], [], []>} : vector<8x128xf32>, vector<128x128xf32>, vector<8x128xf32> -> vector<8x128xf32>
      %241 = vector.extract_strided_slice %164 {offsets = [1, 0], sizes = [1, 128], strides = [1, 1]} : vector<8x128xf32> to vector<1x128xf32>
      %242 = vector.broadcast %241 : vector<1x128xf32> to vector<8x128xf32>
      %243 = arith.mulf %242, %240 : vector<8x128xf32>
      %244 = arith.addf %233, %243 : vector<8x128xf32>
      %245 = vector.extract_strided_slice %222 {offsets = [2, 0], sizes = [1, 128], strides = [1, 1]} : vector<8x128xi32> to vector<1x128xi32>
      %246 = vector.broadcast %245 : vector<1x128xi32> to vector<128x128xi32>
      %247 = arith.cmpi eq, %246, %0 : vector<128x128xi32>
      %cst_93 = arith.constant 1.000000e+00 : f32
      %cst_94 = arith.constant 0.000000e+00 : f32
      %248 = vector.broadcast %cst_93 : f32 to vector<128x128xf32>
      %249 = vector.broadcast %cst_94 : f32 to vector<128x128xf32>
      %250 = arith.select %247, %248, %249 : vector<128x128xi1>, vector<128x128xf32>
      %cst_95 = arith.constant dense<0.000000e+00> : vector<8x128xf32>
      %251 = tpu.matmul %219, %250, %cst_95 {dimension_numbers = #tpu.dot_dimension_numbers<[1], [0], [0], [1], [0, 0, 1, 1], [], []>} : vector<8x128xf32>, vector<128x128xf32>, vector<8x128xf32> -> vector<8x128xf32>
      %252 = vector.extract_strided_slice %164 {offsets = [2, 0], sizes = [1, 128], strides = [1, 1]} : vector<8x128xf32> to vector<1x128xf32>
      %253 = vector.broadcast %252 : vector<1x128xf32> to vector<8x128xf32>
      %254 = arith.mulf %253, %251 : vector<8x128xf32>
      %255 = arith.addf %244, %254 : vector<8x128xf32>
      %256 = vector.extract_strided_slice %222 {offsets = [3, 0], sizes = [1, 128], strides = [1, 1]} : vector<8x128xi32> to vector<1x128xi32>
      %257 = vector.broadcast %256 : vector<1x128xi32> to vector<128x128xi32>
      %258 = arith.cmpi eq, %257, %0 : vector<128x128xi32>
      %cst_96 = arith.constant 1.000000e+00 : f32
      %cst_97 = arith.constant 0.000000e+00 : f32
      %259 = vector.broadcast %cst_96 : f32 to vector<128x128xf32>
      %260 = vector.broadcast %cst_97 : f32 to vector<128x128xf32>
      %261 = arith.select %258, %259, %260 : vector<128x128xi1>, vector<128x128xf32>
      %cst_98 = arith.constant dense<0.000000e+00> : vector<8x128xf32>
      %262 = tpu.matmul %219, %261, %cst_98 {dimension_numbers = #tpu.dot_dimension_numbers<[1], [0], [0], [1], [0, 0, 1, 1], [], []>} : vector<8x128xf32>, vector<128x128xf32>, vector<8x128xf32> -> vector<8x128xf32>
      %263 = vector.extract_strided_slice %164 {offsets = [3, 0], sizes = [1, 128], strides = [1, 1]} : vector<8x128xf32> to vector<1x128xf32>
      %264 = vector.broadcast %263 : vector<1x128xf32> to vector<8x128xf32>
      %265 = arith.mulf %264, %262 : vector<8x128xf32>
      %266 = arith.addf %255, %265 : vector<8x128xf32>
      %267 = vector.extract_strided_slice %222 {offsets = [4, 0], sizes = [1, 128], strides = [1, 1]} : vector<8x128xi32> to vector<1x128xi32>
      %268 = vector.broadcast %267 : vector<1x128xi32> to vector<128x128xi32>
      %269 = arith.cmpi eq, %268, %0 : vector<128x128xi32>
      %cst_99 = arith.constant 1.000000e+00 : f32
      %cst_100 = arith.constant 0.000000e+00 : f32
      %270 = vector.broadcast %cst_99 : f32 to vector<128x128xf32>
      %271 = vector.broadcast %cst_100 : f32 to vector<128x128xf32>
      %272 = arith.select %269, %270, %271 : vector<128x128xi1>, vector<128x128xf32>
      %cst_101 = arith.constant dense<0.000000e+00> : vector<8x128xf32>
      %273 = tpu.matmul %219, %272, %cst_101 {dimension_numbers = #tpu.dot_dimension_numbers<[1], [0], [0], [1], [0, 0, 1, 1], [], []>} : vector<8x128xf32>, vector<128x128xf32>, vector<8x128xf32> -> vector<8x128xf32>
      %274 = vector.extract_strided_slice %164 {offsets = [4, 0], sizes = [1, 128], strides = [1, 1]} : vector<8x128xf32> to vector<1x128xf32>
      %275 = vector.broadcast %274 : vector<1x128xf32> to vector<8x128xf32>
      %276 = arith.mulf %275, %273 : vector<8x128xf32>
      %277 = arith.addf %266, %276 : vector<8x128xf32>
      %278 = vector.extract_strided_slice %222 {offsets = [5, 0], sizes = [1, 128], strides = [1, 1]} : vector<8x128xi32> to vector<1x128xi32>
      %279 = vector.broadcast %278 : vector<1x128xi32> to vector<128x128xi32>
      %280 = arith.cmpi eq, %279, %0 : vector<128x128xi32>
      %cst_102 = arith.constant 1.000000e+00 : f32
      %cst_103 = arith.constant 0.000000e+00 : f32
      %281 = vector.broadcast %cst_102 : f32 to vector<128x128xf32>
      %282 = vector.broadcast %cst_103 : f32 to vector<128x128xf32>
      %283 = arith.select %280, %281, %282 : vector<128x128xi1>, vector<128x128xf32>
      %cst_104 = arith.constant dense<0.000000e+00> : vector<8x128xf32>
      %284 = tpu.matmul %219, %283, %cst_104 {dimension_numbers = #tpu.dot_dimension_numbers<[1], [0], [0], [1], [0, 0, 1, 1], [], []>} : vector<8x128xf32>, vector<128x128xf32>, vector<8x128xf32> -> vector<8x128xf32>
      %285 = vector.extract_strided_slice %164 {offsets = [5, 0], sizes = [1, 128], strides = [1, 1]} : vector<8x128xf32> to vector<1x128xf32>
      %286 = vector.broadcast %285 : vector<1x128xf32> to vector<8x128xf32>
      %287 = arith.mulf %286, %284 : vector<8x128xf32>
      %288 = arith.addf %277, %287 : vector<8x128xf32>
      %289 = vector.extract_strided_slice %222 {offsets = [6, 0], sizes = [1, 128], strides = [1, 1]} : vector<8x128xi32> to vector<1x128xi32>
      %290 = vector.broadcast %289 : vector<1x128xi32> to vector<128x128xi32>
      %291 = arith.cmpi eq, %290, %0 : vector<128x128xi32>
      %cst_105 = arith.constant 1.000000e+00 : f32
      %cst_106 = arith.constant 0.000000e+00 : f32
      %292 = vector.broadcast %cst_105 : f32 to vector<128x128xf32>
      %293 = vector.broadcast %cst_106 : f32 to vector<128x128xf32>
      %294 = arith.select %291, %292, %293 : vector<128x128xi1>, vector<128x128xf32>
      %cst_107 = arith.constant dense<0.000000e+00> : vector<8x128xf32>
      %295 = tpu.matmul %219, %294, %cst_107 {dimension_numbers = #tpu.dot_dimension_numbers<[1], [0], [0], [1], [0, 0, 1, 1], [], []>} : vector<8x128xf32>, vector<128x128xf32>, vector<8x128xf32> -> vector<8x128xf32>
      %296 = vector.extract_strided_slice %164 {offsets = [6, 0], sizes = [1, 128], strides = [1, 1]} : vector<8x128xf32> to vector<1x128xf32>
      %297 = vector.broadcast %296 : vector<1x128xf32> to vector<8x128xf32>
      %298 = arith.mulf %297, %295 : vector<8x128xf32>
      %299 = arith.addf %288, %298 : vector<8x128xf32>
      %300 = vector.extract_strided_slice %222 {offsets = [7, 0], sizes = [1, 128], strides = [1, 1]} : vector<8x128xi32> to vector<1x128xi32>
      %301 = vector.broadcast %300 : vector<1x128xi32> to vector<128x128xi32>
      %302 = arith.cmpi eq, %301, %0 : vector<128x128xi32>
      %cst_108 = arith.constant 1.000000e+00 : f32
      %cst_109 = arith.constant 0.000000e+00 : f32
      %303 = vector.broadcast %cst_108 : f32 to vector<128x128xf32>
      %304 = vector.broadcast %cst_109 : f32 to vector<128x128xf32>
      %305 = arith.select %302, %303, %304 : vector<128x128xi1>, vector<128x128xf32>
      %cst_110 = arith.constant dense<0.000000e+00> : vector<8x128xf32>
      %306 = tpu.matmul %219, %305, %cst_110 {dimension_numbers = #tpu.dot_dimension_numbers<[1], [0], [0], [1], [0, 0, 1, 1], [], []>} : vector<8x128xf32>, vector<128x128xf32>, vector<8x128xf32> -> vector<8x128xf32>
      %307 = vector.extract_strided_slice %164 {offsets = [7, 0], sizes = [1, 128], strides = [1, 1]} : vector<8x128xf32> to vector<1x128xf32>
      %308 = vector.broadcast %307 : vector<1x128xf32> to vector<8x128xf32>
      %309 = arith.mulf %308, %306 : vector<8x128xf32>
      %310 = arith.addf %299, %309 : vector<8x128xf32>
      scf.yield %310 : vector<8x128xf32>
    }
    %c1_60 = arith.constant 1 : index
    %c0_61 = arith.constant 0 : index
    %c256_62 = arith.constant 256 : index
    %175 = vector.load %arg3[%c1_60, %c0_61, %c256_62] : memref<2x8x512xi32, #tpu.memory_space<vmem>>, vector<1x8x128xi32>
    %176 = vector.shape_cast %175 : vector<1x8x128xi32> to vector<8x128xi32>
    %177 = vector.extract_strided_slice %104 {offsets = [0, 256], sizes = [8, 128], strides = [1, 1]} : vector<8x512xf32> to vector<8x128xf32>
    %c4_i32_63 = arith.constant 4 : i32
    %178 = arith.muli %arg0, %c4_i32_63 : i32
    %c2_i32_64 = arith.constant 2 : i32
    %179 = arith.addi %178, %c2_i32_64 : i32
    %180 = arith.index_cast %179 : i32 to index
    %181 = memref.load %arg1[%180] : memref<8xi32, #tpu.memory_space<smem>>
    %c1_i32_65 = arith.constant 1 : i32
    %182 = arith.addi %179, %c1_i32_65 : i32
    %183 = arith.index_cast %182 : i32 to index
    %184 = memref.load %arg1[%183] : memref<8xi32, #tpu.memory_space<smem>>
    %185 = arith.subi %184, %181 : i32
    %186 = arith.addi %181, %185 : i32
    %c1_i32_66 = arith.constant 1 : i32
    %187 = scf.for %arg6 = %181 to %186 step %c1_i32_66 iter_args(%arg7 = %174) -> (vector<8x128xf32>)  : i32 {
      %217 = arith.index_cast %arg6 : i32 to index
      %c0_85 = arith.constant 0 : index
      %c0_86 = arith.constant 0 : index
      %218 = vector.load %arg4[%217, %c0_85, %c0_86] : memref<7x8x128xf32, #tpu.memory_space<vmem>>, vector<1x8x128xf32>
      %219 = vector.shape_cast %218 : vector<1x8x128xf32> to vector<8x128xf32>
      %c128_i32 = arith.constant 128 : i32
      %220 = arith.muli %arg6, %c128_i32 : i32
      %221 = vector.broadcast %220 : i32 to vector<8x128xi32>
      %222 = arith.subi %176, %221 : vector<8x128xi32>
      %223 = vector.extract_strided_slice %222 {offsets = [0, 0], sizes = [1, 128], strides = [1, 1]} : vector<8x128xi32> to vector<1x128xi32>
      %224 = vector.broadcast %223 : vector<1x128xi32> to vector<128x128xi32>
      %225 = arith.cmpi eq, %224, %0 : vector<128x128xi32>
      %cst_87 = arith.constant 1.000000e+00 : f32
      %cst_88 = arith.constant 0.000000e+00 : f32
      %226 = vector.broadcast %cst_87 : f32 to vector<128x128xf32>
      %227 = vector.broadcast %cst_88 : f32 to vector<128x128xf32>
      %228 = arith.select %225, %226, %227 : vector<128x128xi1>, vector<128x128xf32>
      %cst_89 = arith.constant dense<0.000000e+00> : vector<8x128xf32>
      %229 = tpu.matmul %219, %228, %cst_89 {dimension_numbers = #tpu.dot_dimension_numbers<[1], [0], [0], [1], [0, 0, 1, 1], [], []>} : vector<8x128xf32>, vector<128x128xf32>, vector<8x128xf32> -> vector<8x128xf32>
      %230 = vector.extract_strided_slice %177 {offsets = [0, 0], sizes = [1, 128], strides = [1, 1]} : vector<8x128xf32> to vector<1x128xf32>
      %231 = vector.broadcast %230 : vector<1x128xf32> to vector<8x128xf32>
      %232 = arith.mulf %231, %229 : vector<8x128xf32>
      %233 = arith.addf %arg7, %232 : vector<8x128xf32>
      %234 = vector.extract_strided_slice %222 {offsets = [1, 0], sizes = [1, 128], strides = [1, 1]} : vector<8x128xi32> to vector<1x128xi32>
      %235 = vector.broadcast %234 : vector<1x128xi32> to vector<128x128xi32>
      %236 = arith.cmpi eq, %235, %0 : vector<128x128xi32>
      %cst_90 = arith.constant 1.000000e+00 : f32
      %cst_91 = arith.constant 0.000000e+00 : f32
      %237 = vector.broadcast %cst_90 : f32 to vector<128x128xf32>
      %238 = vector.broadcast %cst_91 : f32 to vector<128x128xf32>
      %239 = arith.select %236, %237, %238 : vector<128x128xi1>, vector<128x128xf32>
      %cst_92 = arith.constant dense<0.000000e+00> : vector<8x128xf32>
      %240 = tpu.matmul %219, %239, %cst_92 {dimension_numbers = #tpu.dot_dimension_numbers<[1], [0], [0], [1], [0, 0, 1, 1], [], []>} : vector<8x128xf32>, vector<128x128xf32>, vector<8x128xf32> -> vector<8x128xf32>
      %241 = vector.extract_strided_slice %177 {offsets = [1, 0], sizes = [1, 128], strides = [1, 1]} : vector<8x128xf32> to vector<1x128xf32>
      %242 = vector.broadcast %241 : vector<1x128xf32> to vector<8x128xf32>
      %243 = arith.mulf %242, %240 : vector<8x128xf32>
      %244 = arith.addf %233, %243 : vector<8x128xf32>
      %245 = vector.extract_strided_slice %222 {offsets = [2, 0], sizes = [1, 128], strides = [1, 1]} : vector<8x128xi32> to vector<1x128xi32>
      %246 = vector.broadcast %245 : vector<1x128xi32> to vector<128x128xi32>
      %247 = arith.cmpi eq, %246, %0 : vector<128x128xi32>
      %cst_93 = arith.constant 1.000000e+00 : f32
      %cst_94 = arith.constant 0.000000e+00 : f32
      %248 = vector.broadcast %cst_93 : f32 to vector<128x128xf32>
      %249 = vector.broadcast %cst_94 : f32 to vector<128x128xf32>
      %250 = arith.select %247, %248, %249 : vector<128x128xi1>, vector<128x128xf32>
      %cst_95 = arith.constant dense<0.000000e+00> : vector<8x128xf32>
      %251 = tpu.matmul %219, %250, %cst_95 {dimension_numbers = #tpu.dot_dimension_numbers<[1], [0], [0], [1], [0, 0, 1, 1], [], []>} : vector<8x128xf32>, vector<128x128xf32>, vector<8x128xf32> -> vector<8x128xf32>
      %252 = vector.extract_strided_slice %177 {offsets = [2, 0], sizes = [1, 128], strides = [1, 1]} : vector<8x128xf32> to vector<1x128xf32>
      %253 = vector.broadcast %252 : vector<1x128xf32> to vector<8x128xf32>
      %254 = arith.mulf %253, %251 : vector<8x128xf32>
      %255 = arith.addf %244, %254 : vector<8x128xf32>
      %256 = vector.extract_strided_slice %222 {offsets = [3, 0], sizes = [1, 128], strides = [1, 1]} : vector<8x128xi32> to vector<1x128xi32>
      %257 = vector.broadcast %256 : vector<1x128xi32> to vector<128x128xi32>
      %258 = arith.cmpi eq, %257, %0 : vector<128x128xi32>
      %cst_96 = arith.constant 1.000000e+00 : f32
      %cst_97 = arith.constant 0.000000e+00 : f32
      %259 = vector.broadcast %cst_96 : f32 to vector<128x128xf32>
      %260 = vector.broadcast %cst_97 : f32 to vector<128x128xf32>
      %261 = arith.select %258, %259, %260 : vector<128x128xi1>, vector<128x128xf32>
      %cst_98 = arith.constant dense<0.000000e+00> : vector<8x128xf32>
      %262 = tpu.matmul %219, %261, %cst_98 {dimension_numbers = #tpu.dot_dimension_numbers<[1], [0], [0], [1], [0, 0, 1, 1], [], []>} : vector<8x128xf32>, vector<128x128xf32>, vector<8x128xf32> -> vector<8x128xf32>
      %263 = vector.extract_strided_slice %177 {offsets = [3, 0], sizes = [1, 128], strides = [1, 1]} : vector<8x128xf32> to vector<1x128xf32>
      %264 = vector.broadcast %263 : vector<1x128xf32> to vector<8x128xf32>
      %265 = arith.mulf %264, %262 : vector<8x128xf32>
      %266 = arith.addf %255, %265 : vector<8x128xf32>
      %267 = vector.extract_strided_slice %222 {offsets = [4, 0], sizes = [1, 128], strides = [1, 1]} : vector<8x128xi32> to vector<1x128xi32>
      %268 = vector.broadcast %267 : vector<1x128xi32> to vector<128x128xi32>
      %269 = arith.cmpi eq, %268, %0 : vector<128x128xi32>
      %cst_99 = arith.constant 1.000000e+00 : f32
      %cst_100 = arith.constant 0.000000e+00 : f32
      %270 = vector.broadcast %cst_99 : f32 to vector<128x128xf32>
      %271 = vector.broadcast %cst_100 : f32 to vector<128x128xf32>
      %272 = arith.select %269, %270, %271 : vector<128x128xi1>, vector<128x128xf32>
      %cst_101 = arith.constant dense<0.000000e+00> : vector<8x128xf32>
      %273 = tpu.matmul %219, %272, %cst_101 {dimension_numbers = #tpu.dot_dimension_numbers<[1], [0], [0], [1], [0, 0, 1, 1], [], []>} : vector<8x128xf32>, vector<128x128xf32>, vector<8x128xf32> -> vector<8x128xf32>
      %274 = vector.extract_strided_slice %177 {offsets = [4, 0], sizes = [1, 128], strides = [1, 1]} : vector<8x128xf32> to vector<1x128xf32>
      %275 = vector.broadcast %274 : vector<1x128xf32> to vector<8x128xf32>
      %276 = arith.mulf %275, %273 : vector<8x128xf32>
      %277 = arith.addf %266, %276 : vector<8x128xf32>
      %278 = vector.extract_strided_slice %222 {offsets = [5, 0], sizes = [1, 128], strides = [1, 1]} : vector<8x128xi32> to vector<1x128xi32>
      %279 = vector.broadcast %278 : vector<1x128xi32> to vector<128x128xi32>
      %280 = arith.cmpi eq, %279, %0 : vector<128x128xi32>
      %cst_102 = arith.constant 1.000000e+00 : f32
      %cst_103 = arith.constant 0.000000e+00 : f32
      %281 = vector.broadcast %cst_102 : f32 to vector<128x128xf32>
      %282 = vector.broadcast %cst_103 : f32 to vector<128x128xf32>
      %283 = arith.select %280, %281, %282 : vector<128x128xi1>, vector<128x128xf32>
      %cst_104 = arith.constant dense<0.000000e+00> : vector<8x128xf32>
      %284 = tpu.matmul %219, %283, %cst_104 {dimension_numbers = #tpu.dot_dimension_numbers<[1], [0], [0], [1], [0, 0, 1, 1], [], []>} : vector<8x128xf32>, vector<128x128xf32>, vector<8x128xf32> -> vector<8x128xf32>
      %285 = vector.extract_strided_slice %177 {offsets = [5, 0], sizes = [1, 128], strides = [1, 1]} : vector<8x128xf32> to vector<1x128xf32>
      %286 = vector.broadcast %285 : vector<1x128xf32> to vector<8x128xf32>
      %287 = arith.mulf %286, %284 : vector<8x128xf32>
      %288 = arith.addf %277, %287 : vector<8x128xf32>
      %289 = vector.extract_strided_slice %222 {offsets = [6, 0], sizes = [1, 128], strides = [1, 1]} : vector<8x128xi32> to vector<1x128xi32>
      %290 = vector.broadcast %289 : vector<1x128xi32> to vector<128x128xi32>
      %291 = arith.cmpi eq, %290, %0 : vector<128x128xi32>
      %cst_105 = arith.constant 1.000000e+00 : f32
      %cst_106 = arith.constant 0.000000e+00 : f32
      %292 = vector.broadcast %cst_105 : f32 to vector<128x128xf32>
      %293 = vector.broadcast %cst_106 : f32 to vector<128x128xf32>
      %294 = arith.select %291, %292, %293 : vector<128x128xi1>, vector<128x128xf32>
      %cst_107 = arith.constant dense<0.000000e+00> : vector<8x128xf32>
      %295 = tpu.matmul %219, %294, %cst_107 {dimension_numbers = #tpu.dot_dimension_numbers<[1], [0], [0], [1], [0, 0, 1, 1], [], []>} : vector<8x128xf32>, vector<128x128xf32>, vector<8x128xf32> -> vector<8x128xf32>
      %296 = vector.extract_strided_slice %177 {offsets = [6, 0], sizes = [1, 128], strides = [1, 1]} : vector<8x128xf32> to vector<1x128xf32>
      %297 = vector.broadcast %296 : vector<1x128xf32> to vector<8x128xf32>
      %298 = arith.mulf %297, %295 : vector<8x128xf32>
      %299 = arith.addf %288, %298 : vector<8x128xf32>
      %300 = vector.extract_strided_slice %222 {offsets = [7, 0], sizes = [1, 128], strides = [1, 1]} : vector<8x128xi32> to vector<1x128xi32>
      %301 = vector.broadcast %300 : vector<1x128xi32> to vector<128x128xi32>
      %302 = arith.cmpi eq, %301, %0 : vector<128x128xi32>
      %cst_108 = arith.constant 1.000000e+00 : f32
      %cst_109 = arith.constant 0.000000e+00 : f32
      %303 = vector.broadcast %cst_108 : f32 to vector<128x128xf32>
      %304 = vector.broadcast %cst_109 : f32 to vector<128x128xf32>
      %305 = arith.select %302, %303, %304 : vector<128x128xi1>, vector<128x128xf32>
      %cst_110 = arith.constant dense<0.000000e+00> : vector<8x128xf32>
      %306 = tpu.matmul %219, %305, %cst_110 {dimension_numbers = #tpu.dot_dimension_numbers<[1], [0], [0], [1], [0, 0, 1, 1], [], []>} : vector<8x128xf32>, vector<128x128xf32>, vector<8x128xf32> -> vector<8x128xf32>
      %307 = vector.extract_strided_slice %177 {offsets = [7, 0], sizes = [1, 128], strides = [1, 1]} : vector<8x128xf32> to vector<1x128xf32>
      %308 = vector.broadcast %307 : vector<1x128xf32> to vector<8x128xf32>
      %309 = arith.mulf %308, %306 : vector<8x128xf32>
      %310 = arith.addf %299, %309 : vector<8x128xf32>
      scf.yield %310 : vector<8x128xf32>
    }
    %c0_67 = arith.constant 0 : index
    %c256_68 = arith.constant 256 : index
    %188 = vector.load %arg5[%c0_67, %c256_68] : memref<8x512xf32, #tpu.memory_space<vmem>>, vector<8x128xf32>
    tpu.vector_store %arg5[%c0_67, %c256_68], %187 {strides = array<i32>} : memref<8x512xf32, #tpu.memory_space<vmem>>, vector<8x128xf32>,
    %cst_69 = arith.constant 0.000000e+00 : f32
    %189 = vector.broadcast %cst_69 : f32 to vector<8x128xf32>
    %c0_70 = arith.constant 0 : index
    %c0_71 = arith.constant 0 : index
    %c384 = arith.constant 384 : index
    %190 = vector.load %arg3[%c0_70, %c0_71, %c384] : memref<2x8x512xi32, #tpu.memory_space<vmem>>, vector<1x8x128xi32>
    %191 = vector.shape_cast %190 : vector<1x8x128xi32> to vector<8x128xi32>
    %192 = vector.extract_strided_slice %60 {offsets = [0, 384], sizes = [8, 128], strides = [1, 1]} : vector<8x512xf32> to vector<8x128xf32>
    %c4_i32_72 = arith.constant 4 : i32
    %193 = arith.muli %arg0, %c4_i32_72 : i32
    %c0_i32_73 = arith.constant 0 : i32
    %194 = arith.addi %193, %c0_i32_73 : i32
    %195 = arith.index_cast %194 : i32 to index
    %196 = memref.load %arg1[%195] : memref<8xi32, #tpu.memory_space<smem>>
    %c1_i32_74 = arith.constant 1 : i32
    %197 = arith.addi %194, %c1_i32_74 : i32
    %198 = arith.index_cast %197 : i32 to index
    %199 = memref.load %arg1[%198] : memref<8xi32, #tpu.memory_space<smem>>
    %200 = arith.subi %199, %196 : i32
    %201 = arith.addi %196, %200 : i32
    %c1_i32_75 = arith.constant 1 : i32
    %202 = scf.for %arg6 = %196 to %201 step %c1_i32_75 iter_args(%arg7 = %189) -> (vector<8x128xf32>)  : i32 {
      %217 = arith.index_cast %arg6 : i32 to index
      %c0_85 = arith.constant 0 : index
      %c0_86 = arith.constant 0 : index
      %218 = vector.load %arg4[%217, %c0_85, %c0_86] : memref<7x8x128xf32, #tpu.memory_space<vmem>>, vector<1x8x128xf32>
      %219 = vector.shape_cast %218 : vector<1x8x128xf32> to vector<8x128xf32>
      %c128_i32 = arith.constant 128 : i32
      %220 = arith.muli %arg6, %c128_i32 : i32
      %221 = vector.broadcast %220 : i32 to vector<8x128xi32>
      %222 = arith.subi %191, %221 : vector<8x128xi32>
      %223 = vector.extract_strided_slice %222 {offsets = [0, 0], sizes = [1, 128], strides = [1, 1]} : vector<8x128xi32> to vector<1x128xi32>
      %224 = vector.broadcast %223 : vector<1x128xi32> to vector<128x128xi32>
      %225 = arith.cmpi eq, %224, %0 : vector<128x128xi32>
      %cst_87 = arith.constant 1.000000e+00 : f32
      %cst_88 = arith.constant 0.000000e+00 : f32
      %226 = vector.broadcast %cst_87 : f32 to vector<128x128xf32>
      %227 = vector.broadcast %cst_88 : f32 to vector<128x128xf32>
      %228 = arith.select %225, %226, %227 : vector<128x128xi1>, vector<128x128xf32>
      %cst_89 = arith.constant dense<0.000000e+00> : vector<8x128xf32>
      %229 = tpu.matmul %219, %228, %cst_89 {dimension_numbers = #tpu.dot_dimension_numbers<[1], [0], [0], [1], [0, 0, 1, 1], [], []>} : vector<8x128xf32>, vector<128x128xf32>, vector<8x128xf32> -> vector<8x128xf32>
      %230 = vector.extract_strided_slice %192 {offsets = [0, 0], sizes = [1, 128], strides = [1, 1]} : vector<8x128xf32> to vector<1x128xf32>
      %231 = vector.broadcast %230 : vector<1x128xf32> to vector<8x128xf32>
      %232 = arith.mulf %231, %229 : vector<8x128xf32>
      %233 = arith.addf %arg7, %232 : vector<8x128xf32>
      %234 = vector.extract_strided_slice %222 {offsets = [1, 0], sizes = [1, 128], strides = [1, 1]} : vector<8x128xi32> to vector<1x128xi32>
      %235 = vector.broadcast %234 : vector<1x128xi32> to vector<128x128xi32>
      %236 = arith.cmpi eq, %235, %0 : vector<128x128xi32>
      %cst_90 = arith.constant 1.000000e+00 : f32
      %cst_91 = arith.constant 0.000000e+00 : f32
      %237 = vector.broadcast %cst_90 : f32 to vector<128x128xf32>
      %238 = vector.broadcast %cst_91 : f32 to vector<128x128xf32>
      %239 = arith.select %236, %237, %238 : vector<128x128xi1>, vector<128x128xf32>
      %cst_92 = arith.constant dense<0.000000e+00> : vector<8x128xf32>
      %240 = tpu.matmul %219, %239, %cst_92 {dimension_numbers = #tpu.dot_dimension_numbers<[1], [0], [0], [1], [0, 0, 1, 1], [], []>} : vector<8x128xf32>, vector<128x128xf32>, vector<8x128xf32> -> vector<8x128xf32>
      %241 = vector.extract_strided_slice %192 {offsets = [1, 0], sizes = [1, 128], strides = [1, 1]} : vector<8x128xf32> to vector<1x128xf32>
      %242 = vector.broadcast %241 : vector<1x128xf32> to vector<8x128xf32>
      %243 = arith.mulf %242, %240 : vector<8x128xf32>
      %244 = arith.addf %233, %243 : vector<8x128xf32>
      %245 = vector.extract_strided_slice %222 {offsets = [2, 0], sizes = [1, 128], strides = [1, 1]} : vector<8x128xi32> to vector<1x128xi32>
      %246 = vector.broadcast %245 : vector<1x128xi32> to vector<128x128xi32>
      %247 = arith.cmpi eq, %246, %0 : vector<128x128xi32>
      %cst_93 = arith.constant 1.000000e+00 : f32
      %cst_94 = arith.constant 0.000000e+00 : f32
      %248 = vector.broadcast %cst_93 : f32 to vector<128x128xf32>
      %249 = vector.broadcast %cst_94 : f32 to vector<128x128xf32>
      %250 = arith.select %247, %248, %249 : vector<128x128xi1>, vector<128x128xf32>
      %cst_95 = arith.constant dense<0.000000e+00> : vector<8x128xf32>
      %251 = tpu.matmul %219, %250, %cst_95 {dimension_numbers = #tpu.dot_dimension_numbers<[1], [0], [0], [1], [0, 0, 1, 1], [], []>} : vector<8x128xf32>, vector<128x128xf32>, vector<8x128xf32> -> vector<8x128xf32>
      %252 = vector.extract_strided_slice %192 {offsets = [2, 0], sizes = [1, 128], strides = [1, 1]} : vector<8x128xf32> to vector<1x128xf32>
      %253 = vector.broadcast %252 : vector<1x128xf32> to vector<8x128xf32>
      %254 = arith.mulf %253, %251 : vector<8x128xf32>
      %255 = arith.addf %244, %254 : vector<8x128xf32>
      %256 = vector.extract_strided_slice %222 {offsets = [3, 0], sizes = [1, 128], strides = [1, 1]} : vector<8x128xi32> to vector<1x128xi32>
      %257 = vector.broadcast %256 : vector<1x128xi32> to vector<128x128xi32>
      %258 = arith.cmpi eq, %257, %0 : vector<128x128xi32>
      %cst_96 = arith.constant 1.000000e+00 : f32
      %cst_97 = arith.constant 0.000000e+00 : f32
      %259 = vector.broadcast %cst_96 : f32 to vector<128x128xf32>
      %260 = vector.broadcast %cst_97 : f32 to vector<128x128xf32>
      %261 = arith.select %258, %259, %260 : vector<128x128xi1>, vector<128x128xf32>
      %cst_98 = arith.constant dense<0.000000e+00> : vector<8x128xf32>
      %262 = tpu.matmul %219, %261, %cst_98 {dimension_numbers = #tpu.dot_dimension_numbers<[1], [0], [0], [1], [0, 0, 1, 1], [], []>} : vector<8x128xf32>, vector<128x128xf32>, vector<8x128xf32> -> vector<8x128xf32>
      %263 = vector.extract_strided_slice %192 {offsets = [3, 0], sizes = [1, 128], strides = [1, 1]} : vector<8x128xf32> to vector<1x128xf32>
      %264 = vector.broadcast %263 : vector<1x128xf32> to vector<8x128xf32>
      %265 = arith.mulf %264, %262 : vector<8x128xf32>
      %266 = arith.addf %255, %265 : vector<8x128xf32>
      %267 = vector.extract_strided_slice %222 {offsets = [4, 0], sizes = [1, 128], strides = [1, 1]} : vector<8x128xi32> to vector<1x128xi32>
      %268 = vector.broadcast %267 : vector<1x128xi32> to vector<128x128xi32>
      %269 = arith.cmpi eq, %268, %0 : vector<128x128xi32>
      %cst_99 = arith.constant 1.000000e+00 : f32
      %cst_100 = arith.constant 0.000000e+00 : f32
      %270 = vector.broadcast %cst_99 : f32 to vector<128x128xf32>
      %271 = vector.broadcast %cst_100 : f32 to vector<128x128xf32>
      %272 = arith.select %269, %270, %271 : vector<128x128xi1>, vector<128x128xf32>
      %cst_101 = arith.constant dense<0.000000e+00> : vector<8x128xf32>
      %273 = tpu.matmul %219, %272, %cst_101 {dimension_numbers = #tpu.dot_dimension_numbers<[1], [0], [0], [1], [0, 0, 1, 1], [], []>} : vector<8x128xf32>, vector<128x128xf32>, vector<8x128xf32> -> vector<8x128xf32>
      %274 = vector.extract_strided_slice %192 {offsets = [4, 0], sizes = [1, 128], strides = [1, 1]} : vector<8x128xf32> to vector<1x128xf32>
      %275 = vector.broadcast %274 : vector<1x128xf32> to vector<8x128xf32>
      %276 = arith.mulf %275, %273 : vector<8x128xf32>
      %277 = arith.addf %266, %276 : vector<8x128xf32>
      %278 = vector.extract_strided_slice %222 {offsets = [5, 0], sizes = [1, 128], strides = [1, 1]} : vector<8x128xi32> to vector<1x128xi32>
      %279 = vector.broadcast %278 : vector<1x128xi32> to vector<128x128xi32>
      %280 = arith.cmpi eq, %279, %0 : vector<128x128xi32>
      %cst_102 = arith.constant 1.000000e+00 : f32
      %cst_103 = arith.constant 0.000000e+00 : f32
      %281 = vector.broadcast %cst_102 : f32 to vector<128x128xf32>
      %282 = vector.broadcast %cst_103 : f32 to vector<128x128xf32>
      %283 = arith.select %280, %281, %282 : vector<128x128xi1>, vector<128x128xf32>
      %cst_104 = arith.constant dense<0.000000e+00> : vector<8x128xf32>
      %284 = tpu.matmul %219, %283, %cst_104 {dimension_numbers = #tpu.dot_dimension_numbers<[1], [0], [0], [1], [0, 0, 1, 1], [], []>} : vector<8x128xf32>, vector<128x128xf32>, vector<8x128xf32> -> vector<8x128xf32>
      %285 = vector.extract_strided_slice %192 {offsets = [5, 0], sizes = [1, 128], strides = [1, 1]} : vector<8x128xf32> to vector<1x128xf32>
      %286 = vector.broadcast %285 : vector<1x128xf32> to vector<8x128xf32>
      %287 = arith.mulf %286, %284 : vector<8x128xf32>
      %288 = arith.addf %277, %287 : vector<8x128xf32>
      %289 = vector.extract_strided_slice %222 {offsets = [6, 0], sizes = [1, 128], strides = [1, 1]} : vector<8x128xi32> to vector<1x128xi32>
      %290 = vector.broadcast %289 : vector<1x128xi32> to vector<128x128xi32>
      %291 = arith.cmpi eq, %290, %0 : vector<128x128xi32>
      %cst_105 = arith.constant 1.000000e+00 : f32
      %cst_106 = arith.constant 0.000000e+00 : f32
      %292 = vector.broadcast %cst_105 : f32 to vector<128x128xf32>
      %293 = vector.broadcast %cst_106 : f32 to vector<128x128xf32>
      %294 = arith.select %291, %292, %293 : vector<128x128xi1>, vector<128x128xf32>
      %cst_107 = arith.constant dense<0.000000e+00> : vector<8x128xf32>
      %295 = tpu.matmul %219, %294, %cst_107 {dimension_numbers = #tpu.dot_dimension_numbers<[1], [0], [0], [1], [0, 0, 1, 1], [], []>} : vector<8x128xf32>, vector<128x128xf32>, vector<8x128xf32> -> vector<8x128xf32>
      %296 = vector.extract_strided_slice %192 {offsets = [6, 0], sizes = [1, 128], strides = [1, 1]} : vector<8x128xf32> to vector<1x128xf32>
      %297 = vector.broadcast %296 : vector<1x128xf32> to vector<8x128xf32>
      %298 = arith.mulf %297, %295 : vector<8x128xf32>
      %299 = arith.addf %288, %298 : vector<8x128xf32>
      %300 = vector.extract_strided_slice %222 {offsets = [7, 0], sizes = [1, 128], strides = [1, 1]} : vector<8x128xi32> to vector<1x128xi32>
      %301 = vector.broadcast %300 : vector<1x128xi32> to vector<128x128xi32>
      %302 = arith.cmpi eq, %301, %0 : vector<128x128xi32>
      %cst_108 = arith.constant 1.000000e+00 : f32
      %cst_109 = arith.constant 0.000000e+00 : f32
      %303 = vector.broadcast %cst_108 : f32 to vector<128x128xf32>
      %304 = vector.broadcast %cst_109 : f32 to vector<128x128xf32>
      %305 = arith.select %302, %303, %304 : vector<128x128xi1>, vector<128x128xf32>
      %cst_110 = arith.constant dense<0.000000e+00> : vector<8x128xf32>
      %306 = tpu.matmul %219, %305, %cst_110 {dimension_numbers = #tpu.dot_dimension_numbers<[1], [0], [0], [1], [0, 0, 1, 1], [], []>} : vector<8x128xf32>, vector<128x128xf32>, vector<8x128xf32> -> vector<8x128xf32>
      %307 = vector.extract_strided_slice %192 {offsets = [7, 0], sizes = [1, 128], strides = [1, 1]} : vector<8x128xf32> to vector<1x128xf32>
      %308 = vector.broadcast %307 : vector<1x128xf32> to vector<8x128xf32>
      %309 = arith.mulf %308, %306 : vector<8x128xf32>
      %310 = arith.addf %299, %309 : vector<8x128xf32>
      scf.yield %310 : vector<8x128xf32>
    }
    %c1_76 = arith.constant 1 : index
    %c0_77 = arith.constant 0 : index
    %c384_78 = arith.constant 384 : index
    %203 = vector.load %arg3[%c1_76, %c0_77, %c384_78] : memref<2x8x512xi32, #tpu.memory_space<vmem>>, vector<1x8x128xi32>
    %204 = vector.shape_cast %203 : vector<1x8x128xi32> to vector<8x128xi32>
    %205 = vector.extract_strided_slice %104 {offsets = [0, 384], sizes = [8, 128], strides = [1, 1]} : vector<8x512xf32> to vector<8x128xf32>
    %c4_i32_79 = arith.constant 4 : i32
    %206 = arith.muli %arg0, %c4_i32_79 : i32
    %c2_i32_80 = arith.constant 2 : i32
    %207 = arith.addi %206, %c2_i32_80 : i32
    %208 = arith.index_cast %207 : i32 to index
    %209 = memref.load %arg1[%208] : memref<8xi32, #tpu.memory_space<smem>>
    %c1_i32_81 = arith.constant 1 : i32
    %210 = arith.addi %207, %c1_i32_81 : i32
    %211 = arith.index_cast %210 : i32 to index
    %212 = memref.load %arg1[%211] : memref<8xi32, #tpu.memory_space<smem>>
    %213 = arith.subi %212, %209 : i32
    %214 = arith.addi %209, %213 : i32
    %c1_i32_82 = arith.constant 1 : i32
    %215 = scf.for %arg6 = %209 to %214 step %c1_i32_82 iter_args(%arg7 = %202) -> (vector<8x128xf32>)  : i32 {
      %217 = arith.index_cast %arg6 : i32 to index
      %c0_85 = arith.constant 0 : index
      %c0_86 = arith.constant 0 : index
      %218 = vector.load %arg4[%217, %c0_85, %c0_86] : memref<7x8x128xf32, #tpu.memory_space<vmem>>, vector<1x8x128xf32>
      %219 = vector.shape_cast %218 : vector<1x8x128xf32> to vector<8x128xf32>
      %c128_i32 = arith.constant 128 : i32
      %220 = arith.muli %arg6, %c128_i32 : i32
      %221 = vector.broadcast %220 : i32 to vector<8x128xi32>
      %222 = arith.subi %204, %221 : vector<8x128xi32>
      %223 = vector.extract_strided_slice %222 {offsets = [0, 0], sizes = [1, 128], strides = [1, 1]} : vector<8x128xi32> to vector<1x128xi32>
      %224 = vector.broadcast %223 : vector<1x128xi32> to vector<128x128xi32>
      %225 = arith.cmpi eq, %224, %0 : vector<128x128xi32>
      %cst_87 = arith.constant 1.000000e+00 : f32
      %cst_88 = arith.constant 0.000000e+00 : f32
      %226 = vector.broadcast %cst_87 : f32 to vector<128x128xf32>
      %227 = vector.broadcast %cst_88 : f32 to vector<128x128xf32>
      %228 = arith.select %225, %226, %227 : vector<128x128xi1>, vector<128x128xf32>
      %cst_89 = arith.constant dense<0.000000e+00> : vector<8x128xf32>
      %229 = tpu.matmul %219, %228, %cst_89 {dimension_numbers = #tpu.dot_dimension_numbers<[1], [0], [0], [1], [0, 0, 1, 1], [], []>} : vector<8x128xf32>, vector<128x128xf32>, vector<8x128xf32> -> vector<8x128xf32>
      %230 = vector.extract_strided_slice %205 {offsets = [0, 0], sizes = [1, 128], strides = [1, 1]} : vector<8x128xf32> to vector<1x128xf32>
      %231 = vector.broadcast %230 : vector<1x128xf32> to vector<8x128xf32>
      %232 = arith.mulf %231, %229 : vector<8x128xf32>
      %233 = arith.addf %arg7, %232 : vector<8x128xf32>
      %234 = vector.extract_strided_slice %222 {offsets = [1, 0], sizes = [1, 128], strides = [1, 1]} : vector<8x128xi32> to vector<1x128xi32>
      %235 = vector.broadcast %234 : vector<1x128xi32> to vector<128x128xi32>
      %236 = arith.cmpi eq, %235, %0 : vector<128x128xi32>
      %cst_90 = arith.constant 1.000000e+00 : f32
      %cst_91 = arith.constant 0.000000e+00 : f32
      %237 = vector.broadcast %cst_90 : f32 to vector<128x128xf32>
      %238 = vector.broadcast %cst_91 : f32 to vector<128x128xf32>
      %239 = arith.select %236, %237, %238 : vector<128x128xi1>, vector<128x128xf32>
      %cst_92 = arith.constant dense<0.000000e+00> : vector<8x128xf32>
      %240 = tpu.matmul %219, %239, %cst_92 {dimension_numbers = #tpu.dot_dimension_numbers<[1], [0], [0], [1], [0, 0, 1, 1], [], []>} : vector<8x128xf32>, vector<128x128xf32>, vector<8x128xf32> -> vector<8x128xf32>
      %241 = vector.extract_strided_slice %205 {offsets = [1, 0], sizes = [1, 128], strides = [1, 1]} : vector<8x128xf32> to vector<1x128xf32>
      %242 = vector.broadcast %241 : vector<1x128xf32> to vector<8x128xf32>
      %243 = arith.mulf %242, %240 : vector<8x128xf32>
      %244 = arith.addf %233, %243 : vector<8x128xf32>
      %245 = vector.extract_strided_slice %222 {offsets = [2, 0], sizes = [1, 128], strides = [1, 1]} : vector<8x128xi32> to vector<1x128xi32>
      %246 = vector.broadcast %245 : vector<1x128xi32> to vector<128x128xi32>
      %247 = arith.cmpi eq, %246, %0 : vector<128x128xi32>
      %cst_93 = arith.constant 1.000000e+00 : f32
      %cst_94 = arith.constant 0.000000e+00 : f32
      %248 = vector.broadcast %cst_93 : f32 to vector<128x128xf32>
      %249 = vector.broadcast %cst_94 : f32 to vector<128x128xf32>
      %250 = arith.select %247, %248, %249 : vector<128x128xi1>, vector<128x128xf32>
      %cst_95 = arith.constant dense<0.000000e+00> : vector<8x128xf32>
      %251 = tpu.matmul %219, %250, %cst_95 {dimension_numbers = #tpu.dot_dimension_numbers<[1], [0], [0], [1], [0, 0, 1, 1], [], []>} : vector<8x128xf32>, vector<128x128xf32>, vector<8x128xf32> -> vector<8x128xf32>
      %252 = vector.extract_strided_slice %205 {offsets = [2, 0], sizes = [1, 128], strides = [1, 1]} : vector<8x128xf32> to vector<1x128xf32>
      %253 = vector.broadcast %252 : vector<1x128xf32> to vector<8x128xf32>
      %254 = arith.mulf %253, %251 : vector<8x128xf32>
      %255 = arith.addf %244, %254 : vector<8x128xf32>
      %256 = vector.extract_strided_slice %222 {offsets = [3, 0], sizes = [1, 128], strides = [1, 1]} : vector<8x128xi32> to vector<1x128xi32>
      %257 = vector.broadcast %256 : vector<1x128xi32> to vector<128x128xi32>
      %258 = arith.cmpi eq, %257, %0 : vector<128x128xi32>
      %cst_96 = arith.constant 1.000000e+00 : f32
      %cst_97 = arith.constant 0.000000e+00 : f32
      %259 = vector.broadcast %cst_96 : f32 to vector<128x128xf32>
      %260 = vector.broadcast %cst_97 : f32 to vector<128x128xf32>
      %261 = arith.select %258, %259, %260 : vector<128x128xi1>, vector<128x128xf32>
      %cst_98 = arith.constant dense<0.000000e+00> : vector<8x128xf32>
      %262 = tpu.matmul %219, %261, %cst_98 {dimension_numbers = #tpu.dot_dimension_numbers<[1], [0], [0], [1], [0, 0, 1, 1], [], []>} : vector<8x128xf32>, vector<128x128xf32>, vector<8x128xf32> -> vector<8x128xf32>
      %263 = vector.extract_strided_slice %205 {offsets = [3, 0], sizes = [1, 128], strides = [1, 1]} : vector<8x128xf32> to vector<1x128xf32>
      %264 = vector.broadcast %263 : vector<1x128xf32> to vector<8x128xf32>
      %265 = arith.mulf %264, %262 : vector<8x128xf32>
      %266 = arith.addf %255, %265 : vector<8x128xf32>
      %267 = vector.extract_strided_slice %222 {offsets = [4, 0], sizes = [1, 128], strides = [1, 1]} : vector<8x128xi32> to vector<1x128xi32>
      %268 = vector.broadcast %267 : vector<1x128xi32> to vector<128x128xi32>
      %269 = arith.cmpi eq, %268, %0 : vector<128x128xi32>
      %cst_99 = arith.constant 1.000000e+00 : f32
      %cst_100 = arith.constant 0.000000e+00 : f32
      %270 = vector.broadcast %cst_99 : f32 to vector<128x128xf32>
      %271 = vector.broadcast %cst_100 : f32 to vector<128x128xf32>
      %272 = arith.select %269, %270, %271 : vector<128x128xi1>, vector<128x128xf32>
      %cst_101 = arith.constant dense<0.000000e+00> : vector<8x128xf32>
      %273 = tpu.matmul %219, %272, %cst_101 {dimension_numbers = #tpu.dot_dimension_numbers<[1], [0], [0], [1], [0, 0, 1, 1], [], []>} : vector<8x128xf32>, vector<128x128xf32>, vector<8x128xf32> -> vector<8x128xf32>
      %274 = vector.extract_strided_slice %205 {offsets = [4, 0], sizes = [1, 128], strides = [1, 1]} : vector<8x128xf32> to vector<1x128xf32>
      %275 = vector.broadcast %274 : vector<1x128xf32> to vector<8x128xf32>
      %276 = arith.mulf %275, %273 : vector<8x128xf32>
      %277 = arith.addf %266, %276 : vector<8x128xf32>
      %278 = vector.extract_strided_slice %222 {offsets = [5, 0], sizes = [1, 128], strides = [1, 1]} : vector<8x128xi32> to vector<1x128xi32>
      %279 = vector.broadcast %278 : vector<1x128xi32> to vector<128x128xi32>
      %280 = arith.cmpi eq, %279, %0 : vector<128x128xi32>
      %cst_102 = arith.constant 1.000000e+00 : f32
      %cst_103 = arith.constant 0.000000e+00 : f32
      %281 = vector.broadcast %cst_102 : f32 to vector<128x128xf32>
      %282 = vector.broadcast %cst_103 : f32 to vector<128x128xf32>
      %283 = arith.select %280, %281, %282 : vector<128x128xi1>, vector<128x128xf32>
      %cst_104 = arith.constant dense<0.000000e+00> : vector<8x128xf32>
      %284 = tpu.matmul %219, %283, %cst_104 {dimension_numbers = #tpu.dot_dimension_numbers<[1], [0], [0], [1], [0, 0, 1, 1], [], []>} : vector<8x128xf32>, vector<128x128xf32>, vector<8x128xf32> -> vector<8x128xf32>
      %285 = vector.extract_strided_slice %205 {offsets = [5, 0], sizes = [1, 128], strides = [1, 1]} : vector<8x128xf32> to vector<1x128xf32>
      %286 = vector.broadcast %285 : vector<1x128xf32> to vector<8x128xf32>
      %287 = arith.mulf %286, %284 : vector<8x128xf32>
      %288 = arith.addf %277, %287 : vector<8x128xf32>
      %289 = vector.extract_strided_slice %222 {offsets = [6, 0], sizes = [1, 128], strides = [1, 1]} : vector<8x128xi32> to vector<1x128xi32>
      %290 = vector.broadcast %289 : vector<1x128xi32> to vector<128x128xi32>
      %291 = arith.cmpi eq, %290, %0 : vector<128x128xi32>
      %cst_105 = arith.constant 1.000000e+00 : f32
      %cst_106 = arith.constant 0.000000e+00 : f32
      %292 = vector.broadcast %cst_105 : f32 to vector<128x128xf32>
      %293 = vector.broadcast %cst_106 : f32 to vector<128x128xf32>
      %294 = arith.select %291, %292, %293 : vector<128x128xi1>, vector<128x128xf32>
      %cst_107 = arith.constant dense<0.000000e+00> : vector<8x128xf32>
      %295 = tpu.matmul %219, %294, %cst_107 {dimension_numbers = #tpu.dot_dimension_numbers<[1], [0], [0], [1], [0, 0, 1, 1], [], []>} : vector<8x128xf32>, vector<128x128xf32>, vector<8x128xf32> -> vector<8x128xf32>
      %296 = vector.extract_strided_slice %205 {offsets = [6, 0], sizes = [1, 128], strides = [1, 1]} : vector<8x128xf32> to vector<1x128xf32>
      %297 = vector.broadcast %296 : vector<1x128xf32> to vector<8x128xf32>
      %298 = arith.mulf %297, %295 : vector<8x128xf32>
      %299 = arith.addf %288, %298 : vector<8x128xf32>
      %300 = vector.extract_strided_slice %222 {offsets = [7, 0], sizes = [1, 128], strides = [1, 1]} : vector<8x128xi32> to vector<1x128xi32>
      %301 = vector.broadcast %300 : vector<1x128xi32> to vector<128x128xi32>
      %302 = arith.cmpi eq, %301, %0 : vector<128x128xi32>
      %cst_108 = arith.constant 1.000000e+00 : f32
      %cst_109 = arith.constant 0.000000e+00 : f32
      %303 = vector.broadcast %cst_108 : f32 to vector<128x128xf32>
      %304 = vector.broadcast %cst_109 : f32 to vector<128x128xf32>
      %305 = arith.select %302, %303, %304 : vector<128x128xi1>, vector<128x128xf32>
      %cst_110 = arith.constant dense<0.000000e+00> : vector<8x128xf32>
      %306 = tpu.matmul %219, %305, %cst_110 {dimension_numbers = #tpu.dot_dimension_numbers<[1], [0], [0], [1], [0, 0, 1, 1], [], []>} : vector<8x128xf32>, vector<128x128xf32>, vector<8x128xf32> -> vector<8x128xf32>
      %307 = vector.extract_strided_slice %205 {offsets = [7, 0], sizes = [1, 128], strides = [1, 1]} : vector<8x128xf32> to vector<1x128xf32>
      %308 = vector.broadcast %307 : vector<1x128xf32> to vector<8x128xf32>
      %309 = arith.mulf %308, %306 : vector<8x128xf32>
      %310 = arith.addf %299, %309 : vector<8x128xf32>
      scf.yield %310 : vector<8x128xf32>
    }
    %c0_83 = arith.constant 0 : index
    %c384_84 = arith.constant 384 : index
    %216 = vector.load %arg5[%c0_83, %c384_84] : memref<8x512xf32, #tpu.memory_space<vmem>>, vector<8x128xf32>
    tpu.vector_store %arg5[%c0_83, %c384_84], %215 {strides = array<i32>} : memref<8x512xf32, #tpu.memory_space<vmem>>, vector<8x128xf32>,
    return
  }
  func.func @transform_0(%arg0: i32, %arg1: memref<8xi32, #tpu.memory_space<smem>>) -> (i32, i32) {
    %c0_i32 = arith.constant 0 : i32
    %c0_i32_0 = arith.constant 0 : i32
    return %c0_i32, %arg0 : i32, i32
  }
  func.func @transform_1(%arg0: i32, %arg1: memref<8xi32, #tpu.memory_space<smem>>) -> (i32, i32, i32) {
    %c0_i32 = arith.constant 0 : i32
    %c0_i32_0 = arith.constant 0 : i32
    %c0_i32_1 = arith.constant 0 : i32
    return %c0_i32, %c0_i32_0, %arg0 : i32, i32, i32
  }
  func.func @transform_2(%arg0: i32, %arg1: memref<8xi32, #tpu.memory_space<smem>>) -> (i32, i32, i32) {
    %c0_i32 = arith.constant 0 : i32
    %c0_i32_0 = arith.constant 0 : i32
    %c0_i32_1 = arith.constant 0 : i32
    %c0_i32_2 = arith.constant 0 : i32
    return %c0_i32, %c0_i32_0, %c0_i32_1 : i32, i32, i32
  }
  func.func @transform_3(%arg0: i32, %arg1: memref<8xi32, #tpu.memory_space<smem>>) -> (i32, i32) {
    %c0_i32 = arith.constant 0 : i32
    %c0_i32_0 = arith.constant 0 : i32
    return %c0_i32, %arg0 : i32, i32
  }
}

</mosaic_0001>

<bundles_post_ra>
// kernel: tpu_custom_call.1
= control target key start
LH: loop header
LB: loop body
LE: loop exit
PB: predicated region body
PF: predicated region fallthrough
CT: control target
= control target key end

     0   :  { %s6150_s18 = smov [#allocation3]   ;;  %s10179_s0 = inlined_call_operand.hbm [shape: s32[8], index: 0, kind: input, shape index: {}]   ;;  %s10180_s1 = inlined_call_operand.hbm [shape: f32[3,1024], index: 1, kind: input, shape index: {}]   ;;  %s10181_s2 = inlined_call_operand.hbm [shape: s32[2,8,1024], index: 2, kind: input, shape index: {}]   ;;  %s10182_s3 = inlined_call_operand.hbm [shape: f32[7,8,128], index: 3, kind: input, shape index: {}]   ;;  %s10183_s4 = inlined_call_operand.hbm [shape: f32[8,1024], index: 4, kind: output, shape index: {}]  }
   0x1   :  { %10184 = sst [smem:[#allocation16_spill]] %s10182_s3  ;;  %s10_s17 = sshll.u32 %s10179_s0, 4  ;;  %s11_s17 = int_to_ptr.hbm [resolvable:$true] %s10_s17 }
   0x2   :  { %13 = dma.hbm_to_smem %s11_s17, 16, %s6150_s18, [#allocation2] }
   0x3   :  { %6020 = dma.done.wait [#allocation2], 16 }
   0x4   :  { %6021 = vsyncadd [#allocation2], 4294967280 }
   0x5   :  { %16 = sfence }
   0x6   :  { %17 = vsyncpa [#allocation5], 0 }
   0x7   :  { %19 = vsyncpa [#allocation5 + $0x1], 0 }
   0x8   :  { %20 = vsyncpa [#allocation8], 0 }
   0x9   :  { %22 = vsyncpa [#allocation8 + $0x1], 0 }
   0xa   :  { %23 = vsyncpa [#allocation6], 0 }
   0xb   :  { %25 = vsyncpa [#allocation6 + $0x1], 0  ;;  %s6193_s19 = smov 0   ;;  %s6195_s20 = smov 0  }
   0xc   :  { %s6197_s21 = smov 0   ;;  %s6199_s22 = smov 0  }
   0xd LB: > { %s10185_s3 = sld [smem:[#allocation16_spill]]  ;;  %s6217_s25 = sadd.s32 4294967295, %s6052_s22   ;;  %s6052_s22 = sphi %s6199_s22, %s10216_s22   ;;  %s6048_s21 = sphi %s6197_s21, %s10215_s21   ;;  %s6044_s20 = sphi %s6195_s20, %s10214_s20   ;;  %s6040_s19 = sphi %s6193_s19, %s10213_s19  }
   0xe   : > { %p4443_p0 = scmp.ge.s32.totalorder %s6052_s22, 1  ;;  %p52_p1 = scmp.eq.s32.totalorder %s6217_s25, 0 }
   0xf   : > { %p135_p2 = scmp.lt.s32.totalorder %s6052_s22, 3  ;;  %s6151_s27 = smov [#allocation9]  }
  0x10   : > { %s148_s28 = sshll.u32 %s6151_s27, 4  ;;  %s6152_s29 = smov 128   ;;  %s149_s28 = int_to_ptr.vmem [resolvable:$true] %s148_s28 }
  0x11   : > { %p6222_p3 = pnand %p4443_p0, %p135_p2  ;;  %s6153_s30 = smov 8  }
  0x12   : > { %s4442_s5 = sadd.s32 4294967294, %s6052_s22   ;;  %s6233_s6 = sadd.s32 1, %s6052_s22  }
  0x13   : > { %s146_s24 = sshll.u32 %s10185_s3, 4  ;;  %p5520_p4 = pneg %p6222_p3  ;;  %s147_s24 = int_to_ptr.hbm [resolvable:$true] %s146_s24 }
  0x14   : > { %s38_s7 = sadd.s32 1, %s6048_s21  ;;  %s35_s8 = ssub.s32 %s6052_s22, %s6233_s6 }
  0x15   : > { %p5521_p6 = pnand %p5520_p4, %p52_p1  ;;  %p45_p7 = scmp.ne.s32.totalorder %s6048_s21, %s6044_s20 }
  0x16   : > { %p36_p8 = scmp.eq.s32.totalorder %s35_s8, 0  ;;  %p46_p9 = scmp.eq.s32.totalorder %s6052_s22, 0 }
  0x17   : > { %5523 = dma.hbm_to_vmem [thread:$0]  (!%p5521_p6), %s147_s24, 896, %s149_s28, [#allocation8], %s6152_s29, %s6152_s29, %s6153_s30  }
  0x18   : > { %p51_p10 = scmp.ne.s32.totalorder %s6044_s20, %s6040_s19  ;;  %p122_p11 = scmp.eq.s32.totalorder %s6217_s25, 1 }
  0x19   : > { %s6245_s9 = scalar_select %p36_p8, %s6048_s21, %s38_s7  }
  0x1a   : > { %p6247_p12 = por %p46_p9, %p45_p7  ;;  %p6253_p13 = por %p52_p1, %p51_p10 }
  0x1b   : > { %p6257_p0 = por %p122_p11, %p45_p7  ;;  %p128_p2 = scmp.eq.s32.totalorder %s4442_s5, 1 }
  0x1c   : > { %p5536_p4 = scmp.lt.s32.totalorder %s6052_s22, 2  ;;  %s6263_s13 = sand.u32 1, %s6048_s21  }
  0x1d   : > { %p6265_p6 = por %p128_p2, %p51_p10  ;;  %s4446_s15 = sshll.u32 %s6263_s13, 4 }
  0x1e   : > { %s5507_s16 = sshll.u32 %s6052_s22, 4  ;;  %s166_s24 = scalar_lea.vmem [#allocation4], %s4446_s15 }
  0x1f   : > { %s171_s0 = scalar_lea.hbm %s10180_s1, %s5507_s16  ;;  %s175_s27 = sshll.u32 %s166_s24, 4  ;;  %s176_s27 = int_to_ptr.vmem [resolvable:$true] %s175_s27 }
  0x20   : > { %s173_s23 = sshll.u32 %s171_s0, 4  ;;  %p6276_p7 = pnand %p5536_p4, %p6247_p12  ;;  %s174_s23 = int_to_ptr.hbm [resolvable:$true] %s173_s23 }
  0x21   : > { %s4449_s29 = sshll.u32 %s6263_s13, 6  ;;  %s182_s30 = sand.u32 1, %s6052_s22  }
  0x22   : > { %s186_s5 = scalar_lea.vmem [#allocation7], %s4449_s29  ;;  %s163_s8 = scalar_lea.sflag [#allocation5], %s6263_s13 }
  0x23   : > { %s194_s7 = sshll.u32 %s186_s5, 4  ;;  %s5820_s3 = sshra.s32 %s174_s23, 4  ;;  %s5821_s3 = int_to_ptr.hbm [resolvable:$true] %s5820_s3  ;;  %s195_s7 = int_to_ptr.vmem [resolvable:$true] %s194_s7 }
  0x24   : > { %s5822_s16 = scalar_lea.hbm %s5821_s3, 16  ;;  %p5824_p9 = pneg %p6276_p7 }
  0x25   : > { %p5823_p8 = scmp.ne.s32.totalorder %s5821_s3, %s5822_s16  ;;  %s5827_s17 = scalar_lea.hbm %s10180_s1, 32 }
  0x26   : > { %p5828_p12 = scmp.lt.s32.totalorder %s5821_s3, %s10180_s1  ;;  %p5829_p2 = scmp.lt.s32.totalorder %s5827_s17, %s5822_s16 }
  0x27   : > { %p5825_p10 = pnand %p5824_p9, %p5823_p8 }
  0x28   : > { %p5830_p4 = por %p5829_p2, %p5828_p12 }
  0x29   : > { %p5826_p11 = pneg %p5825_p10 }
  0x2b   : > { %p5831_p5 = pnand %p5830_p4, %p5826_p11 }
  0x2d   : > { %5834 = shalt.err (!%p5831_p5)
}
  0x2e   : > { %5527 = dma.hbm_to_vmem [thread:$0]  (!%p6276_p7), %s174_s23, 256, %s176_s27, %s163_s8  }
  0x2f   : > { %s5508_s13 = sshll.u32 %s6052_s22, 5  ;;  %s183_s15 = scalar_lea.sflag [#allocation8], %s182_s30 }
  0x30   : > { %s191_s5 = scalar_lea.hbm %s10181_s2, %s5508_s13  ;;  %s5857_s23 = scalar_lea.hbm %s10181_s2, 128 }
  0x31   : > { %s192_s10 = sshll.u32 %s191_s5, 4  ;;  %s193_s10 = int_to_ptr.hbm [resolvable:$true] %s192_s10 }
  0x32   : > { %s5850_s18 = sshra.s32 %s193_s10, 4  ;;  %s5851_s18 = int_to_ptr.hbm [resolvable:$true] %s5850_s18 }
  0x33   : > { %s5852_s3 = scalar_lea.hbm %s5851_s18, 64  ;;  %p5858_p11 = scmp.lt.s32.totalorder %s5851_s18, %s10181_s2 }
  0x34   : > { %p5853_p8 = scmp.ne.s32.totalorder %s5851_s18, %s5852_s3  ;;  %p5859_p12 = scmp.lt.s32.totalorder %s5857_s23, %s5852_s3 }
  0x36   : > { %p5855_p5 = pnand %p5853_p8, %p5824_p9  ;;  %p5860_p2 = por %p5859_p12, %p5858_p11 }
  0x38   : > { %p5856_p10 = pneg %p5855_p5 }
  0x3a   : > { %p5861_p4 = pnand %p5860_p2, %p5856_p10 }
  0x3c   : > { %5864 = shalt.err (!%p5861_p4)
}
  0x3d   : > { %s6154_s30 = smov 1024   ;;  %s6155_s0 = smov 512  }
  0x3e   : > { %s6156_s13 = smov 32   ;;  %206 = sbr.rel (%p6222_p3) target bundleno = 1929 (0x789), region = 32 }
  0x3f   : > { %5530 = dma.hbm_to_vmem [thread:$0]  (!%p6276_p7), %s193_s10, 1024, %s195_s7, %s183_s15, %s6154_s30, %s6155_s0, %s6156_s13  }
  0x40   : > { %s6314_s24 = sand.u32 (!%p6222_p3), 1, %s6044_s20  }
  0x41   : > { %s4453_s29 = sshll.u32 (!%p6222_p3), %s6314_s24, 4  ;;  %s209_s5 = scalar_lea.sflag (!%p6222_p3), [#allocation5], %s6314_s24 }
  0x42   : > { %s6318_s18 = scalar_lea.vmem (!%p6222_p3), [#allocation4], %s4453_s29 }
  0x43   : > { %6023 = dma.done.wait (%p6253_p13), %s209_s5, 256  }
  0x44   : > { %6025 = vsyncadd (%p6253_p13), %s209_s5, 4294967040  ;;  %s218_s26 = sand.u32 1, %s6217_s25   ;;  %s4454_s28 = sshll.u32 %s6314_s24, 6 }
  0x45   : > { %s219_s7 = scalar_lea.sflag [#allocation8], %s218_s26  ;;  %s6326_s10 = scalar_lea.vmem [#allocation7], %s4454_s28 }
  0x46   : > { %6027 = dma.done.wait (%p6253_p13), %s219_s7, 1024  }
  0x47   : > { %6029 = vsyncadd (%p6253_p13), %s219_s7, 4294966272 }
  0x48   : > { %6031 = dma.done.wait (%p52_p1), [#allocation8], 896  }
  0x49   : > { %6033 = vsyncadd (%p52_p1), [#allocation8], 4294966400  ;;  %s4456_s15 = sshll.u32 %s6314_s24, 5  ;;  %v259_v0 = vlaneseq  ;;  %s6338_s3 = sshll.u32 %s6217_s25, 2  ;;  %v281_v17 = vld [vmem:[%s6318_s18] sm:$0x77] }
  0x4a   : > { %s6341_s16 = sld [smem:[#allocation3 + %s6338_s3]]   ;;  %s6346_s11 = sadd.s32 1, %s6338_s3  ;;  %v282_v18 = vld [vmem:[%s6318_s18 + $0x8] sm:$0x77]  ;;  %v283_v19 = vmul.f32 0.5, %v281_v17 }
  0x4b   : > { %v6343_v1 = vshrl.u32 %v259_v0, 7  ;;  %s6349_s17 = sld [smem:[#allocation3 + %s6346_s11]]  ;;  %v284_v20 = vmul.f32 0.5, %v282_v18  ;;  %s6530_s23 = scalar_lea.vmem [#allocation10], %s4456_s15 }
  0x4c   : > { %v285_v21 = vadd.f32 0.5, %v283_v19 }
  0x4d   : > { %v6352_v2 = vadd.s32 8, %v6343_v1  ;;  %v6355_v3 = vadd.s32 16, %v6343_v1  ;;  %v6358_v4 = vadd.s32 24, %v6343_v1  ;;  %v6361_v5 = vadd.s32 32, %v6343_v1 }
  0x4e   : > { %v6364_v6 = vadd.s32 40, %v6343_v1  ;;  %v6367_v7 = vadd.s32 48, %v6343_v1  ;;  %v6370_v8 = vadd.s32 56, %v6343_v1  ;;  %v6373_v9 = vadd.s32 64, %v6343_v1 }
  0x4f   : > { %v6376_v10 = vadd.s32 72, %v6343_v1  ;;  %v6379_v11 = vadd.s32 80, %v6343_v1  ;;  %v6382_v12 = vadd.s32 88, %v6343_v1  ;;  %v6385_v13 = vadd.s32 96, %v6343_v1 }
  0x50   : > { %v6388_v14 = vadd.s32 104, %v6343_v1  ;;  %v6391_v15 = vadd.s32 112, %v6343_v1  ;;  %v6394_v16 = vadd.s32 120, %v6343_v1  ;;  %v286_v22 = vadd.f32 0.5, %v284_v20 }
  0x51   : > { %v287_v23 = vmul.f32 8.0, %v285_v21  ;;  %v406_v24 = vmul.f32 4.0, %v285_v21  ;;  %v276_v29 = vshra.s32 %v6343_v1, 2  ;;  %v278_v36 = vshra.s32 %v6343_v1, 1  ;;  %p4337_p1 = scmp.ge.s32.totalorder %s6341_s16, %s6349_s17 }
  0x52   : > { %v288_v25 = vmul.f32 8.0, %v286_v22  ;;  %v407_v26 = vmul.f32 4.0, %v286_v22  ;;  %v280_v55 = vand.u32 1, %v6343_v1 }
  0x53   : > { %v289_v27 = vfloor.f32 %v287_v23  ;;  %v408_v28 = vfloor.f32 %v406_v24  ;;  %v6400_v40 = vand.u32 1, %v276_v29  ;;  %v6402_v52 = vand.u32 1, %v278_v36 }
  0x54   : > { %v290_v30 = vfloor.f32 %v288_v25  ;;  %v409_v31 = vfloor.f32 %v407_v26  ;;  %vm6426_vm2 = vcmp.eq.s32.totalorder %v280_v55, 1 }
  0x55   : > { %v291_v32 = vsub.f32 %v287_v23, %v289_v27  ;;  %v410_v33 = vsub.f32 %v406_v24, %v408_v28  ;;  %vm305_vm0 = vcmp.eq.s32.totalorder %v6400_v40, 1  ;;  %vm340_vm1 = vcmp.eq.s32.totalorder %v6402_v52, 1 }
  0x56   : > { %v292_v34 = vsub.f32 %v288_v25, %v290_v30  ;;  %v411_v35 = vsub.f32 %v407_v26, %v409_v31 }
  0x57   : > { %v293_v37 = vmul.f32 3.0, %v291_v32  ;;  %v297_v38 = vmul.f32 2.0, %v291_v32  ;;  %v416_v39 = vmul.f32 2.0, %v410_v33  ;;  %v412_v46 = vmul.f32 3.0, %v410_v33 }
  0x58   : > { %v294_v41 = vmul.f32 3.0, %v292_v34  ;;  %v298_v42 = vmul.f32 2.0, %v292_v34  ;;  %v417_v43 = vmul.f32 2.0, %v411_v35  ;;  %v413_v47 = vmul.f32 3.0, %v411_v35 }
  0x59   : > { %v295_v44 = vmul.f32 %v293_v37, %v291_v32  ;;  %v299_v45 = vmul.f32 %v297_v38, %v291_v32  ;;  %v418_v50 = vmul.f32 %v416_v39, %v410_v33  ;;  %v414_v57 = vmul.f32 %v412_v46, %v410_v33 }
  0x5a   : > { %v296_v48 = vmul.f32 %v294_v41, %v292_v34  ;;  %v300_v49 = vmul.f32 %v298_v42, %v292_v34  ;;  %v419_v51 = vmul.f32 %v417_v43, %v411_v35  ;;  %v415_v59 = vmul.f32 %v413_v47, %v411_v35 }
  0x5b   : > { %v301_v53 = vmul.f32 %v299_v45, %v291_v32  ;;  %v420_v60 = vmul.f32 %v418_v50, %v410_v33 }
  0x5c   : > { %v302_v54 = vmul.f32 %v300_v49, %v292_v34  ;;  %v421_v61 = vmul.f32 %v419_v51, %v411_v35  ;;  %v6420_v34 = vld [vmem:[%s6326_s10] sm:$0xff] }
  0x5d   : > { %v303_v56 = vsub.f32 %v295_v44, %v301_v53  ;;  %v6415_v28 = vsub.f32 %v414_v57, %v420_v60 }
  0x5e   : > { %v304_v58 = vsub.f32 %v296_v48, %v302_v54  ;;  %v6417_v29 = vsub.f32 %v415_v59, %v421_v61 }
  0x5f   : > { %v6406_v62 = vsub.f32 1.0, %v303_v56  ;;  %v310_v63 = vperm.slane %v303_v56, 0  ;;  %v311_v0 = vperm.slane %v303_v56, 4  ;;  %v341_v17 = vperm.slane %v303_v56, 1 }
  0x60   : > { %v6409_v18 = vsub.f32 1.0, %v304_v58  ;;  %v312_v19 = vperm.slane %v304_v58, 0  ;;  %v313_v20 = vperm.slane %v304_v58, 4  ;;  %v342_v21 = vperm.slane %v303_v56, 5 }
  0x61   : > { %v318_v22 = vperm.slane %v310_v63, 0  ;;  %v319_v23 = vperm.slane %v311_v0, 0  ;;  %v324_v24 = vperm.slane %v6406_v62, 0  ;;  %v325_v25 = vperm.slane %v6406_v62, 4 }
  0x62   : > { %v326_v26 = vperm.slane %v6409_v18, 0  ;;  %v327_v27 = vperm.slane %v6409_v18, 4  ;;  %v343_v32 = vperm.slane %v304_v58, 1  ;;  %v344_v33 = vperm.slane %v304_v58, 5 }
  0x63   : > { %v332_v30 = vperm.slane %v324_v24, 0  ;;  %v333_v31 = vperm.slane %v325_v25, 0  ;;  %v320_v35 = vperm.slane %v312_v19, 0  ;;  %v321_v36 = vperm.slane %v313_v20, 0 }
  0x64   : > { %v334_v37 = vperm.slane %v326_v26, 0  ;;  %v335_v38 = vperm.slane %v327_v27, 0  ;;  %v349_v42 = vperm.slane %v341_v17, 1  ;;  %v350_v43 = vperm.slane %v342_v21, 1 }
  0x65   : > { %v336_v39 = vsel %vm305_vm0, %v318_v22, %v332_v30  ;;  %v337_v41 = vsel %vm305_vm0, %v319_v23, %v333_v31  ;;  %v351_v45 = vperm.slane %v343_v32, 1  ;;  %v352_v46 = vperm.slane %v344_v33, 1 }
  0x66   : > { %v353_v47 = vperm.slane %v6406_v62, 1  ;;  %v354_v48 = vperm.slane %v6406_v62, 5  ;;  %v355_v49 = vperm.slane %v6409_v18, 1  ;;  %v356_v50 = vperm.slane %v6409_v18, 5 }
  0x67   : > { %v374_v51 = vperm.slane %v303_v56, 2  ;;  %v375_v53 = vperm.slane %v303_v56, 6  ;;  %v376_v59 = vperm.slane %v304_v58, 2  ;;  %v377_v60 = vperm.slane %v304_v58, 6 }
  0x68   : > { %v361_v54 = vperm.slane %v353_v47, 1  ;;  %v362_v57 = vperm.slane %v354_v48, 1  ;;  %v338_v55 = vsel %vm305_vm0, %v320_v35, %v334_v37  ;;  %v339_v61 = vsel %vm305_vm0, %v321_v36, %v335_v38 }
  0x69   : > { %v363_v63 = vperm.slane %v355_v49, 1  ;;  %v364_v0 = vperm.slane %v356_v50, 1  ;;  %v382_v20 = vperm.slane %v374_v51, 2  ;;  %v383_v56 = vperm.slane %v375_v53, 2 }
  0x6a   : > { %v365_v17 = vsel %vm340_vm1, %v349_v42, %v361_v54  ;;  %v366_v19 = vsel %vm340_vm1, %v350_v43, %v362_v57  ;;  %v384_v22 = vperm.slane %v376_v59, 2  ;;  %v385_v23 = vperm.slane %v377_v60, 2 }
  0x6b   : > { %v367_v21 = vsel %vm340_vm1, %v351_v45, %v363_v63  ;;  %v368_v58 = vsel %vm340_vm1, %v352_v46, %v364_v0  ;;  %v369_v24 = vmul.f32 %v365_v17, %v336_v39  ;;  %v370_v25 = vmul.f32 %v366_v19, %v337_v41 }
  0x6c   : > { %v386_v26 = vperm.slane %v6406_v62, 2  ;;  %v387_v27 = vperm.slane %v6406_v62, 6  ;;  %v371_v30 = vmul.f32 %v367_v21, %v338_v55  ;;  %v372_v31 = vmul.f32 %v368_v58, %v339_v61 }
  0x6d   : > { %v388_v32 = vperm.slane %v6409_v18, 2  ;;  %v389_v33 = vperm.slane %v6409_v18, 6  ;;  %v6451_v37 = vsub.f32 1.0, %v6415_v28  ;;  %v6454_v38 = vsub.f32 1.0, %v6417_v29 }
  0x6e   : > { %v394_v35 = vperm.slane %v386_v26, 2  ;;  %v395_v36 = vperm.slane %v387_v27, 2  ;;  %v428_v42 = vperm.slane %v6415_v28, 0  ;;  %v429_v62 = vperm.slane %v6415_v28, 4 }
  0x6f   : > { %v396_v39 = vperm.slane %v388_v32, 2  ;;  %v397_v41 = vperm.slane %v389_v33, 2  ;;  %v430_v45 = vperm.slane %v6417_v29, 0  ;;  %v431_v46 = vperm.slane %v6417_v29, 4 }
  0x70   : > { %v398_v43 = vsel %vm6426_vm2, %v382_v20, %v394_v35  ;;  %v399_v18 = vsel %vm6426_vm2, %v383_v56, %v395_v36  ;;  %v442_v54 = vperm.slane %v6451_v37, 0  ;;  %v443_v57 = vperm.slane %v6451_v37, 4 }
  0x71   : > { %v400_v47 = vsel %vm6426_vm2, %v384_v22, %v396_v39  ;;  %v401_v48 = vsel %vm6426_vm2, %v385_v23, %v397_v41  ;;  %v6468_v49 = vmul.f32 %v398_v43, %v369_v24  ;;  %v6470_v50 = vmul.f32 %v399_v18, %v370_v25 }
  0x72   : > { %v6472_v51 = vmul.f32 %v400_v47, %v371_v30  ;;  %v6474_v53 = vmul.f32 %v401_v48, %v372_v31  ;;  %v444_v59 = vperm.slane %v6454_v38, 0  ;;  %v445_v60 = vperm.slane %v6454_v38, 4 }
  0x73   : > { %v458_v55 = vperm.slane %v6415_v28, 1  ;;  %v459_v61 = vperm.slane %v6415_v28, 5  ;;  %v460_v63 = vperm.slane %v6417_v29, 1  ;;  %v461_v0 = vperm.slane %v6417_v29, 5 }
  0x74   : > { %v436_v17 = vperm.slane %v428_v42, 0  ;;  %v437_v19 = vperm.slane %v429_v62, 0  ;;  %v438_v20 = vperm.slane %v430_v45, 0  ;;  %v439_v56 = vperm.slane %v431_v46, 0 }
  0x75   : > { %v450_v21 = vperm.slane %v442_v54, 0  ;;  %v451_v58 = vperm.slane %v443_v57, 0  ;;  %v452_v22 = vperm.slane %v444_v59, 0  ;;  %v453_v23 = vperm.slane %v445_v60, 0 }
  0x76   : > { %v466_v24 = vperm.slane %v458_v55, 1  ;;  %v467_v25 = vperm.slane %v459_v61, 1  ;;  %v468_v26 = vperm.slane %v460_v63, 1  ;;  %v469_v27 = vperm.slane %v461_v0, 1 }
  0x77   : > { %v470_v30 = vperm.slane %v6451_v37, 1  ;;  %v471_v31 = vperm.slane %v6451_v37, 5  ;;  %v472_v32 = vperm.slane %v6454_v38, 1  ;;  %v473_v33 = vperm.slane %v6454_v38, 5 }
  0x78   : > { %v490_v35 = vperm.slane %v6415_v28, 2  ;;  %v491_v36 = vperm.slane %v6415_v28, 6  ;;  %v492_v39 = vperm.slane %v6417_v29, 2  ;;  %v493_v41 = vperm.slane %v6417_v29, 6 }
  0x79   : > { %v478_v42 = vperm.slane %v470_v30, 1  ;;  %v479_v62 = vperm.slane %v471_v31, 1  ;;  %v480_v43 = vperm.slane %v472_v32, 1  ;;  %v481_v18 = vperm.slane %v473_v33, 1 }
  0x7a   : > { %v454_v45 = vsel %vm305_vm0, %v436_v17, %v450_v21  ;;  %v455_v46 = vsel %vm305_vm0, %v437_v19, %v451_v58  ;;  %v456_v47 = vsel %vm305_vm0, %v438_v20, %v452_v22  ;;  %v457_v28 = vsel %vm305_vm0, %v439_v56, %v453_v23 }
  0x7b   : > { %v482_v48 = vsel %vm340_vm1, %v466_v24, %v478_v42  ;;  %v483_v29 = vsel %vm340_vm1, %v467_v25, %v479_v62  ;;  %v484_v54 = vsel %vm340_vm1, %v468_v26, %v480_v43  ;;  %v485_v57 = vsel %vm340_vm1, %v469_v27, %v481_v18 }
  0x7c   : > { %v498_v59 = vperm.slane %v490_v35, 2  ;;  %v499_v60 = vperm.slane %v491_v36, 2  ;;  %v500_v55 = vperm.slane %v492_v39, 2  ;;  %v501_v61 = vperm.slane %v493_v41, 2 }
  0x7d   : > { %v502_v63 = vperm.slane %v6451_v37, 2  ;;  %v503_v40 = vperm.slane %v6451_v37, 6  ;;  %v504_v0 = vperm.slane %v6454_v38, 2  ;;  %v505_v17 = vperm.slane %v6454_v38, 6 }
  0x7e   : > { %v486_v19 = vmul.f32 %v482_v48, %v454_v45  ;;  %v487_v20 = vmul.f32 %v483_v29, %v455_v46  ;;  %v488_v56 = vmul.f32 %v484_v54, %v456_v47  ;;  %v489_v21 = vmul.f32 %v485_v57, %v457_v28  ;;  %4339 = sbr.rel (%p4337_p1) target bundleno = 342 (0x156), region = 153 }
  0x7f   : > { %v510_v58 = vperm.slane %v502_v63, 2  ;;  %v511_v52 = vperm.slane %v503_v40, 2  ;;  %v512_v22 = vperm.slane %v504_v0, 2  ;;  %v513_v23 = vperm.slane %v505_v17, 2 }
  0x80   : > { %v6534_v32 = vmov 0.0  }
  0x81   : > { %v514_v24 = vsel %vm6426_vm2, %v498_v59, %v510_v58  ;;  %v515_v25 = vsel %vm6426_vm2, %v499_v60, %v511_v52  ;;  %v516_v37 = vsel %vm6426_vm2, %v500_v55, %v512_v22  ;;  %v517_v38 = vsel %vm6426_vm2, %v501_v61, %v513_v23 }
  0x82   : > { %v6520_v26 = vmul.f32 %v514_v24, %v486_v19  ;;  %v6522_v27 = vmul.f32 %v515_v25, %v487_v20  ;;  %v6524_v30 = vmul.f32 %v516_v37, %v488_v56  ;;  %v6526_v31 = vmul.f32 %v517_v38, %v489_v21 }
  0x83   : > { %v6536_v33 = vmov 0.0  }
  0x84 LB: >> { %s4459_s27 = sshll.u32 %s6060_s16, 7  ;;  %v6157_v62 = vmov 1.0   ;;  %s4458_s8 = sshll.u32 %s6060_s16, 3  ;;  %v593_v28 = vperm.slane %v6468_v49, 0  ;;  %v649_v29 = vperm.slane %v6468_v49, 1  ;;  %v705_v57 = vperm.slane %v6468_v49, 2  ;;  %s6060_s16 = sphi %s6341_s16, %s530_s16   ;;  %v6056_v33 = vphi %v6536_v33, %v10194_v33  }
  0x85   : >> { %v538_v44 = vstv %s4459_s27  ;;  %s535_s30 = scalar_lea.vmem [#allocation9], %s4458_s8  ;;  %v761_v63 = vperm.slane %v6468_v49, 3  ;;  %v817_v19 = vperm.slane %v6468_v49, 4  ;;  %v873_v21 = vperm.slane %v6468_v49, 5  ;;  %s530_s16 = sadd.s32 1, %s6060_s16  }
  0x86   : >> { %v6549_v35 = vsub.s32 %v6420_v34, %v538_v44  ;;  %v536_v47 = vld [vmem:[%s535_s30] sm:$0xff]  ;;  %v929_v23 = vperm.slane %v6468_v49, 6  ;;  %v985_v38 = vperm.slane %v6468_v49, 7  ;;  %p529_p3 = scmp.ge.s32.totalorder %s530_s16, %s6349_s17 }
  0x88   : >> { %v6552_v36 = vperm.slane %v6549_v35, 2  ;;  %v6555_v39 = vperm.slane %v6549_v35, 0  ;;  %v6558_v41 = vperm.slane %v6549_v35, 3  ;;  %v6561_v42 = vperm.slane %v6549_v35, 1 }
  0x89   : >> { %v6726_v43 = vperm.slane %v6549_v35, 6  ;;  %v6735_v18 = vperm.slane %v6549_v35, 4  ;;  %v6738_v45 = vperm.slane %v6549_v35, 7  ;;  %v6753_v46 = vperm.slane %v6549_v35, 5 }
  0x8a   : >> { %vm668_vm3 = vcmp.eq.s32.totalorder %v6552_v36, %v6394_v16  ;;  %vm556_vm4 = vcmp.eq.s32.totalorder %v6555_v39, %v6394_v16  ;;  %vm667_vm5 = vcmp.eq.s32.totalorder %v6552_v36, %v6391_v15  ;;  %vm724_vm6 = vcmp.eq.s32.totalorder %v6558_v41, %v6394_v16 }
  0x8b   : >> { %4492 = vmatpush.msk.msra.mxu2 %vm668_vm3, %v6157_v62  ;;  %4460 = vmatpush.msk.msra.mxu0 %vm556_vm4, %v6157_v62  ;;  %vm555_vm7 = vcmp.eq.s32.totalorder %v6555_v39, %v6391_v15  ;;  %vm612_vm8 = vcmp.eq.s32.totalorder %v6561_v42, %v6394_v16  ;;  %vm666_vm9 = vcmp.eq.s32.totalorder %v6552_v36, %v6388_v14 }
  0x8c   : >> { %4508 = vmatpush.msk.msra.mxu3 %vm724_vm6, %v6157_v62  ;;  %4476 = vmatpush.msk.msra.mxu1 %vm612_vm8, %v6157_v62  ;;  %vm723_vm10 = vcmp.eq.s32.totalorder %v6558_v41, %v6391_v15  ;;  %vm554_vm11 = vcmp.eq.s32.totalorder %v6555_v39, %v6388_v14  ;;  %vm611_vm12 = vcmp.eq.s32.totalorder %v6561_v42, %v6391_v15 }
  0x8d   : >> { %4493 = vmatpush.msk.msra.mxu2 %vm667_vm5, %v6157_v62  ;;  %4461 = vmatpush.msk.msra.mxu0 %vm555_vm7, %v6157_v62  ;;  %vm722_vm13 = vcmp.eq.s32.totalorder %v6558_v41, %v6388_v14  ;;  %vm665_vm14 = vcmp.eq.s32.totalorder %v6552_v36, %v6385_v13  ;;  %vm553_vm15 = vcmp.eq.s32.totalorder %v6555_v39, %v6385_v13 }
  0x8e   : >> { %4509 = vmatpush.msk.msra.mxu3 %vm723_vm10, %v6157_v62  ;;  %4477 = vmatpush.msk.msra.mxu1 %vm611_vm12, %v6157_v62  ;;  %vm610_vm0 = vcmp.eq.s32.totalorder %v6561_v42, %v6388_v14  ;;  %vm721_vm1 = vcmp.eq.s32.totalorder %v6558_v41, %v6385_v13  ;;  %vm609_vm2 = vcmp.eq.s32.totalorder %v6561_v42, %v6385_v13 }
  0x8f   : >> { %4494 = vmatpush.msk.msra.mxu2 %vm666_vm9, %v6157_v62  ;;  %4462 = vmatpush.msk.msra.mxu0 %vm554_vm11, %v6157_v62  ;;  %vm664_vm3 = vcmp.eq.s32.totalorder %v6552_v36, %v6382_v12  ;;  %vm552_vm4 = vcmp.eq.s32.totalorder %v6555_v39, %v6382_v12  ;;  %vm720_vm5 = vcmp.eq.s32.totalorder %v6558_v41, %v6382_v12 }
  0x90   : >> { %4510 = vmatpush.msk.msra.mxu3 %vm722_vm13, %v6157_v62  ;;  %4478 = vmatpush.msk.msra.mxu1 %vm610_vm0, %v6157_v62  ;;  %vm608_vm6 = vcmp.eq.s32.totalorder %v6561_v42, %v6382_v12  ;;  %vm663_vm7 = vcmp.eq.s32.totalorder %v6552_v36, %v6379_v11  ;;  %vm551_vm8 = vcmp.eq.s32.totalorder %v6555_v39, %v6379_v11 }
  0x91   : >> { %4495 = vmatpush.msk.msra.mxu2 %vm665_vm14, %v6157_v62  ;;  %4463 = vmatpush.msk.msra.mxu0 %vm553_vm15, %v6157_v62  ;;  %vm719_vm9 = vcmp.eq.s32.totalorder %v6558_v41, %v6379_v11  ;;  %vm607_vm10 = vcmp.eq.s32.totalorder %v6561_v42, %v6379_v11  ;;  %vm662_vm11 = vcmp.eq.s32.totalorder %v6552_v36, %v6376_v10 }
  0x92   : >> { %4511 = vmatpush.msk.msra.mxu3 %vm721_vm1, %v6157_v62  ;;  %4479 = vmatpush.msk.msra.mxu1 %vm609_vm2, %v6157_v62  ;;  %vm550_vm12 = vcmp.eq.s32.totalorder %v6555_v39, %v6376_v10  ;;  %vm718_vm13 = vcmp.eq.s32.totalorder %v6558_v41, %v6376_v10  ;;  %vm606_vm14 = vcmp.eq.s32.totalorder %v6561_v42, %v6376_v10 }
  0x93   : >> { %4496 = vmatpush.msk.msra.mxu2 %vm664_vm3, %v6157_v62  ;;  %4464 = vmatpush.msk.msra.mxu0 %vm552_vm4, %v6157_v62  ;;  %vm661_vm15 = vcmp.eq.s32.totalorder %v6552_v36, %v6373_v9  ;;  %vm549_vm0 = vcmp.eq.s32.totalorder %v6555_v39, %v6373_v9  ;;  %vm717_vm1 = vcmp.eq.s32.totalorder %v6558_v41, %v6373_v9 }
  0x94   : >> { %4512 = vmatpush.msk.msra.mxu3 %vm720_vm5, %v6157_v62  ;;  %4480 = vmatpush.msk.msra.mxu1 %vm608_vm6, %v6157_v62  ;;  %vm605_vm2 = vcmp.eq.s32.totalorder %v6561_v42, %v6373_v9  ;;  %vm660_vm3 = vcmp.eq.s32.totalorder %v6552_v36, %v6370_v8  ;;  %vm548_vm4 = vcmp.eq.s32.totalorder %v6555_v39, %v6370_v8 }
  0x95   : >> { %4497 = vmatpush.msk.msra.mxu2 %vm663_vm7, %v6157_v62  ;;  %4465 = vmatpush.msk.msra.mxu0 %vm551_vm8, %v6157_v62  ;;  %vm716_vm5 = vcmp.eq.s32.totalorder %v6558_v41, %v6370_v8  ;;  %vm604_vm6 = vcmp.eq.s32.totalorder %v6561_v42, %v6370_v8  ;;  %vm659_vm7 = vcmp.eq.s32.totalorder %v6552_v36, %v6367_v7 }
  0x96   : >> { %4513 = vmatpush.msk.msra.mxu3 %vm719_vm9, %v6157_v62  ;;  %4481 = vmatpush.msk.msra.mxu1 %vm607_vm10, %v6157_v62  ;;  %vm547_vm8 = vcmp.eq.s32.totalorder %v6555_v39, %v6367_v7  ;;  %vm715_vm9 = vcmp.eq.s32.totalorder %v6558_v41, %v6367_v7  ;;  %vm603_vm10 = vcmp.eq.s32.totalorder %v6561_v42, %v6367_v7 }
  0x97   : >> { %4498 = vmatpush.msk.msra.mxu2 %vm662_vm11, %v6157_v62  ;;  %4466 = vmatpush.msk.msra.mxu0 %vm550_vm12, %v6157_v62  ;;  %vm658_vm11 = vcmp.eq.s32.totalorder %v6552_v36, %v6364_v6  ;;  %vm546_vm12 = vcmp.eq.s32.totalorder %v6555_v39, %v6364_v6 }
  0x98   : >> { %4514 = vmatpush.msk.msra.mxu3 %vm718_vm13, %v6157_v62  ;;  %4482 = vmatpush.msk.msra.mxu1 %vm606_vm14, %v6157_v62  ;;  %vm714_vm13 = vcmp.eq.s32.totalorder %v6558_v41, %v6364_v6  ;;  %vm602_vm14 = vcmp.eq.s32.totalorder %v6561_v42, %v6364_v6 }
  0x99   : >> { %4499 = vmatpush.msk.msra.mxu2 %vm661_vm15, %v6157_v62  ;;  %4467 = vmatpush.msk.msra.mxu0 %vm549_vm0, %v6157_v62  ;;  %vm657_vm15 = vcmp.eq.s32.totalorder %v6552_v36, %v6361_v5  ;;  %vm545_vm0 = vcmp.eq.s32.totalorder %v6555_v39, %v6361_v5 }
  0x9a   : >> { %4515 = vmatpush.msk.msra.mxu3 %vm717_vm1, %v6157_v62  ;;  %4483 = vmatpush.msk.msra.mxu1 %vm605_vm2, %v6157_v62  ;;  %vm713_vm1 = vcmp.eq.s32.totalorder %v6558_v41, %v6361_v5  ;;  %vm601_vm2 = vcmp.eq.s32.totalorder %v6561_v42, %v6361_v5 }
  0x9b   : >> { %4500 = vmatpush.msk.msra.mxu2 %vm660_vm3, %v6157_v62  ;;  %4468 = vmatpush.msk.msra.mxu0 %vm548_vm4, %v6157_v62  ;;  %vm656_vm3 = vcmp.eq.s32.totalorder %v6552_v36, %v6358_v4  ;;  %vm544_vm4 = vcmp.eq.s32.totalorder %v6555_v39, %v6358_v4 }
  0x9c   : >> { %4516 = vmatpush.msk.msra.mxu3 %vm716_vm5, %v6157_v62  ;;  %4484 = vmatpush.msk.msra.mxu1 %vm604_vm6, %v6157_v62  ;;  %vm712_vm5 = vcmp.eq.s32.totalorder %v6558_v41, %v6358_v4  ;;  %vm600_vm6 = vcmp.eq.s32.totalorder %v6561_v42, %v6358_v4 }
  0x9d   : >> { %4501 = vmatpush.msk.msra.mxu2 %vm659_vm7, %v6157_v62  ;;  %4469 = vmatpush.msk.msra.mxu0 %vm547_vm8, %v6157_v62  ;;  %vm655_vm7 = vcmp.eq.s32.totalorder %v6552_v36, %v6355_v3  ;;  %vm543_vm8 = vcmp.eq.s32.totalorder %v6555_v39, %v6355_v3 }
  0x9e   : >> { %4517 = vmatpush.msk.msra.mxu3 %vm715_vm9, %v6157_v62  ;;  %4485 = vmatpush.msk.msra.mxu1 %vm603_vm10, %v6157_v62  ;;  %vm711_vm9 = vcmp.eq.s32.totalorder %v6558_v41, %v6355_v3  ;;  %vm599_vm10 = vcmp.eq.s32.totalorder %v6561_v42, %v6355_v3 }
  0x9f   : >> { %4502 = vmatpush.msk.msra.mxu2 %vm658_vm11, %v6157_v62  ;;  %4470 = vmatpush.msk.msra.mxu0 %vm546_vm12, %v6157_v62  ;;  %vm654_vm11 = vcmp.eq.s32.totalorder %v6552_v36, %v6352_v2  ;;  %vm542_vm12 = vcmp.eq.s32.totalorder %v6555_v39, %v6352_v2 }
  0xa0   : >> { %4518 = vmatpush.msk.msra.mxu3 %vm714_vm13, %v6157_v62  ;;  %4486 = vmatpush.msk.msra.mxu1 %vm602_vm14, %v6157_v62  ;;  %vm710_vm13 = vcmp.eq.s32.totalorder %v6558_v41, %v6352_v2  ;;  %vm598_vm14 = vcmp.eq.s32.totalorder %v6561_v42, %v6352_v2 }
  0xa1   : >> { %4503 = vmatpush.msk.msra.mxu2 %vm657_vm15, %v6157_v62  ;;  %4471 = vmatpush.msk.msra.mxu0 %vm545_vm0, %v6157_v62  ;;  %vm653_vm15 = vcmp.eq.s32.totalorder %v6552_v36, %v6343_v1  ;;  %vm541_vm0 = vcmp.eq.s32.totalorder %v6555_v39, %v6343_v1 }
  0xa2   : >> { %4519 = vmatpush.msk.msra.mxu3 %vm713_vm1, %v6157_v62  ;;  %4487 = vmatpush.msk.msra.mxu1 %vm601_vm2, %v6157_v62  ;;  %vm892_vm1 = vcmp.eq.s32.totalorder %v6726_v43, %v6394_v16  ;;  %vm709_vm2 = vcmp.eq.s32.totalorder %v6558_v41, %v6343_v1 }
  0xa3   : >> { %4504 = vmatpush.msk.msra.mxu2 %vm656_vm3, %v6157_v62  ;;  %4472 = vmatpush.msk.msra.mxu0 %vm544_vm4, %v6157_v62  ;;  %vm780_vm3 = vcmp.eq.s32.totalorder %v6735_v18, %v6394_v16  ;;  %vm948_vm4 = vcmp.eq.s32.totalorder %v6738_v45, %v6394_v16 }
  0xa4   : >> { %4520 = vmatpush.msk.msra.mxu3 %vm712_vm5, %v6157_v62  ;;  %4488 = vmatpush.msk.msra.mxu1 %vm600_vm6, %v6157_v62  ;;  %vm891_vm5 = vcmp.eq.s32.totalorder %v6726_v43, %v6391_v15  ;;  %vm597_vm6 = vcmp.eq.s32.totalorder %v6561_v42, %v6343_v1 }
  0xa5   : >> { %4505 = vmatpush.msk.msra.mxu2 %vm655_vm7, %v6157_v62  ;;  %4473 = vmatpush.msk.msra.mxu0 %vm543_vm8, %v6157_v62  ;;  %vm779_vm7 = vcmp.eq.s32.totalorder %v6735_v18, %v6391_v15  ;;  %vm836_vm8 = vcmp.eq.s32.totalorder %v6753_v46, %v6394_v16 }
  0xa6   : >> { %4521 = vmatpush.msk.msra.mxu3 %vm711_vm9, %v6157_v62  ;;  %4489 = vmatpush.msk.msra.mxu1 %vm599_vm10, %v6157_v62  ;;  %vm890_vm9 = vcmp.eq.s32.totalorder %v6726_v43, %v6388_v14  ;;  %vm947_vm10 = vcmp.eq.s32.totalorder %v6738_v45, %v6391_v15 }
  0xa7   : >> { %4506 = vmatpush.msk.msra.mxu2 %vm654_vm11, %v6157_v62  ;;  %4474 = vmatpush.msk.msra.mxu0 %vm542_vm12, %v6157_v62  ;;  %vm778_vm11 = vcmp.eq.s32.totalorder %v6735_v18, %v6388_v14  ;;  %vm835_vm12 = vcmp.eq.s32.totalorder %v6753_v46, %v6391_v15 }
  0xa8   : >> { %4522 = vmatpush.msk.msra.mxu3 %vm710_vm13, %v6157_v62  ;;  %4490 = vmatpush.msk.msra.mxu1 %vm598_vm14, %v6157_v62  ;;  %vm889_vm13 = vcmp.eq.s32.totalorder %v6726_v43, %v6385_v13  ;;  %vm946_vm14 = vcmp.eq.s32.totalorder %v6738_v45, %v6388_v14 }
  0xa9   : >> { %4507 = vmatpush.msk.msra.mxu2 %vm653_vm15, %v6157_v62  ;;  %4475 = vmatpush.msk.msra.mxu0 %vm541_vm0, %v6157_v62  ;;  %vm777_vm15 = vcmp.eq.s32.totalorder %v6735_v18, %v6385_v13  ;;  %vm834_vm0 = vcmp.eq.s32.totalorder %v6753_v46, %v6388_v14 }
  0xaa   : >> { %4523 = vmatpush.msk.msra.mxu3 %vm709_vm2, %v6157_v62  ;;  %4491 = vmatpush.msk.msra.mxu1 %vm597_vm6, %v6157_v62  ;;  %vm945_vm2 = vcmp.eq.s32.totalorder %v6738_v45, %v6385_v13  ;;  %vm944_vm6 = vcmp.eq.s32.totalorder %v6738_v45, %v6382_v12 }
  0xab   : >> { %4556 = vmatpush.msk.msrb.mxu2 %vm892_vm1, %v6157_v62  ;;  %4524 = vmatpush.msk.msrb.mxu0 %vm780_vm3, %v6157_v62  ;;  %vm888_vm1 = vcmp.eq.s32.totalorder %v6726_v43, %v6382_v12  ;;  %vm776_vm3 = vcmp.eq.s32.totalorder %v6735_v18, %v6382_v12 }
  0xac   : >> { %4572 = vmatpush.msk.msrb.mxu3 %vm948_vm4, %v6157_v62  ;;  %4540 = vmatpush.msk.msrb.mxu1 %vm836_vm8, %v6157_v62  ;;  %vm833_vm4 = vcmp.eq.s32.totalorder %v6753_v46, %v6385_v13  ;;  %vm832_vm8 = vcmp.eq.s32.totalorder %v6753_v46, %v6382_v12 }
  0xad   : >> { %4557 = vmatpush.msk.msrb.mxu2 %vm891_vm5, %v6157_v62  ;;  %4525 = vmatpush.msk.msrb.mxu0 %vm779_vm7, %v6157_v62  ;;  %vm887_vm5 = vcmp.eq.s32.totalorder %v6726_v43, %v6379_v11  ;;  %vm775_vm7 = vcmp.eq.s32.totalorder %v6735_v18, %v6379_v11 }
  0xae   : >> { %4573 = vmatpush.msk.msrb.mxu3 %vm947_vm10, %v6157_v62  ;;  %4541 = vmatpush.msk.msrb.mxu1 %vm835_vm12, %v6157_v62  ;;  %vm943_vm10 = vcmp.eq.s32.totalorder %v6738_v45, %v6379_v11  ;;  %vm831_vm12 = vcmp.eq.s32.totalorder %v6753_v46, %v6379_v11 }
  0xaf   : >> { %4558 = vmatpush.msk.msrb.mxu2 %vm890_vm9, %v6157_v62  ;;  %4526 = vmatpush.msk.msrb.mxu0 %vm778_vm11, %v6157_v62  ;;  %vm886_vm9 = vcmp.eq.s32.totalorder %v6726_v43, %v6376_v10  ;;  %vm774_vm11 = vcmp.eq.s32.totalorder %v6735_v18, %v6376_v10 }
  0xb0   : >> { %4574 = vmatpush.msk.msrb.mxu3 %vm946_vm14, %v6157_v62  ;;  %4542 = vmatpush.msk.msrb.mxu1 %vm834_vm0, %v6157_v62  ;;  %vm942_vm14 = vcmp.eq.s32.totalorder %v6738_v45, %v6376_v10  ;;  %vm830_vm0 = vcmp.eq.s32.totalorder %v6753_v46, %v6376_v10 }
  0xb1   : >> { %4559 = vmatpush.msk.msrb.mxu2 %vm889_vm13, %v6157_v62  ;;  %4527 = vmatpush.msk.msrb.mxu0 %vm777_vm15, %v6157_v62  ;;  %vm885_vm13 = vcmp.eq.s32.totalorder %v6726_v43, %v6373_v9  ;;  %vm773_vm15 = vcmp.eq.s32.totalorder %v6735_v18, %v6373_v9 }
  0xb2   : >> { %4575 = vmatpush.msk.msrb.mxu3 %vm945_vm2, %v6157_v62  ;;  %4543 = vmatpush.msk.msrb.mxu1 %vm833_vm4, %v6157_v62  ;;  %vm941_vm2 = vcmp.eq.s32.totalorder %v6738_v45, %v6373_v9  ;;  %vm829_vm4 = vcmp.eq.s32.totalorder %v6753_v46, %v6373_v9 }
  0xb3   : >> { %4560 = vmatpush.msk.msrb.mxu2 %vm888_vm1, %v6157_v62  ;;  %4528 = vmatpush.msk.msrb.mxu0 %vm776_vm3, %v6157_v62  ;;  %vm884_vm1 = vcmp.eq.s32.totalorder %v6726_v43, %v6370_v8  ;;  %vm772_vm3 = vcmp.eq.s32.totalorder %v6735_v18, %v6370_v8 }
  0xb4   : >> { %4576 = vmatpush.msk.msrb.mxu3 %vm944_vm6, %v6157_v62  ;;  %4544 = vmatpush.msk.msrb.mxu1 %vm832_vm8, %v6157_v62  ;;  %vm940_vm6 = vcmp.eq.s32.totalorder %v6738_v45, %v6370_v8  ;;  %vm828_vm8 = vcmp.eq.s32.totalorder %v6753_v46, %v6370_v8 }
  0xb5   : >> { %4561 = vmatpush.msk.msrb.mxu2 %vm887_vm5, %v6157_v62  ;;  %4529 = vmatpush.msk.msrb.mxu0 %vm775_vm7, %v6157_v62  ;;  %vm883_vm5 = vcmp.eq.s32.totalorder %v6726_v43, %v6367_v7  ;;  %vm771_vm7 = vcmp.eq.s32.totalorder %v6735_v18, %v6367_v7 }
  0xb6   : >> { %4577 = vmatpush.msk.msrb.mxu3 %vm943_vm10, %v6157_v62  ;;  %4545 = vmatpush.msk.msrb.mxu1 %vm831_vm12, %v6157_v62  ;;  %vm939_vm10 = vcmp.eq.s32.totalorder %v6738_v45, %v6367_v7  ;;  %vm827_vm12 = vcmp.eq.s32.totalorder %v6753_v46, %v6367_v7 }
  0xb7   : >> { %4562 = vmatpush.msk.msrb.mxu2 %vm886_vm9, %v6157_v62  ;;  %4530 = vmatpush.msk.msrb.mxu0 %vm774_vm11, %v6157_v62  ;;  %vm882_vm9 = vcmp.eq.s32.totalorder %v6726_v43, %v6364_v6  ;;  %vm770_vm11 = vcmp.eq.s32.totalorder %v6735_v18, %v6364_v6 }
  0xb8   : >> { %4578 = vmatpush.msk.msrb.mxu3 %vm942_vm14, %v6157_v62  ;;  %4546 = vmatpush.msk.msrb.mxu1 %vm830_vm0, %v6157_v62  ;;  %vm938_vm14 = vcmp.eq.s32.totalorder %v6738_v45, %v6364_v6  ;;  %vm826_vm0 = vcmp.eq.s32.totalorder %v6753_v46, %v6364_v6 }
  0xb9   : >> { %4563 = vmatpush.msk.msrb.mxu2 %vm885_vm13, %v6157_v62  ;;  %4531 = vmatpush.msk.msrb.mxu0 %vm773_vm15, %v6157_v62  ;;  %vm881_vm13 = vcmp.eq.s32.totalorder %v6726_v43, %v6361_v5  ;;  %vm769_vm15 = vcmp.eq.s32.totalorder %v6735_v18, %v6361_v5 }
  0xba   : >> { %4579 = vmatpush.msk.msrb.mxu3 %vm941_vm2, %v6157_v62  ;;  %4547 = vmatpush.msk.msrb.mxu1 %vm829_vm4, %v6157_v62  ;;  %vm937_vm2 = vcmp.eq.s32.totalorder %v6738_v45, %v6361_v5  ;;  %vm825_vm4 = vcmp.eq.s32.totalorder %v6753_v46, %v6361_v5 }
  0xbb   : >> { %4564 = vmatpush.msk.msrb.mxu2 %vm884_vm1, %v6157_v62  ;;  %4532 = vmatpush.msk.msrb.mxu0 %vm772_vm3, %v6157_v62  ;;  %vm880_vm1 = vcmp.eq.s32.totalorder %v6726_v43, %v6358_v4  ;;  %vm768_vm3 = vcmp.eq.s32.totalorder %v6735_v18, %v6358_v4 }
  0xbc   : >> { %4580 = vmatpush.msk.msrb.mxu3 %vm940_vm6, %v6157_v62  ;;  %4548 = vmatpush.msk.msrb.mxu1 %vm828_vm8, %v6157_v62  ;;  %vm936_vm6 = vcmp.eq.s32.totalorder %v6738_v45, %v6358_v4  ;;  %vm824_vm8 = vcmp.eq.s32.totalorder %v6753_v46, %v6358_v4 }
  0xbd   : >> { %4565 = vmatpush.msk.msrb.mxu2 %vm883_vm5, %v6157_v62  ;;  %4533 = vmatpush.msk.msrb.mxu0 %vm771_vm7, %v6157_v62  ;;  %vm879_vm5 = vcmp.eq.s32.totalorder %v6726_v43, %v6355_v3  ;;  %vm767_vm7 = vcmp.eq.s32.totalorder %v6735_v18, %v6355_v3 }
  0xbe   : >> { %4581 = vmatpush.msk.msrb.mxu3 %vm939_vm10, %v6157_v62  ;;  %4549 = vmatpush.msk.msrb.mxu1 %vm827_vm12, %v6157_v62  ;;  %vm935_vm10 = vcmp.eq.s32.totalorder %v6738_v45, %v6355_v3  ;;  %vm823_vm12 = vcmp.eq.s32.totalorder %v6753_v46, %v6355_v3 }
  0xbf   : >> { %4566 = vmatpush.msk.msrb.mxu2 %vm882_vm9, %v6157_v62  ;;  %4534 = vmatpush.msk.msrb.mxu0 %vm770_vm11, %v6157_v62  ;;  %vm878_vm9 = vcmp.eq.s32.totalorder %v6726_v43, %v6352_v2  ;;  %vm766_vm11 = vcmp.eq.s32.totalorder %v6735_v18, %v6352_v2 }
  0xc0   : >> { %4582 = vmatpush.msk.msrb.mxu3 %vm938_vm14, %v6157_v62  ;;  %701 = vmatmul.f32.vlgmr.msra.gmra.mxu2 %v536_v47  ;;  %vm934_vm14 = vcmp.eq.s32.totalorder %v6738_v45, %v6352_v2 }
  0xc1   : >> { %4567 = vmatpush.msk.msrb.mxu2 %vm881_vm13, %v6157_v62  ;;  %4535 = vmatpush.msk.msrb.mxu0 %vm769_vm15, %v6157_v62  ;;  %vm877_vm13 = vcmp.eq.s32.totalorder %v6726_v43, %v6343_v1  ;;  %vm765_vm15 = vcmp.eq.s32.totalorder %v6735_v18, %v6343_v1 }
  0xc2   : >> { %4550 = vmatpush.msk.msrb.mxu1 %vm826_vm0, %v6157_v62  ;;  %4583 = vmatpush.msk.msrb.mxu3 %vm937_vm2, %v6157_v62  ;;  %vm822_vm0 = vcmp.eq.s32.totalorder %v6753_v46, %v6352_v2  ;;  %vm821_vm2 = vcmp.eq.s32.totalorder %v6753_v46, %v6343_v1 }
  0xc3   : >> { %4568 = vmatpush.msk.msrb.mxu2 %vm880_vm1, %v6157_v62  ;;  %589 = vmatmul.f32.vlgmr.msra.gmra.mxu0 %v536_v47  ;;  %vm933_vm1 = vcmp.eq.s32.totalorder %v6738_v45, %v6343_v1 }
  0xc4   : >> { %757 = vmatmul.f32.vlgmr.msra.gmra.mxu3 %v536_v47  ;;  %4536 = vmatpush.msk.msrb.mxu0 %vm768_vm3, %v6157_v62 }
  0xc5   : >> { %4551 = vmatpush.msk.msrb.mxu1 %vm825_vm4, %v6157_v62  ;;  %4569 = vmatpush.msk.msrb.mxu2 %vm879_vm5, %v6157_v62 }
  0xc6   : >> { %4584 = vmatpush.msk.msrb.mxu3 %vm936_vm6, %v6157_v62  ;;  %645 = vmatmul.f32.vlgmr.msra.gmra.mxu1 %v536_v47 }
  0xc7   : >> { %4537 = vmatpush.msk.msrb.mxu0 %vm767_vm7, %v6157_v62  ;;  %4552 = vmatpush.msk.msrb.mxu1 %vm824_vm8, %v6157_v62 }
  0xc8   : >> { %4570 = vmatpush.msk.msrb.mxu2 %vm878_vm9, %v6157_v62  ;;  %4585 = vmatpush.msk.msrb.mxu3 %vm935_vm10, %v6157_v62 }
  0xc9   : >> { %4538 = vmatpush.msk.msrb.mxu0 %vm766_vm11, %v6157_v62  ;;  %4553 = vmatpush.msk.msrb.mxu1 %vm823_vm12, %v6157_v62 }
  0xca   : >> { %4571 = vmatpush.msk.msrb.mxu2 %vm877_vm13, %v6157_v62  ;;  %4586 = vmatpush.msk.msrb.mxu3 %vm934_vm14, %v6157_v62 }
  0xcb   : >> { %925 = vmatmul.f32.vlgmr.msrb.gmra.mxu2 %v536_v47  ;;  %4539 = vmatpush.msk.msrb.mxu0 %vm765_vm15, %v6157_v62 }
  0xcc   : >> { %4554 = vmatpush.msk.msrb.mxu1 %vm822_vm0, %v6157_v62  ;;  %4587 = vmatpush.msk.msrb.mxu3 %vm933_vm1, %v6157_v62 }
  0xcd   : >> { %813 = vmatmul.f32.vlgmr.msrb.gmra.mxu0 %v536_v47  ;;  %981 = vmatmul.f32.vlgmr.msrb.gmra.mxu3 %v536_v47 }
  0xce   : >> { %4555 = vmatpush.msk.msrb.mxu1 %vm821_vm2, %v6157_v62 }
  0xcf   : >> { %869 = vmatmul.f32.vlgmr.msrb.gmra.mxu1 %v536_v47 }
 0x140   : >> { %v590_v48 = vpop.f32.mrf.mxu0 }
 0x141   : >> { %v594_v54 = vmul.f32 %v593_v28, %v590_v48 }
 0x143   : >> { %v595_v59 = vadd.f32 %v6056_v33, %v594_v54  ;;  %v646_v60 = vpop.f32.mrf.mxu1  ;;  %v702_v61 = vpop.f32.mrf.mxu2 }
 0x144   : >> { %v650_v55 = vmul.f32 %v649_v29, %v646_v60  ;;  %v706_v40 = vmul.f32 %v705_v57, %v702_v61 }
 0x146   : >> { %v651_v0 = vadd.f32 %v650_v55, %v595_v59 }
 0x147   : >> { %v758_v17 = vpop.f32.mrf.mxu3 }
 0x148   : >> { %v707_v20 = vadd.f32 %v706_v40, %v651_v0  ;;  %v762_v56 = vmul.f32 %v761_v63, %v758_v17 }
 0x14a   : >> { %v763_v58 = vadd.f32 %v762_v56, %v707_v20  ;;  %v814_v52 = vpop.f32.mrf.mxu0 }
 0x14b   : >> { %v818_v22 = vmul.f32 %v817_v19, %v814_v52 }
 0x14c   : >> { %v870_v24 = vpop.f32.mrf.mxu1 }
 0x14d   : >> { %v819_v25 = vadd.f32 %v818_v22, %v763_v58  ;;  %v874_v37 = vmul.f32 %v873_v21, %v870_v24 }
 0x14e   : >> { %v926_v32 = vpop.f32.mrf.mxu2 }
 0x14f   : >> { %v875_v33 = vadd.f32 %v874_v37, %v819_v25  ;;  %v930_v44 = vmul.f32 %v929_v23, %v926_v32 }
 0x150   : >> { %v982_v35 = vpop.f32.mrf.mxu3 }
 0x151   : >> { %v931_v36 = vadd.f32 %v930_v44, %v875_v33  ;;  %v986_v39 = vmul.f32 %v985_v38, %v982_v35  ;;  %532 = sbr.rel (!%p529_p3) target bundleno = 132 (0x84), region = 159 }
 0x153   : >> { %v987_v41 = vadd.f32 %v986_v39, %v931_v36  }
 0x155   : >> { %v10194_v33 = vmov %v987_v41  ;;  %v10195_v32 = vmov (%p529_p3), %v987_v41 }
 0x156 PF: > { %v6979_v42 = vld [vmem:[%s6326_s10 + $0x20] sm:$0xff]  ;;  %s6982_s0 = sadd.s32 2, %s6338_s3  ;;  %s6985_s13 = sadd.s32 3, %s6338_s3  ;;  %v10196_v34 = vmov %v6064_v32  ;;  %v6064_v32 = vphi %v6534_v32, %v10195_v32  }
 0x157   : > { %s991_s29 = sld [smem:[#allocation3 + %s6982_s0]]  }
 0x158   : > { %s6989_s5 = sld [smem:[#allocation3 + %s6985_s13]] }
 0x15e   : > { %p4345_p13 = scmp.ge.s32.totalorder %s991_s29, %s6989_s5 }
 0x160   : > { %4347 = sbr.rel (%p4345_p13) target bundleno = 567 (0x237), region = 164 }
 0x165 LB: >> { %s4590_s18 = sshll.u32 %s6072_s29, 7  ;;  %v6158_v47 = vmov 1.0   ;;  %s4589_s26 = sshll.u32 %s6072_s29, 3  ;;  %v1060_v59 = vperm.slane %v6520_v26, 0  ;;  %v1116_v55 = vperm.slane %v6520_v26, 1  ;;  %v1172_v63 = vperm.slane %v6520_v26, 2  ;;  %s6072_s29 = sphi %s991_s29, %s997_s29   ;;  %v6068_v32 = vphi %v6064_v32, %v10197_v32  }
 0x166   : >> { %v1005_v49 = vstv %s4590_s18  ;;  %s1002_s28 = scalar_lea.vmem [#allocation9], %s4589_s26  ;;  %v1228_v20 = vperm.slane %v6520_v26, 3  ;;  %v1284_v52 = vperm.slane %v6520_v26, 4  ;;  %v1340_v24 = vperm.slane %v6520_v26, 5  ;;  %s997_s29 = sadd.s32 1, %s6072_s29  }
 0x167   : >> { %v7006_v62 = vsub.s32 %v6979_v42, %v1005_v49  ;;  %v1003_v57 = vld [vmem:[%s1002_s28] sm:$0xff]  ;;  %v1396_v33 = vperm.slane %v6520_v26, 6  ;;  %v1452_v36 = vperm.slane %v6520_v26, 7  ;;  %p996_p7 = scmp.ge.s32.totalorder %s997_s29, %s6989_s5 }
 0x169   : >> { %v7009_v43 = vperm.slane %v7006_v62, 2  ;;  %v7012_v18 = vperm.slane %v7006_v62, 0  ;;  %v7015_v45 = vperm.slane %v7006_v62, 3  ;;  %v7018_v46 = vperm.slane %v7006_v62, 1 }
 0x16a   : >> { %v7183_v28 = vperm.slane %v7006_v62, 6  ;;  %v7192_v48 = vperm.slane %v7006_v62, 4  ;;  %v7195_v29 = vperm.slane %v7006_v62, 7  ;;  %v7210_v54 = vperm.slane %v7006_v62, 5 }
 0x16b   : >> { %vm1135_vm3 = vcmp.eq.s32.totalorder %v7009_v43, %v6394_v16  ;;  %vm1023_vm4 = vcmp.eq.s32.totalorder %v7012_v18, %v6394_v16  ;;  %vm1134_vm5 = vcmp.eq.s32.totalorder %v7009_v43, %v6391_v15  ;;  %vm1191_vm6 = vcmp.eq.s32.totalorder %v7015_v45, %v6394_v16 }
 0x16c   : >> { %4623 = vmatpush.msk.msra.mxu2 %vm1135_vm3, %v6158_v47  ;;  %4591 = vmatpush.msk.msra.mxu0 %vm1023_vm4, %v6158_v47  ;;  %vm1022_vm7 = vcmp.eq.s32.totalorder %v7012_v18, %v6391_v15  ;;  %vm1079_vm8 = vcmp.eq.s32.totalorder %v7018_v46, %v6394_v16  ;;  %vm1133_vm9 = vcmp.eq.s32.totalorder %v7009_v43, %v6388_v14 }
 0x16d   : >> { %4639 = vmatpush.msk.msra.mxu3 %vm1191_vm6, %v6158_v47  ;;  %4607 = vmatpush.msk.msra.mxu1 %vm1079_vm8, %v6158_v47  ;;  %vm1190_vm10 = vcmp.eq.s32.totalorder %v7015_v45, %v6391_v15  ;;  %vm1021_vm11 = vcmp.eq.s32.totalorder %v7012_v18, %v6388_v14  ;;  %vm1078_vm12 = vcmp.eq.s32.totalorder %v7018_v46, %v6391_v15 }
 0x16e   : >> { %4624 = vmatpush.msk.msra.mxu2 %vm1134_vm5, %v6158_v47  ;;  %4592 = vmatpush.msk.msra.mxu0 %vm1022_vm7, %v6158_v47  ;;  %vm1189_vm13 = vcmp.eq.s32.totalorder %v7015_v45, %v6388_v14  ;;  %vm1132_vm14 = vcmp.eq.s32.totalorder %v7009_v43, %v6385_v13  ;;  %vm1020_vm15 = vcmp.eq.s32.totalorder %v7012_v18, %v6385_v13 }
 0x16f   : >> { %4640 = vmatpush.msk.msra.mxu3 %vm1190_vm10, %v6158_v47  ;;  %4608 = vmatpush.msk.msra.mxu1 %vm1078_vm12, %v6158_v47  ;;  %vm1077_vm0 = vcmp.eq.s32.totalorder %v7018_v46, %v6388_v14  ;;  %vm1188_vm1 = vcmp.eq.s32.totalorder %v7015_v45, %v6385_v13  ;;  %vm1076_vm2 = vcmp.eq.s32.totalorder %v7018_v46, %v6385_v13 }
 0x170   : >> { %4625 = vmatpush.msk.msra.mxu2 %vm1133_vm9, %v6158_v47  ;;  %4593 = vmatpush.msk.msra.mxu0 %vm1021_vm11, %v6158_v47  ;;  %vm1131_vm3 = vcmp.eq.s32.totalorder %v7009_v43, %v6382_v12  ;;  %vm1019_vm4 = vcmp.eq.s32.totalorder %v7012_v18, %v6382_v12  ;;  %vm1187_vm5 = vcmp.eq.s32.totalorder %v7015_v45, %v6382_v12 }
 0x171   : >> { %4641 = vmatpush.msk.msra.mxu3 %vm1189_vm13, %v6158_v47  ;;  %4609 = vmatpush.msk.msra.mxu1 %vm1077_vm0, %v6158_v47  ;;  %vm1075_vm6 = vcmp.eq.s32.totalorder %v7018_v46, %v6382_v12  ;;  %vm1130_vm7 = vcmp.eq.s32.totalorder %v7009_v43, %v6379_v11  ;;  %vm1018_vm8 = vcmp.eq.s32.totalorder %v7012_v18, %v6379_v11 }
 0x172   : >> { %4626 = vmatpush.msk.msra.mxu2 %vm1132_vm14, %v6158_v47  ;;  %4594 = vmatpush.msk.msra.mxu0 %vm1020_vm15, %v6158_v47  ;;  %vm1186_vm9 = vcmp.eq.s32.totalorder %v7015_v45, %v6379_v11  ;;  %vm1074_vm10 = vcmp.eq.s32.totalorder %v7018_v46, %v6379_v11  ;;  %vm1129_vm11 = vcmp.eq.s32.totalorder %v7009_v43, %v6376_v10 }
 0x173   : >> { %4642 = vmatpush.msk.msra.mxu3 %vm1188_vm1, %v6158_v47  ;;  %4610 = vmatpush.msk.msra.mxu1 %vm1076_vm2, %v6158_v47  ;;  %vm1017_vm12 = vcmp.eq.s32.totalorder %v7012_v18, %v6376_v10  ;;  %vm1185_vm13 = vcmp.eq.s32.totalorder %v7015_v45, %v6376_v10  ;;  %vm1073_vm14 = vcmp.eq.s32.totalorder %v7018_v46, %v6376_v10 }
 0x174   : >> { %4627 = vmatpush.msk.msra.mxu2 %vm1131_vm3, %v6158_v47  ;;  %4595 = vmatpush.msk.msra.mxu0 %vm1019_vm4, %v6158_v47  ;;  %vm1128_vm15 = vcmp.eq.s32.totalorder %v7009_v43, %v6373_v9  ;;  %vm1016_vm0 = vcmp.eq.s32.totalorder %v7012_v18, %v6373_v9  ;;  %vm1184_vm1 = vcmp.eq.s32.totalorder %v7015_v45, %v6373_v9 }
 0x175   : >> { %4643 = vmatpush.msk.msra.mxu3 %vm1187_vm5, %v6158_v47  ;;  %4611 = vmatpush.msk.msra.mxu1 %vm1075_vm6, %v6158_v47  ;;  %vm1072_vm2 = vcmp.eq.s32.totalorder %v7018_v46, %v6373_v9  ;;  %vm1127_vm3 = vcmp.eq.s32.totalorder %v7009_v43, %v6370_v8  ;;  %vm1015_vm4 = vcmp.eq.s32.totalorder %v7012_v18, %v6370_v8 }
 0x176   : >> { %4628 = vmatpush.msk.msra.mxu2 %vm1130_vm7, %v6158_v47  ;;  %4596 = vmatpush.msk.msra.mxu0 %vm1018_vm8, %v6158_v47  ;;  %vm1183_vm5 = vcmp.eq.s32.totalorder %v7015_v45, %v6370_v8  ;;  %vm1071_vm6 = vcmp.eq.s32.totalorder %v7018_v46, %v6370_v8  ;;  %vm1126_vm7 = vcmp.eq.s32.totalorder %v7009_v43, %v6367_v7 }
 0x177   : >> { %4644 = vmatpush.msk.msra.mxu3 %vm1186_vm9, %v6158_v47  ;;  %4612 = vmatpush.msk.msra.mxu1 %vm1074_vm10, %v6158_v47  ;;  %vm1014_vm8 = vcmp.eq.s32.totalorder %v7012_v18, %v6367_v7  ;;  %vm1182_vm9 = vcmp.eq.s32.totalorder %v7015_v45, %v6367_v7  ;;  %vm1070_vm10 = vcmp.eq.s32.totalorder %v7018_v46, %v6367_v7 }
 0x178   : >> { %4629 = vmatpush.msk.msra.mxu2 %vm1129_vm11, %v6158_v47  ;;  %4597 = vmatpush.msk.msra.mxu0 %vm1017_vm12, %v6158_v47  ;;  %vm1125_vm11 = vcmp.eq.s32.totalorder %v7009_v43, %v6364_v6  ;;  %vm1013_vm12 = vcmp.eq.s32.totalorder %v7012_v18, %v6364_v6 }
 0x179   : >> { %4645 = vmatpush.msk.msra.mxu3 %vm1185_vm13, %v6158_v47  ;;  %4613 = vmatpush.msk.msra.mxu1 %vm1073_vm14, %v6158_v47  ;;  %vm1181_vm13 = vcmp.eq.s32.totalorder %v7015_v45, %v6364_v6  ;;  %vm1069_vm14 = vcmp.eq.s32.totalorder %v7018_v46, %v6364_v6 }
 0x17a   : >> { %4630 = vmatpush.msk.msra.mxu2 %vm1128_vm15, %v6158_v47  ;;  %4598 = vmatpush.msk.msra.mxu0 %vm1016_vm0, %v6158_v47  ;;  %vm1124_vm15 = vcmp.eq.s32.totalorder %v7009_v43, %v6361_v5  ;;  %vm1012_vm0 = vcmp.eq.s32.totalorder %v7012_v18, %v6361_v5 }
 0x17b   : >> { %4646 = vmatpush.msk.msra.mxu3 %vm1184_vm1, %v6158_v47  ;;  %4614 = vmatpush.msk.msra.mxu1 %vm1072_vm2, %v6158_v47  ;;  %vm1180_vm1 = vcmp.eq.s32.totalorder %v7015_v45, %v6361_v5  ;;  %vm1068_vm2 = vcmp.eq.s32.totalorder %v7018_v46, %v6361_v5 }
 0x17c   : >> { %4631 = vmatpush.msk.msra.mxu2 %vm1127_vm3, %v6158_v47  ;;  %4599 = vmatpush.msk.msra.mxu0 %vm1015_vm4, %v6158_v47  ;;  %vm1123_vm3 = vcmp.eq.s32.totalorder %v7009_v43, %v6358_v4  ;;  %vm1011_vm4 = vcmp.eq.s32.totalorder %v7012_v18, %v6358_v4 }
 0x17d   : >> { %4647 = vmatpush.msk.msra.mxu3 %vm1183_vm5, %v6158_v47  ;;  %4615 = vmatpush.msk.msra.mxu1 %vm1071_vm6, %v6158_v47  ;;  %vm1179_vm5 = vcmp.eq.s32.totalorder %v7015_v45, %v6358_v4  ;;  %vm1067_vm6 = vcmp.eq.s32.totalorder %v7018_v46, %v6358_v4 }
 0x17e   : >> { %4632 = vmatpush.msk.msra.mxu2 %vm1126_vm7, %v6158_v47  ;;  %4600 = vmatpush.msk.msra.mxu0 %vm1014_vm8, %v6158_v47  ;;  %vm1122_vm7 = vcmp.eq.s32.totalorder %v7009_v43, %v6355_v3  ;;  %vm1010_vm8 = vcmp.eq.s32.totalorder %v7012_v18, %v6355_v3 }
 0x17f   : >> { %4648 = vmatpush.msk.msra.mxu3 %vm1182_vm9, %v6158_v47  ;;  %4616 = vmatpush.msk.msra.mxu1 %vm1070_vm10, %v6158_v47  ;;  %vm1178_vm9 = vcmp.eq.s32.totalorder %v7015_v45, %v6355_v3  ;;  %vm1066_vm10 = vcmp.eq.s32.totalorder %v7018_v46, %v6355_v3 }
 0x180   : >> { %4633 = vmatpush.msk.msra.mxu2 %vm1125_vm11, %v6158_v47  ;;  %4601 = vmatpush.msk.msra.mxu0 %vm1013_vm12, %v6158_v47  ;;  %vm1121_vm11 = vcmp.eq.s32.totalorder %v7009_v43, %v6352_v2  ;;  %vm1009_vm12 = vcmp.eq.s32.totalorder %v7012_v18, %v6352_v2 }
 0x181   : >> { %4649 = vmatpush.msk.msra.mxu3 %vm1181_vm13, %v6158_v47  ;;  %4617 = vmatpush.msk.msra.mxu1 %vm1069_vm14, %v6158_v47  ;;  %vm1177_vm13 = vcmp.eq.s32.totalorder %v7015_v45, %v6352_v2  ;;  %vm1065_vm14 = vcmp.eq.s32.totalorder %v7018_v46, %v6352_v2 }
 0x182   : >> { %4634 = vmatpush.msk.msra.mxu2 %vm1124_vm15, %v6158_v47  ;;  %4602 = vmatpush.msk.msra.mxu0 %vm1012_vm0, %v6158_v47  ;;  %vm1120_vm15 = vcmp.eq.s32.totalorder %v7009_v43, %v6343_v1  ;;  %vm1008_vm0 = vcmp.eq.s32.totalorder %v7012_v18, %v6343_v1 }
 0x183   : >> { %4650 = vmatpush.msk.msra.mxu3 %vm1180_vm1, %v6158_v47  ;;  %4618 = vmatpush.msk.msra.mxu1 %vm1068_vm2, %v6158_v47  ;;  %vm1359_vm1 = vcmp.eq.s32.totalorder %v7183_v28, %v6394_v16  ;;  %vm1176_vm2 = vcmp.eq.s32.totalorder %v7015_v45, %v6343_v1 }
 0x184   : >> { %4635 = vmatpush.msk.msra.mxu2 %vm1123_vm3, %v6158_v47  ;;  %4603 = vmatpush.msk.msra.mxu0 %vm1011_vm4, %v6158_v47  ;;  %vm1247_vm3 = vcmp.eq.s32.totalorder %v7192_v48, %v6394_v16  ;;  %vm1415_vm4 = vcmp.eq.s32.totalorder %v7195_v29, %v6394_v16 }
 0x185   : >> { %4651 = vmatpush.msk.msra.mxu3 %vm1179_vm5, %v6158_v47  ;;  %4619 = vmatpush.msk.msra.mxu1 %vm1067_vm6, %v6158_v47  ;;  %vm1358_vm5 = vcmp.eq.s32.totalorder %v7183_v28, %v6391_v15  ;;  %vm1064_vm6 = vcmp.eq.s32.totalorder %v7018_v46, %v6343_v1 }
 0x186   : >> { %4636 = vmatpush.msk.msra.mxu2 %vm1122_vm7, %v6158_v47  ;;  %4604 = vmatpush.msk.msra.mxu0 %vm1010_vm8, %v6158_v47  ;;  %vm1246_vm7 = vcmp.eq.s32.totalorder %v7192_v48, %v6391_v15  ;;  %vm1303_vm8 = vcmp.eq.s32.totalorder %v7210_v54, %v6394_v16 }
 0x187   : >> { %4652 = vmatpush.msk.msra.mxu3 %vm1178_vm9, %v6158_v47  ;;  %4620 = vmatpush.msk.msra.mxu1 %vm1066_vm10, %v6158_v47  ;;  %vm1357_vm9 = vcmp.eq.s32.totalorder %v7183_v28, %v6388_v14  ;;  %vm1414_vm10 = vcmp.eq.s32.totalorder %v7195_v29, %v6391_v15 }
 0x188   : >> { %4637 = vmatpush.msk.msra.mxu2 %vm1121_vm11, %v6158_v47  ;;  %4605 = vmatpush.msk.msra.mxu0 %vm1009_vm12, %v6158_v47  ;;  %vm1245_vm11 = vcmp.eq.s32.totalorder %v7192_v48, %v6388_v14  ;;  %vm1302_vm12 = vcmp.eq.s32.totalorder %v7210_v54, %v6391_v15 }
 0x189   : >> { %4653 = vmatpush.msk.msra.mxu3 %vm1177_vm13, %v6158_v47  ;;  %4621 = vmatpush.msk.msra.mxu1 %vm1065_vm14, %v6158_v47  ;;  %vm1356_vm13 = vcmp.eq.s32.totalorder %v7183_v28, %v6385_v13  ;;  %vm1413_vm14 = vcmp.eq.s32.totalorder %v7195_v29, %v6388_v14 }
 0x18a   : >> { %4638 = vmatpush.msk.msra.mxu2 %vm1120_vm15, %v6158_v47  ;;  %4606 = vmatpush.msk.msra.mxu0 %vm1008_vm0, %v6158_v47  ;;  %vm1244_vm15 = vcmp.eq.s32.totalorder %v7192_v48, %v6385_v13  ;;  %vm1301_vm0 = vcmp.eq.s32.totalorder %v7210_v54, %v6388_v14 }
 0x18b   : >> { %4654 = vmatpush.msk.msra.mxu3 %vm1176_vm2, %v6158_v47  ;;  %4622 = vmatpush.msk.msra.mxu1 %vm1064_vm6, %v6158_v47  ;;  %vm1412_vm2 = vcmp.eq.s32.totalorder %v7195_v29, %v6385_v13  ;;  %vm1411_vm6 = vcmp.eq.s32.totalorder %v7195_v29, %v6382_v12 }
 0x18c   : >> { %4687 = vmatpush.msk.msrb.mxu2 %vm1359_vm1, %v6158_v47  ;;  %4655 = vmatpush.msk.msrb.mxu0 %vm1247_vm3, %v6158_v47  ;;  %vm1355_vm1 = vcmp.eq.s32.totalorder %v7183_v28, %v6382_v12  ;;  %vm1243_vm3 = vcmp.eq.s32.totalorder %v7192_v48, %v6382_v12 }
 0x18d   : >> { %4703 = vmatpush.msk.msrb.mxu3 %vm1415_vm4, %v6158_v47  ;;  %4671 = vmatpush.msk.msrb.mxu1 %vm1303_vm8, %v6158_v47  ;;  %vm1300_vm4 = vcmp.eq.s32.totalorder %v7210_v54, %v6385_v13  ;;  %vm1299_vm8 = vcmp.eq.s32.totalorder %v7210_v54, %v6382_v12 }
 0x18e   : >> { %4688 = vmatpush.msk.msrb.mxu2 %vm1358_vm5, %v6158_v47  ;;  %4656 = vmatpush.msk.msrb.mxu0 %vm1246_vm7, %v6158_v47  ;;  %vm1354_vm5 = vcmp.eq.s32.totalorder %v7183_v28, %v6379_v11  ;;  %vm1242_vm7 = vcmp.eq.s32.totalorder %v7192_v48, %v6379_v11 }
 0x18f   : >> { %4704 = vmatpush.msk.msrb.mxu3 %vm1414_vm10, %v6158_v47  ;;  %4672 = vmatpush.msk.msrb.mxu1 %vm1302_vm12, %v6158_v47  ;;  %vm1410_vm10 = vcmp.eq.s32.totalorder %v7195_v29, %v6379_v11  ;;  %vm1298_vm12 = vcmp.eq.s32.totalorder %v7210_v54, %v6379_v11 }
 0x190   : >> { %4689 = vmatpush.msk.msrb.mxu2 %vm1357_vm9, %v6158_v47  ;;  %4657 = vmatpush.msk.msrb.mxu0 %vm1245_vm11, %v6158_v47  ;;  %vm1353_vm9 = vcmp.eq.s32.totalorder %v7183_v28, %v6376_v10  ;;  %vm1241_vm11 = vcmp.eq.s32.totalorder %v7192_v48, %v6376_v10 }
 0x191   : >> { %4705 = vmatpush.msk.msrb.mxu3 %vm1413_vm14, %v6158_v47  ;;  %4673 = vmatpush.msk.msrb.mxu1 %vm1301_vm0, %v6158_v47  ;;  %vm1409_vm14 = vcmp.eq.s32.totalorder %v7195_v29, %v6376_v10  ;;  %vm1297_vm0 = vcmp.eq.s32.totalorder %v7210_v54, %v6376_v10 }
 0x192   : >> { %4690 = vmatpush.msk.msrb.mxu2 %vm1356_vm13, %v6158_v47  ;;  %4658 = vmatpush.msk.msrb.mxu0 %vm1244_vm15, %v6158_v47  ;;  %vm1352_vm13 = vcmp.eq.s32.totalorder %v7183_v28, %v6373_v9  ;;  %vm1240_vm15 = vcmp.eq.s32.totalorder %v7192_v48, %v6373_v9 }
 0x193   : >> { %4706 = vmatpush.msk.msrb.mxu3 %vm1412_vm2, %v6158_v47  ;;  %4674 = vmatpush.msk.msrb.mxu1 %vm1300_vm4, %v6158_v47  ;;  %vm1408_vm2 = vcmp.eq.s32.totalorder %v7195_v29, %v6373_v9  ;;  %vm1296_vm4 = vcmp.eq.s32.totalorder %v7210_v54, %v6373_v9 }
 0x194   : >> { %4691 = vmatpush.msk.msrb.mxu2 %vm1355_vm1, %v6158_v47  ;;  %4659 = vmatpush.msk.msrb.mxu0 %vm1243_vm3, %v6158_v47  ;;  %vm1351_vm1 = vcmp.eq.s32.totalorder %v7183_v28, %v6370_v8  ;;  %vm1239_vm3 = vcmp.eq.s32.totalorder %v7192_v48, %v6370_v8 }
 0x195   : >> { %4707 = vmatpush.msk.msrb.mxu3 %vm1411_vm6, %v6158_v47  ;;  %4675 = vmatpush.msk.msrb.mxu1 %vm1299_vm8, %v6158_v47  ;;  %vm1407_vm6 = vcmp.eq.s32.totalorder %v7195_v29, %v6370_v8  ;;  %vm1295_vm8 = vcmp.eq.s32.totalorder %v7210_v54, %v6370_v8 }
 0x196   : >> { %4692 = vmatpush.msk.msrb.mxu2 %vm1354_vm5, %v6158_v47  ;;  %4660 = vmatpush.msk.msrb.mxu0 %vm1242_vm7, %v6158_v47  ;;  %vm1350_vm5 = vcmp.eq.s32.totalorder %v7183_v28, %v6367_v7  ;;  %vm1238_vm7 = vcmp.eq.s32.totalorder %v7192_v48, %v6367_v7 }
 0x197   : >> { %4708 = vmatpush.msk.msrb.mxu3 %vm1410_vm10, %v6158_v47  ;;  %4676 = vmatpush.msk.msrb.mxu1 %vm1298_vm12, %v6158_v47  ;;  %vm1406_vm10 = vcmp.eq.s32.totalorder %v7195_v29, %v6367_v7  ;;  %vm1294_vm12 = vcmp.eq.s32.totalorder %v7210_v54, %v6367_v7 }
 0x198   : >> { %4693 = vmatpush.msk.msrb.mxu2 %vm1353_vm9, %v6158_v47  ;;  %4661 = vmatpush.msk.msrb.mxu0 %vm1241_vm11, %v6158_v47  ;;  %vm1349_vm9 = vcmp.eq.s32.totalorder %v7183_v28, %v6364_v6  ;;  %vm1237_vm11 = vcmp.eq.s32.totalorder %v7192_v48, %v6364_v6 }
 0x199   : >> { %4709 = vmatpush.msk.msrb.mxu3 %vm1409_vm14, %v6158_v47  ;;  %4677 = vmatpush.msk.msrb.mxu1 %vm1297_vm0, %v6158_v47  ;;  %vm1405_vm14 = vcmp.eq.s32.totalorder %v7195_v29, %v6364_v6  ;;  %vm1293_vm0 = vcmp.eq.s32.totalorder %v7210_v54, %v6364_v6 }
 0x19a   : >> { %4694 = vmatpush.msk.msrb.mxu2 %vm1352_vm13, %v6158_v47  ;;  %4662 = vmatpush.msk.msrb.mxu0 %vm1240_vm15, %v6158_v47  ;;  %vm1348_vm13 = vcmp.eq.s32.totalorder %v7183_v28, %v6361_v5  ;;  %vm1236_vm15 = vcmp.eq.s32.totalorder %v7192_v48, %v6361_v5 }
 0x19b   : >> { %4710 = vmatpush.msk.msrb.mxu3 %vm1408_vm2, %v6158_v47  ;;  %4678 = vmatpush.msk.msrb.mxu1 %vm1296_vm4, %v6158_v47  ;;  %vm1404_vm2 = vcmp.eq.s32.totalorder %v7195_v29, %v6361_v5  ;;  %vm1292_vm4 = vcmp.eq.s32.totalorder %v7210_v54, %v6361_v5 }
 0x19c   : >> { %4695 = vmatpush.msk.msrb.mxu2 %vm1351_vm1, %v6158_v47  ;;  %4663 = vmatpush.msk.msrb.mxu0 %vm1239_vm3, %v6158_v47  ;;  %vm1347_vm1 = vcmp.eq.s32.totalorder %v7183_v28, %v6358_v4  ;;  %vm1235_vm3 = vcmp.eq.s32.totalorder %v7192_v48, %v6358_v4 }
 0x19d   : >> { %4711 = vmatpush.msk.msrb.mxu3 %vm1407_vm6, %v6158_v47  ;;  %4679 = vmatpush.msk.msrb.mxu1 %vm1295_vm8, %v6158_v47  ;;  %vm1403_vm6 = vcmp.eq.s32.totalorder %v7195_v29, %v6358_v4  ;;  %vm1291_vm8 = vcmp.eq.s32.totalorder %v7210_v54, %v6358_v4 }
 0x19e   : >> { %4696 = vmatpush.msk.msrb.mxu2 %vm1350_vm5, %v6158_v47  ;;  %4664 = vmatpush.msk.msrb.mxu0 %vm1238_vm7, %v6158_v47  ;;  %vm1346_vm5 = vcmp.eq.s32.totalorder %v7183_v28, %v6355_v3  ;;  %vm1234_vm7 = vcmp.eq.s32.totalorder %v7192_v48, %v6355_v3 }
 0x19f   : >> { %4712 = vmatpush.msk.msrb.mxu3 %vm1406_vm10, %v6158_v47  ;;  %4680 = vmatpush.msk.msrb.mxu1 %vm1294_vm12, %v6158_v47  ;;  %vm1402_vm10 = vcmp.eq.s32.totalorder %v7195_v29, %v6355_v3  ;;  %vm1290_vm12 = vcmp.eq.s32.totalorder %v7210_v54, %v6355_v3 }
 0x1a0   : >> { %4697 = vmatpush.msk.msrb.mxu2 %vm1349_vm9, %v6158_v47  ;;  %4665 = vmatpush.msk.msrb.mxu0 %vm1237_vm11, %v6158_v47  ;;  %vm1345_vm9 = vcmp.eq.s32.totalorder %v7183_v28, %v6352_v2  ;;  %vm1233_vm11 = vcmp.eq.s32.totalorder %v7192_v48, %v6352_v2 }
 0x1a1   : >> { %4713 = vmatpush.msk.msrb.mxu3 %vm1405_vm14, %v6158_v47  ;;  %1168 = vmatmul.f32.vlgmr.msra.gmra.mxu2 %v1003_v57  ;;  %vm1401_vm14 = vcmp.eq.s32.totalorder %v7195_v29, %v6352_v2 }
 0x1a2   : >> { %4698 = vmatpush.msk.msrb.mxu2 %vm1348_vm13, %v6158_v47  ;;  %4666 = vmatpush.msk.msrb.mxu0 %vm1236_vm15, %v6158_v47  ;;  %vm1344_vm13 = vcmp.eq.s32.totalorder %v7183_v28, %v6343_v1  ;;  %vm1232_vm15 = vcmp.eq.s32.totalorder %v7192_v48, %v6343_v1 }
 0x1a3   : >> { %4681 = vmatpush.msk.msrb.mxu1 %vm1293_vm0, %v6158_v47  ;;  %4714 = vmatpush.msk.msrb.mxu3 %vm1404_vm2, %v6158_v47  ;;  %vm1289_vm0 = vcmp.eq.s32.totalorder %v7210_v54, %v6352_v2  ;;  %vm1288_vm2 = vcmp.eq.s32.totalorder %v7210_v54, %v6343_v1 }
 0x1a4   : >> { %4699 = vmatpush.msk.msrb.mxu2 %vm1347_vm1, %v6158_v47  ;;  %1056 = vmatmul.f32.vlgmr.msra.gmra.mxu0 %v1003_v57  ;;  %vm1400_vm1 = vcmp.eq.s32.totalorder %v7195_v29, %v6343_v1 }
 0x1a5   : >> { %1224 = vmatmul.f32.vlgmr.msra.gmra.mxu3 %v1003_v57  ;;  %4667 = vmatpush.msk.msrb.mxu0 %vm1235_vm3, %v6158_v47 }
 0x1a6   : >> { %4682 = vmatpush.msk.msrb.mxu1 %vm1292_vm4, %v6158_v47  ;;  %4700 = vmatpush.msk.msrb.mxu2 %vm1346_vm5, %v6158_v47 }
 0x1a7   : >> { %4715 = vmatpush.msk.msrb.mxu3 %vm1403_vm6, %v6158_v47  ;;  %1112 = vmatmul.f32.vlgmr.msra.gmra.mxu1 %v1003_v57 }
 0x1a8   : >> { %4668 = vmatpush.msk.msrb.mxu0 %vm1234_vm7, %v6158_v47  ;;  %4683 = vmatpush.msk.msrb.mxu1 %vm1291_vm8, %v6158_v47 }
 0x1a9   : >> { %4701 = vmatpush.msk.msrb.mxu2 %vm1345_vm9, %v6158_v47  ;;  %4716 = vmatpush.msk.msrb.mxu3 %vm1402_vm10, %v6158_v47 }
 0x1aa   : >> { %4669 = vmatpush.msk.msrb.mxu0 %vm1233_vm11, %v6158_v47  ;;  %4684 = vmatpush.msk.msrb.mxu1 %vm1290_vm12, %v6158_v47 }
 0x1ab   : >> { %4702 = vmatpush.msk.msrb.mxu2 %vm1344_vm13, %v6158_v47  ;;  %4717 = vmatpush.msk.msrb.mxu3 %vm1401_vm14, %v6158_v47 }
 0x1ac   : >> { %1392 = vmatmul.f32.vlgmr.msrb.gmra.mxu2 %v1003_v57  ;;  %4670 = vmatpush.msk.msrb.mxu0 %vm1232_vm15, %v6158_v47 }
 0x1ad   : >> { %4685 = vmatpush.msk.msrb.mxu1 %vm1289_vm0, %v6158_v47  ;;  %4718 = vmatpush.msk.msrb.mxu3 %vm1400_vm1, %v6158_v47 }
 0x1ae   : >> { %1280 = vmatmul.f32.vlgmr.msrb.gmra.mxu0 %v1003_v57  ;;  %1448 = vmatmul.f32.vlgmr.msrb.gmra.mxu3 %v1003_v57 }
 0x1af   : >> { %4686 = vmatpush.msk.msrb.mxu1 %vm1288_vm2, %v6158_v47 }
 0x1b0   : >> { %1336 = vmatmul.f32.vlgmr.msrb.gmra.mxu1 %v1003_v57 }
 0x221   : >> { %v1057_v60 = vpop.f32.mrf.mxu0 }
 0x222   : >> { %v1061_v61 = vmul.f32 %v1060_v59, %v1057_v60 }
 0x224   : >> { %v1062_v40 = vadd.f32 %v6068_v32, %v1061_v61  ;;  %v1113_v0 = vpop.f32.mrf.mxu1  ;;  %v1169_v19 = vpop.f32.mrf.mxu2 }
 0x225   : >> { %v1117_v17 = vmul.f32 %v1116_v55, %v1113_v0  ;;  %v1173_v56 = vmul.f32 %v1172_v63, %v1169_v19 }
 0x227   : >> { %v1118_v21 = vadd.f32 %v1117_v17, %v1062_v40 }
 0x228   : >> { %v1225_v58 = vpop.f32.mrf.mxu3 }
 0x229   : >> { %v1174_v22 = vadd.f32 %v1173_v56, %v1118_v21  ;;  %v1229_v23 = vmul.f32 %v1228_v20, %v1225_v58 }
 0x22b   : >> { %v1230_v25 = vadd.f32 %v1229_v23, %v1174_v22  ;;  %v1281_v37 = vpop.f32.mrf.mxu0 }
 0x22c   : >> { %v1285_v38 = vmul.f32 %v1284_v52, %v1281_v37 }
 0x22d   : >> { %v1337_v32 = vpop.f32.mrf.mxu1 }
 0x22e   : >> { %v1286_v44 = vadd.f32 %v1285_v38, %v1230_v25  ;;  %v1341_v35 = vmul.f32 %v1340_v24, %v1337_v32 }
 0x22f   : >> { %v1393_v39 = vpop.f32.mrf.mxu2 }
 0x230   : >> { %v1342_v41 = vadd.f32 %v1341_v35, %v1286_v44  ;;  %v1397_v34 = vmul.f32 %v1396_v33, %v1393_v39 }
 0x231   : >> { %v1449_v49 = vpop.f32.mrf.mxu3 }
 0x232   : >> { %v1398_v62 = vadd.f32 %v1397_v34, %v1342_v41  ;;  %v1453_v43 = vmul.f32 %v1452_v36, %v1449_v49  ;;  %999 = sbr.rel (!%p996_p7) target bundleno = 357 (0x165), region = 170 }
 0x234   : >> { %v1454_v18 = vadd.f32 %v1453_v43, %v1398_v62  }
 0x236   : >> { %v10197_v32 = vmov %v1454_v18  ;;  %v10198_v34 = vmov (%p996_p7), %v1454_v18 }
 0x237 PF: > { %1455 = vst [vmem:[%s6530_s23] sm:$0xff] %v6076_v34  ;;  %v7437_v45 = vld [vmem:[%s6326_s10 + $0x8] sm:$0xff]  ;;  %s1457_s7 = sld [smem:[#allocation3 + %s6338_s3]]   ;;  %v7444_v46 = vmov 0.0   ;;  %v6076_v34 = vphi %v10196_v34, %v10198_v34  }
 0x238   : > { %s7441_s15 = sld [smem:[#allocation3 + %s6346_s11]] }
 0x23e   : > { %p4353_p9 = scmp.ge.s32.totalorder %s1457_s7, %s7441_s15 }
 0x240   : > { %4355 = sbr.rel (%p4353_p9) target bundleno = 792 (0x318), region = 175 }
 0x245   : > { %v7446_v26 = vmov 0.0  }
 0x246 LB: >> { %s4720_s16 = sshll.u32 %s6084_s7, 7  ;;  %v6159_v57 = vmov 1.0   ;;  %s4719_s17 = sshll.u32 %s6084_s7, 3  ;;  %v1525_v40 = vperm.slane %v6470_v50, 0  ;;  %v1581_v17 = vperm.slane %v6470_v50, 1  ;;  %v1637_v20 = vperm.slane %v6470_v50, 2  ;;  %s6084_s7 = sphi %s1457_s7, %s1462_s7   ;;  %v6080_v26 = vphi %v7446_v26, %v10199_v26  }
 0x247   : >> { %v1470_v42 = vstv %s4720_s16  ;;  %s1467_s27 = scalar_lea.vmem [#allocation9], %s4719_s17  ;;  %v1693_v22 = vperm.slane %v6470_v50, 3  ;;  %v1749_v37 = vperm.slane %v6470_v50, 4  ;;  %v1805_v32 = vperm.slane %v6470_v50, 5  ;;  %s1462_s7 = sadd.s32 1, %s6084_s7  }
 0x248   : >> { %v7458_v47 = vsub.s32 %v7437_v45, %v1470_v42  ;;  %v1468_v63 = vld [vmem:[%s1467_s27] sm:$0xff]  ;;  %v1861_v39 = vperm.slane %v6470_v50, 6  ;;  %v1917_v62 = vperm.slane %v6470_v50, 7  ;;  %p1461_p8 = scmp.ge.s32.totalorder %s1462_s7, %s7441_s15 }
 0x24a   : >> { %v7461_v28 = vperm.slane %v7458_v47, 2  ;;  %v7464_v48 = vperm.slane %v7458_v47, 0  ;;  %v7467_v29 = vperm.slane %v7458_v47, 3  ;;  %v7470_v54 = vperm.slane %v7458_v47, 1 }
 0x24b   : >> { %v7635_v59 = vperm.slane %v7458_v47, 6  ;;  %v7644_v60 = vperm.slane %v7458_v47, 4  ;;  %v7647_v55 = vperm.slane %v7458_v47, 7  ;;  %v7662_v61 = vperm.slane %v7458_v47, 5 }
 0x24c   : >> { %vm1600_vm3 = vcmp.eq.s32.totalorder %v7461_v28, %v6394_v16  ;;  %vm1488_vm4 = vcmp.eq.s32.totalorder %v7464_v48, %v6394_v16  ;;  %vm1599_vm5 = vcmp.eq.s32.totalorder %v7461_v28, %v6391_v15  ;;  %vm1656_vm6 = vcmp.eq.s32.totalorder %v7467_v29, %v6394_v16 }
 0x24d   : >> { %4753 = vmatpush.msk.msra.mxu2 %vm1600_vm3, %v6159_v57  ;;  %4721 = vmatpush.msk.msra.mxu0 %vm1488_vm4, %v6159_v57  ;;  %vm1487_vm7 = vcmp.eq.s32.totalorder %v7464_v48, %v6391_v15  ;;  %vm1544_vm8 = vcmp.eq.s32.totalorder %v7470_v54, %v6394_v16  ;;  %vm1598_vm9 = vcmp.eq.s32.totalorder %v7461_v28, %v6388_v14 }
 0x24e   : >> { %4769 = vmatpush.msk.msra.mxu3 %vm1656_vm6, %v6159_v57  ;;  %4737 = vmatpush.msk.msra.mxu1 %vm1544_vm8, %v6159_v57  ;;  %vm1655_vm10 = vcmp.eq.s32.totalorder %v7467_v29, %v6391_v15  ;;  %vm1486_vm11 = vcmp.eq.s32.totalorder %v7464_v48, %v6388_v14  ;;  %vm1543_vm12 = vcmp.eq.s32.totalorder %v7470_v54, %v6391_v15 }
 0x24f   : >> { %4754 = vmatpush.msk.msra.mxu2 %vm1599_vm5, %v6159_v57  ;;  %4722 = vmatpush.msk.msra.mxu0 %vm1487_vm7, %v6159_v57  ;;  %vm1654_vm13 = vcmp.eq.s32.totalorder %v7467_v29, %v6388_v14  ;;  %vm1597_vm14 = vcmp.eq.s32.totalorder %v7461_v28, %v6385_v13  ;;  %vm1485_vm15 = vcmp.eq.s32.totalorder %v7464_v48, %v6385_v13 }
 0x250   : >> { %4770 = vmatpush.msk.msra.mxu3 %vm1655_vm10, %v6159_v57  ;;  %4738 = vmatpush.msk.msra.mxu1 %vm1543_vm12, %v6159_v57  ;;  %vm1542_vm0 = vcmp.eq.s32.totalorder %v7470_v54, %v6388_v14  ;;  %vm1653_vm1 = vcmp.eq.s32.totalorder %v7467_v29, %v6385_v13  ;;  %vm1541_vm2 = vcmp.eq.s32.totalorder %v7470_v54, %v6385_v13 }
 0x251   : >> { %4755 = vmatpush.msk.msra.mxu2 %vm1598_vm9, %v6159_v57  ;;  %4723 = vmatpush.msk.msra.mxu0 %vm1486_vm11, %v6159_v57  ;;  %vm1596_vm3 = vcmp.eq.s32.totalorder %v7461_v28, %v6382_v12  ;;  %vm1484_vm4 = vcmp.eq.s32.totalorder %v7464_v48, %v6382_v12  ;;  %vm1652_vm5 = vcmp.eq.s32.totalorder %v7467_v29, %v6382_v12 }
 0x252   : >> { %4771 = vmatpush.msk.msra.mxu3 %vm1654_vm13, %v6159_v57  ;;  %4739 = vmatpush.msk.msra.mxu1 %vm1542_vm0, %v6159_v57  ;;  %vm1540_vm6 = vcmp.eq.s32.totalorder %v7470_v54, %v6382_v12  ;;  %vm1595_vm7 = vcmp.eq.s32.totalorder %v7461_v28, %v6379_v11  ;;  %vm1483_vm8 = vcmp.eq.s32.totalorder %v7464_v48, %v6379_v11 }
 0x253   : >> { %4756 = vmatpush.msk.msra.mxu2 %vm1597_vm14, %v6159_v57  ;;  %4724 = vmatpush.msk.msra.mxu0 %vm1485_vm15, %v6159_v57  ;;  %vm1651_vm9 = vcmp.eq.s32.totalorder %v7467_v29, %v6379_v11  ;;  %vm1539_vm10 = vcmp.eq.s32.totalorder %v7470_v54, %v6379_v11  ;;  %vm1594_vm11 = vcmp.eq.s32.totalorder %v7461_v28, %v6376_v10 }
 0x254   : >> { %4772 = vmatpush.msk.msra.mxu3 %vm1653_vm1, %v6159_v57  ;;  %4740 = vmatpush.msk.msra.mxu1 %vm1541_vm2, %v6159_v57  ;;  %vm1482_vm12 = vcmp.eq.s32.totalorder %v7464_v48, %v6376_v10  ;;  %vm1650_vm13 = vcmp.eq.s32.totalorder %v7467_v29, %v6376_v10  ;;  %vm1538_vm14 = vcmp.eq.s32.totalorder %v7470_v54, %v6376_v10 }
 0x255   : >> { %4757 = vmatpush.msk.msra.mxu2 %vm1596_vm3, %v6159_v57  ;;  %4725 = vmatpush.msk.msra.mxu0 %vm1484_vm4, %v6159_v57  ;;  %vm1593_vm15 = vcmp.eq.s32.totalorder %v7461_v28, %v6373_v9  ;;  %vm1481_vm0 = vcmp.eq.s32.totalorder %v7464_v48, %v6373_v9  ;;  %vm1649_vm1 = vcmp.eq.s32.totalorder %v7467_v29, %v6373_v9 }
 0x256   : >> { %4773 = vmatpush.msk.msra.mxu3 %vm1652_vm5, %v6159_v57  ;;  %4741 = vmatpush.msk.msra.mxu1 %vm1540_vm6, %v6159_v57  ;;  %vm1537_vm2 = vcmp.eq.s32.totalorder %v7470_v54, %v6373_v9  ;;  %vm1592_vm3 = vcmp.eq.s32.totalorder %v7461_v28, %v6370_v8  ;;  %vm1480_vm4 = vcmp.eq.s32.totalorder %v7464_v48, %v6370_v8 }
 0x257   : >> { %4758 = vmatpush.msk.msra.mxu2 %vm1595_vm7, %v6159_v57  ;;  %4726 = vmatpush.msk.msra.mxu0 %vm1483_vm8, %v6159_v57  ;;  %vm1648_vm5 = vcmp.eq.s32.totalorder %v7467_v29, %v6370_v8  ;;  %vm1536_vm6 = vcmp.eq.s32.totalorder %v7470_v54, %v6370_v8  ;;  %vm1591_vm7 = vcmp.eq.s32.totalorder %v7461_v28, %v6367_v7 }
 0x258   : >> { %4774 = vmatpush.msk.msra.mxu3 %vm1651_vm9, %v6159_v57  ;;  %4742 = vmatpush.msk.msra.mxu1 %vm1539_vm10, %v6159_v57  ;;  %vm1479_vm8 = vcmp.eq.s32.totalorder %v7464_v48, %v6367_v7  ;;  %vm1647_vm9 = vcmp.eq.s32.totalorder %v7467_v29, %v6367_v7  ;;  %vm1535_vm10 = vcmp.eq.s32.totalorder %v7470_v54, %v6367_v7 }
 0x259   : >> { %4759 = vmatpush.msk.msra.mxu2 %vm1594_vm11, %v6159_v57  ;;  %4727 = vmatpush.msk.msra.mxu0 %vm1482_vm12, %v6159_v57  ;;  %vm1590_vm11 = vcmp.eq.s32.totalorder %v7461_v28, %v6364_v6  ;;  %vm1478_vm12 = vcmp.eq.s32.totalorder %v7464_v48, %v6364_v6 }
 0x25a   : >> { %4775 = vmatpush.msk.msra.mxu3 %vm1650_vm13, %v6159_v57  ;;  %4743 = vmatpush.msk.msra.mxu1 %vm1538_vm14, %v6159_v57  ;;  %vm1646_vm13 = vcmp.eq.s32.totalorder %v7467_v29, %v6364_v6  ;;  %vm1534_vm14 = vcmp.eq.s32.totalorder %v7470_v54, %v6364_v6 }
 0x25b   : >> { %4760 = vmatpush.msk.msra.mxu2 %vm1593_vm15, %v6159_v57  ;;  %4728 = vmatpush.msk.msra.mxu0 %vm1481_vm0, %v6159_v57  ;;  %vm1589_vm15 = vcmp.eq.s32.totalorder %v7461_v28, %v6361_v5  ;;  %vm1477_vm0 = vcmp.eq.s32.totalorder %v7464_v48, %v6361_v5 }
 0x25c   : >> { %4776 = vmatpush.msk.msra.mxu3 %vm1649_vm1, %v6159_v57  ;;  %4744 = vmatpush.msk.msra.mxu1 %vm1537_vm2, %v6159_v57  ;;  %vm1645_vm1 = vcmp.eq.s32.totalorder %v7467_v29, %v6361_v5  ;;  %vm1533_vm2 = vcmp.eq.s32.totalorder %v7470_v54, %v6361_v5 }
 0x25d   : >> { %4761 = vmatpush.msk.msra.mxu2 %vm1592_vm3, %v6159_v57  ;;  %4729 = vmatpush.msk.msra.mxu0 %vm1480_vm4, %v6159_v57  ;;  %vm1588_vm3 = vcmp.eq.s32.totalorder %v7461_v28, %v6358_v4  ;;  %vm1476_vm4 = vcmp.eq.s32.totalorder %v7464_v48, %v6358_v4 }
 0x25e   : >> { %4777 = vmatpush.msk.msra.mxu3 %vm1648_vm5, %v6159_v57  ;;  %4745 = vmatpush.msk.msra.mxu1 %vm1536_vm6, %v6159_v57  ;;  %vm1644_vm5 = vcmp.eq.s32.totalorder %v7467_v29, %v6358_v4  ;;  %vm1532_vm6 = vcmp.eq.s32.totalorder %v7470_v54, %v6358_v4 }
 0x25f   : >> { %4762 = vmatpush.msk.msra.mxu2 %vm1591_vm7, %v6159_v57  ;;  %4730 = vmatpush.msk.msra.mxu0 %vm1479_vm8, %v6159_v57  ;;  %vm1587_vm7 = vcmp.eq.s32.totalorder %v7461_v28, %v6355_v3  ;;  %vm1475_vm8 = vcmp.eq.s32.totalorder %v7464_v48, %v6355_v3 }
 0x260   : >> { %4778 = vmatpush.msk.msra.mxu3 %vm1647_vm9, %v6159_v57  ;;  %4746 = vmatpush.msk.msra.mxu1 %vm1535_vm10, %v6159_v57  ;;  %vm1643_vm9 = vcmp.eq.s32.totalorder %v7467_v29, %v6355_v3  ;;  %vm1531_vm10 = vcmp.eq.s32.totalorder %v7470_v54, %v6355_v3 }
 0x261   : >> { %4763 = vmatpush.msk.msra.mxu2 %vm1590_vm11, %v6159_v57  ;;  %4731 = vmatpush.msk.msra.mxu0 %vm1478_vm12, %v6159_v57  ;;  %vm1586_vm11 = vcmp.eq.s32.totalorder %v7461_v28, %v6352_v2  ;;  %vm1474_vm12 = vcmp.eq.s32.totalorder %v7464_v48, %v6352_v2 }
 0x262   : >> { %4779 = vmatpush.msk.msra.mxu3 %vm1646_vm13, %v6159_v57  ;;  %4747 = vmatpush.msk.msra.mxu1 %vm1534_vm14, %v6159_v57  ;;  %vm1642_vm13 = vcmp.eq.s32.totalorder %v7467_v29, %v6352_v2  ;;  %vm1530_vm14 = vcmp.eq.s32.totalorder %v7470_v54, %v6352_v2 }
 0x263   : >> { %4764 = vmatpush.msk.msra.mxu2 %vm1589_vm15, %v6159_v57  ;;  %4732 = vmatpush.msk.msra.mxu0 %vm1477_vm0, %v6159_v57  ;;  %vm1585_vm15 = vcmp.eq.s32.totalorder %v7461_v28, %v6343_v1  ;;  %vm1473_vm0 = vcmp.eq.s32.totalorder %v7464_v48, %v6343_v1 }
 0x264   : >> { %4780 = vmatpush.msk.msra.mxu3 %vm1645_vm1, %v6159_v57  ;;  %4748 = vmatpush.msk.msra.mxu1 %vm1533_vm2, %v6159_v57  ;;  %vm1824_vm1 = vcmp.eq.s32.totalorder %v7635_v59, %v6394_v16  ;;  %vm1641_vm2 = vcmp.eq.s32.totalorder %v7467_v29, %v6343_v1 }
 0x265   : >> { %4765 = vmatpush.msk.msra.mxu2 %vm1588_vm3, %v6159_v57  ;;  %4733 = vmatpush.msk.msra.mxu0 %vm1476_vm4, %v6159_v57  ;;  %vm1712_vm3 = vcmp.eq.s32.totalorder %v7644_v60, %v6394_v16  ;;  %vm1880_vm4 = vcmp.eq.s32.totalorder %v7647_v55, %v6394_v16 }
 0x266   : >> { %4781 = vmatpush.msk.msra.mxu3 %vm1644_vm5, %v6159_v57  ;;  %4749 = vmatpush.msk.msra.mxu1 %vm1532_vm6, %v6159_v57  ;;  %vm1823_vm5 = vcmp.eq.s32.totalorder %v7635_v59, %v6391_v15  ;;  %vm1529_vm6 = vcmp.eq.s32.totalorder %v7470_v54, %v6343_v1 }
 0x267   : >> { %4766 = vmatpush.msk.msra.mxu2 %vm1587_vm7, %v6159_v57  ;;  %4734 = vmatpush.msk.msra.mxu0 %vm1475_vm8, %v6159_v57  ;;  %vm1711_vm7 = vcmp.eq.s32.totalorder %v7644_v60, %v6391_v15  ;;  %vm1768_vm8 = vcmp.eq.s32.totalorder %v7662_v61, %v6394_v16 }
 0x268   : >> { %4782 = vmatpush.msk.msra.mxu3 %vm1643_vm9, %v6159_v57  ;;  %4750 = vmatpush.msk.msra.mxu1 %vm1531_vm10, %v6159_v57  ;;  %vm1822_vm9 = vcmp.eq.s32.totalorder %v7635_v59, %v6388_v14  ;;  %vm1879_vm10 = vcmp.eq.s32.totalorder %v7647_v55, %v6391_v15 }
 0x269   : >> { %4767 = vmatpush.msk.msra.mxu2 %vm1586_vm11, %v6159_v57  ;;  %4735 = vmatpush.msk.msra.mxu0 %vm1474_vm12, %v6159_v57  ;;  %vm1710_vm11 = vcmp.eq.s32.totalorder %v7644_v60, %v6388_v14  ;;  %vm1767_vm12 = vcmp.eq.s32.totalorder %v7662_v61, %v6391_v15 }
 0x26a   : >> { %4783 = vmatpush.msk.msra.mxu3 %vm1642_vm13, %v6159_v57  ;;  %4751 = vmatpush.msk.msra.mxu1 %vm1530_vm14, %v6159_v57  ;;  %vm1821_vm13 = vcmp.eq.s32.totalorder %v7635_v59, %v6385_v13  ;;  %vm1878_vm14 = vcmp.eq.s32.totalorder %v7647_v55, %v6388_v14 }
 0x26b   : >> { %4768 = vmatpush.msk.msra.mxu2 %vm1585_vm15, %v6159_v57  ;;  %4736 = vmatpush.msk.msra.mxu0 %vm1473_vm0, %v6159_v57  ;;  %vm1709_vm15 = vcmp.eq.s32.totalorder %v7644_v60, %v6385_v13  ;;  %vm1766_vm0 = vcmp.eq.s32.totalorder %v7662_v61, %v6388_v14 }
 0x26c   : >> { %4784 = vmatpush.msk.msra.mxu3 %vm1641_vm2, %v6159_v57  ;;  %4752 = vmatpush.msk.msra.mxu1 %vm1529_vm6, %v6159_v57  ;;  %vm1877_vm2 = vcmp.eq.s32.totalorder %v7647_v55, %v6385_v13  ;;  %vm1876_vm6 = vcmp.eq.s32.totalorder %v7647_v55, %v6382_v12 }
 0x26d   : >> { %4817 = vmatpush.msk.msrb.mxu2 %vm1824_vm1, %v6159_v57  ;;  %4785 = vmatpush.msk.msrb.mxu0 %vm1712_vm3, %v6159_v57  ;;  %vm1820_vm1 = vcmp.eq.s32.totalorder %v7635_v59, %v6382_v12  ;;  %vm1708_vm3 = vcmp.eq.s32.totalorder %v7644_v60, %v6382_v12 }
 0x26e   : >> { %4833 = vmatpush.msk.msrb.mxu3 %vm1880_vm4, %v6159_v57  ;;  %4801 = vmatpush.msk.msrb.mxu1 %vm1768_vm8, %v6159_v57  ;;  %vm1765_vm4 = vcmp.eq.s32.totalorder %v7662_v61, %v6385_v13  ;;  %vm1764_vm8 = vcmp.eq.s32.totalorder %v7662_v61, %v6382_v12 }
 0x26f   : >> { %4818 = vmatpush.msk.msrb.mxu2 %vm1823_vm5, %v6159_v57  ;;  %4786 = vmatpush.msk.msrb.mxu0 %vm1711_vm7, %v6159_v57  ;;  %vm1819_vm5 = vcmp.eq.s32.totalorder %v7635_v59, %v6379_v11  ;;  %vm1707_vm7 = vcmp.eq.s32.totalorder %v7644_v60, %v6379_v11 }
 0x270   : >> { %4834 = vmatpush.msk.msrb.mxu3 %vm1879_vm10, %v6159_v57  ;;  %4802 = vmatpush.msk.msrb.mxu1 %vm1767_vm12, %v6159_v57  ;;  %vm1875_vm10 = vcmp.eq.s32.totalorder %v7647_v55, %v6379_v11  ;;  %vm1763_vm12 = vcmp.eq.s32.totalorder %v7662_v61, %v6379_v11 }
 0x271   : >> { %4819 = vmatpush.msk.msrb.mxu2 %vm1822_vm9, %v6159_v57  ;;  %4787 = vmatpush.msk.msrb.mxu0 %vm1710_vm11, %v6159_v57  ;;  %vm1818_vm9 = vcmp.eq.s32.totalorder %v7635_v59, %v6376_v10  ;;  %vm1706_vm11 = vcmp.eq.s32.totalorder %v7644_v60, %v6376_v10 }
 0x272   : >> { %4835 = vmatpush.msk.msrb.mxu3 %vm1878_vm14, %v6159_v57  ;;  %4803 = vmatpush.msk.msrb.mxu1 %vm1766_vm0, %v6159_v57  ;;  %vm1874_vm14 = vcmp.eq.s32.totalorder %v7647_v55, %v6376_v10  ;;  %vm1762_vm0 = vcmp.eq.s32.totalorder %v7662_v61, %v6376_v10 }
 0x273   : >> { %4820 = vmatpush.msk.msrb.mxu2 %vm1821_vm13, %v6159_v57  ;;  %4788 = vmatpush.msk.msrb.mxu0 %vm1709_vm15, %v6159_v57  ;;  %vm1817_vm13 = vcmp.eq.s32.totalorder %v7635_v59, %v6373_v9  ;;  %vm1705_vm15 = vcmp.eq.s32.totalorder %v7644_v60, %v6373_v9 }
 0x274   : >> { %4836 = vmatpush.msk.msrb.mxu3 %vm1877_vm2, %v6159_v57  ;;  %4804 = vmatpush.msk.msrb.mxu1 %vm1765_vm4, %v6159_v57  ;;  %vm1873_vm2 = vcmp.eq.s32.totalorder %v7647_v55, %v6373_v9  ;;  %vm1761_vm4 = vcmp.eq.s32.totalorder %v7662_v61, %v6373_v9 }
 0x275   : >> { %4821 = vmatpush.msk.msrb.mxu2 %vm1820_vm1, %v6159_v57  ;;  %4789 = vmatpush.msk.msrb.mxu0 %vm1708_vm3, %v6159_v57  ;;  %vm1816_vm1 = vcmp.eq.s32.totalorder %v7635_v59, %v6370_v8  ;;  %vm1704_vm3 = vcmp.eq.s32.totalorder %v7644_v60, %v6370_v8 }
 0x276   : >> { %4837 = vmatpush.msk.msrb.mxu3 %vm1876_vm6, %v6159_v57  ;;  %4805 = vmatpush.msk.msrb.mxu1 %vm1764_vm8, %v6159_v57  ;;  %vm1872_vm6 = vcmp.eq.s32.totalorder %v7647_v55, %v6370_v8  ;;  %vm1760_vm8 = vcmp.eq.s32.totalorder %v7662_v61, %v6370_v8 }
 0x277   : >> { %4822 = vmatpush.msk.msrb.mxu2 %vm1819_vm5, %v6159_v57  ;;  %4790 = vmatpush.msk.msrb.mxu0 %vm1707_vm7, %v6159_v57  ;;  %vm1815_vm5 = vcmp.eq.s32.totalorder %v7635_v59, %v6367_v7  ;;  %vm1703_vm7 = vcmp.eq.s32.totalorder %v7644_v60, %v6367_v7 }
 0x278   : >> { %4838 = vmatpush.msk.msrb.mxu3 %vm1875_vm10, %v6159_v57  ;;  %4806 = vmatpush.msk.msrb.mxu1 %vm1763_vm12, %v6159_v57  ;;  %vm1871_vm10 = vcmp.eq.s32.totalorder %v7647_v55, %v6367_v7  ;;  %vm1759_vm12 = vcmp.eq.s32.totalorder %v7662_v61, %v6367_v7 }
 0x279   : >> { %4823 = vmatpush.msk.msrb.mxu2 %vm1818_vm9, %v6159_v57  ;;  %4791 = vmatpush.msk.msrb.mxu0 %vm1706_vm11, %v6159_v57  ;;  %vm1814_vm9 = vcmp.eq.s32.totalorder %v7635_v59, %v6364_v6  ;;  %vm1702_vm11 = vcmp.eq.s32.totalorder %v7644_v60, %v6364_v6 }
 0x27a   : >> { %4839 = vmatpush.msk.msrb.mxu3 %vm1874_vm14, %v6159_v57  ;;  %4807 = vmatpush.msk.msrb.mxu1 %vm1762_vm0, %v6159_v57  ;;  %vm1870_vm14 = vcmp.eq.s32.totalorder %v7647_v55, %v6364_v6  ;;  %vm1758_vm0 = vcmp.eq.s32.totalorder %v7662_v61, %v6364_v6 }
 0x27b   : >> { %4824 = vmatpush.msk.msrb.mxu2 %vm1817_vm13, %v6159_v57  ;;  %4792 = vmatpush.msk.msrb.mxu0 %vm1705_vm15, %v6159_v57  ;;  %vm1813_vm13 = vcmp.eq.s32.totalorder %v7635_v59, %v6361_v5  ;;  %vm1701_vm15 = vcmp.eq.s32.totalorder %v7644_v60, %v6361_v5 }
 0x27c   : >> { %4840 = vmatpush.msk.msrb.mxu3 %vm1873_vm2, %v6159_v57  ;;  %4808 = vmatpush.msk.msrb.mxu1 %vm1761_vm4, %v6159_v57  ;;  %vm1869_vm2 = vcmp.eq.s32.totalorder %v7647_v55, %v6361_v5  ;;  %vm1757_vm4 = vcmp.eq.s32.totalorder %v7662_v61, %v6361_v5 }
 0x27d   : >> { %4825 = vmatpush.msk.msrb.mxu2 %vm1816_vm1, %v6159_v57  ;;  %4793 = vmatpush.msk.msrb.mxu0 %vm1704_vm3, %v6159_v57  ;;  %vm1812_vm1 = vcmp.eq.s32.totalorder %v7635_v59, %v6358_v4  ;;  %vm1700_vm3 = vcmp.eq.s32.totalorder %v7644_v60, %v6358_v4 }
 0x27e   : >> { %4841 = vmatpush.msk.msrb.mxu3 %vm1872_vm6, %v6159_v57  ;;  %4809 = vmatpush.msk.msrb.mxu1 %vm1760_vm8, %v6159_v57  ;;  %vm1868_vm6 = vcmp.eq.s32.totalorder %v7647_v55, %v6358_v4  ;;  %vm1756_vm8 = vcmp.eq.s32.totalorder %v7662_v61, %v6358_v4 }
 0x27f   : >> { %4826 = vmatpush.msk.msrb.mxu2 %vm1815_vm5, %v6159_v57  ;;  %4794 = vmatpush.msk.msrb.mxu0 %vm1703_vm7, %v6159_v57  ;;  %vm1811_vm5 = vcmp.eq.s32.totalorder %v7635_v59, %v6355_v3  ;;  %vm1699_vm7 = vcmp.eq.s32.totalorder %v7644_v60, %v6355_v3 }
 0x280   : >> { %4842 = vmatpush.msk.msrb.mxu3 %vm1871_vm10, %v6159_v57  ;;  %4810 = vmatpush.msk.msrb.mxu1 %vm1759_vm12, %v6159_v57  ;;  %vm1867_vm10 = vcmp.eq.s32.totalorder %v7647_v55, %v6355_v3  ;;  %vm1755_vm12 = vcmp.eq.s32.totalorder %v7662_v61, %v6355_v3 }
 0x281   : >> { %4827 = vmatpush.msk.msrb.mxu2 %vm1814_vm9, %v6159_v57  ;;  %4795 = vmatpush.msk.msrb.mxu0 %vm1702_vm11, %v6159_v57  ;;  %vm1810_vm9 = vcmp.eq.s32.totalorder %v7635_v59, %v6352_v2  ;;  %vm1698_vm11 = vcmp.eq.s32.totalorder %v7644_v60, %v6352_v2 }
 0x282   : >> { %4843 = vmatpush.msk.msrb.mxu3 %vm1870_vm14, %v6159_v57  ;;  %1633 = vmatmul.f32.vlgmr.msra.gmra.mxu2 %v1468_v63  ;;  %vm1866_vm14 = vcmp.eq.s32.totalorder %v7647_v55, %v6352_v2 }
 0x283   : >> { %4828 = vmatpush.msk.msrb.mxu2 %vm1813_vm13, %v6159_v57  ;;  %4796 = vmatpush.msk.msrb.mxu0 %vm1701_vm15, %v6159_v57  ;;  %vm1809_vm13 = vcmp.eq.s32.totalorder %v7635_v59, %v6343_v1  ;;  %vm1697_vm15 = vcmp.eq.s32.totalorder %v7644_v60, %v6343_v1 }
 0x284   : >> { %4811 = vmatpush.msk.msrb.mxu1 %vm1758_vm0, %v6159_v57  ;;  %4844 = vmatpush.msk.msrb.mxu3 %vm1869_vm2, %v6159_v57  ;;  %vm1754_vm0 = vcmp.eq.s32.totalorder %v7662_v61, %v6352_v2  ;;  %vm1753_vm2 = vcmp.eq.s32.totalorder %v7662_v61, %v6343_v1 }
 0x285   : >> { %4829 = vmatpush.msk.msrb.mxu2 %vm1812_vm1, %v6159_v57  ;;  %1521 = vmatmul.f32.vlgmr.msra.gmra.mxu0 %v1468_v63  ;;  %vm1865_vm1 = vcmp.eq.s32.totalorder %v7647_v55, %v6343_v1 }
 0x286   : >> { %1689 = vmatmul.f32.vlgmr.msra.gmra.mxu3 %v1468_v63  ;;  %4797 = vmatpush.msk.msrb.mxu0 %vm1700_vm3, %v6159_v57 }
 0x287   : >> { %4812 = vmatpush.msk.msrb.mxu1 %vm1757_vm4, %v6159_v57  ;;  %4830 = vmatpush.msk.msrb.mxu2 %vm1811_vm5, %v6159_v57 }
 0x288   : >> { %4845 = vmatpush.msk.msrb.mxu3 %vm1868_vm6, %v6159_v57  ;;  %1577 = vmatmul.f32.vlgmr.msra.gmra.mxu1 %v1468_v63 }
 0x289   : >> { %4798 = vmatpush.msk.msrb.mxu0 %vm1699_vm7, %v6159_v57  ;;  %4813 = vmatpush.msk.msrb.mxu1 %vm1756_vm8, %v6159_v57 }
 0x28a   : >> { %4831 = vmatpush.msk.msrb.mxu2 %vm1810_vm9, %v6159_v57  ;;  %4846 = vmatpush.msk.msrb.mxu3 %vm1867_vm10, %v6159_v57 }
 0x28b   : >> { %4799 = vmatpush.msk.msrb.mxu0 %vm1698_vm11, %v6159_v57  ;;  %4814 = vmatpush.msk.msrb.mxu1 %vm1755_vm12, %v6159_v57 }
 0x28c   : >> { %4832 = vmatpush.msk.msrb.mxu2 %vm1809_vm13, %v6159_v57  ;;  %4847 = vmatpush.msk.msrb.mxu3 %vm1866_vm14, %v6159_v57 }
 0x28d   : >> { %1857 = vmatmul.f32.vlgmr.msrb.gmra.mxu2 %v1468_v63  ;;  %4800 = vmatpush.msk.msrb.mxu0 %vm1697_vm15, %v6159_v57 }
 0x28e   : >> { %4815 = vmatpush.msk.msrb.mxu1 %vm1754_vm0, %v6159_v57  ;;  %4848 = vmatpush.msk.msrb.mxu3 %vm1865_vm1, %v6159_v57 }
 0x28f   : >> { %1745 = vmatmul.f32.vlgmr.msrb.gmra.mxu0 %v1468_v63  ;;  %1913 = vmatmul.f32.vlgmr.msrb.gmra.mxu3 %v1468_v63 }
 0x290   : >> { %4816 = vmatpush.msk.msrb.mxu1 %vm1753_vm2, %v6159_v57 }
 0x291   : >> { %1801 = vmatmul.f32.vlgmr.msrb.gmra.mxu1 %v1468_v63 }
 0x302   : >> { %v1522_v0 = vpop.f32.mrf.mxu0 }
 0x303   : >> { %v1526_v19 = vmul.f32 %v1525_v40, %v1522_v0 }
 0x305   : >> { %v1527_v56 = vadd.f32 %v6080_v26, %v1526_v19  ;;  %v1578_v21 = vpop.f32.mrf.mxu1  ;;  %v1634_v52 = vpop.f32.mrf.mxu2 }
 0x306   : >> { %v1582_v58 = vmul.f32 %v1581_v17, %v1578_v21  ;;  %v1638_v23 = vmul.f32 %v1637_v20, %v1634_v52 }
 0x308   : >> { %v1583_v24 = vadd.f32 %v1582_v58, %v1527_v56 }
 0x309   : >> { %v1690_v25 = vpop.f32.mrf.mxu3 }
 0x30a   : >> { %v1639_v38 = vadd.f32 %v1638_v23, %v1583_v24  ;;  %v1694_v33 = vmul.f32 %v1693_v22, %v1690_v25 }
 0x30c   : >> { %v1695_v44 = vadd.f32 %v1694_v33, %v1639_v38  ;;  %v1746_v35 = vpop.f32.mrf.mxu0 }
 0x30d   : >> { %v1750_v36 = vmul.f32 %v1749_v37, %v1746_v35 }
 0x30e   : >> { %v1802_v41 = vpop.f32.mrf.mxu1 }
 0x30f   : >> { %v1751_v34 = vadd.f32 %v1750_v36, %v1695_v44  ;;  %v1806_v49 = vmul.f32 %v1805_v32, %v1802_v41 }
 0x310   : >> { %v1858_v43 = vpop.f32.mrf.mxu2 }
 0x311   : >> { %v1807_v18 = vadd.f32 %v1806_v49, %v1751_v34  ;;  %v1862_v46 = vmul.f32 %v1861_v39, %v1858_v43 }
 0x312   : >> { %v1914_v26 = vpop.f32.mrf.mxu3 }
 0x313   : >> { %v1863_v42 = vadd.f32 %v1862_v46, %v1807_v18  ;;  %v1918_v47 = vmul.f32 %v1917_v62, %v1914_v26  ;;  %1464 = sbr.rel (!%p1461_p8) target bundleno = 582 (0x246), region = 181 }
 0x315   : >> { %v1919_v28 = vadd.f32 %v1918_v47, %v1863_v42  }
 0x317   : >> { %v10199_v26 = vmov %v1919_v28  ;;  %v10200_v46 = vmov (%p1461_p8), %v1919_v28 }
 0x318 PF: > { %v7888_v48 = vld [vmem:[%s6326_s10 + $0x28] sm:$0xff]  ;;  %s1921_s8 = sld [smem:[#allocation3 + %s6982_s0]]   ;;  %v10201_v29 = vmov %v6088_v46  ;;  %v6088_v46 = vphi %v7444_v46, %v10200_v46  }
 0x319   : > { %s7892_s30 = sld [smem:[#allocation3 + %s6985_s13]] }
 0x31f   : > { %p4361_p5 = scmp.ge.s32.totalorder %s1921_s8, %s7892_s30 }
 0x321   : > { %4363 = sbr.rel (%p4361_p5) target bundleno = 1016 (0x3f8), region = 186 }
 0x326 LB: >> { %s4851_s29 = sshll.u32 %s6096_s8, 7  ;;  %v6160_v55 = vmov 1.0   ;;  %s4850_s5 = sshll.u32 %s6096_s8, 3  ;;  %v1989_v19 = vperm.slane %v6522_v27, 0  ;;  %v2045_v56 = vperm.slane %v6522_v27, 1  ;;  %v2101_v58 = vperm.slane %v6522_v27, 2  ;;  %s6096_s8 = sphi %s1921_s8, %s1926_s8   ;;  %v6092_v46 = vphi %v6088_v46, %v10202_v46  }
 0x327   : >> { %v1934_v50 = vstv %s4851_s29  ;;  %s1931_s18 = scalar_lea.vmem [#allocation9], %s4850_s5  ;;  %v2157_v25 = vperm.slane %v6522_v27, 3  ;;  %v2213_v32 = vperm.slane %v6522_v27, 4  ;;  %v2269_v36 = vperm.slane %v6522_v27, 5  ;;  %s1926_s8 = sadd.s32 1, %s6096_s8  }
 0x328   : >> { %v7909_v45 = vsub.s32 %v7888_v48, %v1934_v50  ;;  %v1932_v17 = vld [vmem:[%s1931_s18] sm:$0xff]  ;;  %v2325_v49 = vperm.slane %v6522_v27, 6  ;;  %p1925_p10 = scmp.ge.s32.totalorder %s1926_s8, %s7892_s30 }
 0x32a   : >> { %v7912_v54 = vperm.slane %v7909_v45, 2  ;;  %v7915_v57 = vperm.slane %v7909_v45, 0  ;;  %v7918_v59 = vperm.slane %v7909_v45, 3  ;;  %v7921_v60 = vperm.slane %v7909_v45, 1 }
 0x32b   : >> { %v8086_v61 = vperm.slane %v7909_v45, 6  ;;  %v8095_v63 = vperm.slane %v7909_v45, 4  ;;  %v8098_v40 = vperm.slane %v7909_v45, 7  ;;  %v8113_v0 = vperm.slane %v7909_v45, 5 }
 0x32c   : >> { %vm2064_vm3 = vcmp.eq.s32.totalorder %v7912_v54, %v6394_v16  ;;  %vm1952_vm4 = vcmp.eq.s32.totalorder %v7915_v57, %v6394_v16  ;;  %vm2063_vm5 = vcmp.eq.s32.totalorder %v7912_v54, %v6391_v15  ;;  %vm2120_vm6 = vcmp.eq.s32.totalorder %v7918_v59, %v6394_v16 }
 0x32d   : >> { %4884 = vmatpush.msk.msra.mxu2 %vm2064_vm3, %v6160_v55  ;;  %4852 = vmatpush.msk.msra.mxu0 %vm1952_vm4, %v6160_v55  ;;  %vm1951_vm7 = vcmp.eq.s32.totalorder %v7915_v57, %v6391_v15  ;;  %vm2008_vm8 = vcmp.eq.s32.totalorder %v7921_v60, %v6394_v16  ;;  %vm2062_vm9 = vcmp.eq.s32.totalorder %v7912_v54, %v6388_v14 }
 0x32e   : >> { %4900 = vmatpush.msk.msra.mxu3 %vm2120_vm6, %v6160_v55  ;;  %4868 = vmatpush.msk.msra.mxu1 %vm2008_vm8, %v6160_v55  ;;  %vm2119_vm10 = vcmp.eq.s32.totalorder %v7918_v59, %v6391_v15  ;;  %vm1950_vm11 = vcmp.eq.s32.totalorder %v7915_v57, %v6388_v14  ;;  %vm2007_vm12 = vcmp.eq.s32.totalorder %v7921_v60, %v6391_v15 }
 0x32f   : >> { %4885 = vmatpush.msk.msra.mxu2 %vm2063_vm5, %v6160_v55  ;;  %4853 = vmatpush.msk.msra.mxu0 %vm1951_vm7, %v6160_v55  ;;  %vm2118_vm13 = vcmp.eq.s32.totalorder %v7918_v59, %v6388_v14  ;;  %vm2061_vm14 = vcmp.eq.s32.totalorder %v7912_v54, %v6385_v13  ;;  %vm1949_vm15 = vcmp.eq.s32.totalorder %v7915_v57, %v6385_v13 }
 0x330   : >> { %4901 = vmatpush.msk.msra.mxu3 %vm2119_vm10, %v6160_v55  ;;  %4869 = vmatpush.msk.msra.mxu1 %vm2007_vm12, %v6160_v55  ;;  %vm2006_vm0 = vcmp.eq.s32.totalorder %v7921_v60, %v6388_v14  ;;  %vm2117_vm1 = vcmp.eq.s32.totalorder %v7918_v59, %v6385_v13  ;;  %vm2005_vm2 = vcmp.eq.s32.totalorder %v7921_v60, %v6385_v13 }
 0x331   : >> { %4886 = vmatpush.msk.msra.mxu2 %vm2062_vm9, %v6160_v55  ;;  %4854 = vmatpush.msk.msra.mxu0 %vm1950_vm11, %v6160_v55  ;;  %vm2060_vm3 = vcmp.eq.s32.totalorder %v7912_v54, %v6382_v12  ;;  %vm1948_vm4 = vcmp.eq.s32.totalorder %v7915_v57, %v6382_v12  ;;  %vm2116_vm5 = vcmp.eq.s32.totalorder %v7918_v59, %v6382_v12 }
 0x332   : >> { %4902 = vmatpush.msk.msra.mxu3 %vm2118_vm13, %v6160_v55  ;;  %4870 = vmatpush.msk.msra.mxu1 %vm2006_vm0, %v6160_v55  ;;  %vm2004_vm6 = vcmp.eq.s32.totalorder %v7921_v60, %v6382_v12  ;;  %vm2059_vm7 = vcmp.eq.s32.totalorder %v7912_v54, %v6379_v11  ;;  %vm1947_vm8 = vcmp.eq.s32.totalorder %v7915_v57, %v6379_v11 }
 0x333   : >> { %4887 = vmatpush.msk.msra.mxu2 %vm2061_vm14, %v6160_v55  ;;  %4855 = vmatpush.msk.msra.mxu0 %vm1949_vm15, %v6160_v55  ;;  %vm2115_vm9 = vcmp.eq.s32.totalorder %v7918_v59, %v6379_v11  ;;  %vm2003_vm10 = vcmp.eq.s32.totalorder %v7921_v60, %v6379_v11  ;;  %vm2058_vm11 = vcmp.eq.s32.totalorder %v7912_v54, %v6376_v10 }
 0x334   : >> { %4903 = vmatpush.msk.msra.mxu3 %vm2117_vm1, %v6160_v55  ;;  %4871 = vmatpush.msk.msra.mxu1 %vm2005_vm2, %v6160_v55  ;;  %vm1946_vm12 = vcmp.eq.s32.totalorder %v7915_v57, %v6376_v10  ;;  %vm2114_vm13 = vcmp.eq.s32.totalorder %v7918_v59, %v6376_v10  ;;  %vm2002_vm14 = vcmp.eq.s32.totalorder %v7921_v60, %v6376_v10 }
 0x335   : >> { %4888 = vmatpush.msk.msra.mxu2 %vm2060_vm3, %v6160_v55  ;;  %4856 = vmatpush.msk.msra.mxu0 %vm1948_vm4, %v6160_v55  ;;  %vm2057_vm15 = vcmp.eq.s32.totalorder %v7912_v54, %v6373_v9  ;;  %vm1945_vm0 = vcmp.eq.s32.totalorder %v7915_v57, %v6373_v9  ;;  %vm2113_vm1 = vcmp.eq.s32.totalorder %v7918_v59, %v6373_v9 }
 0x336   : >> { %4904 = vmatpush.msk.msra.mxu3 %vm2116_vm5, %v6160_v55  ;;  %4872 = vmatpush.msk.msra.mxu1 %vm2004_vm6, %v6160_v55  ;;  %vm2001_vm2 = vcmp.eq.s32.totalorder %v7921_v60, %v6373_v9  ;;  %vm2056_vm3 = vcmp.eq.s32.totalorder %v7912_v54, %v6370_v8  ;;  %vm1944_vm4 = vcmp.eq.s32.totalorder %v7915_v57, %v6370_v8 }
 0x337   : >> { %4889 = vmatpush.msk.msra.mxu2 %vm2059_vm7, %v6160_v55  ;;  %4857 = vmatpush.msk.msra.mxu0 %vm1947_vm8, %v6160_v55  ;;  %vm2112_vm5 = vcmp.eq.s32.totalorder %v7918_v59, %v6370_v8  ;;  %vm2000_vm6 = vcmp.eq.s32.totalorder %v7921_v60, %v6370_v8  ;;  %vm2055_vm7 = vcmp.eq.s32.totalorder %v7912_v54, %v6367_v7 }
 0x338   : >> { %4905 = vmatpush.msk.msra.mxu3 %vm2115_vm9, %v6160_v55  ;;  %4873 = vmatpush.msk.msra.mxu1 %vm2003_vm10, %v6160_v55  ;;  %vm1943_vm8 = vcmp.eq.s32.totalorder %v7915_v57, %v6367_v7  ;;  %vm2111_vm9 = vcmp.eq.s32.totalorder %v7918_v59, %v6367_v7  ;;  %vm1999_vm10 = vcmp.eq.s32.totalorder %v7921_v60, %v6367_v7 }
 0x339   : >> { %4890 = vmatpush.msk.msra.mxu2 %vm2058_vm11, %v6160_v55  ;;  %4858 = vmatpush.msk.msra.mxu0 %vm1946_vm12, %v6160_v55  ;;  %vm2054_vm11 = vcmp.eq.s32.totalorder %v7912_v54, %v6364_v6  ;;  %vm1942_vm12 = vcmp.eq.s32.totalorder %v7915_v57, %v6364_v6 }
 0x33a   : >> { %4906 = vmatpush.msk.msra.mxu3 %vm2114_vm13, %v6160_v55  ;;  %4874 = vmatpush.msk.msra.mxu1 %vm2002_vm14, %v6160_v55  ;;  %vm2110_vm13 = vcmp.eq.s32.totalorder %v7918_v59, %v6364_v6  ;;  %vm1998_vm14 = vcmp.eq.s32.totalorder %v7921_v60, %v6364_v6 }
 0x33b   : >> { %4891 = vmatpush.msk.msra.mxu2 %vm2057_vm15, %v6160_v55  ;;  %4859 = vmatpush.msk.msra.mxu0 %vm1945_vm0, %v6160_v55  ;;  %vm2053_vm15 = vcmp.eq.s32.totalorder %v7912_v54, %v6361_v5  ;;  %vm1941_vm0 = vcmp.eq.s32.totalorder %v7915_v57, %v6361_v5 }
 0x33c   : >> { %4907 = vmatpush.msk.msra.mxu3 %vm2113_vm1, %v6160_v55  ;;  %4875 = vmatpush.msk.msra.mxu1 %vm2001_vm2, %v6160_v55  ;;  %vm2109_vm1 = vcmp.eq.s32.totalorder %v7918_v59, %v6361_v5  ;;  %vm1997_vm2 = vcmp.eq.s32.totalorder %v7921_v60, %v6361_v5 }
 0x33d   : >> { %4892 = vmatpush.msk.msra.mxu2 %vm2056_vm3, %v6160_v55  ;;  %4860 = vmatpush.msk.msra.mxu0 %vm1944_vm4, %v6160_v55  ;;  %vm2052_vm3 = vcmp.eq.s32.totalorder %v7912_v54, %v6358_v4  ;;  %vm1940_vm4 = vcmp.eq.s32.totalorder %v7915_v57, %v6358_v4 }
 0x33e   : >> { %4908 = vmatpush.msk.msra.mxu3 %vm2112_vm5, %v6160_v55  ;;  %4876 = vmatpush.msk.msra.mxu1 %vm2000_vm6, %v6160_v55  ;;  %vm2108_vm5 = vcmp.eq.s32.totalorder %v7918_v59, %v6358_v4  ;;  %vm1996_vm6 = vcmp.eq.s32.totalorder %v7921_v60, %v6358_v4 }
 0x33f   : >> { %4893 = vmatpush.msk.msra.mxu2 %vm2055_vm7, %v6160_v55  ;;  %4861 = vmatpush.msk.msra.mxu0 %vm1943_vm8, %v6160_v55  ;;  %vm2051_vm7 = vcmp.eq.s32.totalorder %v7912_v54, %v6355_v3  ;;  %vm1939_vm8 = vcmp.eq.s32.totalorder %v7915_v57, %v6355_v3 }
 0x340   : >> { %4909 = vmatpush.msk.msra.mxu3 %vm2111_vm9, %v6160_v55  ;;  %4877 = vmatpush.msk.msra.mxu1 %vm1999_vm10, %v6160_v55  ;;  %vm2107_vm9 = vcmp.eq.s32.totalorder %v7918_v59, %v6355_v3  ;;  %vm1995_vm10 = vcmp.eq.s32.totalorder %v7921_v60, %v6355_v3 }
 0x341   : >> { %4894 = vmatpush.msk.msra.mxu2 %vm2054_vm11, %v6160_v55  ;;  %4862 = vmatpush.msk.msra.mxu0 %vm1942_vm12, %v6160_v55  ;;  %vm2050_vm11 = vcmp.eq.s32.totalorder %v7912_v54, %v6352_v2  ;;  %vm1938_vm12 = vcmp.eq.s32.totalorder %v7915_v57, %v6352_v2 }
 0x342   : >> { %4910 = vmatpush.msk.msra.mxu3 %vm2110_vm13, %v6160_v55  ;;  %4878 = vmatpush.msk.msra.mxu1 %vm1998_vm14, %v6160_v55  ;;  %vm2106_vm13 = vcmp.eq.s32.totalorder %v7918_v59, %v6352_v2  ;;  %vm1994_vm14 = vcmp.eq.s32.totalorder %v7921_v60, %v6352_v2 }
 0x343   : >> { %4895 = vmatpush.msk.msra.mxu2 %vm2053_vm15, %v6160_v55  ;;  %4863 = vmatpush.msk.msra.mxu0 %vm1941_vm0, %v6160_v55  ;;  %vm2049_vm15 = vcmp.eq.s32.totalorder %v7912_v54, %v6343_v1  ;;  %vm1937_vm0 = vcmp.eq.s32.totalorder %v7915_v57, %v6343_v1 }
 0x344   : >> { %4911 = vmatpush.msk.msra.mxu3 %vm2109_vm1, %v6160_v55  ;;  %4879 = vmatpush.msk.msra.mxu1 %vm1997_vm2, %v6160_v55  ;;  %vm2288_vm1 = vcmp.eq.s32.totalorder %v8086_v61, %v6394_v16  ;;  %vm2105_vm2 = vcmp.eq.s32.totalorder %v7918_v59, %v6343_v1 }
 0x345   : >> { %4896 = vmatpush.msk.msra.mxu2 %vm2052_vm3, %v6160_v55  ;;  %4864 = vmatpush.msk.msra.mxu0 %vm1940_vm4, %v6160_v55  ;;  %vm2176_vm3 = vcmp.eq.s32.totalorder %v8095_v63, %v6394_v16  ;;  %vm2344_vm4 = vcmp.eq.s32.totalorder %v8098_v40, %v6394_v16 }
 0x346   : >> { %4912 = vmatpush.msk.msra.mxu3 %vm2108_vm5, %v6160_v55  ;;  %4880 = vmatpush.msk.msra.mxu1 %vm1996_vm6, %v6160_v55  ;;  %vm2287_vm5 = vcmp.eq.s32.totalorder %v8086_v61, %v6391_v15  ;;  %vm1993_vm6 = vcmp.eq.s32.totalorder %v7921_v60, %v6343_v1 }
 0x347   : >> { %4897 = vmatpush.msk.msra.mxu2 %vm2051_vm7, %v6160_v55  ;;  %4865 = vmatpush.msk.msra.mxu0 %vm1939_vm8, %v6160_v55  ;;  %vm2175_vm7 = vcmp.eq.s32.totalorder %v8095_v63, %v6391_v15  ;;  %vm2232_vm8 = vcmp.eq.s32.totalorder %v8113_v0, %v6394_v16 }
 0x348   : >> { %4913 = vmatpush.msk.msra.mxu3 %vm2107_vm9, %v6160_v55  ;;  %4881 = vmatpush.msk.msra.mxu1 %vm1995_vm10, %v6160_v55  ;;  %vm2286_vm9 = vcmp.eq.s32.totalorder %v8086_v61, %v6388_v14  ;;  %vm2343_vm10 = vcmp.eq.s32.totalorder %v8098_v40, %v6391_v15 }
 0x349   : >> { %4898 = vmatpush.msk.msra.mxu2 %vm2050_vm11, %v6160_v55  ;;  %4866 = vmatpush.msk.msra.mxu0 %vm1938_vm12, %v6160_v55  ;;  %vm2174_vm11 = vcmp.eq.s32.totalorder %v8095_v63, %v6388_v14  ;;  %vm2231_vm12 = vcmp.eq.s32.totalorder %v8113_v0, %v6391_v15 }
 0x34a   : >> { %4914 = vmatpush.msk.msra.mxu3 %vm2106_vm13, %v6160_v55  ;;  %4882 = vmatpush.msk.msra.mxu1 %vm1994_vm14, %v6160_v55  ;;  %vm2285_vm13 = vcmp.eq.s32.totalorder %v8086_v61, %v6385_v13  ;;  %vm2342_vm14 = vcmp.eq.s32.totalorder %v8098_v40, %v6388_v14 }
 0x34b   : >> { %4899 = vmatpush.msk.msra.mxu2 %vm2049_vm15, %v6160_v55  ;;  %4867 = vmatpush.msk.msra.mxu0 %vm1937_vm0, %v6160_v55  ;;  %vm2173_vm15 = vcmp.eq.s32.totalorder %v8095_v63, %v6385_v13  ;;  %vm2230_vm0 = vcmp.eq.s32.totalorder %v8113_v0, %v6388_v14 }
 0x34c   : >> { %4915 = vmatpush.msk.msra.mxu3 %vm2105_vm2, %v6160_v55  ;;  %4883 = vmatpush.msk.msra.mxu1 %vm1993_vm6, %v6160_v55  ;;  %vm2341_vm2 = vcmp.eq.s32.totalorder %v8098_v40, %v6385_v13  ;;  %vm2340_vm6 = vcmp.eq.s32.totalorder %v8098_v40, %v6382_v12 }
 0x34d   : >> { %4948 = vmatpush.msk.msrb.mxu2 %vm2288_vm1, %v6160_v55  ;;  %4916 = vmatpush.msk.msrb.mxu0 %vm2176_vm3, %v6160_v55  ;;  %vm2284_vm1 = vcmp.eq.s32.totalorder %v8086_v61, %v6382_v12  ;;  %vm2172_vm3 = vcmp.eq.s32.totalorder %v8095_v63, %v6382_v12 }
 0x34e   : >> { %4964 = vmatpush.msk.msrb.mxu3 %vm2344_vm4, %v6160_v55  ;;  %4932 = vmatpush.msk.msrb.mxu1 %vm2232_vm8, %v6160_v55  ;;  %vm2229_vm4 = vcmp.eq.s32.totalorder %v8113_v0, %v6385_v13  ;;  %vm2228_vm8 = vcmp.eq.s32.totalorder %v8113_v0, %v6382_v12 }
 0x34f   : >> { %4949 = vmatpush.msk.msrb.mxu2 %vm2287_vm5, %v6160_v55  ;;  %4917 = vmatpush.msk.msrb.mxu0 %vm2175_vm7, %v6160_v55  ;;  %vm2283_vm5 = vcmp.eq.s32.totalorder %v8086_v61, %v6379_v11  ;;  %vm2171_vm7 = vcmp.eq.s32.totalorder %v8095_v63, %v6379_v11 }
 0x350   : >> { %4965 = vmatpush.msk.msrb.mxu3 %vm2343_vm10, %v6160_v55  ;;  %4933 = vmatpush.msk.msrb.mxu1 %vm2231_vm12, %v6160_v55  ;;  %vm2339_vm10 = vcmp.eq.s32.totalorder %v8098_v40, %v6379_v11  ;;  %vm2227_vm12 = vcmp.eq.s32.totalorder %v8113_v0, %v6379_v11 }
 0x351   : >> { %4950 = vmatpush.msk.msrb.mxu2 %vm2286_vm9, %v6160_v55  ;;  %4918 = vmatpush.msk.msrb.mxu0 %vm2174_vm11, %v6160_v55  ;;  %vm2282_vm9 = vcmp.eq.s32.totalorder %v8086_v61, %v6376_v10  ;;  %vm2170_vm11 = vcmp.eq.s32.totalorder %v8095_v63, %v6376_v10 }
 0x352   : >> { %4966 = vmatpush.msk.msrb.mxu3 %vm2342_vm14, %v6160_v55  ;;  %4934 = vmatpush.msk.msrb.mxu1 %vm2230_vm0, %v6160_v55  ;;  %vm2338_vm14 = vcmp.eq.s32.totalorder %v8098_v40, %v6376_v10  ;;  %vm2226_vm0 = vcmp.eq.s32.totalorder %v8113_v0, %v6376_v10 }
 0x353   : >> { %4951 = vmatpush.msk.msrb.mxu2 %vm2285_vm13, %v6160_v55  ;;  %4919 = vmatpush.msk.msrb.mxu0 %vm2173_vm15, %v6160_v55  ;;  %vm2281_vm13 = vcmp.eq.s32.totalorder %v8086_v61, %v6373_v9  ;;  %vm2169_vm15 = vcmp.eq.s32.totalorder %v8095_v63, %v6373_v9 }
 0x354   : >> { %4967 = vmatpush.msk.msrb.mxu3 %vm2341_vm2, %v6160_v55  ;;  %4935 = vmatpush.msk.msrb.mxu1 %vm2229_vm4, %v6160_v55  ;;  %vm2337_vm2 = vcmp.eq.s32.totalorder %v8098_v40, %v6373_v9  ;;  %vm2225_vm4 = vcmp.eq.s32.totalorder %v8113_v0, %v6373_v9 }
 0x355   : >> { %4952 = vmatpush.msk.msrb.mxu2 %vm2284_vm1, %v6160_v55  ;;  %4920 = vmatpush.msk.msrb.mxu0 %vm2172_vm3, %v6160_v55  ;;  %vm2280_vm1 = vcmp.eq.s32.totalorder %v8086_v61, %v6370_v8  ;;  %vm2168_vm3 = vcmp.eq.s32.totalorder %v8095_v63, %v6370_v8 }
 0x356   : >> { %4968 = vmatpush.msk.msrb.mxu3 %vm2340_vm6, %v6160_v55  ;;  %4936 = vmatpush.msk.msrb.mxu1 %vm2228_vm8, %v6160_v55  ;;  %vm2336_vm6 = vcmp.eq.s32.totalorder %v8098_v40, %v6370_v8  ;;  %vm2224_vm8 = vcmp.eq.s32.totalorder %v8113_v0, %v6370_v8 }
 0x357   : >> { %4953 = vmatpush.msk.msrb.mxu2 %vm2283_vm5, %v6160_v55  ;;  %4921 = vmatpush.msk.msrb.mxu0 %vm2171_vm7, %v6160_v55  ;;  %vm2279_vm5 = vcmp.eq.s32.totalorder %v8086_v61, %v6367_v7  ;;  %vm2167_vm7 = vcmp.eq.s32.totalorder %v8095_v63, %v6367_v7 }
 0x358   : >> { %4969 = vmatpush.msk.msrb.mxu3 %vm2339_vm10, %v6160_v55  ;;  %4937 = vmatpush.msk.msrb.mxu1 %vm2227_vm12, %v6160_v55  ;;  %vm2335_vm10 = vcmp.eq.s32.totalorder %v8098_v40, %v6367_v7  ;;  %vm2223_vm12 = vcmp.eq.s32.totalorder %v8113_v0, %v6367_v7 }
 0x359   : >> { %4954 = vmatpush.msk.msrb.mxu2 %vm2282_vm9, %v6160_v55  ;;  %4922 = vmatpush.msk.msrb.mxu0 %vm2170_vm11, %v6160_v55  ;;  %vm2278_vm9 = vcmp.eq.s32.totalorder %v8086_v61, %v6364_v6  ;;  %vm2166_vm11 = vcmp.eq.s32.totalorder %v8095_v63, %v6364_v6 }
 0x35a   : >> { %4970 = vmatpush.msk.msrb.mxu3 %vm2338_vm14, %v6160_v55  ;;  %4938 = vmatpush.msk.msrb.mxu1 %vm2226_vm0, %v6160_v55  ;;  %vm2334_vm14 = vcmp.eq.s32.totalorder %v8098_v40, %v6364_v6  ;;  %vm2222_vm0 = vcmp.eq.s32.totalorder %v8113_v0, %v6364_v6 }
 0x35b   : >> { %4955 = vmatpush.msk.msrb.mxu2 %vm2281_vm13, %v6160_v55  ;;  %4923 = vmatpush.msk.msrb.mxu0 %vm2169_vm15, %v6160_v55  ;;  %vm2277_vm13 = vcmp.eq.s32.totalorder %v8086_v61, %v6361_v5  ;;  %vm2165_vm15 = vcmp.eq.s32.totalorder %v8095_v63, %v6361_v5 }
 0x35c   : >> { %4971 = vmatpush.msk.msrb.mxu3 %vm2337_vm2, %v6160_v55  ;;  %4939 = vmatpush.msk.msrb.mxu1 %vm2225_vm4, %v6160_v55  ;;  %vm2333_vm2 = vcmp.eq.s32.totalorder %v8098_v40, %v6361_v5  ;;  %vm2221_vm4 = vcmp.eq.s32.totalorder %v8113_v0, %v6361_v5 }
 0x35d   : >> { %4956 = vmatpush.msk.msrb.mxu2 %vm2280_vm1, %v6160_v55  ;;  %4924 = vmatpush.msk.msrb.mxu0 %vm2168_vm3, %v6160_v55  ;;  %vm2276_vm1 = vcmp.eq.s32.totalorder %v8086_v61, %v6358_v4  ;;  %vm2164_vm3 = vcmp.eq.s32.totalorder %v8095_v63, %v6358_v4 }
 0x35e   : >> { %4972 = vmatpush.msk.msrb.mxu3 %vm2336_vm6, %v6160_v55  ;;  %4940 = vmatpush.msk.msrb.mxu1 %vm2224_vm8, %v6160_v55  ;;  %vm2332_vm6 = vcmp.eq.s32.totalorder %v8098_v40, %v6358_v4  ;;  %vm2220_vm8 = vcmp.eq.s32.totalorder %v8113_v0, %v6358_v4 }
 0x35f   : >> { %4957 = vmatpush.msk.msrb.mxu2 %vm2279_vm5, %v6160_v55  ;;  %4925 = vmatpush.msk.msrb.mxu0 %vm2167_vm7, %v6160_v55  ;;  %vm2275_vm5 = vcmp.eq.s32.totalorder %v8086_v61, %v6355_v3  ;;  %vm2163_vm7 = vcmp.eq.s32.totalorder %v8095_v63, %v6355_v3 }
 0x360   : >> { %4973 = vmatpush.msk.msrb.mxu3 %vm2335_vm10, %v6160_v55  ;;  %4941 = vmatpush.msk.msrb.mxu1 %vm2223_vm12, %v6160_v55  ;;  %vm2331_vm10 = vcmp.eq.s32.totalorder %v8098_v40, %v6355_v3  ;;  %vm2219_vm12 = vcmp.eq.s32.totalorder %v8113_v0, %v6355_v3 }
 0x361   : >> { %4958 = vmatpush.msk.msrb.mxu2 %vm2278_vm9, %v6160_v55  ;;  %4926 = vmatpush.msk.msrb.mxu0 %vm2166_vm11, %v6160_v55  ;;  %vm2274_vm9 = vcmp.eq.s32.totalorder %v8086_v61, %v6352_v2  ;;  %vm2162_vm11 = vcmp.eq.s32.totalorder %v8095_v63, %v6352_v2 }
 0x362   : >> { %4974 = vmatpush.msk.msrb.mxu3 %vm2334_vm14, %v6160_v55  ;;  %2097 = vmatmul.f32.vlgmr.msra.gmra.mxu2 %v1932_v17  ;;  %vm2330_vm14 = vcmp.eq.s32.totalorder %v8098_v40, %v6352_v2 }
 0x363   : >> { %4959 = vmatpush.msk.msrb.mxu2 %vm2277_vm13, %v6160_v55  ;;  %4927 = vmatpush.msk.msrb.mxu0 %vm2165_vm15, %v6160_v55  ;;  %vm2273_vm13 = vcmp.eq.s32.totalorder %v8086_v61, %v6343_v1  ;;  %vm2161_vm15 = vcmp.eq.s32.totalorder %v8095_v63, %v6343_v1 }
 0x364   : >> { %4942 = vmatpush.msk.msrb.mxu1 %vm2222_vm0, %v6160_v55  ;;  %4975 = vmatpush.msk.msrb.mxu3 %vm2333_vm2, %v6160_v55  ;;  %vm2218_vm0 = vcmp.eq.s32.totalorder %v8113_v0, %v6352_v2  ;;  %vm2217_vm2 = vcmp.eq.s32.totalorder %v8113_v0, %v6343_v1 }
 0x365   : >> { %4960 = vmatpush.msk.msrb.mxu2 %vm2276_vm1, %v6160_v55  ;;  %1985 = vmatmul.f32.vlgmr.msra.gmra.mxu0 %v1932_v17  ;;  %vm2329_vm1 = vcmp.eq.s32.totalorder %v8098_v40, %v6343_v1 }
 0x366   : >> { %2153 = vmatmul.f32.vlgmr.msra.gmra.mxu3 %v1932_v17  ;;  %4928 = vmatpush.msk.msrb.mxu0 %vm2164_vm3, %v6160_v55 }
 0x367   : >> { %4943 = vmatpush.msk.msrb.mxu1 %vm2221_vm4, %v6160_v55  ;;  %4961 = vmatpush.msk.msrb.mxu2 %vm2275_vm5, %v6160_v55 }
 0x368   : >> { %4976 = vmatpush.msk.msrb.mxu3 %vm2332_vm6, %v6160_v55  ;;  %2041 = vmatmul.f32.vlgmr.msra.gmra.mxu1 %v1932_v17 }
 0x369   : >> { %4929 = vmatpush.msk.msrb.mxu0 %vm2163_vm7, %v6160_v55  ;;  %4944 = vmatpush.msk.msrb.mxu1 %vm2220_vm8, %v6160_v55 }
 0x36a   : >> { %4962 = vmatpush.msk.msrb.mxu2 %vm2274_vm9, %v6160_v55  ;;  %4977 = vmatpush.msk.msrb.mxu3 %vm2331_vm10, %v6160_v55 }
 0x36b   : >> { %4930 = vmatpush.msk.msrb.mxu0 %vm2162_vm11, %v6160_v55  ;;  %4945 = vmatpush.msk.msrb.mxu1 %vm2219_vm12, %v6160_v55 }
 0x36c   : >> { %4963 = vmatpush.msk.msrb.mxu2 %vm2273_vm13, %v6160_v55  ;;  %4978 = vmatpush.msk.msrb.mxu3 %vm2330_vm14, %v6160_v55 }
 0x36d   : >> { %2321 = vmatmul.f32.vlgmr.msrb.gmra.mxu2 %v1932_v17  ;;  %4931 = vmatpush.msk.msrb.mxu0 %vm2161_vm15, %v6160_v55 }
 0x36e   : >> { %4946 = vmatpush.msk.msrb.mxu1 %vm2218_vm0, %v6160_v55  ;;  %4979 = vmatpush.msk.msrb.mxu3 %vm2329_vm1, %v6160_v55 }
 0x36f   : >> { %2209 = vmatmul.f32.vlgmr.msrb.gmra.mxu0 %v1932_v17  ;;  %2377 = vmatmul.f32.vlgmr.msrb.gmra.mxu3 %v1932_v17 }
 0x370   : >> { %4947 = vmatpush.msk.msrb.mxu1 %vm2217_vm2, %v6160_v55 }
 0x371   : >> { %2265 = vmatmul.f32.vlgmr.msrb.gmra.mxu1 %v1932_v17 }
 0x3e2   : >> { %v1986_v20 = vpop.f32.mrf.mxu0 }
 0x3e3   : >> { %v1990_v21 = vmul.f32 %v1989_v19, %v1986_v20 }
 0x3e5   : >> { %v1991_v52 = vadd.f32 %v6092_v46, %v1990_v21  ;;  %v2042_v22 = vpop.f32.mrf.mxu1  ;;  %v2098_v24 = vpop.f32.mrf.mxu2  ;;  %v2381_v46 = vperm.slane %v6522_v27, 7 }
 0x3e6   : >> { %v2046_v23 = vmul.f32 %v2045_v56, %v2042_v22  ;;  %v2102_v37 = vmul.f32 %v2101_v58, %v2098_v24 }
 0x3e8   : >> { %v2047_v38 = vadd.f32 %v2046_v23, %v1991_v52 }
 0x3e9   : >> { %v2154_v33 = vpop.f32.mrf.mxu3 }
 0x3ea   : >> { %v2103_v44 = vadd.f32 %v2102_v37, %v2047_v38  ;;  %v2158_v35 = vmul.f32 %v2157_v25, %v2154_v33 }
 0x3ec   : >> { %v2159_v39 = vadd.f32 %v2158_v35, %v2103_v44  ;;  %v2210_v41 = vpop.f32.mrf.mxu0 }
 0x3ed   : >> { %v2214_v34 = vmul.f32 %v2213_v32, %v2210_v41 }
 0x3ee   : >> { %v2266_v62 = vpop.f32.mrf.mxu1 }
 0x3ef   : >> { %v2215_v43 = vadd.f32 %v2214_v34, %v2159_v39  ;;  %v2270_v18 = vmul.f32 %v2269_v36, %v2266_v62 }
 0x3f0   : >> { %v2322_v26 = vpop.f32.mrf.mxu2 }
 0x3f1   : >> { %v2271_v42 = vadd.f32 %v2270_v18, %v2215_v43  ;;  %v2326_v47 = vmul.f32 %v2325_v49, %v2322_v26 }
 0x3f2   : >> { %v2378_v28 = vpop.f32.mrf.mxu3 }
 0x3f3   : >> { %v2327_v29 = vadd.f32 %v2326_v47, %v2271_v42  ;;  %v2382_v50 = vmul.f32 %v2381_v46, %v2378_v28  ;;  %1928 = sbr.rel (!%p1925_p10) target bundleno = 806 (0x326), region = 192 }
 0x3f5   : >> { %v2383_v45 = vadd.f32 %v2382_v50, %v2327_v29  }
 0x3f7   : >> { %v10202_v46 = vmov %v2383_v45  ;;  %v10203_v29 = vmov (%p1925_p10), %v2383_v45 }
 0x3f8 PF: > { %2384 = vst [vmem:[%s6530_s23 + $0x8] sm:$0xff] %v6100_v29  ;;  %v8340_v54 = vld [vmem:[%s6326_s10 + $0x10] sm:$0xff]  ;;  %s2386_s26 = sld [smem:[#allocation3 + %s6338_s3]]   ;;  %v8347_v57 = vmov 0.0   ;;  %v6100_v29 = vphi %v10201_v29, %v10203_v29  }
 0x3f9   : > { %s8344_s28 = sld [smem:[#allocation3 + %s6346_s11]] }
 0x3ff   : > { %p4369_p11 = scmp.ge.s32.totalorder %s2386_s26, %s8344_s28 }
 0x401   : > { %4371 = sbr.rel (%p4369_p11) target bundleno = 1241 (0x4d9), region = 197 }
 0x406   : > { %v8349_v27 = vmov 0.0  }
 0x407 LB: >> { %s4981_s7 = sshll.u32 %s6108_s26, 7  ;;  %v6161_v40 = vmov 1.0   ;;  %s4980_s15 = sshll.u32 %s6108_s26, 3  ;;  %v2454_v21 = vperm.slane %v6472_v51, 0  ;;  %v2510_v52 = vperm.slane %v6472_v51, 1  ;;  %v2566_v23 = vperm.slane %v6472_v51, 2  ;;  %s6108_s26 = sphi %s2386_s26, %s2391_s26   ;;  %v6104_v27 = vphi %v8349_v27, %v10204_v27  }
 0x408   : >> { %v2399_v48 = vstv %s4981_s7  ;;  %s2396_s16 = scalar_lea.vmem [#allocation9], %s4980_s15  ;;  %v2622_v33 = vperm.slane %v6472_v51, 3  ;;  %v2678_v36 = vperm.slane %v6472_v51, 4  ;;  %v2734_v34 = vperm.slane %v6472_v51, 5  ;;  %s2391_s26 = sadd.s32 1, %s6108_s26  }
 0x409   : >> { %v8361_v59 = vsub.s32 %v8340_v54, %v2399_v48  ;;  %v2397_v56 = vld [vmem:[%s2396_s16] sm:$0xff]  ;;  %v2790_v18 = vperm.slane %v6472_v51, 6  ;;  %v2846_v47 = vperm.slane %v6472_v51, 7  ;;  %p2390_p12 = scmp.ge.s32.totalorder %s2391_s26, %s8344_s28 }
 0x40b   : >> { %v8364_v60 = vperm.slane %v8361_v59, 2  ;;  %v8367_v55 = vperm.slane %v8361_v59, 0  ;;  %v8370_v61 = vperm.slane %v8361_v59, 3  ;;  %v8373_v63 = vperm.slane %v8361_v59, 1 }
 0x40c   : >> { %v8538_v0 = vperm.slane %v8361_v59, 6  ;;  %v8547_v17 = vperm.slane %v8361_v59, 4  ;;  %v8550_v19 = vperm.slane %v8361_v59, 7  ;;  %v8565_v20 = vperm.slane %v8361_v59, 5 }
 0x40d   : >> { %vm2529_vm3 = vcmp.eq.s32.totalorder %v8364_v60, %v6394_v16  ;;  %vm2417_vm4 = vcmp.eq.s32.totalorder %v8367_v55, %v6394_v16  ;;  %vm2528_vm5 = vcmp.eq.s32.totalorder %v8364_v60, %v6391_v15  ;;  %vm2585_vm6 = vcmp.eq.s32.totalorder %v8370_v61, %v6394_v16 }
 0x40e   : >> { %5014 = vmatpush.msk.msra.mxu2 %vm2529_vm3, %v6161_v40  ;;  %4982 = vmatpush.msk.msra.mxu0 %vm2417_vm4, %v6161_v40  ;;  %vm2416_vm7 = vcmp.eq.s32.totalorder %v8367_v55, %v6391_v15  ;;  %vm2473_vm8 = vcmp.eq.s32.totalorder %v8373_v63, %v6394_v16  ;;  %vm2527_vm9 = vcmp.eq.s32.totalorder %v8364_v60, %v6388_v14 }
 0x40f   : >> { %5030 = vmatpush.msk.msra.mxu3 %vm2585_vm6, %v6161_v40  ;;  %4998 = vmatpush.msk.msra.mxu1 %vm2473_vm8, %v6161_v40  ;;  %vm2584_vm10 = vcmp.eq.s32.totalorder %v8370_v61, %v6391_v15  ;;  %vm2415_vm11 = vcmp.eq.s32.totalorder %v8367_v55, %v6388_v14  ;;  %vm2472_vm12 = vcmp.eq.s32.totalorder %v8373_v63, %v6391_v15 }
 0x410   : >> { %5015 = vmatpush.msk.msra.mxu2 %vm2528_vm5, %v6161_v40  ;;  %4983 = vmatpush.msk.msra.mxu0 %vm2416_vm7, %v6161_v40  ;;  %vm2583_vm13 = vcmp.eq.s32.totalorder %v8370_v61, %v6388_v14  ;;  %vm2526_vm14 = vcmp.eq.s32.totalorder %v8364_v60, %v6385_v13  ;;  %vm2414_vm15 = vcmp.eq.s32.totalorder %v8367_v55, %v6385_v13 }
 0x411   : >> { %5031 = vmatpush.msk.msra.mxu3 %vm2584_vm10, %v6161_v40  ;;  %4999 = vmatpush.msk.msra.mxu1 %vm2472_vm12, %v6161_v40  ;;  %vm2471_vm0 = vcmp.eq.s32.totalorder %v8373_v63, %v6388_v14  ;;  %vm2582_vm1 = vcmp.eq.s32.totalorder %v8370_v61, %v6385_v13  ;;  %vm2470_vm2 = vcmp.eq.s32.totalorder %v8373_v63, %v6385_v13 }
 0x412   : >> { %5016 = vmatpush.msk.msra.mxu2 %vm2527_vm9, %v6161_v40  ;;  %4984 = vmatpush.msk.msra.mxu0 %vm2415_vm11, %v6161_v40  ;;  %vm2525_vm3 = vcmp.eq.s32.totalorder %v8364_v60, %v6382_v12  ;;  %vm2413_vm4 = vcmp.eq.s32.totalorder %v8367_v55, %v6382_v12  ;;  %vm2581_vm5 = vcmp.eq.s32.totalorder %v8370_v61, %v6382_v12 }
 0x413   : >> { %5032 = vmatpush.msk.msra.mxu3 %vm2583_vm13, %v6161_v40  ;;  %5000 = vmatpush.msk.msra.mxu1 %vm2471_vm0, %v6161_v40  ;;  %vm2469_vm6 = vcmp.eq.s32.totalorder %v8373_v63, %v6382_v12  ;;  %vm2524_vm7 = vcmp.eq.s32.totalorder %v8364_v60, %v6379_v11  ;;  %vm2412_vm8 = vcmp.eq.s32.totalorder %v8367_v55, %v6379_v11 }
 0x414   : >> { %5017 = vmatpush.msk.msra.mxu2 %vm2526_vm14, %v6161_v40  ;;  %4985 = vmatpush.msk.msra.mxu0 %vm2414_vm15, %v6161_v40  ;;  %vm2580_vm9 = vcmp.eq.s32.totalorder %v8370_v61, %v6379_v11  ;;  %vm2468_vm10 = vcmp.eq.s32.totalorder %v8373_v63, %v6379_v11  ;;  %vm2523_vm11 = vcmp.eq.s32.totalorder %v8364_v60, %v6376_v10 }
 0x415   : >> { %5033 = vmatpush.msk.msra.mxu3 %vm2582_vm1, %v6161_v40  ;;  %5001 = vmatpush.msk.msra.mxu1 %vm2470_vm2, %v6161_v40  ;;  %vm2411_vm12 = vcmp.eq.s32.totalorder %v8367_v55, %v6376_v10  ;;  %vm2579_vm13 = vcmp.eq.s32.totalorder %v8370_v61, %v6376_v10  ;;  %vm2467_vm14 = vcmp.eq.s32.totalorder %v8373_v63, %v6376_v10 }
 0x416   : >> { %5018 = vmatpush.msk.msra.mxu2 %vm2525_vm3, %v6161_v40  ;;  %4986 = vmatpush.msk.msra.mxu0 %vm2413_vm4, %v6161_v40  ;;  %vm2522_vm15 = vcmp.eq.s32.totalorder %v8364_v60, %v6373_v9  ;;  %vm2410_vm0 = vcmp.eq.s32.totalorder %v8367_v55, %v6373_v9  ;;  %vm2578_vm1 = vcmp.eq.s32.totalorder %v8370_v61, %v6373_v9 }
 0x417   : >> { %5034 = vmatpush.msk.msra.mxu3 %vm2581_vm5, %v6161_v40  ;;  %5002 = vmatpush.msk.msra.mxu1 %vm2469_vm6, %v6161_v40  ;;  %vm2466_vm2 = vcmp.eq.s32.totalorder %v8373_v63, %v6373_v9  ;;  %vm2521_vm3 = vcmp.eq.s32.totalorder %v8364_v60, %v6370_v8  ;;  %vm2409_vm4 = vcmp.eq.s32.totalorder %v8367_v55, %v6370_v8 }
 0x418   : >> { %5019 = vmatpush.msk.msra.mxu2 %vm2524_vm7, %v6161_v40  ;;  %4987 = vmatpush.msk.msra.mxu0 %vm2412_vm8, %v6161_v40  ;;  %vm2577_vm5 = vcmp.eq.s32.totalorder %v8370_v61, %v6370_v8  ;;  %vm2465_vm6 = vcmp.eq.s32.totalorder %v8373_v63, %v6370_v8  ;;  %vm2520_vm7 = vcmp.eq.s32.totalorder %v8364_v60, %v6367_v7 }
 0x419   : >> { %5035 = vmatpush.msk.msra.mxu3 %vm2580_vm9, %v6161_v40  ;;  %5003 = vmatpush.msk.msra.mxu1 %vm2468_vm10, %v6161_v40  ;;  %vm2408_vm8 = vcmp.eq.s32.totalorder %v8367_v55, %v6367_v7  ;;  %vm2576_vm9 = vcmp.eq.s32.totalorder %v8370_v61, %v6367_v7  ;;  %vm2464_vm10 = vcmp.eq.s32.totalorder %v8373_v63, %v6367_v7 }
 0x41a   : >> { %5020 = vmatpush.msk.msra.mxu2 %vm2523_vm11, %v6161_v40  ;;  %4988 = vmatpush.msk.msra.mxu0 %vm2411_vm12, %v6161_v40  ;;  %vm2519_vm11 = vcmp.eq.s32.totalorder %v8364_v60, %v6364_v6  ;;  %vm2407_vm12 = vcmp.eq.s32.totalorder %v8367_v55, %v6364_v6 }
 0x41b   : >> { %5036 = vmatpush.msk.msra.mxu3 %vm2579_vm13, %v6161_v40  ;;  %5004 = vmatpush.msk.msra.mxu1 %vm2467_vm14, %v6161_v40  ;;  %vm2575_vm13 = vcmp.eq.s32.totalorder %v8370_v61, %v6364_v6  ;;  %vm2463_vm14 = vcmp.eq.s32.totalorder %v8373_v63, %v6364_v6 }
 0x41c   : >> { %5021 = vmatpush.msk.msra.mxu2 %vm2522_vm15, %v6161_v40  ;;  %4989 = vmatpush.msk.msra.mxu0 %vm2410_vm0, %v6161_v40  ;;  %vm2518_vm15 = vcmp.eq.s32.totalorder %v8364_v60, %v6361_v5  ;;  %vm2406_vm0 = vcmp.eq.s32.totalorder %v8367_v55, %v6361_v5 }
 0x41d   : >> { %5037 = vmatpush.msk.msra.mxu3 %vm2578_vm1, %v6161_v40  ;;  %5005 = vmatpush.msk.msra.mxu1 %vm2466_vm2, %v6161_v40  ;;  %vm2574_vm1 = vcmp.eq.s32.totalorder %v8370_v61, %v6361_v5  ;;  %vm2462_vm2 = vcmp.eq.s32.totalorder %v8373_v63, %v6361_v5 }
 0x41e   : >> { %5022 = vmatpush.msk.msra.mxu2 %vm2521_vm3, %v6161_v40  ;;  %4990 = vmatpush.msk.msra.mxu0 %vm2409_vm4, %v6161_v40  ;;  %vm2517_vm3 = vcmp.eq.s32.totalorder %v8364_v60, %v6358_v4  ;;  %vm2405_vm4 = vcmp.eq.s32.totalorder %v8367_v55, %v6358_v4 }
 0x41f   : >> { %5038 = vmatpush.msk.msra.mxu3 %vm2577_vm5, %v6161_v40  ;;  %5006 = vmatpush.msk.msra.mxu1 %vm2465_vm6, %v6161_v40  ;;  %vm2573_vm5 = vcmp.eq.s32.totalorder %v8370_v61, %v6358_v4  ;;  %vm2461_vm6 = vcmp.eq.s32.totalorder %v8373_v63, %v6358_v4 }
 0x420   : >> { %5023 = vmatpush.msk.msra.mxu2 %vm2520_vm7, %v6161_v40  ;;  %4991 = vmatpush.msk.msra.mxu0 %vm2408_vm8, %v6161_v40  ;;  %vm2516_vm7 = vcmp.eq.s32.totalorder %v8364_v60, %v6355_v3  ;;  %vm2404_vm8 = vcmp.eq.s32.totalorder %v8367_v55, %v6355_v3 }
 0x421   : >> { %5039 = vmatpush.msk.msra.mxu3 %vm2576_vm9, %v6161_v40  ;;  %5007 = vmatpush.msk.msra.mxu1 %vm2464_vm10, %v6161_v40  ;;  %vm2572_vm9 = vcmp.eq.s32.totalorder %v8370_v61, %v6355_v3  ;;  %vm2460_vm10 = vcmp.eq.s32.totalorder %v8373_v63, %v6355_v3 }
 0x422   : >> { %5024 = vmatpush.msk.msra.mxu2 %vm2519_vm11, %v6161_v40  ;;  %4992 = vmatpush.msk.msra.mxu0 %vm2407_vm12, %v6161_v40  ;;  %vm2515_vm11 = vcmp.eq.s32.totalorder %v8364_v60, %v6352_v2  ;;  %vm2403_vm12 = vcmp.eq.s32.totalorder %v8367_v55, %v6352_v2 }
 0x423   : >> { %5040 = vmatpush.msk.msra.mxu3 %vm2575_vm13, %v6161_v40  ;;  %5008 = vmatpush.msk.msra.mxu1 %vm2463_vm14, %v6161_v40  ;;  %vm2571_vm13 = vcmp.eq.s32.totalorder %v8370_v61, %v6352_v2  ;;  %vm2459_vm14 = vcmp.eq.s32.totalorder %v8373_v63, %v6352_v2 }
 0x424   : >> { %5025 = vmatpush.msk.msra.mxu2 %vm2518_vm15, %v6161_v40  ;;  %4993 = vmatpush.msk.msra.mxu0 %vm2406_vm0, %v6161_v40  ;;  %vm2514_vm15 = vcmp.eq.s32.totalorder %v8364_v60, %v6343_v1  ;;  %vm2402_vm0 = vcmp.eq.s32.totalorder %v8367_v55, %v6343_v1 }
 0x425   : >> { %5041 = vmatpush.msk.msra.mxu3 %vm2574_vm1, %v6161_v40  ;;  %5009 = vmatpush.msk.msra.mxu1 %vm2462_vm2, %v6161_v40  ;;  %vm2753_vm1 = vcmp.eq.s32.totalorder %v8538_v0, %v6394_v16  ;;  %vm2570_vm2 = vcmp.eq.s32.totalorder %v8370_v61, %v6343_v1 }
 0x426   : >> { %5026 = vmatpush.msk.msra.mxu2 %vm2517_vm3, %v6161_v40  ;;  %4994 = vmatpush.msk.msra.mxu0 %vm2405_vm4, %v6161_v40  ;;  %vm2641_vm3 = vcmp.eq.s32.totalorder %v8547_v17, %v6394_v16  ;;  %vm2809_vm4 = vcmp.eq.s32.totalorder %v8550_v19, %v6394_v16 }
 0x427   : >> { %5042 = vmatpush.msk.msra.mxu3 %vm2573_vm5, %v6161_v40  ;;  %5010 = vmatpush.msk.msra.mxu1 %vm2461_vm6, %v6161_v40  ;;  %vm2752_vm5 = vcmp.eq.s32.totalorder %v8538_v0, %v6391_v15  ;;  %vm2458_vm6 = vcmp.eq.s32.totalorder %v8373_v63, %v6343_v1 }
 0x428   : >> { %5027 = vmatpush.msk.msra.mxu2 %vm2516_vm7, %v6161_v40  ;;  %4995 = vmatpush.msk.msra.mxu0 %vm2404_vm8, %v6161_v40  ;;  %vm2640_vm7 = vcmp.eq.s32.totalorder %v8547_v17, %v6391_v15  ;;  %vm2697_vm8 = vcmp.eq.s32.totalorder %v8565_v20, %v6394_v16 }
 0x429   : >> { %5043 = vmatpush.msk.msra.mxu3 %vm2572_vm9, %v6161_v40  ;;  %5011 = vmatpush.msk.msra.mxu1 %vm2460_vm10, %v6161_v40  ;;  %vm2751_vm9 = vcmp.eq.s32.totalorder %v8538_v0, %v6388_v14  ;;  %vm2808_vm10 = vcmp.eq.s32.totalorder %v8550_v19, %v6391_v15 }
 0x42a   : >> { %5028 = vmatpush.msk.msra.mxu2 %vm2515_vm11, %v6161_v40  ;;  %4996 = vmatpush.msk.msra.mxu0 %vm2403_vm12, %v6161_v40  ;;  %vm2639_vm11 = vcmp.eq.s32.totalorder %v8547_v17, %v6388_v14  ;;  %vm2696_vm12 = vcmp.eq.s32.totalorder %v8565_v20, %v6391_v15 }
 0x42b   : >> { %5044 = vmatpush.msk.msra.mxu3 %vm2571_vm13, %v6161_v40  ;;  %5012 = vmatpush.msk.msra.mxu1 %vm2459_vm14, %v6161_v40  ;;  %vm2750_vm13 = vcmp.eq.s32.totalorder %v8538_v0, %v6385_v13  ;;  %vm2807_vm14 = vcmp.eq.s32.totalorder %v8550_v19, %v6388_v14 }
 0x42c   : >> { %5029 = vmatpush.msk.msra.mxu2 %vm2514_vm15, %v6161_v40  ;;  %4997 = vmatpush.msk.msra.mxu0 %vm2402_vm0, %v6161_v40  ;;  %vm2638_vm15 = vcmp.eq.s32.totalorder %v8547_v17, %v6385_v13  ;;  %vm2695_vm0 = vcmp.eq.s32.totalorder %v8565_v20, %v6388_v14 }
 0x42d   : >> { %5045 = vmatpush.msk.msra.mxu3 %vm2570_vm2, %v6161_v40  ;;  %5013 = vmatpush.msk.msra.mxu1 %vm2458_vm6, %v6161_v40  ;;  %vm2806_vm2 = vcmp.eq.s32.totalorder %v8550_v19, %v6385_v13  ;;  %vm2805_vm6 = vcmp.eq.s32.totalorder %v8550_v19, %v6382_v12 }
 0x42e   : >> { %5078 = vmatpush.msk.msrb.mxu2 %vm2753_vm1, %v6161_v40  ;;  %5046 = vmatpush.msk.msrb.mxu0 %vm2641_vm3, %v6161_v40  ;;  %vm2749_vm1 = vcmp.eq.s32.totalorder %v8538_v0, %v6382_v12  ;;  %vm2637_vm3 = vcmp.eq.s32.totalorder %v8547_v17, %v6382_v12 }
 0x42f   : >> { %5094 = vmatpush.msk.msrb.mxu3 %vm2809_vm4, %v6161_v40  ;;  %5062 = vmatpush.msk.msrb.mxu1 %vm2697_vm8, %v6161_v40  ;;  %vm2694_vm4 = vcmp.eq.s32.totalorder %v8565_v20, %v6385_v13  ;;  %vm2693_vm8 = vcmp.eq.s32.totalorder %v8565_v20, %v6382_v12 }
 0x430   : >> { %5079 = vmatpush.msk.msrb.mxu2 %vm2752_vm5, %v6161_v40  ;;  %5047 = vmatpush.msk.msrb.mxu0 %vm2640_vm7, %v6161_v40  ;;  %vm2748_vm5 = vcmp.eq.s32.totalorder %v8538_v0, %v6379_v11  ;;  %vm2636_vm7 = vcmp.eq.s32.totalorder %v8547_v17, %v6379_v11 }
 0x431   : >> { %5095 = vmatpush.msk.msrb.mxu3 %vm2808_vm10, %v6161_v40  ;;  %5063 = vmatpush.msk.msrb.mxu1 %vm2696_vm12, %v6161_v40  ;;  %vm2804_vm10 = vcmp.eq.s32.totalorder %v8550_v19, %v6379_v11  ;;  %vm2692_vm12 = vcmp.eq.s32.totalorder %v8565_v20, %v6379_v11 }
 0x432   : >> { %5080 = vmatpush.msk.msrb.mxu2 %vm2751_vm9, %v6161_v40  ;;  %5048 = vmatpush.msk.msrb.mxu0 %vm2639_vm11, %v6161_v40  ;;  %vm2747_vm9 = vcmp.eq.s32.totalorder %v8538_v0, %v6376_v10  ;;  %vm2635_vm11 = vcmp.eq.s32.totalorder %v8547_v17, %v6376_v10 }
 0x433   : >> { %5096 = vmatpush.msk.msrb.mxu3 %vm2807_vm14, %v6161_v40  ;;  %5064 = vmatpush.msk.msrb.mxu1 %vm2695_vm0, %v6161_v40  ;;  %vm2803_vm14 = vcmp.eq.s32.totalorder %v8550_v19, %v6376_v10  ;;  %vm2691_vm0 = vcmp.eq.s32.totalorder %v8565_v20, %v6376_v10 }
 0x434   : >> { %5081 = vmatpush.msk.msrb.mxu2 %vm2750_vm13, %v6161_v40  ;;  %5049 = vmatpush.msk.msrb.mxu0 %vm2638_vm15, %v6161_v40  ;;  %vm2746_vm13 = vcmp.eq.s32.totalorder %v8538_v0, %v6373_v9  ;;  %vm2634_vm15 = vcmp.eq.s32.totalorder %v8547_v17, %v6373_v9 }
 0x435   : >> { %5097 = vmatpush.msk.msrb.mxu3 %vm2806_vm2, %v6161_v40  ;;  %5065 = vmatpush.msk.msrb.mxu1 %vm2694_vm4, %v6161_v40  ;;  %vm2802_vm2 = vcmp.eq.s32.totalorder %v8550_v19, %v6373_v9  ;;  %vm2690_vm4 = vcmp.eq.s32.totalorder %v8565_v20, %v6373_v9 }
 0x436   : >> { %5082 = vmatpush.msk.msrb.mxu2 %vm2749_vm1, %v6161_v40  ;;  %5050 = vmatpush.msk.msrb.mxu0 %vm2637_vm3, %v6161_v40  ;;  %vm2745_vm1 = vcmp.eq.s32.totalorder %v8538_v0, %v6370_v8  ;;  %vm2633_vm3 = vcmp.eq.s32.totalorder %v8547_v17, %v6370_v8 }
 0x437   : >> { %5098 = vmatpush.msk.msrb.mxu3 %vm2805_vm6, %v6161_v40  ;;  %5066 = vmatpush.msk.msrb.mxu1 %vm2693_vm8, %v6161_v40  ;;  %vm2801_vm6 = vcmp.eq.s32.totalorder %v8550_v19, %v6370_v8  ;;  %vm2689_vm8 = vcmp.eq.s32.totalorder %v8565_v20, %v6370_v8 }
 0x438   : >> { %5083 = vmatpush.msk.msrb.mxu2 %vm2748_vm5, %v6161_v40  ;;  %5051 = vmatpush.msk.msrb.mxu0 %vm2636_vm7, %v6161_v40  ;;  %vm2744_vm5 = vcmp.eq.s32.totalorder %v8538_v0, %v6367_v7  ;;  %vm2632_vm7 = vcmp.eq.s32.totalorder %v8547_v17, %v6367_v7 }
 0x439   : >> { %5099 = vmatpush.msk.msrb.mxu3 %vm2804_vm10, %v6161_v40  ;;  %5067 = vmatpush.msk.msrb.mxu1 %vm2692_vm12, %v6161_v40  ;;  %vm2800_vm10 = vcmp.eq.s32.totalorder %v8550_v19, %v6367_v7  ;;  %vm2688_vm12 = vcmp.eq.s32.totalorder %v8565_v20, %v6367_v7 }
 0x43a   : >> { %5084 = vmatpush.msk.msrb.mxu2 %vm2747_vm9, %v6161_v40  ;;  %5052 = vmatpush.msk.msrb.mxu0 %vm2635_vm11, %v6161_v40  ;;  %vm2743_vm9 = vcmp.eq.s32.totalorder %v8538_v0, %v6364_v6  ;;  %vm2631_vm11 = vcmp.eq.s32.totalorder %v8547_v17, %v6364_v6 }
 0x43b   : >> { %5100 = vmatpush.msk.msrb.mxu3 %vm2803_vm14, %v6161_v40  ;;  %5068 = vmatpush.msk.msrb.mxu1 %vm2691_vm0, %v6161_v40  ;;  %vm2799_vm14 = vcmp.eq.s32.totalorder %v8550_v19, %v6364_v6  ;;  %vm2687_vm0 = vcmp.eq.s32.totalorder %v8565_v20, %v6364_v6 }
 0x43c   : >> { %5085 = vmatpush.msk.msrb.mxu2 %vm2746_vm13, %v6161_v40  ;;  %5053 = vmatpush.msk.msrb.mxu0 %vm2634_vm15, %v6161_v40  ;;  %vm2742_vm13 = vcmp.eq.s32.totalorder %v8538_v0, %v6361_v5  ;;  %vm2630_vm15 = vcmp.eq.s32.totalorder %v8547_v17, %v6361_v5 }
 0x43d   : >> { %5101 = vmatpush.msk.msrb.mxu3 %vm2802_vm2, %v6161_v40  ;;  %5069 = vmatpush.msk.msrb.mxu1 %vm2690_vm4, %v6161_v40  ;;  %vm2798_vm2 = vcmp.eq.s32.totalorder %v8550_v19, %v6361_v5  ;;  %vm2686_vm4 = vcmp.eq.s32.totalorder %v8565_v20, %v6361_v5 }
 0x43e   : >> { %5086 = vmatpush.msk.msrb.mxu2 %vm2745_vm1, %v6161_v40  ;;  %5054 = vmatpush.msk.msrb.mxu0 %vm2633_vm3, %v6161_v40  ;;  %vm2741_vm1 = vcmp.eq.s32.totalorder %v8538_v0, %v6358_v4  ;;  %vm2629_vm3 = vcmp.eq.s32.totalorder %v8547_v17, %v6358_v4 }
 0x43f   : >> { %5102 = vmatpush.msk.msrb.mxu3 %vm2801_vm6, %v6161_v40  ;;  %5070 = vmatpush.msk.msrb.mxu1 %vm2689_vm8, %v6161_v40  ;;  %vm2797_vm6 = vcmp.eq.s32.totalorder %v8550_v19, %v6358_v4  ;;  %vm2685_vm8 = vcmp.eq.s32.totalorder %v8565_v20, %v6358_v4 }
 0x440   : >> { %5087 = vmatpush.msk.msrb.mxu2 %vm2744_vm5, %v6161_v40  ;;  %5055 = vmatpush.msk.msrb.mxu0 %vm2632_vm7, %v6161_v40  ;;  %vm2740_vm5 = vcmp.eq.s32.totalorder %v8538_v0, %v6355_v3  ;;  %vm2628_vm7 = vcmp.eq.s32.totalorder %v8547_v17, %v6355_v3 }
 0x441   : >> { %5103 = vmatpush.msk.msrb.mxu3 %vm2800_vm10, %v6161_v40  ;;  %5071 = vmatpush.msk.msrb.mxu1 %vm2688_vm12, %v6161_v40  ;;  %vm2796_vm10 = vcmp.eq.s32.totalorder %v8550_v19, %v6355_v3  ;;  %vm2684_vm12 = vcmp.eq.s32.totalorder %v8565_v20, %v6355_v3 }
 0x442   : >> { %5088 = vmatpush.msk.msrb.mxu2 %vm2743_vm9, %v6161_v40  ;;  %5056 = vmatpush.msk.msrb.mxu0 %vm2631_vm11, %v6161_v40  ;;  %vm2739_vm9 = vcmp.eq.s32.totalorder %v8538_v0, %v6352_v2  ;;  %vm2627_vm11 = vcmp.eq.s32.totalorder %v8547_v17, %v6352_v2 }
 0x443   : >> { %5104 = vmatpush.msk.msrb.mxu3 %vm2799_vm14, %v6161_v40  ;;  %2562 = vmatmul.f32.vlgmr.msra.gmra.mxu2 %v2397_v56  ;;  %vm2795_vm14 = vcmp.eq.s32.totalorder %v8550_v19, %v6352_v2 }
 0x444   : >> { %5089 = vmatpush.msk.msrb.mxu2 %vm2742_vm13, %v6161_v40  ;;  %5057 = vmatpush.msk.msrb.mxu0 %vm2630_vm15, %v6161_v40  ;;  %vm2738_vm13 = vcmp.eq.s32.totalorder %v8538_v0, %v6343_v1  ;;  %vm2626_vm15 = vcmp.eq.s32.totalorder %v8547_v17, %v6343_v1 }
 0x445   : >> { %5072 = vmatpush.msk.msrb.mxu1 %vm2687_vm0, %v6161_v40  ;;  %5105 = vmatpush.msk.msrb.mxu3 %vm2798_vm2, %v6161_v40  ;;  %vm2683_vm0 = vcmp.eq.s32.totalorder %v8565_v20, %v6352_v2  ;;  %vm2682_vm2 = vcmp.eq.s32.totalorder %v8565_v20, %v6343_v1 }
 0x446   : >> { %5090 = vmatpush.msk.msrb.mxu2 %vm2741_vm1, %v6161_v40  ;;  %2450 = vmatmul.f32.vlgmr.msra.gmra.mxu0 %v2397_v56  ;;  %vm2794_vm1 = vcmp.eq.s32.totalorder %v8550_v19, %v6343_v1 }
 0x447   : >> { %2618 = vmatmul.f32.vlgmr.msra.gmra.mxu3 %v2397_v56  ;;  %5058 = vmatpush.msk.msrb.mxu0 %vm2629_vm3, %v6161_v40 }
 0x448   : >> { %5073 = vmatpush.msk.msrb.mxu1 %vm2686_vm4, %v6161_v40  ;;  %5091 = vmatpush.msk.msrb.mxu2 %vm2740_vm5, %v6161_v40 }
 0x449   : >> { %5106 = vmatpush.msk.msrb.mxu3 %vm2797_vm6, %v6161_v40  ;;  %2506 = vmatmul.f32.vlgmr.msra.gmra.mxu1 %v2397_v56 }
 0x44a   : >> { %5059 = vmatpush.msk.msrb.mxu0 %vm2628_vm7, %v6161_v40  ;;  %5074 = vmatpush.msk.msrb.mxu1 %vm2685_vm8, %v6161_v40 }
 0x44b   : >> { %5092 = vmatpush.msk.msrb.mxu2 %vm2739_vm9, %v6161_v40  ;;  %5107 = vmatpush.msk.msrb.mxu3 %vm2796_vm10, %v6161_v40 }
 0x44c   : >> { %5060 = vmatpush.msk.msrb.mxu0 %vm2627_vm11, %v6161_v40  ;;  %5075 = vmatpush.msk.msrb.mxu1 %vm2684_vm12, %v6161_v40 }
 0x44d   : >> { %5093 = vmatpush.msk.msrb.mxu2 %vm2738_vm13, %v6161_v40  ;;  %5108 = vmatpush.msk.msrb.mxu3 %vm2795_vm14, %v6161_v40 }
 0x44e   : >> { %2786 = vmatmul.f32.vlgmr.msrb.gmra.mxu2 %v2397_v56  ;;  %5061 = vmatpush.msk.msrb.mxu0 %vm2626_vm15, %v6161_v40 }
 0x44f   : >> { %5076 = vmatpush.msk.msrb.mxu1 %vm2683_vm0, %v6161_v40  ;;  %5109 = vmatpush.msk.msrb.mxu3 %vm2794_vm1, %v6161_v40 }
 0x450   : >> { %2674 = vmatmul.f32.vlgmr.msrb.gmra.mxu0 %v2397_v56  ;;  %2842 = vmatmul.f32.vlgmr.msrb.gmra.mxu3 %v2397_v56 }
 0x451   : >> { %5077 = vmatpush.msk.msrb.mxu1 %vm2682_vm2, %v6161_v40 }
 0x452   : >> { %2730 = vmatmul.f32.vlgmr.msrb.gmra.mxu1 %v2397_v56 }
 0x4c3   : >> { %v2451_v58 = vpop.f32.mrf.mxu0 }
 0x4c4   : >> { %v2455_v22 = vmul.f32 %v2454_v21, %v2451_v58 }
 0x4c6   : >> { %v2456_v24 = vadd.f32 %v6104_v27, %v2455_v22  ;;  %v2507_v25 = vpop.f32.mrf.mxu1  ;;  %v2563_v38 = vpop.f32.mrf.mxu2 }
 0x4c7   : >> { %v2511_v37 = vmul.f32 %v2510_v52, %v2507_v25  ;;  %v2567_v32 = vmul.f32 %v2566_v23, %v2563_v38 }
 0x4c9   : >> { %v2512_v44 = vadd.f32 %v2511_v37, %v2456_v24 }
 0x4ca   : >> { %v2619_v35 = vpop.f32.mrf.mxu3 }
 0x4cb   : >> { %v2568_v39 = vadd.f32 %v2567_v32, %v2512_v44  ;;  %v2623_v41 = vmul.f32 %v2622_v33, %v2619_v35 }
 0x4cd   : >> { %v2624_v49 = vadd.f32 %v2623_v41, %v2568_v39  ;;  %v2675_v62 = vpop.f32.mrf.mxu0 }
 0x4ce   : >> { %v2679_v43 = vmul.f32 %v2678_v36, %v2675_v62 }
 0x4cf   : >> { %v2731_v46 = vpop.f32.mrf.mxu1 }
 0x4d0   : >> { %v2680_v26 = vadd.f32 %v2679_v43, %v2624_v49  ;;  %v2735_v42 = vmul.f32 %v2734_v34, %v2731_v46 }
 0x4d1   : >> { %v2787_v28 = vpop.f32.mrf.mxu2 }
 0x4d2   : >> { %v2736_v29 = vadd.f32 %v2735_v42, %v2680_v26  ;;  %v2791_v50 = vmul.f32 %v2790_v18, %v2787_v28 }
 0x4d3   : >> { %v2843_v45 = vpop.f32.mrf.mxu3 }
 0x4d4   : >> { %v2792_v57 = vadd.f32 %v2791_v50, %v2736_v29  ;;  %v2847_v27 = vmul.f32 %v2846_v47, %v2843_v45  ;;  %2393 = sbr.rel (!%p2390_p12) target bundleno = 1031 (0x407), region = 203 }
 0x4d6   : >> { %v2848_v48 = vadd.f32 %v2847_v27, %v2792_v57  }
 0x4d8   : >> { %v10204_v27 = vmov %v2848_v48  ;;  %v10205_v57 = vmov (%p2390_p12), %v2848_v48 }
 0x4d9 PF: > { %v8791_v59 = vld [vmem:[%s6326_s10 + $0x30] sm:$0xff]  ;;  %s2850_s17 = sld [smem:[#allocation3 + %s6982_s0]]   ;;  %v10206_v60 = vmov %v6112_v57  ;;  %v6112_v57 = vphi %v8347_v57, %v10205_v57  }
 0x4da   : > { %s8795_s27 = sld [smem:[#allocation3 + %s6985_s13]] }
 0x4e0   : > { %p4377_p2 = scmp.ge.s32.totalorder %s2850_s17, %s8795_s27 }
 0x4e2   : > { %4379 = sbr.rel (%p4377_p2) target bundleno = 1465 (0x5b9), region = 208 }
 0x4e7 LB: >> { %s5112_s8 = sshll.u32 %s6120_s17, 7  ;;  %v6162_v0 = vmov 1.0   ;;  %s5111_s30 = sshll.u32 %s6120_s17, 3  ;;  %v2918_v58 = vperm.slane %v6524_v30, 0  ;;  %v2974_v22 = vperm.slane %v6524_v30, 1  ;;  %v3030_v24 = vperm.slane %v6524_v30, 2  ;;  %s6120_s17 = sphi %s2850_s17, %s2855_s17   ;;  %v6116_v57 = vphi %v6112_v57, %v10207_v57  }
 0x4e8   : >> { %v2863_v51 = vstv %s5112_s8  ;;  %s2860_s29 = scalar_lea.vmem [#allocation9], %s5111_s30  ;;  %v3086_v32 = vperm.slane %v6524_v30, 3  ;;  %v3142_v39 = vperm.slane %v6524_v30, 4  ;;  %v3198_v49 = vperm.slane %v6524_v30, 5  ;;  %s2855_s17 = sadd.s32 1, %s6120_s17  }
 0x4e9   : >> { %v8812_v54 = vsub.s32 %v8791_v59, %v2863_v51  ;;  %v2861_v21 = vld [vmem:[%s2860_s29] sm:$0xff]  ;;  %v3254_v46 = vperm.slane %v6524_v30, 6  ;;  %v3310_v28 = vperm.slane %v6524_v30, 7  ;;  %p2854_p4 = scmp.ge.s32.totalorder %s2855_s17, %s8795_s27 }
 0x4eb   : >> { %v8815_v55 = vperm.slane %v8812_v54, 2  ;;  %v8818_v61 = vperm.slane %v8812_v54, 0  ;;  %v8821_v63 = vperm.slane %v8812_v54, 3  ;;  %v8824_v40 = vperm.slane %v8812_v54, 1 }
 0x4ec   : >> { %v8989_v17 = vperm.slane %v8812_v54, 6  ;;  %v8998_v19 = vperm.slane %v8812_v54, 4  ;;  %v9001_v20 = vperm.slane %v8812_v54, 7  ;;  %v9016_v56 = vperm.slane %v8812_v54, 5 }
 0x4ed   : >> { %vm2993_vm3 = vcmp.eq.s32.totalorder %v8815_v55, %v6394_v16  ;;  %vm2881_vm4 = vcmp.eq.s32.totalorder %v8818_v61, %v6394_v16  ;;  %vm2992_vm5 = vcmp.eq.s32.totalorder %v8815_v55, %v6391_v15  ;;  %vm3049_vm6 = vcmp.eq.s32.totalorder %v8821_v63, %v6394_v16 }
 0x4ee   : >> { %5145 = vmatpush.msk.msra.mxu2 %vm2993_vm3, %v6162_v0  ;;  %5113 = vmatpush.msk.msra.mxu0 %vm2881_vm4, %v6162_v0  ;;  %vm2880_vm7 = vcmp.eq.s32.totalorder %v8818_v61, %v6391_v15  ;;  %vm2937_vm8 = vcmp.eq.s32.totalorder %v8824_v40, %v6394_v16  ;;  %vm2991_vm9 = vcmp.eq.s32.totalorder %v8815_v55, %v6388_v14 }
 0x4ef   : >> { %5161 = vmatpush.msk.msra.mxu3 %vm3049_vm6, %v6162_v0  ;;  %5129 = vmatpush.msk.msra.mxu1 %vm2937_vm8, %v6162_v0  ;;  %vm3048_vm10 = vcmp.eq.s32.totalorder %v8821_v63, %v6391_v15  ;;  %vm2879_vm11 = vcmp.eq.s32.totalorder %v8818_v61, %v6388_v14  ;;  %vm2936_vm12 = vcmp.eq.s32.totalorder %v8824_v40, %v6391_v15 }
 0x4f0   : >> { %5146 = vmatpush.msk.msra.mxu2 %vm2992_vm5, %v6162_v0  ;;  %5114 = vmatpush.msk.msra.mxu0 %vm2880_vm7, %v6162_v0  ;;  %vm3047_vm13 = vcmp.eq.s32.totalorder %v8821_v63, %v6388_v14  ;;  %vm2990_vm14 = vcmp.eq.s32.totalorder %v8815_v55, %v6385_v13  ;;  %vm2878_vm15 = vcmp.eq.s32.totalorder %v8818_v61, %v6385_v13 }
 0x4f1   : >> { %5162 = vmatpush.msk.msra.mxu3 %vm3048_vm10, %v6162_v0  ;;  %5130 = vmatpush.msk.msra.mxu1 %vm2936_vm12, %v6162_v0  ;;  %vm2935_vm0 = vcmp.eq.s32.totalorder %v8824_v40, %v6388_v14  ;;  %vm3046_vm1 = vcmp.eq.s32.totalorder %v8821_v63, %v6385_v13  ;;  %vm2934_vm2 = vcmp.eq.s32.totalorder %v8824_v40, %v6385_v13 }
 0x4f2   : >> { %5147 = vmatpush.msk.msra.mxu2 %vm2991_vm9, %v6162_v0  ;;  %5115 = vmatpush.msk.msra.mxu0 %vm2879_vm11, %v6162_v0  ;;  %vm2989_vm3 = vcmp.eq.s32.totalorder %v8815_v55, %v6382_v12  ;;  %vm2877_vm4 = vcmp.eq.s32.totalorder %v8818_v61, %v6382_v12  ;;  %vm3045_vm5 = vcmp.eq.s32.totalorder %v8821_v63, %v6382_v12 }
 0x4f3   : >> { %5163 = vmatpush.msk.msra.mxu3 %vm3047_vm13, %v6162_v0  ;;  %5131 = vmatpush.msk.msra.mxu1 %vm2935_vm0, %v6162_v0  ;;  %vm2933_vm6 = vcmp.eq.s32.totalorder %v8824_v40, %v6382_v12  ;;  %vm2988_vm7 = vcmp.eq.s32.totalorder %v8815_v55, %v6379_v11  ;;  %vm2876_vm8 = vcmp.eq.s32.totalorder %v8818_v61, %v6379_v11 }
 0x4f4   : >> { %5148 = vmatpush.msk.msra.mxu2 %vm2990_vm14, %v6162_v0  ;;  %5116 = vmatpush.msk.msra.mxu0 %vm2878_vm15, %v6162_v0  ;;  %vm3044_vm9 = vcmp.eq.s32.totalorder %v8821_v63, %v6379_v11  ;;  %vm2932_vm10 = vcmp.eq.s32.totalorder %v8824_v40, %v6379_v11  ;;  %vm2987_vm11 = vcmp.eq.s32.totalorder %v8815_v55, %v6376_v10 }
 0x4f5   : >> { %5164 = vmatpush.msk.msra.mxu3 %vm3046_vm1, %v6162_v0  ;;  %5132 = vmatpush.msk.msra.mxu1 %vm2934_vm2, %v6162_v0  ;;  %vm2875_vm12 = vcmp.eq.s32.totalorder %v8818_v61, %v6376_v10  ;;  %vm3043_vm13 = vcmp.eq.s32.totalorder %v8821_v63, %v6376_v10  ;;  %vm2931_vm14 = vcmp.eq.s32.totalorder %v8824_v40, %v6376_v10 }
 0x4f6   : >> { %5149 = vmatpush.msk.msra.mxu2 %vm2989_vm3, %v6162_v0  ;;  %5117 = vmatpush.msk.msra.mxu0 %vm2877_vm4, %v6162_v0  ;;  %vm2986_vm15 = vcmp.eq.s32.totalorder %v8815_v55, %v6373_v9  ;;  %vm2874_vm0 = vcmp.eq.s32.totalorder %v8818_v61, %v6373_v9  ;;  %vm3042_vm1 = vcmp.eq.s32.totalorder %v8821_v63, %v6373_v9 }
 0x4f7   : >> { %5165 = vmatpush.msk.msra.mxu3 %vm3045_vm5, %v6162_v0  ;;  %5133 = vmatpush.msk.msra.mxu1 %vm2933_vm6, %v6162_v0  ;;  %vm2930_vm2 = vcmp.eq.s32.totalorder %v8824_v40, %v6373_v9  ;;  %vm2985_vm3 = vcmp.eq.s32.totalorder %v8815_v55, %v6370_v8  ;;  %vm2873_vm4 = vcmp.eq.s32.totalorder %v8818_v61, %v6370_v8 }
 0x4f8   : >> { %5150 = vmatpush.msk.msra.mxu2 %vm2988_vm7, %v6162_v0  ;;  %5118 = vmatpush.msk.msra.mxu0 %vm2876_vm8, %v6162_v0  ;;  %vm3041_vm5 = vcmp.eq.s32.totalorder %v8821_v63, %v6370_v8  ;;  %vm2929_vm6 = vcmp.eq.s32.totalorder %v8824_v40, %v6370_v8  ;;  %vm2984_vm7 = vcmp.eq.s32.totalorder %v8815_v55, %v6367_v7 }
 0x4f9   : >> { %5166 = vmatpush.msk.msra.mxu3 %vm3044_vm9, %v6162_v0  ;;  %5134 = vmatpush.msk.msra.mxu1 %vm2932_vm10, %v6162_v0  ;;  %vm2872_vm8 = vcmp.eq.s32.totalorder %v8818_v61, %v6367_v7  ;;  %vm3040_vm9 = vcmp.eq.s32.totalorder %v8821_v63, %v6367_v7  ;;  %vm2928_vm10 = vcmp.eq.s32.totalorder %v8824_v40, %v6367_v7 }
 0x4fa   : >> { %5151 = vmatpush.msk.msra.mxu2 %vm2987_vm11, %v6162_v0  ;;  %5119 = vmatpush.msk.msra.mxu0 %vm2875_vm12, %v6162_v0  ;;  %vm2983_vm11 = vcmp.eq.s32.totalorder %v8815_v55, %v6364_v6  ;;  %vm2871_vm12 = vcmp.eq.s32.totalorder %v8818_v61, %v6364_v6 }
 0x4fb   : >> { %5167 = vmatpush.msk.msra.mxu3 %vm3043_vm13, %v6162_v0  ;;  %5135 = vmatpush.msk.msra.mxu1 %vm2931_vm14, %v6162_v0  ;;  %vm3039_vm13 = vcmp.eq.s32.totalorder %v8821_v63, %v6364_v6  ;;  %vm2927_vm14 = vcmp.eq.s32.totalorder %v8824_v40, %v6364_v6 }
 0x4fc   : >> { %5152 = vmatpush.msk.msra.mxu2 %vm2986_vm15, %v6162_v0  ;;  %5120 = vmatpush.msk.msra.mxu0 %vm2874_vm0, %v6162_v0  ;;  %vm2982_vm15 = vcmp.eq.s32.totalorder %v8815_v55, %v6361_v5  ;;  %vm2870_vm0 = vcmp.eq.s32.totalorder %v8818_v61, %v6361_v5 }
 0x4fd   : >> { %5168 = vmatpush.msk.msra.mxu3 %vm3042_vm1, %v6162_v0  ;;  %5136 = vmatpush.msk.msra.mxu1 %vm2930_vm2, %v6162_v0  ;;  %vm3038_vm1 = vcmp.eq.s32.totalorder %v8821_v63, %v6361_v5  ;;  %vm2926_vm2 = vcmp.eq.s32.totalorder %v8824_v40, %v6361_v5 }
 0x4fe   : >> { %5153 = vmatpush.msk.msra.mxu2 %vm2985_vm3, %v6162_v0  ;;  %5121 = vmatpush.msk.msra.mxu0 %vm2873_vm4, %v6162_v0  ;;  %vm2981_vm3 = vcmp.eq.s32.totalorder %v8815_v55, %v6358_v4  ;;  %vm2869_vm4 = vcmp.eq.s32.totalorder %v8818_v61, %v6358_v4 }
 0x4ff   : >> { %5169 = vmatpush.msk.msra.mxu3 %vm3041_vm5, %v6162_v0  ;;  %5137 = vmatpush.msk.msra.mxu1 %vm2929_vm6, %v6162_v0  ;;  %vm3037_vm5 = vcmp.eq.s32.totalorder %v8821_v63, %v6358_v4  ;;  %vm2925_vm6 = vcmp.eq.s32.totalorder %v8824_v40, %v6358_v4 }
 0x500   : >> { %5154 = vmatpush.msk.msra.mxu2 %vm2984_vm7, %v6162_v0  ;;  %5122 = vmatpush.msk.msra.mxu0 %vm2872_vm8, %v6162_v0  ;;  %vm2980_vm7 = vcmp.eq.s32.totalorder %v8815_v55, %v6355_v3  ;;  %vm2868_vm8 = vcmp.eq.s32.totalorder %v8818_v61, %v6355_v3 }
 0x501   : >> { %5170 = vmatpush.msk.msra.mxu3 %vm3040_vm9, %v6162_v0  ;;  %5138 = vmatpush.msk.msra.mxu1 %vm2928_vm10, %v6162_v0  ;;  %vm3036_vm9 = vcmp.eq.s32.totalorder %v8821_v63, %v6355_v3  ;;  %vm2924_vm10 = vcmp.eq.s32.totalorder %v8824_v40, %v6355_v3 }
 0x502   : >> { %5155 = vmatpush.msk.msra.mxu2 %vm2983_vm11, %v6162_v0  ;;  %5123 = vmatpush.msk.msra.mxu0 %vm2871_vm12, %v6162_v0  ;;  %vm2979_vm11 = vcmp.eq.s32.totalorder %v8815_v55, %v6352_v2  ;;  %vm2867_vm12 = vcmp.eq.s32.totalorder %v8818_v61, %v6352_v2 }
 0x503   : >> { %5171 = vmatpush.msk.msra.mxu3 %vm3039_vm13, %v6162_v0  ;;  %5139 = vmatpush.msk.msra.mxu1 %vm2927_vm14, %v6162_v0  ;;  %vm3035_vm13 = vcmp.eq.s32.totalorder %v8821_v63, %v6352_v2  ;;  %vm2923_vm14 = vcmp.eq.s32.totalorder %v8824_v40, %v6352_v2 }
 0x504   : >> { %5156 = vmatpush.msk.msra.mxu2 %vm2982_vm15, %v6162_v0  ;;  %5124 = vmatpush.msk.msra.mxu0 %vm2870_vm0, %v6162_v0  ;;  %vm2978_vm15 = vcmp.eq.s32.totalorder %v8815_v55, %v6343_v1  ;;  %vm2866_vm0 = vcmp.eq.s32.totalorder %v8818_v61, %v6343_v1 }
 0x505   : >> { %5172 = vmatpush.msk.msra.mxu3 %vm3038_vm1, %v6162_v0  ;;  %5140 = vmatpush.msk.msra.mxu1 %vm2926_vm2, %v6162_v0  ;;  %vm3217_vm1 = vcmp.eq.s32.totalorder %v8989_v17, %v6394_v16  ;;  %vm3034_vm2 = vcmp.eq.s32.totalorder %v8821_v63, %v6343_v1 }
 0x506   : >> { %5157 = vmatpush.msk.msra.mxu2 %vm2981_vm3, %v6162_v0  ;;  %5125 = vmatpush.msk.msra.mxu0 %vm2869_vm4, %v6162_v0  ;;  %vm3105_vm3 = vcmp.eq.s32.totalorder %v8998_v19, %v6394_v16  ;;  %vm3273_vm4 = vcmp.eq.s32.totalorder %v9001_v20, %v6394_v16 }
 0x507   : >> { %5173 = vmatpush.msk.msra.mxu3 %vm3037_vm5, %v6162_v0  ;;  %5141 = vmatpush.msk.msra.mxu1 %vm2925_vm6, %v6162_v0  ;;  %vm3216_vm5 = vcmp.eq.s32.totalorder %v8989_v17, %v6391_v15  ;;  %vm2922_vm6 = vcmp.eq.s32.totalorder %v8824_v40, %v6343_v1 }
 0x508   : >> { %5158 = vmatpush.msk.msra.mxu2 %vm2980_vm7, %v6162_v0  ;;  %5126 = vmatpush.msk.msra.mxu0 %vm2868_vm8, %v6162_v0  ;;  %vm3104_vm7 = vcmp.eq.s32.totalorder %v8998_v19, %v6391_v15  ;;  %vm3161_vm8 = vcmp.eq.s32.totalorder %v9016_v56, %v6394_v16 }
 0x509   : >> { %5174 = vmatpush.msk.msra.mxu3 %vm3036_vm9, %v6162_v0  ;;  %5142 = vmatpush.msk.msra.mxu1 %vm2924_vm10, %v6162_v0  ;;  %vm3215_vm9 = vcmp.eq.s32.totalorder %v8989_v17, %v6388_v14  ;;  %vm3272_vm10 = vcmp.eq.s32.totalorder %v9001_v20, %v6391_v15 }
 0x50a   : >> { %5159 = vmatpush.msk.msra.mxu2 %vm2979_vm11, %v6162_v0  ;;  %5127 = vmatpush.msk.msra.mxu0 %vm2867_vm12, %v6162_v0  ;;  %vm3103_vm11 = vcmp.eq.s32.totalorder %v8998_v19, %v6388_v14  ;;  %vm3160_vm12 = vcmp.eq.s32.totalorder %v9016_v56, %v6391_v15 }
 0x50b   : >> { %5175 = vmatpush.msk.msra.mxu3 %vm3035_vm13, %v6162_v0  ;;  %5143 = vmatpush.msk.msra.mxu1 %vm2923_vm14, %v6162_v0  ;;  %vm3214_vm13 = vcmp.eq.s32.totalorder %v8989_v17, %v6385_v13  ;;  %vm3271_vm14 = vcmp.eq.s32.totalorder %v9001_v20, %v6388_v14 }
 0x50c   : >> { %5160 = vmatpush.msk.msra.mxu2 %vm2978_vm15, %v6162_v0  ;;  %5128 = vmatpush.msk.msra.mxu0 %vm2866_vm0, %v6162_v0  ;;  %vm3102_vm15 = vcmp.eq.s32.totalorder %v8998_v19, %v6385_v13  ;;  %vm3159_vm0 = vcmp.eq.s32.totalorder %v9016_v56, %v6388_v14 }
 0x50d   : >> { %5176 = vmatpush.msk.msra.mxu3 %vm3034_vm2, %v6162_v0  ;;  %5144 = vmatpush.msk.msra.mxu1 %vm2922_vm6, %v6162_v0  ;;  %vm3270_vm2 = vcmp.eq.s32.totalorder %v9001_v20, %v6385_v13  ;;  %vm3269_vm6 = vcmp.eq.s32.totalorder %v9001_v20, %v6382_v12 }
 0x50e   : >> { %5209 = vmatpush.msk.msrb.mxu2 %vm3217_vm1, %v6162_v0  ;;  %5177 = vmatpush.msk.msrb.mxu0 %vm3105_vm3, %v6162_v0  ;;  %vm3213_vm1 = vcmp.eq.s32.totalorder %v8989_v17, %v6382_v12  ;;  %vm3101_vm3 = vcmp.eq.s32.totalorder %v8998_v19, %v6382_v12 }
 0x50f   : >> { %5225 = vmatpush.msk.msrb.mxu3 %vm3273_vm4, %v6162_v0  ;;  %5193 = vmatpush.msk.msrb.mxu1 %vm3161_vm8, %v6162_v0  ;;  %vm3158_vm4 = vcmp.eq.s32.totalorder %v9016_v56, %v6385_v13  ;;  %vm3157_vm8 = vcmp.eq.s32.totalorder %v9016_v56, %v6382_v12 }
 0x510   : >> { %5210 = vmatpush.msk.msrb.mxu2 %vm3216_vm5, %v6162_v0  ;;  %5178 = vmatpush.msk.msrb.mxu0 %vm3104_vm7, %v6162_v0  ;;  %vm3212_vm5 = vcmp.eq.s32.totalorder %v8989_v17, %v6379_v11  ;;  %vm3100_vm7 = vcmp.eq.s32.totalorder %v8998_v19, %v6379_v11 }
 0x511   : >> { %5226 = vmatpush.msk.msrb.mxu3 %vm3272_vm10, %v6162_v0  ;;  %5194 = vmatpush.msk.msrb.mxu1 %vm3160_vm12, %v6162_v0  ;;  %vm3268_vm10 = vcmp.eq.s32.totalorder %v9001_v20, %v6379_v11  ;;  %vm3156_vm12 = vcmp.eq.s32.totalorder %v9016_v56, %v6379_v11 }
 0x512   : >> { %5211 = vmatpush.msk.msrb.mxu2 %vm3215_vm9, %v6162_v0  ;;  %5179 = vmatpush.msk.msrb.mxu0 %vm3103_vm11, %v6162_v0  ;;  %vm3211_vm9 = vcmp.eq.s32.totalorder %v8989_v17, %v6376_v10  ;;  %vm3099_vm11 = vcmp.eq.s32.totalorder %v8998_v19, %v6376_v10 }
 0x513   : >> { %5227 = vmatpush.msk.msrb.mxu3 %vm3271_vm14, %v6162_v0  ;;  %5195 = vmatpush.msk.msrb.mxu1 %vm3159_vm0, %v6162_v0  ;;  %vm3267_vm14 = vcmp.eq.s32.totalorder %v9001_v20, %v6376_v10  ;;  %vm3155_vm0 = vcmp.eq.s32.totalorder %v9016_v56, %v6376_v10 }
 0x514   : >> { %5212 = vmatpush.msk.msrb.mxu2 %vm3214_vm13, %v6162_v0  ;;  %5180 = vmatpush.msk.msrb.mxu0 %vm3102_vm15, %v6162_v0  ;;  %vm3210_vm13 = vcmp.eq.s32.totalorder %v8989_v17, %v6373_v9  ;;  %vm3098_vm15 = vcmp.eq.s32.totalorder %v8998_v19, %v6373_v9 }
 0x515   : >> { %5228 = vmatpush.msk.msrb.mxu3 %vm3270_vm2, %v6162_v0  ;;  %5196 = vmatpush.msk.msrb.mxu1 %vm3158_vm4, %v6162_v0  ;;  %vm3266_vm2 = vcmp.eq.s32.totalorder %v9001_v20, %v6373_v9  ;;  %vm3154_vm4 = vcmp.eq.s32.totalorder %v9016_v56, %v6373_v9 }
 0x516   : >> { %5213 = vmatpush.msk.msrb.mxu2 %vm3213_vm1, %v6162_v0  ;;  %5181 = vmatpush.msk.msrb.mxu0 %vm3101_vm3, %v6162_v0  ;;  %vm3209_vm1 = vcmp.eq.s32.totalorder %v8989_v17, %v6370_v8  ;;  %vm3097_vm3 = vcmp.eq.s32.totalorder %v8998_v19, %v6370_v8 }
 0x517   : >> { %5229 = vmatpush.msk.msrb.mxu3 %vm3269_vm6, %v6162_v0  ;;  %5197 = vmatpush.msk.msrb.mxu1 %vm3157_vm8, %v6162_v0  ;;  %vm3265_vm6 = vcmp.eq.s32.totalorder %v9001_v20, %v6370_v8  ;;  %vm3153_vm8 = vcmp.eq.s32.totalorder %v9016_v56, %v6370_v8 }
 0x518   : >> { %5214 = vmatpush.msk.msrb.mxu2 %vm3212_vm5, %v6162_v0  ;;  %5182 = vmatpush.msk.msrb.mxu0 %vm3100_vm7, %v6162_v0  ;;  %vm3208_vm5 = vcmp.eq.s32.totalorder %v8989_v17, %v6367_v7  ;;  %vm3096_vm7 = vcmp.eq.s32.totalorder %v8998_v19, %v6367_v7 }
 0x519   : >> { %5230 = vmatpush.msk.msrb.mxu3 %vm3268_vm10, %v6162_v0  ;;  %5198 = vmatpush.msk.msrb.mxu1 %vm3156_vm12, %v6162_v0  ;;  %vm3264_vm10 = vcmp.eq.s32.totalorder %v9001_v20, %v6367_v7  ;;  %vm3152_vm12 = vcmp.eq.s32.totalorder %v9016_v56, %v6367_v7 }
 0x51a   : >> { %5215 = vmatpush.msk.msrb.mxu2 %vm3211_vm9, %v6162_v0  ;;  %5183 = vmatpush.msk.msrb.mxu0 %vm3099_vm11, %v6162_v0  ;;  %vm3207_vm9 = vcmp.eq.s32.totalorder %v8989_v17, %v6364_v6  ;;  %vm3095_vm11 = vcmp.eq.s32.totalorder %v8998_v19, %v6364_v6 }
 0x51b   : >> { %5231 = vmatpush.msk.msrb.mxu3 %vm3267_vm14, %v6162_v0  ;;  %5199 = vmatpush.msk.msrb.mxu1 %vm3155_vm0, %v6162_v0  ;;  %vm3263_vm14 = vcmp.eq.s32.totalorder %v9001_v20, %v6364_v6  ;;  %vm3151_vm0 = vcmp.eq.s32.totalorder %v9016_v56, %v6364_v6 }
 0x51c   : >> { %5216 = vmatpush.msk.msrb.mxu2 %vm3210_vm13, %v6162_v0  ;;  %5184 = vmatpush.msk.msrb.mxu0 %vm3098_vm15, %v6162_v0  ;;  %vm3206_vm13 = vcmp.eq.s32.totalorder %v8989_v17, %v6361_v5  ;;  %vm3094_vm15 = vcmp.eq.s32.totalorder %v8998_v19, %v6361_v5 }
 0x51d   : >> { %5232 = vmatpush.msk.msrb.mxu3 %vm3266_vm2, %v6162_v0  ;;  %5200 = vmatpush.msk.msrb.mxu1 %vm3154_vm4, %v6162_v0  ;;  %vm3262_vm2 = vcmp.eq.s32.totalorder %v9001_v20, %v6361_v5  ;;  %vm3150_vm4 = vcmp.eq.s32.totalorder %v9016_v56, %v6361_v5 }
 0x51e   : >> { %5217 = vmatpush.msk.msrb.mxu2 %vm3209_vm1, %v6162_v0  ;;  %5185 = vmatpush.msk.msrb.mxu0 %vm3097_vm3, %v6162_v0  ;;  %vm3205_vm1 = vcmp.eq.s32.totalorder %v8989_v17, %v6358_v4  ;;  %vm3093_vm3 = vcmp.eq.s32.totalorder %v8998_v19, %v6358_v4 }
 0x51f   : >> { %5233 = vmatpush.msk.msrb.mxu3 %vm3265_vm6, %v6162_v0  ;;  %5201 = vmatpush.msk.msrb.mxu1 %vm3153_vm8, %v6162_v0  ;;  %vm3261_vm6 = vcmp.eq.s32.totalorder %v9001_v20, %v6358_v4  ;;  %vm3149_vm8 = vcmp.eq.s32.totalorder %v9016_v56, %v6358_v4 }
 0x520   : >> { %5218 = vmatpush.msk.msrb.mxu2 %vm3208_vm5, %v6162_v0  ;;  %5186 = vmatpush.msk.msrb.mxu0 %vm3096_vm7, %v6162_v0  ;;  %vm3204_vm5 = vcmp.eq.s32.totalorder %v8989_v17, %v6355_v3  ;;  %vm3092_vm7 = vcmp.eq.s32.totalorder %v8998_v19, %v6355_v3 }
 0x521   : >> { %5234 = vmatpush.msk.msrb.mxu3 %vm3264_vm10, %v6162_v0  ;;  %5202 = vmatpush.msk.msrb.mxu1 %vm3152_vm12, %v6162_v0  ;;  %vm3260_vm10 = vcmp.eq.s32.totalorder %v9001_v20, %v6355_v3  ;;  %vm3148_vm12 = vcmp.eq.s32.totalorder %v9016_v56, %v6355_v3 }
 0x522   : >> { %5219 = vmatpush.msk.msrb.mxu2 %vm3207_vm9, %v6162_v0  ;;  %5187 = vmatpush.msk.msrb.mxu0 %vm3095_vm11, %v6162_v0  ;;  %vm3203_vm9 = vcmp.eq.s32.totalorder %v8989_v17, %v6352_v2  ;;  %vm3091_vm11 = vcmp.eq.s32.totalorder %v8998_v19, %v6352_v2 }
 0x523   : >> { %5235 = vmatpush.msk.msrb.mxu3 %vm3263_vm14, %v6162_v0  ;;  %3026 = vmatmul.f32.vlgmr.msra.gmra.mxu2 %v2861_v21  ;;  %vm3259_vm14 = vcmp.eq.s32.totalorder %v9001_v20, %v6352_v2 }
 0x524   : >> { %5220 = vmatpush.msk.msrb.mxu2 %vm3206_vm13, %v6162_v0  ;;  %5188 = vmatpush.msk.msrb.mxu0 %vm3094_vm15, %v6162_v0  ;;  %vm3202_vm13 = vcmp.eq.s32.totalorder %v8989_v17, %v6343_v1  ;;  %vm3090_vm15 = vcmp.eq.s32.totalorder %v8998_v19, %v6343_v1 }
 0x525   : >> { %5203 = vmatpush.msk.msrb.mxu1 %vm3151_vm0, %v6162_v0  ;;  %5236 = vmatpush.msk.msrb.mxu3 %vm3262_vm2, %v6162_v0  ;;  %vm3147_vm0 = vcmp.eq.s32.totalorder %v9016_v56, %v6352_v2  ;;  %vm3146_vm2 = vcmp.eq.s32.totalorder %v9016_v56, %v6343_v1 }
 0x526   : >> { %5221 = vmatpush.msk.msrb.mxu2 %vm3205_vm1, %v6162_v0  ;;  %2914 = vmatmul.f32.vlgmr.msra.gmra.mxu0 %v2861_v21  ;;  %vm3258_vm1 = vcmp.eq.s32.totalorder %v9001_v20, %v6343_v1 }
 0x527   : >> { %3082 = vmatmul.f32.vlgmr.msra.gmra.mxu3 %v2861_v21  ;;  %5189 = vmatpush.msk.msrb.mxu0 %vm3093_vm3, %v6162_v0 }
 0x528   : >> { %5204 = vmatpush.msk.msrb.mxu1 %vm3150_vm4, %v6162_v0  ;;  %5222 = vmatpush.msk.msrb.mxu2 %vm3204_vm5, %v6162_v0 }
 0x529   : >> { %5237 = vmatpush.msk.msrb.mxu3 %vm3261_vm6, %v6162_v0  ;;  %2970 = vmatmul.f32.vlgmr.msra.gmra.mxu1 %v2861_v21 }
 0x52a   : >> { %5190 = vmatpush.msk.msrb.mxu0 %vm3092_vm7, %v6162_v0  ;;  %5205 = vmatpush.msk.msrb.mxu1 %vm3149_vm8, %v6162_v0 }
 0x52b   : >> { %5223 = vmatpush.msk.msrb.mxu2 %vm3203_vm9, %v6162_v0  ;;  %5238 = vmatpush.msk.msrb.mxu3 %vm3260_vm10, %v6162_v0 }
 0x52c   : >> { %5191 = vmatpush.msk.msrb.mxu0 %vm3091_vm11, %v6162_v0  ;;  %5206 = vmatpush.msk.msrb.mxu1 %vm3148_vm12, %v6162_v0 }
 0x52d   : >> { %5224 = vmatpush.msk.msrb.mxu2 %vm3202_vm13, %v6162_v0  ;;  %5239 = vmatpush.msk.msrb.mxu3 %vm3259_vm14, %v6162_v0 }
 0x52e   : >> { %3250 = vmatmul.f32.vlgmr.msrb.gmra.mxu2 %v2861_v21  ;;  %5192 = vmatpush.msk.msrb.mxu0 %vm3090_vm15, %v6162_v0 }
 0x52f   : >> { %5207 = vmatpush.msk.msrb.mxu1 %vm3147_vm0, %v6162_v0  ;;  %5240 = vmatpush.msk.msrb.mxu3 %vm3258_vm1, %v6162_v0 }
 0x530   : >> { %3138 = vmatmul.f32.vlgmr.msrb.gmra.mxu0 %v2861_v21  ;;  %3306 = vmatmul.f32.vlgmr.msrb.gmra.mxu3 %v2861_v21 }
 0x531   : >> { %5208 = vmatpush.msk.msrb.mxu1 %vm3146_vm2, %v6162_v0 }
 0x532   : >> { %3194 = vmatmul.f32.vlgmr.msrb.gmra.mxu1 %v2861_v21 }
 0x5a3   : >> { %v2915_v52 = vpop.f32.mrf.mxu0 }
 0x5a4   : >> { %v2919_v23 = vmul.f32 %v2918_v58, %v2915_v52 }
 0x5a6   : >> { %v2920_v25 = vadd.f32 %v6116_v57, %v2919_v23  ;;  %v2971_v37 = vpop.f32.mrf.mxu1  ;;  %v3027_v33 = vpop.f32.mrf.mxu2 }
 0x5a7   : >> { %v2975_v38 = vmul.f32 %v2974_v22, %v2971_v37  ;;  %v3031_v44 = vmul.f32 %v3030_v24, %v3027_v33 }
 0x5a9   : >> { %v2976_v35 = vadd.f32 %v2975_v38, %v2920_v25 }
 0x5aa   : >> { %v3083_v36 = vpop.f32.mrf.mxu3 }
 0x5ab   : >> { %v3032_v41 = vadd.f32 %v3031_v44, %v2976_v35  ;;  %v3087_v34 = vmul.f32 %v3086_v32, %v3083_v36 }
 0x5ad   : >> { %v3088_v62 = vadd.f32 %v3087_v34, %v3032_v41  ;;  %v3139_v43 = vpop.f32.mrf.mxu0 }
 0x5ae   : >> { %v3143_v18 = vmul.f32 %v3142_v39, %v3139_v43 }
 0x5af   : >> { %v3195_v26 = vpop.f32.mrf.mxu1 }
 0x5b0   : >> { %v3144_v42 = vadd.f32 %v3143_v18, %v3088_v62  ;;  %v3199_v47 = vmul.f32 %v3198_v49, %v3195_v26 }
 0x5b1   : >> { %v3251_v29 = vpop.f32.mrf.mxu2 }
 0x5b2   : >> { %v3200_v50 = vadd.f32 %v3199_v47, %v3144_v42  ;;  %v3255_v45 = vmul.f32 %v3254_v46, %v3251_v29 }
 0x5b3   : >> { %v3307_v57 = vpop.f32.mrf.mxu3 }
 0x5b4   : >> { %v3256_v27 = vadd.f32 %v3255_v45, %v3200_v50  ;;  %v3311_v48 = vmul.f32 %v3310_v28, %v3307_v57  ;;  %2857 = sbr.rel (!%p2854_p4) target bundleno = 1255 (0x4e7), region = 214 }
 0x5b6   : >> { %v3312_v60 = vadd.f32 %v3311_v48, %v3256_v27  }
 0x5b8   : >> { %v10207_v57 = vmov %v3312_v60 }
 0x5b9 PF: > { %3313 = vst [vmem:[%s6530_s23 + $0x10] sm:$0xff] %v6124_v60  ;;  %v9243_v51 = vld [vmem:[%s6326_s10 + $0x18] sm:$0xff]  ;;  %s3315_s5 = sld [smem:[#allocation3 + %s6338_s3]]   ;;  %v9250_v54 = vmov 0.0   ;;  %v6124_v60 = vphi %v10206_v60, %v3312_v60  }
 0x5ba   : > { %s9247_s18 = sld [smem:[#allocation3 + %s6346_s11]] }
 0x5c0   : > { %p4385_p1 = scmp.ge.s32.totalorder %s3315_s5, %s9247_s18 }
 0x5c2   : > { %4387 = sbr.rel (%p4385_p1) target bundleno = 1690 (0x69a), region = 219 }
 0x5c7   : > { %v9252_v30 = vmov 0.0  }
 0x5c8 LB: >> { %s5242_s3 = sshll.u32 %s6132_s5, 7  ;;  %v6163_v17 = vmov 1.0   ;;  %s5241_s11 = sshll.u32 %s6132_s5, 3  ;;  %v3383_v52 = vperm.slane %v6474_v53, 0  ;;  %v3439_v23 = vperm.slane %v6474_v53, 1  ;;  %v3495_v25 = vperm.slane %v6474_v53, 2  ;;  %s6132_s5 = sphi %s3315_s5, %s3320_s5   ;;  %v6128_v30 = vphi %v9252_v30, %v10208_v30  }
 0x5c9   : >> { %v3328_v59 = vstv %s5242_s3  ;;  %s3325_s26 = scalar_lea.vmem [#allocation9], %s5241_s11  ;;  %v3551_v44 = vperm.slane %v6474_v53, 3  ;;  %v3607_v41 = vperm.slane %v6474_v53, 4  ;;  %v3663_v62 = vperm.slane %v6474_v53, 5  ;;  %s3320_s5 = sadd.s32 1, %s6132_s5  }
 0x5ca   : >> { %v9264_v55 = vsub.s32 %v9243_v51, %v3328_v59  ;;  %v3326_v58 = vld [vmem:[%s3325_s26] sm:$0xff]  ;;  %v3719_v26 = vperm.slane %v6474_v53, 6  ;;  %v3775_v29 = vperm.slane %v6474_v53, 7  ;;  %p3319_p3 = scmp.ge.s32.totalorder %s3320_s5, %s9247_s18 }
 0x5cc   : >> { %v9267_v61 = vperm.slane %v9264_v55, 2  ;;  %v9270_v63 = vperm.slane %v9264_v55, 0  ;;  %v9273_v40 = vperm.slane %v9264_v55, 3  ;;  %v9276_v0 = vperm.slane %v9264_v55, 1 }
 0x5cd   : >> { %v9441_v19 = vperm.slane %v9264_v55, 6  ;;  %v9450_v20 = vperm.slane %v9264_v55, 4  ;;  %v9453_v56 = vperm.slane %v9264_v55, 7  ;;  %v9468_v21 = vperm.slane %v9264_v55, 5 }
 0x5ce   : >> { %vm3458_vm3 = vcmp.eq.s32.totalorder %v9267_v61, %v6394_v16  ;;  %vm3346_vm4 = vcmp.eq.s32.totalorder %v9270_v63, %v6394_v16  ;;  %vm3457_vm5 = vcmp.eq.s32.totalorder %v9267_v61, %v6391_v15  ;;  %vm3514_vm6 = vcmp.eq.s32.totalorder %v9273_v40, %v6394_v16 }
 0x5cf   : >> { %5275 = vmatpush.msk.msra.mxu2 %vm3458_vm3, %v6163_v17  ;;  %5243 = vmatpush.msk.msra.mxu0 %vm3346_vm4, %v6163_v17  ;;  %vm3345_vm7 = vcmp.eq.s32.totalorder %v9270_v63, %v6391_v15  ;;  %vm3402_vm8 = vcmp.eq.s32.totalorder %v9276_v0, %v6394_v16  ;;  %vm3456_vm9 = vcmp.eq.s32.totalorder %v9267_v61, %v6388_v14 }
 0x5d0   : >> { %5291 = vmatpush.msk.msra.mxu3 %vm3514_vm6, %v6163_v17  ;;  %5259 = vmatpush.msk.msra.mxu1 %vm3402_vm8, %v6163_v17  ;;  %vm3513_vm10 = vcmp.eq.s32.totalorder %v9273_v40, %v6391_v15  ;;  %vm3344_vm11 = vcmp.eq.s32.totalorder %v9270_v63, %v6388_v14  ;;  %vm3401_vm12 = vcmp.eq.s32.totalorder %v9276_v0, %v6391_v15 }
 0x5d1   : >> { %5276 = vmatpush.msk.msra.mxu2 %vm3457_vm5, %v6163_v17  ;;  %5244 = vmatpush.msk.msra.mxu0 %vm3345_vm7, %v6163_v17  ;;  %vm3512_vm13 = vcmp.eq.s32.totalorder %v9273_v40, %v6388_v14  ;;  %vm3455_vm14 = vcmp.eq.s32.totalorder %v9267_v61, %v6385_v13  ;;  %vm3343_vm15 = vcmp.eq.s32.totalorder %v9270_v63, %v6385_v13 }
 0x5d2   : >> { %5292 = vmatpush.msk.msra.mxu3 %vm3513_vm10, %v6163_v17  ;;  %5260 = vmatpush.msk.msra.mxu1 %vm3401_vm12, %v6163_v17  ;;  %vm3400_vm0 = vcmp.eq.s32.totalorder %v9276_v0, %v6388_v14  ;;  %vm3511_vm1 = vcmp.eq.s32.totalorder %v9273_v40, %v6385_v13  ;;  %vm3399_vm2 = vcmp.eq.s32.totalorder %v9276_v0, %v6385_v13 }
 0x5d3   : >> { %5277 = vmatpush.msk.msra.mxu2 %vm3456_vm9, %v6163_v17  ;;  %5245 = vmatpush.msk.msra.mxu0 %vm3344_vm11, %v6163_v17  ;;  %vm3454_vm3 = vcmp.eq.s32.totalorder %v9267_v61, %v6382_v12  ;;  %vm3342_vm4 = vcmp.eq.s32.totalorder %v9270_v63, %v6382_v12  ;;  %vm3510_vm5 = vcmp.eq.s32.totalorder %v9273_v40, %v6382_v12 }
 0x5d4   : >> { %5293 = vmatpush.msk.msra.mxu3 %vm3512_vm13, %v6163_v17  ;;  %5261 = vmatpush.msk.msra.mxu1 %vm3400_vm0, %v6163_v17  ;;  %vm3398_vm6 = vcmp.eq.s32.totalorder %v9276_v0, %v6382_v12  ;;  %vm3453_vm7 = vcmp.eq.s32.totalorder %v9267_v61, %v6379_v11  ;;  %vm3341_vm8 = vcmp.eq.s32.totalorder %v9270_v63, %v6379_v11 }
 0x5d5   : >> { %5278 = vmatpush.msk.msra.mxu2 %vm3455_vm14, %v6163_v17  ;;  %5246 = vmatpush.msk.msra.mxu0 %vm3343_vm15, %v6163_v17  ;;  %vm3509_vm9 = vcmp.eq.s32.totalorder %v9273_v40, %v6379_v11  ;;  %vm3397_vm10 = vcmp.eq.s32.totalorder %v9276_v0, %v6379_v11  ;;  %vm3452_vm11 = vcmp.eq.s32.totalorder %v9267_v61, %v6376_v10 }
 0x5d6   : >> { %5294 = vmatpush.msk.msra.mxu3 %vm3511_vm1, %v6163_v17  ;;  %5262 = vmatpush.msk.msra.mxu1 %vm3399_vm2, %v6163_v17  ;;  %vm3340_vm12 = vcmp.eq.s32.totalorder %v9270_v63, %v6376_v10  ;;  %vm3508_vm13 = vcmp.eq.s32.totalorder %v9273_v40, %v6376_v10  ;;  %vm3396_vm14 = vcmp.eq.s32.totalorder %v9276_v0, %v6376_v10 }
 0x5d7   : >> { %5279 = vmatpush.msk.msra.mxu2 %vm3454_vm3, %v6163_v17  ;;  %5247 = vmatpush.msk.msra.mxu0 %vm3342_vm4, %v6163_v17  ;;  %vm3451_vm15 = vcmp.eq.s32.totalorder %v9267_v61, %v6373_v9  ;;  %vm3339_vm0 = vcmp.eq.s32.totalorder %v9270_v63, %v6373_v9  ;;  %vm3507_vm1 = vcmp.eq.s32.totalorder %v9273_v40, %v6373_v9 }
 0x5d8   : >> { %5295 = vmatpush.msk.msra.mxu3 %vm3510_vm5, %v6163_v17  ;;  %5263 = vmatpush.msk.msra.mxu1 %vm3398_vm6, %v6163_v17  ;;  %vm3395_vm2 = vcmp.eq.s32.totalorder %v9276_v0, %v6373_v9  ;;  %vm3450_vm3 = vcmp.eq.s32.totalorder %v9267_v61, %v6370_v8  ;;  %vm3338_vm4 = vcmp.eq.s32.totalorder %v9270_v63, %v6370_v8 }
 0x5d9   : >> { %5280 = vmatpush.msk.msra.mxu2 %vm3453_vm7, %v6163_v17  ;;  %5248 = vmatpush.msk.msra.mxu0 %vm3341_vm8, %v6163_v17  ;;  %vm3506_vm5 = vcmp.eq.s32.totalorder %v9273_v40, %v6370_v8  ;;  %vm3394_vm6 = vcmp.eq.s32.totalorder %v9276_v0, %v6370_v8  ;;  %vm3449_vm7 = vcmp.eq.s32.totalorder %v9267_v61, %v6367_v7 }
 0x5da   : >> { %5296 = vmatpush.msk.msra.mxu3 %vm3509_vm9, %v6163_v17  ;;  %5264 = vmatpush.msk.msra.mxu1 %vm3397_vm10, %v6163_v17  ;;  %vm3337_vm8 = vcmp.eq.s32.totalorder %v9270_v63, %v6367_v7  ;;  %vm3505_vm9 = vcmp.eq.s32.totalorder %v9273_v40, %v6367_v7  ;;  %vm3393_vm10 = vcmp.eq.s32.totalorder %v9276_v0, %v6367_v7 }
 0x5db   : >> { %5281 = vmatpush.msk.msra.mxu2 %vm3452_vm11, %v6163_v17  ;;  %5249 = vmatpush.msk.msra.mxu0 %vm3340_vm12, %v6163_v17  ;;  %vm3448_vm11 = vcmp.eq.s32.totalorder %v9267_v61, %v6364_v6  ;;  %vm3336_vm12 = vcmp.eq.s32.totalorder %v9270_v63, %v6364_v6 }
 0x5dc   : >> { %5297 = vmatpush.msk.msra.mxu3 %vm3508_vm13, %v6163_v17  ;;  %5265 = vmatpush.msk.msra.mxu1 %vm3396_vm14, %v6163_v17  ;;  %vm3504_vm13 = vcmp.eq.s32.totalorder %v9273_v40, %v6364_v6  ;;  %vm3392_vm14 = vcmp.eq.s32.totalorder %v9276_v0, %v6364_v6 }
 0x5dd   : >> { %5282 = vmatpush.msk.msra.mxu2 %vm3451_vm15, %v6163_v17  ;;  %5250 = vmatpush.msk.msra.mxu0 %vm3339_vm0, %v6163_v17  ;;  %vm3447_vm15 = vcmp.eq.s32.totalorder %v9267_v61, %v6361_v5  ;;  %vm3335_vm0 = vcmp.eq.s32.totalorder %v9270_v63, %v6361_v5 }
 0x5de   : >> { %5298 = vmatpush.msk.msra.mxu3 %vm3507_vm1, %v6163_v17  ;;  %5266 = vmatpush.msk.msra.mxu1 %vm3395_vm2, %v6163_v17  ;;  %vm3503_vm1 = vcmp.eq.s32.totalorder %v9273_v40, %v6361_v5  ;;  %vm3391_vm2 = vcmp.eq.s32.totalorder %v9276_v0, %v6361_v5 }
 0x5df   : >> { %5283 = vmatpush.msk.msra.mxu2 %vm3450_vm3, %v6163_v17  ;;  %5251 = vmatpush.msk.msra.mxu0 %vm3338_vm4, %v6163_v17  ;;  %vm3446_vm3 = vcmp.eq.s32.totalorder %v9267_v61, %v6358_v4  ;;  %vm3334_vm4 = vcmp.eq.s32.totalorder %v9270_v63, %v6358_v4 }
 0x5e0   : >> { %5299 = vmatpush.msk.msra.mxu3 %vm3506_vm5, %v6163_v17  ;;  %5267 = vmatpush.msk.msra.mxu1 %vm3394_vm6, %v6163_v17  ;;  %vm3502_vm5 = vcmp.eq.s32.totalorder %v9273_v40, %v6358_v4  ;;  %vm3390_vm6 = vcmp.eq.s32.totalorder %v9276_v0, %v6358_v4 }
 0x5e1   : >> { %5284 = vmatpush.msk.msra.mxu2 %vm3449_vm7, %v6163_v17  ;;  %5252 = vmatpush.msk.msra.mxu0 %vm3337_vm8, %v6163_v17  ;;  %vm3445_vm7 = vcmp.eq.s32.totalorder %v9267_v61, %v6355_v3  ;;  %vm3333_vm8 = vcmp.eq.s32.totalorder %v9270_v63, %v6355_v3 }
 0x5e2   : >> { %5300 = vmatpush.msk.msra.mxu3 %vm3505_vm9, %v6163_v17  ;;  %5268 = vmatpush.msk.msra.mxu1 %vm3393_vm10, %v6163_v17  ;;  %vm3501_vm9 = vcmp.eq.s32.totalorder %v9273_v40, %v6355_v3  ;;  %vm3389_vm10 = vcmp.eq.s32.totalorder %v9276_v0, %v6355_v3 }
 0x5e3   : >> { %5285 = vmatpush.msk.msra.mxu2 %vm3448_vm11, %v6163_v17  ;;  %5253 = vmatpush.msk.msra.mxu0 %vm3336_vm12, %v6163_v17  ;;  %vm3444_vm11 = vcmp.eq.s32.totalorder %v9267_v61, %v6352_v2  ;;  %vm3332_vm12 = vcmp.eq.s32.totalorder %v9270_v63, %v6352_v2 }
 0x5e4   : >> { %5301 = vmatpush.msk.msra.mxu3 %vm3504_vm13, %v6163_v17  ;;  %5269 = vmatpush.msk.msra.mxu1 %vm3392_vm14, %v6163_v17  ;;  %vm3500_vm13 = vcmp.eq.s32.totalorder %v9273_v40, %v6352_v2  ;;  %vm3388_vm14 = vcmp.eq.s32.totalorder %v9276_v0, %v6352_v2 }
 0x5e5   : >> { %5286 = vmatpush.msk.msra.mxu2 %vm3447_vm15, %v6163_v17  ;;  %5254 = vmatpush.msk.msra.mxu0 %vm3335_vm0, %v6163_v17  ;;  %vm3443_vm15 = vcmp.eq.s32.totalorder %v9267_v61, %v6343_v1  ;;  %vm3331_vm0 = vcmp.eq.s32.totalorder %v9270_v63, %v6343_v1 }
 0x5e6   : >> { %5302 = vmatpush.msk.msra.mxu3 %vm3503_vm1, %v6163_v17  ;;  %5270 = vmatpush.msk.msra.mxu1 %vm3391_vm2, %v6163_v17  ;;  %vm3682_vm1 = vcmp.eq.s32.totalorder %v9441_v19, %v6394_v16  ;;  %vm3499_vm2 = vcmp.eq.s32.totalorder %v9273_v40, %v6343_v1 }
 0x5e7   : >> { %5287 = vmatpush.msk.msra.mxu2 %vm3446_vm3, %v6163_v17  ;;  %5255 = vmatpush.msk.msra.mxu0 %vm3334_vm4, %v6163_v17  ;;  %vm3570_vm3 = vcmp.eq.s32.totalorder %v9450_v20, %v6394_v16  ;;  %vm3738_vm4 = vcmp.eq.s32.totalorder %v9453_v56, %v6394_v16 }
 0x5e8   : >> { %5303 = vmatpush.msk.msra.mxu3 %vm3502_vm5, %v6163_v17  ;;  %5271 = vmatpush.msk.msra.mxu1 %vm3390_vm6, %v6163_v17  ;;  %vm3681_vm5 = vcmp.eq.s32.totalorder %v9441_v19, %v6391_v15  ;;  %vm3387_vm6 = vcmp.eq.s32.totalorder %v9276_v0, %v6343_v1 }
 0x5e9   : >> { %5288 = vmatpush.msk.msra.mxu2 %vm3445_vm7, %v6163_v17  ;;  %5256 = vmatpush.msk.msra.mxu0 %vm3333_vm8, %v6163_v17  ;;  %vm3569_vm7 = vcmp.eq.s32.totalorder %v9450_v20, %v6391_v15  ;;  %vm3626_vm8 = vcmp.eq.s32.totalorder %v9468_v21, %v6394_v16 }
 0x5ea   : >> { %5304 = vmatpush.msk.msra.mxu3 %vm3501_vm9, %v6163_v17  ;;  %5272 = vmatpush.msk.msra.mxu1 %vm3389_vm10, %v6163_v17  ;;  %vm3680_vm9 = vcmp.eq.s32.totalorder %v9441_v19, %v6388_v14  ;;  %vm3737_vm10 = vcmp.eq.s32.totalorder %v9453_v56, %v6391_v15 }
 0x5eb   : >> { %5289 = vmatpush.msk.msra.mxu2 %vm3444_vm11, %v6163_v17  ;;  %5257 = vmatpush.msk.msra.mxu0 %vm3332_vm12, %v6163_v17  ;;  %vm3568_vm11 = vcmp.eq.s32.totalorder %v9450_v20, %v6388_v14  ;;  %vm3625_vm12 = vcmp.eq.s32.totalorder %v9468_v21, %v6391_v15 }
 0x5ec   : >> { %5305 = vmatpush.msk.msra.mxu3 %vm3500_vm13, %v6163_v17  ;;  %5273 = vmatpush.msk.msra.mxu1 %vm3388_vm14, %v6163_v17  ;;  %vm3679_vm13 = vcmp.eq.s32.totalorder %v9441_v19, %v6385_v13  ;;  %vm3736_vm14 = vcmp.eq.s32.totalorder %v9453_v56, %v6388_v14 }
 0x5ed   : >> { %5290 = vmatpush.msk.msra.mxu2 %vm3443_vm15, %v6163_v17  ;;  %5258 = vmatpush.msk.msra.mxu0 %vm3331_vm0, %v6163_v17  ;;  %vm3567_vm15 = vcmp.eq.s32.totalorder %v9450_v20, %v6385_v13  ;;  %vm3624_vm0 = vcmp.eq.s32.totalorder %v9468_v21, %v6388_v14 }
 0x5ee   : >> { %5306 = vmatpush.msk.msra.mxu3 %vm3499_vm2, %v6163_v17  ;;  %5274 = vmatpush.msk.msra.mxu1 %vm3387_vm6, %v6163_v17  ;;  %vm3735_vm2 = vcmp.eq.s32.totalorder %v9453_v56, %v6385_v13  ;;  %vm3734_vm6 = vcmp.eq.s32.totalorder %v9453_v56, %v6382_v12 }
 0x5ef   : >> { %5339 = vmatpush.msk.msrb.mxu2 %vm3682_vm1, %v6163_v17  ;;  %5307 = vmatpush.msk.msrb.mxu0 %vm3570_vm3, %v6163_v17  ;;  %vm3678_vm1 = vcmp.eq.s32.totalorder %v9441_v19, %v6382_v12  ;;  %vm3566_vm3 = vcmp.eq.s32.totalorder %v9450_v20, %v6382_v12 }
 0x5f0   : >> { %5355 = vmatpush.msk.msrb.mxu3 %vm3738_vm4, %v6163_v17  ;;  %5323 = vmatpush.msk.msrb.mxu1 %vm3626_vm8, %v6163_v17  ;;  %vm3623_vm4 = vcmp.eq.s32.totalorder %v9468_v21, %v6385_v13  ;;  %vm3622_vm8 = vcmp.eq.s32.totalorder %v9468_v21, %v6382_v12 }
 0x5f1   : >> { %5340 = vmatpush.msk.msrb.mxu2 %vm3681_vm5, %v6163_v17  ;;  %5308 = vmatpush.msk.msrb.mxu0 %vm3569_vm7, %v6163_v17  ;;  %vm3677_vm5 = vcmp.eq.s32.totalorder %v9441_v19, %v6379_v11  ;;  %vm3565_vm7 = vcmp.eq.s32.totalorder %v9450_v20, %v6379_v11 }
 0x5f2   : >> { %5356 = vmatpush.msk.msrb.mxu3 %vm3737_vm10, %v6163_v17  ;;  %5324 = vmatpush.msk.msrb.mxu1 %vm3625_vm12, %v6163_v17  ;;  %vm3733_vm10 = vcmp.eq.s32.totalorder %v9453_v56, %v6379_v11  ;;  %vm3621_vm12 = vcmp.eq.s32.totalorder %v9468_v21, %v6379_v11 }
 0x5f3   : >> { %5341 = vmatpush.msk.msrb.mxu2 %vm3680_vm9, %v6163_v17  ;;  %5309 = vmatpush.msk.msrb.mxu0 %vm3568_vm11, %v6163_v17  ;;  %vm3676_vm9 = vcmp.eq.s32.totalorder %v9441_v19, %v6376_v10  ;;  %vm3564_vm11 = vcmp.eq.s32.totalorder %v9450_v20, %v6376_v10 }
 0x5f4   : >> { %5357 = vmatpush.msk.msrb.mxu3 %vm3736_vm14, %v6163_v17  ;;  %5325 = vmatpush.msk.msrb.mxu1 %vm3624_vm0, %v6163_v17  ;;  %vm3732_vm14 = vcmp.eq.s32.totalorder %v9453_v56, %v6376_v10  ;;  %vm3620_vm0 = vcmp.eq.s32.totalorder %v9468_v21, %v6376_v10 }
 0x5f5   : >> { %5342 = vmatpush.msk.msrb.mxu2 %vm3679_vm13, %v6163_v17  ;;  %5310 = vmatpush.msk.msrb.mxu0 %vm3567_vm15, %v6163_v17  ;;  %vm3675_vm13 = vcmp.eq.s32.totalorder %v9441_v19, %v6373_v9  ;;  %vm3563_vm15 = vcmp.eq.s32.totalorder %v9450_v20, %v6373_v9 }
 0x5f6   : >> { %5358 = vmatpush.msk.msrb.mxu3 %vm3735_vm2, %v6163_v17  ;;  %5326 = vmatpush.msk.msrb.mxu1 %vm3623_vm4, %v6163_v17  ;;  %vm3731_vm2 = vcmp.eq.s32.totalorder %v9453_v56, %v6373_v9  ;;  %vm3619_vm4 = vcmp.eq.s32.totalorder %v9468_v21, %v6373_v9 }
 0x5f7   : >> { %5343 = vmatpush.msk.msrb.mxu2 %vm3678_vm1, %v6163_v17  ;;  %5311 = vmatpush.msk.msrb.mxu0 %vm3566_vm3, %v6163_v17  ;;  %vm3674_vm1 = vcmp.eq.s32.totalorder %v9441_v19, %v6370_v8  ;;  %vm3562_vm3 = vcmp.eq.s32.totalorder %v9450_v20, %v6370_v8 }
 0x5f8   : >> { %5359 = vmatpush.msk.msrb.mxu3 %vm3734_vm6, %v6163_v17  ;;  %5327 = vmatpush.msk.msrb.mxu1 %vm3622_vm8, %v6163_v17  ;;  %vm3730_vm6 = vcmp.eq.s32.totalorder %v9453_v56, %v6370_v8  ;;  %vm3618_vm8 = vcmp.eq.s32.totalorder %v9468_v21, %v6370_v8 }
 0x5f9   : >> { %5344 = vmatpush.msk.msrb.mxu2 %vm3677_vm5, %v6163_v17  ;;  %5312 = vmatpush.msk.msrb.mxu0 %vm3565_vm7, %v6163_v17  ;;  %vm3673_vm5 = vcmp.eq.s32.totalorder %v9441_v19, %v6367_v7  ;;  %vm3561_vm7 = vcmp.eq.s32.totalorder %v9450_v20, %v6367_v7 }
 0x5fa   : >> { %5360 = vmatpush.msk.msrb.mxu3 %vm3733_vm10, %v6163_v17  ;;  %5328 = vmatpush.msk.msrb.mxu1 %vm3621_vm12, %v6163_v17  ;;  %vm3729_vm10 = vcmp.eq.s32.totalorder %v9453_v56, %v6367_v7  ;;  %vm3617_vm12 = vcmp.eq.s32.totalorder %v9468_v21, %v6367_v7 }
 0x5fb   : >> { %5345 = vmatpush.msk.msrb.mxu2 %vm3676_vm9, %v6163_v17  ;;  %5313 = vmatpush.msk.msrb.mxu0 %vm3564_vm11, %v6163_v17  ;;  %vm3672_vm9 = vcmp.eq.s32.totalorder %v9441_v19, %v6364_v6  ;;  %vm3560_vm11 = vcmp.eq.s32.totalorder %v9450_v20, %v6364_v6 }
 0x5fc   : >> { %5361 = vmatpush.msk.msrb.mxu3 %vm3732_vm14, %v6163_v17  ;;  %5329 = vmatpush.msk.msrb.mxu1 %vm3620_vm0, %v6163_v17  ;;  %vm3728_vm14 = vcmp.eq.s32.totalorder %v9453_v56, %v6364_v6  ;;  %vm3616_vm0 = vcmp.eq.s32.totalorder %v9468_v21, %v6364_v6 }
 0x5fd   : >> { %5346 = vmatpush.msk.msrb.mxu2 %vm3675_vm13, %v6163_v17  ;;  %5314 = vmatpush.msk.msrb.mxu0 %vm3563_vm15, %v6163_v17  ;;  %vm3671_vm13 = vcmp.eq.s32.totalorder %v9441_v19, %v6361_v5  ;;  %vm3559_vm15 = vcmp.eq.s32.totalorder %v9450_v20, %v6361_v5 }
 0x5fe   : >> { %5362 = vmatpush.msk.msrb.mxu3 %vm3731_vm2, %v6163_v17  ;;  %5330 = vmatpush.msk.msrb.mxu1 %vm3619_vm4, %v6163_v17  ;;  %vm3727_vm2 = vcmp.eq.s32.totalorder %v9453_v56, %v6361_v5  ;;  %vm3615_vm4 = vcmp.eq.s32.totalorder %v9468_v21, %v6361_v5 }
 0x5ff   : >> { %5347 = vmatpush.msk.msrb.mxu2 %vm3674_vm1, %v6163_v17  ;;  %5315 = vmatpush.msk.msrb.mxu0 %vm3562_vm3, %v6163_v17  ;;  %vm3670_vm1 = vcmp.eq.s32.totalorder %v9441_v19, %v6358_v4  ;;  %vm3558_vm3 = vcmp.eq.s32.totalorder %v9450_v20, %v6358_v4 }
 0x600   : >> { %5363 = vmatpush.msk.msrb.mxu3 %vm3730_vm6, %v6163_v17  ;;  %5331 = vmatpush.msk.msrb.mxu1 %vm3618_vm8, %v6163_v17  ;;  %vm3726_vm6 = vcmp.eq.s32.totalorder %v9453_v56, %v6358_v4  ;;  %vm3614_vm8 = vcmp.eq.s32.totalorder %v9468_v21, %v6358_v4 }
 0x601   : >> { %5348 = vmatpush.msk.msrb.mxu2 %vm3673_vm5, %v6163_v17  ;;  %5316 = vmatpush.msk.msrb.mxu0 %vm3561_vm7, %v6163_v17  ;;  %vm3669_vm5 = vcmp.eq.s32.totalorder %v9441_v19, %v6355_v3  ;;  %vm3557_vm7 = vcmp.eq.s32.totalorder %v9450_v20, %v6355_v3 }
 0x602   : >> { %5364 = vmatpush.msk.msrb.mxu3 %vm3729_vm10, %v6163_v17  ;;  %5332 = vmatpush.msk.msrb.mxu1 %vm3617_vm12, %v6163_v17  ;;  %vm3725_vm10 = vcmp.eq.s32.totalorder %v9453_v56, %v6355_v3  ;;  %vm3613_vm12 = vcmp.eq.s32.totalorder %v9468_v21, %v6355_v3 }
 0x603   : >> { %5349 = vmatpush.msk.msrb.mxu2 %vm3672_vm9, %v6163_v17  ;;  %5317 = vmatpush.msk.msrb.mxu0 %vm3560_vm11, %v6163_v17  ;;  %vm3668_vm9 = vcmp.eq.s32.totalorder %v9441_v19, %v6352_v2  ;;  %vm3556_vm11 = vcmp.eq.s32.totalorder %v9450_v20, %v6352_v2 }
 0x604   : >> { %5365 = vmatpush.msk.msrb.mxu3 %vm3728_vm14, %v6163_v17  ;;  %3491 = vmatmul.f32.vlgmr.msra.gmra.mxu2 %v3326_v58  ;;  %vm3724_vm14 = vcmp.eq.s32.totalorder %v9453_v56, %v6352_v2 }
 0x605   : >> { %5350 = vmatpush.msk.msrb.mxu2 %vm3671_vm13, %v6163_v17  ;;  %5318 = vmatpush.msk.msrb.mxu0 %vm3559_vm15, %v6163_v17  ;;  %vm3667_vm13 = vcmp.eq.s32.totalorder %v9441_v19, %v6343_v1  ;;  %vm3555_vm15 = vcmp.eq.s32.totalorder %v9450_v20, %v6343_v1 }
 0x606   : >> { %5333 = vmatpush.msk.msrb.mxu1 %vm3616_vm0, %v6163_v17  ;;  %5366 = vmatpush.msk.msrb.mxu3 %vm3727_vm2, %v6163_v17  ;;  %vm3612_vm0 = vcmp.eq.s32.totalorder %v9468_v21, %v6352_v2  ;;  %vm3611_vm2 = vcmp.eq.s32.totalorder %v9468_v21, %v6343_v1 }
 0x607   : >> { %5351 = vmatpush.msk.msrb.mxu2 %vm3670_vm1, %v6163_v17  ;;  %3379 = vmatmul.f32.vlgmr.msra.gmra.mxu0 %v3326_v58  ;;  %vm3723_vm1 = vcmp.eq.s32.totalorder %v9453_v56, %v6343_v1 }
 0x608   : >> { %3547 = vmatmul.f32.vlgmr.msra.gmra.mxu3 %v3326_v58  ;;  %5319 = vmatpush.msk.msrb.mxu0 %vm3558_vm3, %v6163_v17 }
 0x609   : >> { %5334 = vmatpush.msk.msrb.mxu1 %vm3615_vm4, %v6163_v17  ;;  %5352 = vmatpush.msk.msrb.mxu2 %vm3669_vm5, %v6163_v17 }
 0x60a   : >> { %5367 = vmatpush.msk.msrb.mxu3 %vm3726_vm6, %v6163_v17  ;;  %3435 = vmatmul.f32.vlgmr.msra.gmra.mxu1 %v3326_v58 }
 0x60b   : >> { %5320 = vmatpush.msk.msrb.mxu0 %vm3557_vm7, %v6163_v17  ;;  %5335 = vmatpush.msk.msrb.mxu1 %vm3614_vm8, %v6163_v17 }
 0x60c   : >> { %5353 = vmatpush.msk.msrb.mxu2 %vm3668_vm9, %v6163_v17  ;;  %5368 = vmatpush.msk.msrb.mxu3 %vm3725_vm10, %v6163_v17 }
 0x60d   : >> { %5321 = vmatpush.msk.msrb.mxu0 %vm3556_vm11, %v6163_v17  ;;  %5336 = vmatpush.msk.msrb.mxu1 %vm3613_vm12, %v6163_v17 }
 0x60e   : >> { %5354 = vmatpush.msk.msrb.mxu2 %vm3667_vm13, %v6163_v17  ;;  %5369 = vmatpush.msk.msrb.mxu3 %vm3724_vm14, %v6163_v17 }
 0x60f   : >> { %3715 = vmatmul.f32.vlgmr.msrb.gmra.mxu2 %v3326_v58  ;;  %5322 = vmatpush.msk.msrb.mxu0 %vm3555_vm15, %v6163_v17 }
 0x610   : >> { %5337 = vmatpush.msk.msrb.mxu1 %vm3612_vm0, %v6163_v17  ;;  %5370 = vmatpush.msk.msrb.mxu3 %vm3723_vm1, %v6163_v17 }
 0x611   : >> { %3603 = vmatmul.f32.vlgmr.msrb.gmra.mxu0 %v3326_v58  ;;  %3771 = vmatmul.f32.vlgmr.msrb.gmra.mxu3 %v3326_v58 }
 0x612   : >> { %5338 = vmatpush.msk.msrb.mxu1 %vm3611_vm2, %v6163_v17 }
 0x613   : >> { %3659 = vmatmul.f32.vlgmr.msrb.gmra.mxu1 %v3326_v58 }
 0x684   : >> { %v3380_v22 = vpop.f32.mrf.mxu0 }
 0x685   : >> { %v3384_v24 = vmul.f32 %v3383_v52, %v3380_v22 }
 0x687   : >> { %v3385_v37 = vadd.f32 %v6128_v30, %v3384_v24  ;;  %v3436_v38 = vpop.f32.mrf.mxu1  ;;  %v3492_v32 = vpop.f32.mrf.mxu2 }
 0x688   : >> { %v3440_v33 = vmul.f32 %v3439_v23, %v3436_v38  ;;  %v3496_v35 = vmul.f32 %v3495_v25, %v3492_v32 }
 0x68a   : >> { %v3441_v36 = vadd.f32 %v3440_v33, %v3385_v37 }
 0x68b   : >> { %v3548_v39 = vpop.f32.mrf.mxu3 }
 0x68c   : >> { %v3497_v34 = vadd.f32 %v3496_v35, %v3441_v36  ;;  %v3552_v49 = vmul.f32 %v3551_v44, %v3548_v39 }
 0x68e   : >> { %v3553_v43 = vadd.f32 %v3552_v49, %v3497_v34  ;;  %v3604_v18 = vpop.f32.mrf.mxu0 }
 0x68f   : >> { %v3608_v46 = vmul.f32 %v3607_v41, %v3604_v18 }
 0x690   : >> { %v3660_v42 = vpop.f32.mrf.mxu1 }
 0x691   : >> { %v3609_v47 = vadd.f32 %v3608_v46, %v3553_v43  ;;  %v3664_v28 = vmul.f32 %v3663_v62, %v3660_v42 }
 0x692   : >> { %v3716_v50 = vpop.f32.mrf.mxu2 }
 0x693   : >> { %v3665_v45 = vadd.f32 %v3664_v28, %v3609_v47  ;;  %v3720_v57 = vmul.f32 %v3719_v26, %v3716_v50 }
 0x694   : >> { %v3772_v27 = vpop.f32.mrf.mxu3 }
 0x695   : >> { %v3721_v48 = vadd.f32 %v3720_v57, %v3665_v45  ;;  %v3776_v60 = vmul.f32 %v3775_v29, %v3772_v27  ;;  %3322 = sbr.rel (!%p3319_p3) target bundleno = 1480 (0x5c8), region = 225 }
 0x697   : >> { %v3777_v54 = vadd.f32 %v3776_v60, %v3721_v48  }
 0x699   : >> { %v10208_v30 = vmov %v3777_v54 }
 0x69a PF: > { %v9694_v30 = vld [vmem:[%s6326_s10 + $0x38] sm:$0xff]  ;;  %s3779_s28 = sld [smem:[#allocation3 + %s6982_s0]]   ;;  %v10209_v59 = vmov %v6136_v54  ;;  %v6136_v54 = vphi %v9250_v54, %v3777_v54  }
 0x69b   : > { %s9698_s7 = sld [smem:[#allocation3 + %s6985_s13]] }
 0x6a1   : > { %p4393_p13 = scmp.ge.s32.totalorder %s3779_s28, %s9698_s7 }
 0x6a3   : > { %4395 = sbr.rel (%p4393_p13) target bundleno = 1914 (0x77a), region = 230 }
 0x6a8 LB: >> { %s5373_s10 = sshll.u32 %s6144_s28, 7  ;;  %v6164_v0 = vmov 1.0   ;;  %s5372_s0 = sshll.u32 %s6144_s28, 3  ;;  %v3847_v58 = vperm.slane %v6526_v31, 0  ;;  %v3903_v22 = vperm.slane %v6526_v31, 1  ;;  %v3959_v24 = vperm.slane %v6526_v31, 2  ;;  %s6144_s28 = sphi %s3779_s28, %s3784_s28   ;;  %v6140_v54 = vphi %v6136_v54, %v10210_v54  }
 0x6a9   : >> { %v3792_v53 = vstv %s5373_s10  ;;  %s3789_s13 = scalar_lea.vmem [#allocation9], %s5372_s0  ;;  %v4015_v32 = vperm.slane %v6526_v31, 3  ;;  %v4071_v39 = vperm.slane %v6526_v31, 4  ;;  %v4127_v49 = vperm.slane %v6526_v31, 5  ;;  %s3784_s28 = sadd.s32 1, %s6144_s28  }
 0x6aa   : >> { %v9715_v51 = vsub.s32 %v9694_v30, %v3792_v53  ;;  %v3790_v21 = vld [vmem:[%s3789_s13] sm:$0xff]  ;;  %v4183_v46 = vperm.slane %v6526_v31, 6  ;;  %v4239_v28 = vperm.slane %v6526_v31, 7  ;;  %p3783_p7 = scmp.ge.s32.totalorder %s3784_s28, %s9698_s7 }
 0x6ac   : >> { %v9718_v55 = vperm.slane %v9715_v51, 2  ;;  %v9721_v61 = vperm.slane %v9715_v51, 0  ;;  %v9724_v63 = vperm.slane %v9715_v51, 3  ;;  %v9727_v40 = vperm.slane %v9715_v51, 1 }
 0x6ad   : >> { %v9892_v17 = vperm.slane %v9715_v51, 6  ;;  %v9901_v19 = vperm.slane %v9715_v51, 4  ;;  %v9904_v20 = vperm.slane %v9715_v51, 7  ;;  %v9919_v56 = vperm.slane %v9715_v51, 5 }
 0x6ae   : >> { %vm3922_vm3 = vcmp.eq.s32.totalorder %v9718_v55, %v6394_v16  ;;  %vm3810_vm4 = vcmp.eq.s32.totalorder %v9721_v61, %v6394_v16  ;;  %vm3921_vm5 = vcmp.eq.s32.totalorder %v9718_v55, %v6391_v15  ;;  %vm3978_vm6 = vcmp.eq.s32.totalorder %v9724_v63, %v6394_v16 }
 0x6af   : >> { %5406 = vmatpush.msk.msra.mxu2 %vm3922_vm3, %v6164_v0  ;;  %5374 = vmatpush.msk.msra.mxu0 %vm3810_vm4, %v6164_v0  ;;  %vm3809_vm7 = vcmp.eq.s32.totalorder %v9721_v61, %v6391_v15  ;;  %vm3866_vm8 = vcmp.eq.s32.totalorder %v9727_v40, %v6394_v16  ;;  %vm3920_vm9 = vcmp.eq.s32.totalorder %v9718_v55, %v6388_v14 }
 0x6b0   : >> { %5422 = vmatpush.msk.msra.mxu3 %vm3978_vm6, %v6164_v0  ;;  %5390 = vmatpush.msk.msra.mxu1 %vm3866_vm8, %v6164_v0  ;;  %vm3977_vm10 = vcmp.eq.s32.totalorder %v9724_v63, %v6391_v15  ;;  %vm3808_vm11 = vcmp.eq.s32.totalorder %v9721_v61, %v6388_v14  ;;  %vm3865_vm12 = vcmp.eq.s32.totalorder %v9727_v40, %v6391_v15 }
 0x6b1   : >> { %5407 = vmatpush.msk.msra.mxu2 %vm3921_vm5, %v6164_v0  ;;  %5375 = vmatpush.msk.msra.mxu0 %vm3809_vm7, %v6164_v0  ;;  %vm3976_vm13 = vcmp.eq.s32.totalorder %v9724_v63, %v6388_v14  ;;  %vm3919_vm14 = vcmp.eq.s32.totalorder %v9718_v55, %v6385_v13  ;;  %vm3807_vm15 = vcmp.eq.s32.totalorder %v9721_v61, %v6385_v13 }
 0x6b2   : >> { %5423 = vmatpush.msk.msra.mxu3 %vm3977_vm10, %v6164_v0  ;;  %5391 = vmatpush.msk.msra.mxu1 %vm3865_vm12, %v6164_v0  ;;  %vm3864_vm0 = vcmp.eq.s32.totalorder %v9727_v40, %v6388_v14  ;;  %vm3975_vm1 = vcmp.eq.s32.totalorder %v9724_v63, %v6385_v13  ;;  %vm3863_vm2 = vcmp.eq.s32.totalorder %v9727_v40, %v6385_v13 }
 0x6b3   : >> { %5408 = vmatpush.msk.msra.mxu2 %vm3920_vm9, %v6164_v0  ;;  %5376 = vmatpush.msk.msra.mxu0 %vm3808_vm11, %v6164_v0  ;;  %vm3918_vm3 = vcmp.eq.s32.totalorder %v9718_v55, %v6382_v12  ;;  %vm3806_vm4 = vcmp.eq.s32.totalorder %v9721_v61, %v6382_v12  ;;  %vm3974_vm5 = vcmp.eq.s32.totalorder %v9724_v63, %v6382_v12 }
 0x6b4   : >> { %5424 = vmatpush.msk.msra.mxu3 %vm3976_vm13, %v6164_v0  ;;  %5392 = vmatpush.msk.msra.mxu1 %vm3864_vm0, %v6164_v0  ;;  %vm3862_vm6 = vcmp.eq.s32.totalorder %v9727_v40, %v6382_v12  ;;  %vm3917_vm7 = vcmp.eq.s32.totalorder %v9718_v55, %v6379_v11  ;;  %vm3805_vm8 = vcmp.eq.s32.totalorder %v9721_v61, %v6379_v11 }
 0x6b5   : >> { %5409 = vmatpush.msk.msra.mxu2 %vm3919_vm14, %v6164_v0  ;;  %5377 = vmatpush.msk.msra.mxu0 %vm3807_vm15, %v6164_v0  ;;  %vm3973_vm9 = vcmp.eq.s32.totalorder %v9724_v63, %v6379_v11  ;;  %vm3861_vm10 = vcmp.eq.s32.totalorder %v9727_v40, %v6379_v11  ;;  %vm3916_vm11 = vcmp.eq.s32.totalorder %v9718_v55, %v6376_v10 }
 0x6b6   : >> { %5425 = vmatpush.msk.msra.mxu3 %vm3975_vm1, %v6164_v0  ;;  %5393 = vmatpush.msk.msra.mxu1 %vm3863_vm2, %v6164_v0  ;;  %vm3804_vm12 = vcmp.eq.s32.totalorder %v9721_v61, %v6376_v10  ;;  %vm3972_vm13 = vcmp.eq.s32.totalorder %v9724_v63, %v6376_v10  ;;  %vm3860_vm14 = vcmp.eq.s32.totalorder %v9727_v40, %v6376_v10 }
 0x6b7   : >> { %5410 = vmatpush.msk.msra.mxu2 %vm3918_vm3, %v6164_v0  ;;  %5378 = vmatpush.msk.msra.mxu0 %vm3806_vm4, %v6164_v0  ;;  %vm3915_vm15 = vcmp.eq.s32.totalorder %v9718_v55, %v6373_v9  ;;  %vm3803_vm0 = vcmp.eq.s32.totalorder %v9721_v61, %v6373_v9  ;;  %vm3971_vm1 = vcmp.eq.s32.totalorder %v9724_v63, %v6373_v9 }
 0x6b8   : >> { %5426 = vmatpush.msk.msra.mxu3 %vm3974_vm5, %v6164_v0  ;;  %5394 = vmatpush.msk.msra.mxu1 %vm3862_vm6, %v6164_v0  ;;  %vm3859_vm2 = vcmp.eq.s32.totalorder %v9727_v40, %v6373_v9  ;;  %vm3914_vm3 = vcmp.eq.s32.totalorder %v9718_v55, %v6370_v8  ;;  %vm3802_vm4 = vcmp.eq.s32.totalorder %v9721_v61, %v6370_v8 }
 0x6b9   : >> { %5411 = vmatpush.msk.msra.mxu2 %vm3917_vm7, %v6164_v0  ;;  %5379 = vmatpush.msk.msra.mxu0 %vm3805_vm8, %v6164_v0  ;;  %vm3970_vm5 = vcmp.eq.s32.totalorder %v9724_v63, %v6370_v8  ;;  %vm3858_vm6 = vcmp.eq.s32.totalorder %v9727_v40, %v6370_v8  ;;  %vm3913_vm7 = vcmp.eq.s32.totalorder %v9718_v55, %v6367_v7 }
 0x6ba   : >> { %5427 = vmatpush.msk.msra.mxu3 %vm3973_vm9, %v6164_v0  ;;  %5395 = vmatpush.msk.msra.mxu1 %vm3861_vm10, %v6164_v0  ;;  %vm3801_vm8 = vcmp.eq.s32.totalorder %v9721_v61, %v6367_v7  ;;  %vm3969_vm9 = vcmp.eq.s32.totalorder %v9724_v63, %v6367_v7  ;;  %vm3857_vm10 = vcmp.eq.s32.totalorder %v9727_v40, %v6367_v7 }
 0x6bb   : >> { %5412 = vmatpush.msk.msra.mxu2 %vm3916_vm11, %v6164_v0  ;;  %5380 = vmatpush.msk.msra.mxu0 %vm3804_vm12, %v6164_v0  ;;  %vm3912_vm11 = vcmp.eq.s32.totalorder %v9718_v55, %v6364_v6  ;;  %vm3800_vm12 = vcmp.eq.s32.totalorder %v9721_v61, %v6364_v6 }
 0x6bc   : >> { %5428 = vmatpush.msk.msra.mxu3 %vm3972_vm13, %v6164_v0  ;;  %5396 = vmatpush.msk.msra.mxu1 %vm3860_vm14, %v6164_v0  ;;  %vm3968_vm13 = vcmp.eq.s32.totalorder %v9724_v63, %v6364_v6  ;;  %vm3856_vm14 = vcmp.eq.s32.totalorder %v9727_v40, %v6364_v6 }
 0x6bd   : >> { %5413 = vmatpush.msk.msra.mxu2 %vm3915_vm15, %v6164_v0  ;;  %5381 = vmatpush.msk.msra.mxu0 %vm3803_vm0, %v6164_v0  ;;  %vm3911_vm15 = vcmp.eq.s32.totalorder %v9718_v55, %v6361_v5  ;;  %vm3799_vm0 = vcmp.eq.s32.totalorder %v9721_v61, %v6361_v5 }
 0x6be   : >> { %5429 = vmatpush.msk.msra.mxu3 %vm3971_vm1, %v6164_v0  ;;  %5397 = vmatpush.msk.msra.mxu1 %vm3859_vm2, %v6164_v0  ;;  %vm3967_vm1 = vcmp.eq.s32.totalorder %v9724_v63, %v6361_v5  ;;  %vm3855_vm2 = vcmp.eq.s32.totalorder %v9727_v40, %v6361_v5 }
 0x6bf   : >> { %5414 = vmatpush.msk.msra.mxu2 %vm3914_vm3, %v6164_v0  ;;  %5382 = vmatpush.msk.msra.mxu0 %vm3802_vm4, %v6164_v0  ;;  %vm3910_vm3 = vcmp.eq.s32.totalorder %v9718_v55, %v6358_v4  ;;  %vm3798_vm4 = vcmp.eq.s32.totalorder %v9721_v61, %v6358_v4 }
 0x6c0   : >> { %5430 = vmatpush.msk.msra.mxu3 %vm3970_vm5, %v6164_v0  ;;  %5398 = vmatpush.msk.msra.mxu1 %vm3858_vm6, %v6164_v0  ;;  %vm3966_vm5 = vcmp.eq.s32.totalorder %v9724_v63, %v6358_v4  ;;  %vm3854_vm6 = vcmp.eq.s32.totalorder %v9727_v40, %v6358_v4 }
 0x6c1   : >> { %5415 = vmatpush.msk.msra.mxu2 %vm3913_vm7, %v6164_v0  ;;  %5383 = vmatpush.msk.msra.mxu0 %vm3801_vm8, %v6164_v0  ;;  %vm3909_vm7 = vcmp.eq.s32.totalorder %v9718_v55, %v6355_v3  ;;  %vm3797_vm8 = vcmp.eq.s32.totalorder %v9721_v61, %v6355_v3 }
 0x6c2   : >> { %5431 = vmatpush.msk.msra.mxu3 %vm3969_vm9, %v6164_v0  ;;  %5399 = vmatpush.msk.msra.mxu1 %vm3857_vm10, %v6164_v0  ;;  %vm3965_vm9 = vcmp.eq.s32.totalorder %v9724_v63, %v6355_v3  ;;  %vm3853_vm10 = vcmp.eq.s32.totalorder %v9727_v40, %v6355_v3 }
 0x6c3   : >> { %5416 = vmatpush.msk.msra.mxu2 %vm3912_vm11, %v6164_v0  ;;  %5384 = vmatpush.msk.msra.mxu0 %vm3800_vm12, %v6164_v0  ;;  %vm3908_vm11 = vcmp.eq.s32.totalorder %v9718_v55, %v6352_v2  ;;  %vm3796_vm12 = vcmp.eq.s32.totalorder %v9721_v61, %v6352_v2 }
 0x6c4   : >> { %5432 = vmatpush.msk.msra.mxu3 %vm3968_vm13, %v6164_v0  ;;  %5400 = vmatpush.msk.msra.mxu1 %vm3856_vm14, %v6164_v0  ;;  %vm3964_vm13 = vcmp.eq.s32.totalorder %v9724_v63, %v6352_v2  ;;  %vm3852_vm14 = vcmp.eq.s32.totalorder %v9727_v40, %v6352_v2 }
 0x6c5   : >> { %5417 = vmatpush.msk.msra.mxu2 %vm3911_vm15, %v6164_v0  ;;  %5385 = vmatpush.msk.msra.mxu0 %vm3799_vm0, %v6164_v0  ;;  %vm3907_vm15 = vcmp.eq.s32.totalorder %v9718_v55, %v6343_v1  ;;  %vm3795_vm0 = vcmp.eq.s32.totalorder %v9721_v61, %v6343_v1 }
 0x6c6   : >> { %5433 = vmatpush.msk.msra.mxu3 %vm3967_vm1, %v6164_v0  ;;  %5401 = vmatpush.msk.msra.mxu1 %vm3855_vm2, %v6164_v0  ;;  %vm4146_vm1 = vcmp.eq.s32.totalorder %v9892_v17, %v6394_v16  ;;  %vm3963_vm2 = vcmp.eq.s32.totalorder %v9724_v63, %v6343_v1 }
 0x6c7   : >> { %5418 = vmatpush.msk.msra.mxu2 %vm3910_vm3, %v6164_v0  ;;  %5386 = vmatpush.msk.msra.mxu0 %vm3798_vm4, %v6164_v0  ;;  %vm4034_vm3 = vcmp.eq.s32.totalorder %v9901_v19, %v6394_v16  ;;  %vm4202_vm4 = vcmp.eq.s32.totalorder %v9904_v20, %v6394_v16 }
 0x6c8   : >> { %5434 = vmatpush.msk.msra.mxu3 %vm3966_vm5, %v6164_v0  ;;  %5402 = vmatpush.msk.msra.mxu1 %vm3854_vm6, %v6164_v0  ;;  %vm4145_vm5 = vcmp.eq.s32.totalorder %v9892_v17, %v6391_v15  ;;  %vm3851_vm6 = vcmp.eq.s32.totalorder %v9727_v40, %v6343_v1 }
 0x6c9   : >> { %5419 = vmatpush.msk.msra.mxu2 %vm3909_vm7, %v6164_v0  ;;  %5387 = vmatpush.msk.msra.mxu0 %vm3797_vm8, %v6164_v0  ;;  %vm4033_vm7 = vcmp.eq.s32.totalorder %v9901_v19, %v6391_v15  ;;  %vm4090_vm8 = vcmp.eq.s32.totalorder %v9919_v56, %v6394_v16 }
 0x6ca   : >> { %5435 = vmatpush.msk.msra.mxu3 %vm3965_vm9, %v6164_v0  ;;  %5403 = vmatpush.msk.msra.mxu1 %vm3853_vm10, %v6164_v0  ;;  %vm4144_vm9 = vcmp.eq.s32.totalorder %v9892_v17, %v6388_v14  ;;  %vm4201_vm10 = vcmp.eq.s32.totalorder %v9904_v20, %v6391_v15 }
 0x6cb   : >> { %5420 = vmatpush.msk.msra.mxu2 %vm3908_vm11, %v6164_v0  ;;  %5388 = vmatpush.msk.msra.mxu0 %vm3796_vm12, %v6164_v0  ;;  %vm4032_vm11 = vcmp.eq.s32.totalorder %v9901_v19, %v6388_v14  ;;  %vm4089_vm12 = vcmp.eq.s32.totalorder %v9919_v56, %v6391_v15 }
 0x6cc   : >> { %5436 = vmatpush.msk.msra.mxu3 %vm3964_vm13, %v6164_v0  ;;  %5404 = vmatpush.msk.msra.mxu1 %vm3852_vm14, %v6164_v0  ;;  %vm4143_vm13 = vcmp.eq.s32.totalorder %v9892_v17, %v6385_v13  ;;  %vm4200_vm14 = vcmp.eq.s32.totalorder %v9904_v20, %v6388_v14 }
 0x6cd   : >> { %5421 = vmatpush.msk.msra.mxu2 %vm3907_vm15, %v6164_v0  ;;  %5389 = vmatpush.msk.msra.mxu0 %vm3795_vm0, %v6164_v0  ;;  %vm4031_vm15 = vcmp.eq.s32.totalorder %v9901_v19, %v6385_v13  ;;  %vm4088_vm0 = vcmp.eq.s32.totalorder %v9919_v56, %v6388_v14 }
 0x6ce   : >> { %5437 = vmatpush.msk.msra.mxu3 %vm3963_vm2, %v6164_v0  ;;  %5405 = vmatpush.msk.msra.mxu1 %vm3851_vm6, %v6164_v0  ;;  %vm4199_vm2 = vcmp.eq.s32.totalorder %v9904_v20, %v6385_v13  ;;  %vm4198_vm6 = vcmp.eq.s32.totalorder %v9904_v20, %v6382_v12 }
 0x6cf   : >> { %5470 = vmatpush.msk.msrb.mxu2 %vm4146_vm1, %v6164_v0  ;;  %5438 = vmatpush.msk.msrb.mxu0 %vm4034_vm3, %v6164_v0  ;;  %vm4142_vm1 = vcmp.eq.s32.totalorder %v9892_v17, %v6382_v12  ;;  %vm4030_vm3 = vcmp.eq.s32.totalorder %v9901_v19, %v6382_v12 }
 0x6d0   : >> { %5486 = vmatpush.msk.msrb.mxu3 %vm4202_vm4, %v6164_v0  ;;  %5454 = vmatpush.msk.msrb.mxu1 %vm4090_vm8, %v6164_v0  ;;  %vm4087_vm4 = vcmp.eq.s32.totalorder %v9919_v56, %v6385_v13  ;;  %vm4086_vm8 = vcmp.eq.s32.totalorder %v9919_v56, %v6382_v12 }
 0x6d1   : >> { %5471 = vmatpush.msk.msrb.mxu2 %vm4145_vm5, %v6164_v0  ;;  %5439 = vmatpush.msk.msrb.mxu0 %vm4033_vm7, %v6164_v0  ;;  %vm4141_vm5 = vcmp.eq.s32.totalorder %v9892_v17, %v6379_v11  ;;  %vm4029_vm7 = vcmp.eq.s32.totalorder %v9901_v19, %v6379_v11 }
 0x6d2   : >> { %5487 = vmatpush.msk.msrb.mxu3 %vm4201_vm10, %v6164_v0  ;;  %5455 = vmatpush.msk.msrb.mxu1 %vm4089_vm12, %v6164_v0  ;;  %vm4197_vm10 = vcmp.eq.s32.totalorder %v9904_v20, %v6379_v11  ;;  %vm4085_vm12 = vcmp.eq.s32.totalorder %v9919_v56, %v6379_v11 }
 0x6d3   : >> { %5472 = vmatpush.msk.msrb.mxu2 %vm4144_vm9, %v6164_v0  ;;  %5440 = vmatpush.msk.msrb.mxu0 %vm4032_vm11, %v6164_v0  ;;  %vm4140_vm9 = vcmp.eq.s32.totalorder %v9892_v17, %v6376_v10  ;;  %vm4028_vm11 = vcmp.eq.s32.totalorder %v9901_v19, %v6376_v10 }
 0x6d4   : >> { %5488 = vmatpush.msk.msrb.mxu3 %vm4200_vm14, %v6164_v0  ;;  %5456 = vmatpush.msk.msrb.mxu1 %vm4088_vm0, %v6164_v0  ;;  %vm4196_vm14 = vcmp.eq.s32.totalorder %v9904_v20, %v6376_v10  ;;  %vm4084_vm0 = vcmp.eq.s32.totalorder %v9919_v56, %v6376_v10 }
 0x6d5   : >> { %5473 = vmatpush.msk.msrb.mxu2 %vm4143_vm13, %v6164_v0  ;;  %5441 = vmatpush.msk.msrb.mxu0 %vm4031_vm15, %v6164_v0  ;;  %vm4139_vm13 = vcmp.eq.s32.totalorder %v9892_v17, %v6373_v9  ;;  %vm4027_vm15 = vcmp.eq.s32.totalorder %v9901_v19, %v6373_v9 }
 0x6d6   : >> { %5489 = vmatpush.msk.msrb.mxu3 %vm4199_vm2, %v6164_v0  ;;  %5457 = vmatpush.msk.msrb.mxu1 %vm4087_vm4, %v6164_v0  ;;  %vm4195_vm2 = vcmp.eq.s32.totalorder %v9904_v20, %v6373_v9  ;;  %vm4083_vm4 = vcmp.eq.s32.totalorder %v9919_v56, %v6373_v9 }
 0x6d7   : >> { %5474 = vmatpush.msk.msrb.mxu2 %vm4142_vm1, %v6164_v0  ;;  %5442 = vmatpush.msk.msrb.mxu0 %vm4030_vm3, %v6164_v0  ;;  %vm4138_vm1 = vcmp.eq.s32.totalorder %v9892_v17, %v6370_v8  ;;  %vm4026_vm3 = vcmp.eq.s32.totalorder %v9901_v19, %v6370_v8 }
 0x6d8   : >> { %5490 = vmatpush.msk.msrb.mxu3 %vm4198_vm6, %v6164_v0  ;;  %5458 = vmatpush.msk.msrb.mxu1 %vm4086_vm8, %v6164_v0  ;;  %vm4194_vm6 = vcmp.eq.s32.totalorder %v9904_v20, %v6370_v8  ;;  %vm4082_vm8 = vcmp.eq.s32.totalorder %v9919_v56, %v6370_v8 }
 0x6d9   : >> { %5475 = vmatpush.msk.msrb.mxu2 %vm4141_vm5, %v6164_v0  ;;  %5443 = vmatpush.msk.msrb.mxu0 %vm4029_vm7, %v6164_v0  ;;  %vm4137_vm5 = vcmp.eq.s32.totalorder %v9892_v17, %v6367_v7  ;;  %vm4025_vm7 = vcmp.eq.s32.totalorder %v9901_v19, %v6367_v7 }
 0x6da   : >> { %5491 = vmatpush.msk.msrb.mxu3 %vm4197_vm10, %v6164_v0  ;;  %5459 = vmatpush.msk.msrb.mxu1 %vm4085_vm12, %v6164_v0  ;;  %vm4193_vm10 = vcmp.eq.s32.totalorder %v9904_v20, %v6367_v7  ;;  %vm4081_vm12 = vcmp.eq.s32.totalorder %v9919_v56, %v6367_v7 }
 0x6db   : >> { %5476 = vmatpush.msk.msrb.mxu2 %vm4140_vm9, %v6164_v0  ;;  %5444 = vmatpush.msk.msrb.mxu0 %vm4028_vm11, %v6164_v0  ;;  %vm4136_vm9 = vcmp.eq.s32.totalorder %v9892_v17, %v6364_v6  ;;  %vm4024_vm11 = vcmp.eq.s32.totalorder %v9901_v19, %v6364_v6 }
 0x6dc   : >> { %5492 = vmatpush.msk.msrb.mxu3 %vm4196_vm14, %v6164_v0  ;;  %5460 = vmatpush.msk.msrb.mxu1 %vm4084_vm0, %v6164_v0  ;;  %vm4192_vm14 = vcmp.eq.s32.totalorder %v9904_v20, %v6364_v6  ;;  %vm4080_vm0 = vcmp.eq.s32.totalorder %v9919_v56, %v6364_v6 }
 0x6dd   : >> { %5477 = vmatpush.msk.msrb.mxu2 %vm4139_vm13, %v6164_v0  ;;  %5445 = vmatpush.msk.msrb.mxu0 %vm4027_vm15, %v6164_v0  ;;  %vm4135_vm13 = vcmp.eq.s32.totalorder %v9892_v17, %v6361_v5  ;;  %vm4023_vm15 = vcmp.eq.s32.totalorder %v9901_v19, %v6361_v5 }
 0x6de   : >> { %5493 = vmatpush.msk.msrb.mxu3 %vm4195_vm2, %v6164_v0  ;;  %5461 = vmatpush.msk.msrb.mxu1 %vm4083_vm4, %v6164_v0  ;;  %vm4191_vm2 = vcmp.eq.s32.totalorder %v9904_v20, %v6361_v5  ;;  %vm4079_vm4 = vcmp.eq.s32.totalorder %v9919_v56, %v6361_v5 }
 0x6df   : >> { %5478 = vmatpush.msk.msrb.mxu2 %vm4138_vm1, %v6164_v0  ;;  %5446 = vmatpush.msk.msrb.mxu0 %vm4026_vm3, %v6164_v0  ;;  %vm4134_vm1 = vcmp.eq.s32.totalorder %v9892_v17, %v6358_v4  ;;  %vm4022_vm3 = vcmp.eq.s32.totalorder %v9901_v19, %v6358_v4 }
 0x6e0   : >> { %5494 = vmatpush.msk.msrb.mxu3 %vm4194_vm6, %v6164_v0  ;;  %5462 = vmatpush.msk.msrb.mxu1 %vm4082_vm8, %v6164_v0  ;;  %vm4190_vm6 = vcmp.eq.s32.totalorder %v9904_v20, %v6358_v4  ;;  %vm4078_vm8 = vcmp.eq.s32.totalorder %v9919_v56, %v6358_v4 }
 0x6e1   : >> { %5479 = vmatpush.msk.msrb.mxu2 %vm4137_vm5, %v6164_v0  ;;  %5447 = vmatpush.msk.msrb.mxu0 %vm4025_vm7, %v6164_v0  ;;  %vm4133_vm5 = vcmp.eq.s32.totalorder %v9892_v17, %v6355_v3  ;;  %vm4021_vm7 = vcmp.eq.s32.totalorder %v9901_v19, %v6355_v3 }
 0x6e2   : >> { %5495 = vmatpush.msk.msrb.mxu3 %vm4193_vm10, %v6164_v0  ;;  %5463 = vmatpush.msk.msrb.mxu1 %vm4081_vm12, %v6164_v0  ;;  %vm4189_vm10 = vcmp.eq.s32.totalorder %v9904_v20, %v6355_v3  ;;  %vm4077_vm12 = vcmp.eq.s32.totalorder %v9919_v56, %v6355_v3 }
 0x6e3   : >> { %5480 = vmatpush.msk.msrb.mxu2 %vm4136_vm9, %v6164_v0  ;;  %5448 = vmatpush.msk.msrb.mxu0 %vm4024_vm11, %v6164_v0  ;;  %vm4132_vm9 = vcmp.eq.s32.totalorder %v9892_v17, %v6352_v2  ;;  %vm4020_vm11 = vcmp.eq.s32.totalorder %v9901_v19, %v6352_v2 }
 0x6e4   : >> { %5496 = vmatpush.msk.msrb.mxu3 %vm4192_vm14, %v6164_v0  ;;  %3955 = vmatmul.f32.vlgmr.msra.gmra.mxu2 %v3790_v21  ;;  %vm4188_vm14 = vcmp.eq.s32.totalorder %v9904_v20, %v6352_v2 }
 0x6e5   : >> { %5481 = vmatpush.msk.msrb.mxu2 %vm4135_vm13, %v6164_v0  ;;  %5449 = vmatpush.msk.msrb.mxu0 %vm4023_vm15, %v6164_v0  ;;  %vm4131_vm13 = vcmp.eq.s32.totalorder %v9892_v17, %v6343_v1  ;;  %vm4019_vm15 = vcmp.eq.s32.totalorder %v9901_v19, %v6343_v1 }
 0x6e6   : >> { %5464 = vmatpush.msk.msrb.mxu1 %vm4080_vm0, %v6164_v0  ;;  %5497 = vmatpush.msk.msrb.mxu3 %vm4191_vm2, %v6164_v0  ;;  %vm4076_vm0 = vcmp.eq.s32.totalorder %v9919_v56, %v6352_v2  ;;  %vm4075_vm2 = vcmp.eq.s32.totalorder %v9919_v56, %v6343_v1 }
 0x6e7   : >> { %5482 = vmatpush.msk.msrb.mxu2 %vm4134_vm1, %v6164_v0  ;;  %3843 = vmatmul.f32.vlgmr.msra.gmra.mxu0 %v3790_v21  ;;  %vm4187_vm1 = vcmp.eq.s32.totalorder %v9904_v20, %v6343_v1 }
 0x6e8   : >> { %4011 = vmatmul.f32.vlgmr.msra.gmra.mxu3 %v3790_v21  ;;  %5450 = vmatpush.msk.msrb.mxu0 %vm4022_vm3, %v6164_v0 }
 0x6e9   : >> { %5465 = vmatpush.msk.msrb.mxu1 %vm4079_vm4, %v6164_v0  ;;  %5483 = vmatpush.msk.msrb.mxu2 %vm4133_vm5, %v6164_v0 }
 0x6ea   : >> { %5498 = vmatpush.msk.msrb.mxu3 %vm4190_vm6, %v6164_v0  ;;  %3899 = vmatmul.f32.vlgmr.msra.gmra.mxu1 %v3790_v21 }
 0x6eb   : >> { %5451 = vmatpush.msk.msrb.mxu0 %vm4021_vm7, %v6164_v0  ;;  %5466 = vmatpush.msk.msrb.mxu1 %vm4078_vm8, %v6164_v0 }
 0x6ec   : >> { %5484 = vmatpush.msk.msrb.mxu2 %vm4132_vm9, %v6164_v0  ;;  %5499 = vmatpush.msk.msrb.mxu3 %vm4189_vm10, %v6164_v0 }
 0x6ed   : >> { %5452 = vmatpush.msk.msrb.mxu0 %vm4020_vm11, %v6164_v0  ;;  %5467 = vmatpush.msk.msrb.mxu1 %vm4077_vm12, %v6164_v0 }
 0x6ee   : >> { %5485 = vmatpush.msk.msrb.mxu2 %vm4131_vm13, %v6164_v0  ;;  %5500 = vmatpush.msk.msrb.mxu3 %vm4188_vm14, %v6164_v0 }
 0x6ef   : >> { %4179 = vmatmul.f32.vlgmr.msrb.gmra.mxu2 %v3790_v21  ;;  %5453 = vmatpush.msk.msrb.mxu0 %vm4019_vm15, %v6164_v0 }
 0x6f0   : >> { %5468 = vmatpush.msk.msrb.mxu1 %vm4076_vm0, %v6164_v0  ;;  %5501 = vmatpush.msk.msrb.mxu3 %vm4187_vm1, %v6164_v0 }
 0x6f1   : >> { %4067 = vmatmul.f32.vlgmr.msrb.gmra.mxu0 %v3790_v21  ;;  %4235 = vmatmul.f32.vlgmr.msrb.gmra.mxu3 %v3790_v21 }
 0x6f2   : >> { %5469 = vmatpush.msk.msrb.mxu1 %vm4075_vm2, %v6164_v0 }
 0x6f3   : >> { %4123 = vmatmul.f32.vlgmr.msrb.gmra.mxu1 %v3790_v21 }
 0x764   : >> { %v3844_v52 = vpop.f32.mrf.mxu0 }
 0x765   : >> { %v3848_v23 = vmul.f32 %v3847_v58, %v3844_v52 }
 0x767   : >> { %v3849_v25 = vadd.f32 %v6140_v54, %v3848_v23  ;;  %v3900_v37 = vpop.f32.mrf.mxu1  ;;  %v3956_v33 = vpop.f32.mrf.mxu2 }
 0x768   : >> { %v3904_v38 = vmul.f32 %v3903_v22, %v3900_v37  ;;  %v3960_v44 = vmul.f32 %v3959_v24, %v3956_v33 }
 0x76a   : >> { %v3905_v35 = vadd.f32 %v3904_v38, %v3849_v25 }
 0x76b   : >> { %v4012_v36 = vpop.f32.mrf.mxu3 }
 0x76c   : >> { %v3961_v41 = vadd.f32 %v3960_v44, %v3905_v35  ;;  %v4016_v34 = vmul.f32 %v4015_v32, %v4012_v36 }
 0x76e   : >> { %v4017_v62 = vadd.f32 %v4016_v34, %v3961_v41  ;;  %v4068_v43 = vpop.f32.mrf.mxu0 }
 0x76f   : >> { %v4072_v18 = vmul.f32 %v4071_v39, %v4068_v43 }
 0x770   : >> { %v4124_v26 = vpop.f32.mrf.mxu1 }
 0x771   : >> { %v4073_v42 = vadd.f32 %v4072_v18, %v4017_v62  ;;  %v4128_v47 = vmul.f32 %v4127_v49, %v4124_v26 }
 0x772   : >> { %v4180_v29 = vpop.f32.mrf.mxu2 }
 0x773   : >> { %v4129_v50 = vadd.f32 %v4128_v47, %v4073_v42  ;;  %v4184_v45 = vmul.f32 %v4183_v46, %v4180_v29 }
 0x774   : >> { %v4236_v57 = vpop.f32.mrf.mxu3 }
 0x775   : >> { %v4185_v27 = vadd.f32 %v4184_v45, %v4129_v50  ;;  %v4240_v48 = vmul.f32 %v4239_v28, %v4236_v57  ;;  %3786 = sbr.rel (!%p3783_p7) target bundleno = 1704 (0x6a8), region = 236 }
 0x777   : >> { %v4241_v60 = vadd.f32 %v4240_v48, %v4185_v27  }
 0x779   : >> { %v10210_v54 = vmov %v4241_v60  ;;  %v10211_v59 = vmov (%p3783_p7), %v4241_v60 }
 0x77a PF: > { %4242 = vst [vmem:[%s6530_s23 + $0x18] sm:$0xff] %v6148_v59  ;;  %s5509_s15 = sshll.u32 %s6217_s25, 5  ;;  %s4257_s8 = sshll.u32 %s6530_s23, 4  ;;  %v6148_v59 = vphi %v10209_v59, %v10211_v59   ;;  %s4258_s8 = int_to_ptr.vmem [resolvable:$true] %s4257_s8 }
 0x77b   : > { %s4255_s27 = scalar_lea.hbm %s10183_s4, %s5509_s15  ;;  %s4244_s29 = scalar_lea.sflag [#allocation6], %s6314_s24 }
 0x77c   : > { %s4259_s30 = sshll.u32 %s4255_s27, 4  ;;  %s5900_s25 = scalar_lea.hbm %s10183_s4, 64  ;;  %s4260_s30 = int_to_ptr.hbm [resolvable:$true] %s4259_s30 }
 0x77d   : > { %s5894_s5 = sshra.s32 %s4260_s30, 4  ;;  %s5895_s5 = int_to_ptr.hbm [resolvable:$true] %s5894_s5 }
 0x77e   : > { %s5896_s18 = scalar_lea.hbm %s5895_s5, 32  ;;  %p5901_p10 = scmp.lt.s32.totalorder %s5895_s5, %s10183_s4 }
 0x77f   : > { %p5897_p9 = scmp.ne.s32.totalorder %s5895_s5, %s5896_s18  ;;  %p5902_p11 = scmp.lt.s32.totalorder %s5900_s25, %s5896_s18 }
 0x781   : > { %p5898_p8 = pnand %p5897_p9, %p6257_p0  ;;  %p5903_p12 = por %p5902_p11, %p5901_p10 }
 0x783   : > { %p5899_p5 = pneg %p5898_p8 }
 0x785   : > { %p5904_p2 = pnand %p5903_p12, %p5899_p5 }
 0x787   : > { %5907 = shalt.err (!%p5904_p2)
}
 0x788   : > { %5518 = dma.vmem_to_hbm [thread:$0]  (%p6257_p0), %s4258_s8, 512, %s4260_s30, %s4244_s29  }
 0x789 PF: > { %s4271_s24 = sand.u32 1, %s6040_s19   ;;  %p10212_p4 = scmp.ge.s32.totalorder %s6052_s22, 2 }
 0x78a   : > { %s4272_s23 = scalar_lea.sflag [#allocation6], %s4271_s24 }
 0x78b   : > { %p5532_p1 = pnand %p10212_p4, %p6265_p6 }
 0x78d   : > { %p5533_p3 = pneg %p5532_p1 }
 0x78f   : > { %6035 = dma.done.wait (%p5533_p3), %s4272_s23, 512  }
 0x790   : > { %6037 = vsyncadd (%p5533_p3), %s4272_s23, 4294966784  ;;  %p28_p13 = scmp.ge.s32.totalorder %s6233_s6, 4   ;;  %s10213_s19 = smov %s6044_s20 }
 0x791   : > { %s10214_s20 = smov %s6048_s21  ;;  %s10215_s21 = smov %s6245_s9 }
 0x792   : > { %s10216_s22 = smov %s6233_s6  ;;  %30 = sbr.rel (!%p28_p13) target bundleno = 13 (0xd), region = 247 }
 0x797   :  { %4278 = vsyncpa [#allocation5], 1 }
 0x798   :  { %4280 = vsyncpa [#allocation5 + $0x1], 1 }
 0x799   :  { %4281 = vsyncpa [#allocation8], 1 }
 0x79a   :  { %4283 = vsyncpa [#allocation8 + $0x1], 1 }
 0x79b   :  { %4284 = vsyncpa [#allocation6], 1 }
 0x79c   :  { %4286 = vsyncpa [#allocation6 + $0x1], 1 }

</bundles_post_ra>
